<compile_context>
chip_gen: v7x
topology: tpu7x:2x2x1
jax: 0.10.0
libtpu: 0.0.40
codegen_flags: <defaults>
</compile_context>

<pallas_src>
import functools
import math

import jax
import jax.numpy as jnp
from jax.experimental import pallas as pl
from jax.experimental.pallas import tpu as pltpu


def _cdiv(a, b):
    return -(-a // b)


def _round_up(a, b):
    return _cdiv(a, b) * b


def _pick_vmem_limit():
    """Generation-aware scoped-VMEM cap (~3/8 of physical VMEM)."""
    cap = 128 * 1024 * 1024
    try:
        info = pltpu.get_tpu_info()
        for attr in ("vmem_capacity_bytes", "vmem_size_bytes", "vmem_bytes"):
            v = getattr(info, attr, None)
            if isinstance(v, int) and v > 0:
                cap = v
                break
    except Exception:
        pass
    return max(16 * 1024 * 1024, min(cap * 3 // 8, 96 * 1024 * 1024))


_VMEM_LIMIT = _pick_vmem_limit()
_TM_DEFAULT = 2048 if _VMEM_LIMIT >= 40 * 1024 * 1024 else 1024  # v5e/v6e vs v7x
_TK_DEFAULT = 512
_W_RESIDENT_MAX = 4 * 1024 * 1024      # keep whole weight in VMEM if <= this (bf16 bytes)
_IN_FUSED_MAX = 2048                   # fused IN+PReLU when spatial <= this
_IN_S_TILE = 2048                      # spatial tile of the two-pass IN path


# ----------------------------------------------------------------------------
# Pallas kernels
# ----------------------------------------------------------------------------
def _matmul_bias_kernel(w_ref, a_ref, b_ref, o_ref, acc_ref, *,
                        block_k, n_k, resident_w):
    """(Cout, TK) @ (TK, TM), K as reduction grid axis, bias+cast in epilogue."""
    k = pl.program_id(2)

    @pl.when(k == 0)
    def _():
        acc_ref[...] = jnp.zeros_like(acc_ref)

    if resident_w and n_k > 1:
        # Whole weight resident in VMEM; slice the current K tile in-kernel.
        w = w_ref[:, pl.ds(pl.multiple_of(k * block_k, block_k), block_k)]
    else:
        w = w_ref[...]

    acc_ref[...] += jnp.dot(w, a_ref[...], preferred_element_type=jnp.float32)

    @pl.when(k == n_k - 1)
    def _():
        o_ref[...] = (acc_ref[...] + b_ref[...]).astype(o_ref.dtype)


def matmul_bias_cf(w, a, b, *, tm=None, tk=_TK_DEFAULT, out_dtype=jnp.bfloat16):
    """Channels-first conv matmul.

    w: (Cout, K) weights, a: (N, K, M) bf16 patches, b: (Cout,) f32 bias.
    Returns (N, Cout, M) in `out_dtype`.  Output lane dim is the large spatial
    M (lane-dense stores), K is an 'arbitrary' reduction axis with an f32 VMEM
    accumulator, MXU operands are bf16.
    """
    if tm is None:
        tm = _TM_DEFAULT
    cout, kdim = w.shape
    n, _, m = a.shape
    cout_p = _round_up(cout, 8)                       # no sub-(8,128) output vregs

    mp = _round_up(m, 128)
    tm_eff = min(tm, mp)
    # Megacore / 2-TC: make sure there are >= 2 "parallel" programs when possible.
    if n * _cdiv(mp, tm_eff) < 2 and mp >= 256:
        tm_eff = _round_up(_cdiv(mp, 2), 128)
    mp = _cdiv(mp, tm_eff) * tm_eff

    if kdim <= tk:
        tk_eff, kp = kdim, kdim
    else:
        tk_eff, kp = tk, _round_up(kdim, tk)

    a_p = a.astype(jnp.bfloat16)
    if kp != kdim or mp != m:
        a_p = jnp.pad(a_p, ((0, 0), (0, kp - kdim), (0, mp - m)))
    w_p = w.astype(jnp.bfloat16)
    if kp != kdim or cout_p != cout:
        w_p = jnp.pad(w_p, ((0, cout_p - cout), (0, kp - kdim)))
    b_p = b.astype(jnp.float32)
    if cout_p != cout:
        b_p = jnp.pad(b_p, (0, cout_p - cout))
    b2 = b_p.reshape(cout_p, 1)

    grid_k = kp // tk_eff
    grid = (n, mp // tm_eff, grid_k)

    resident_w = (cout_p * kp * 2) <= _W_RESIDENT_MAX
    if resident_w:
        w_spec = pl.BlockSpec((cout_p, kp), lambda ni, mi, ki: (0, 0))
    else:
        w_spec = pl.BlockSpec((cout_p, tk_eff), lambda ni, mi, ki: (0, ki))

    kernel = functools.partial(_matmul_bias_kernel, block_k=tk_eff, n_k=grid_k,
                               resident_w=resident_w)

    out = pl.pallas_call(
        kernel,
        out_shape=jax.ShapeDtypeStruct((n, cout_p, mp), out_dtype),
        grid=grid,
        in_specs=[
            w_spec,
            pl.BlockSpec((None, tk_eff, tm_eff), lambda ni, mi, ki: (ni, ki, mi)),
            pl.BlockSpec((cout_p, 1), lambda ni, mi, ki: (0, 0)),
        ],
        out_specs=pl.BlockSpec((None, cout_p, tm_eff),
                               lambda ni, mi, ki: (ni, 0, mi)),
        scratch_shapes=[pltpu.VMEM((cout_p, tm_eff), jnp.float32)],
        compiler_params=pltpu.CompilerParams(
            dimension_semantics=("parallel", "parallel", "arbitrary"),
            vmem_limit_bytes=_VMEM_LIMIT),
    )(w_p, a_p, b2)

    if cout_p != cout:
        out = out[:, :cout, :]
    if mp != m:
        out = out[:, :, :m]
    return out


def _in_fused_kernel(x_ref, a_ref, o_ref, *, inv_count):
    """Fused InstanceNorm (affine=False) + single-parameter PReLU (small s)."""
    x = x_ref[...].astype(jnp.float32)
    mean = jnp.sum(x, axis=-1, keepdims=True) * inv_count
    var = jnp.maximum(jnp.sum(x * x, axis=-1, keepdims=True) * inv_count
                      - mean * mean, 0.0)
    y = (x - mean) * jax.lax.rsqrt(var + 1e-5)
    a = a_ref[0, 0]
    o_ref[...] = jnp.where(y >= 0.0, y, a * y).astype(o_ref.dtype)


def _in_stats_kernel(x_ref, mean_ref, rstd_ref, sum_ref, sq_ref, *, inv_count):
    """Pass 1 of tiled InstanceNorm: per-row sum / sum-of-squares reduction."""
    j = pl.program_id(1)

    @pl.when(j == 0)
    def _():
        sum_ref[...] = jnp.zeros_like(sum_ref)
        sq_ref[...] = jnp.zeros_like(sq_ref)

    x = x_ref[...].astype(jnp.float32)
    sum_ref[...] += jnp.sum(x, axis=-1, keepdims=True)
    sq_ref[...] += jnp.sum(x * x, axis=-1, keepdims=True)

    @pl.when(j == pl.num_programs(1) - 1)
    def _():
        mean = sum_ref[...] * inv_count
        var = jnp.maximum(sq_ref[...] * inv_count - mean * mean, 0.0)
        mean_ref[...] = mean
        rstd_ref[...] = jax.lax.rsqrt(var + 1e-5)


def _in_apply_kernel(x_ref, mean_ref, rstd_ref, a_ref, o_ref):
    """Pass 2 of tiled InstanceNorm: normalize + PReLU per spatial tile."""
    x = x_ref[...].astype(jnp.float32)
    y = (x - mean_ref[...]) * rstd_ref[...]
    a = a_ref[0, 0]
    o_ref[...] = jnp.where(y >= 0.0, y, a * y).astype(o_ref.dtype)


def instance_norm_prelu(x5, alpha, out_dtype=jnp.bfloat16):
    """x5: (N, C, D, H, W). Per-(N,C) normalization over spatial, then PReLU."""
    n, c, d, h, w = x5.shape
    s = d * h * w
    r = n * c
    x2 = x5.reshape(r, s)                               # matmul-output layout: free view
    a2 = jnp.reshape(alpha, (1, 1)).astype(jnp.float32)

    tr = r
    for cand in (64, 32, 16, 8):
        if r % cand == 0:
            tr = cand
            break

    if s <= _IN_FUSED_MAX:
        out = pl.pallas_call(
            functools.partial(_in_fused_kernel, inv_count=1.0 / s),
            out_shape=jax.ShapeDtypeStruct((r, s), out_dtype),
            grid=(r // tr,),
            in_specs=[pl.BlockSpec((tr, s), lambda i: (i, 0)),
                      pl.BlockSpec((1, 1), lambda i: (0, 0))],
            out_specs=pl.BlockSpec((tr, s), lambda i: (i, 0)),
            compiler_params=pltpu.CompilerParams(
                dimension_semantics=("parallel",),
                vmem_limit_bytes=_VMEM_LIMIT),
        )(x2, a2)
        return out.reshape(n, c, d, h, w)

    # Tiled two-pass path: stats reduction over spatial tiles, then normalize.
    st = min(_IN_S_TILE, _round_up(s, 128))
    sp = _cdiv(s, st) * st
    x2p = x2 if sp == s else jnp.pad(x2, ((0, 0), (0, sp - s)))  # zero pad is stats-exact
    grid = (r // tr, sp // st)

    mean, rstd = pl.pallas_call(
        functools.partial(_in_stats_kernel, inv_count=1.0 / s),
        out_shape=(jax.ShapeDtypeStruct((r, 1), jnp.float32),
                   jax.ShapeDtypeStruct((r, 1), jnp.float32)),
        grid=grid,
        in_specs=[pl.BlockSpec((tr, st), lambda i, j: (i, j))],
        out_specs=(pl.BlockSpec((tr, 1), lambda i, j: (i, 0)),
                   pl.BlockSpec((tr, 1), lambda i, j: (i, 0))),
        scratch_shapes=[pltpu.VMEM((tr, 1), jnp.float32),
                        pltpu.VMEM((tr, 1), jnp.float32)],
        compiler_params=pltpu.CompilerParams(
            dimension_semantics=("parallel", "arbitrary"),
            vmem_limit_bytes=_VMEM_LIMIT),
    )(x2p)

    out = pl.pallas_call(
        _in_apply_kernel,
        out_shape=jax.ShapeDtypeStruct((r, sp), out_dtype),
        grid=grid,
        in_specs=[pl.BlockSpec((tr, st), lambda i, j: (i, j)),
                  pl.BlockSpec((tr, 1), lambda i, j: (i, 0)),
                  pl.BlockSpec((tr, 1), lambda i, j: (i, 0)),
                  pl.BlockSpec((1, 1), lambda i, j: (0, 0))],
        out_specs=pl.BlockSpec((tr, st), lambda i, j: (i, j)),
        compiler_params=pltpu.CompilerParams(
            dimension_semantics=("parallel", "parallel"),
            vmem_limit_bytes=_VMEM_LIMIT),
    )(x2p, mean, rstd, a2)
    if sp != s:
        out = out[:, :s]
    return out.reshape(n, c, d, h, w)


# ----------------------------------------------------------------------------
# Conv helpers (channels-first patch glue in JAX, matmul in Pallas)
# ----------------------------------------------------------------------------
def _conv_matmul(parts, w_r3, b_rows, offsets, stride, out_spatial, pad, out_dtype):
    """Generic tap-list conv as one channels-first matmul.

    parts: list of (N, Cin_p, D, H, W) inputs (skip-connection concat is never
      materialized -- each part becomes a range of the K reduction axis).
    w_r3: (R, Cin_total, T) weights, tap index fastest (same order as offsets).
    offsets: list of T (oz, oy, ox) window origins over the padded input.
    Returns (N, R, Do, Ho, Wo) in out_dtype.
    """
    n = parts[0].shape[0]
    do, ho, wo = out_spatial
    t = len(offsets)
    s = stride
    lo, hi = pad
    a_parts, w_parts, c0 = [], [], 0
    for xin in parts:
        cin_p = xin.shape[1]
        xq = xin
        if lo or hi:
            xq = jnp.pad(xq, ((0, 0), (0, 0), (lo, hi), (lo, hi), (lo, hi)))
        xq = xq.astype(jnp.bfloat16)                   # bf16 MXU operand
        slabs = [xq[:, :,
                    oz:oz + (do - 1) * s + 1:s,
                    oy:oy + (ho - 1) * s + 1:s,
                    ox:ox + (wo - 1) * s + 1:s] for (oz, oy, ox) in offsets]
        a_parts.append(jnp.stack(slabs, axis=2).reshape(n, cin_p * t, do * ho * wo))
        w_parts.append(w_r3[:, c0:c0 + cin_p, :].reshape(w_r3.shape[0], cin_p * t))
        c0 += cin_p
    a = a_parts[0] if len(a_parts) == 1 else jnp.concatenate(a_parts, axis=1)
    w_mat = w_parts[0] if len(w_parts) == 1 else jnp.concatenate(w_parts, axis=1)
    out = matmul_bias_cf(w_mat, a, b_rows, out_dtype=out_dtype)
    return out.reshape(n, w_r3.shape[0], do, ho, wo)


def conv3d(x, w, b, stride=1, padding=1, out_dtype=jnp.bfloat16):
    """x: tensor or list of tensors (N, Cin_p, D, H, W); w: (Cout, Cin, k, k, k)."""
    parts = list(x) if isinstance(x, (list, tuple)) else [x]
    d, h, wd = parts[0].shape[2:]
    cout, cin_total, k = w.shape[:3]
    p = padding
    do = (d + 2 * p - k) // stride + 1
    ho = (h + 2 * p - k) // stride + 1
    wo = (wd + 2 * p - k) // stride + 1
    offsets = [(kz, ky, kx) for kz in range(k) for ky in range(k) for kx in range(k)]
    w_r3 = w.reshape(cout, cin_total, k ** 3)
    return _conv_matmul(parts, w_r3, b, offsets, stride, (do, ho, wo), (p, p),
                        out_dtype)


# Per (output-parity, input-offset) -> kernel tap for stride-2, k=3, pad=1, op=1:
#   even output 2m: tap 1 reads input m (offset 0)
#   odd output 2m+1: tap 0 reads input m+1 (offset 1), tap 2 reads input m (offset 0)
def _ct_tap(parity, off):
    return {(0, 0): 1, (1, 0): 2, (1, 1): 0}.get((parity, off), None)


def conv_transpose3d(x, w, b, stride=2, padding=1, output_padding=1,
                     out_dtype=jnp.bfloat16):
    """Sub-pixel decomposition fused into ONE matmul.

    All 8 output phases are folded into the row dimension (Cout*8 rows) and the
    patch tensor uses only the 8 distinct input offsets {0,1}^3 (not 27 taps).
    w: (Cin, Cout, 3, 3, 3) -- PyTorch ConvTranspose3d layout.
    """
    assert stride == 2 and padding == 1 and output_padding == 1 and w.shape[2] == 3
    parts = list(x) if isinstance(x, (list, tuple)) else [x]
    n = parts[0].shape[0]
    d, h, wd = parts[0].shape[2:]
    cin_total, cout = w.shape[:2]

    offsets = [(a_, b_, c_) for a_ in (0, 1) for b_ in (0, 1) for c_ in (0, 1)]
    # Unified weight: W_all[co*8 + q, ci, o] (phase q, offset o, zero if no tap).
    blocks = []
    for (qz, qy, qx) in offsets:                        # phases
        row = []
        for (oz, oy, ox) in offsets:                    # input offsets
            kz, ky, kx = _ct_tap(qz, oz), _ct_tap(qy, oy), _ct_tap(qx, ox)
            if kz is None or ky is None or kx is None:
                row.append(jnp.zeros((cin_total, cout), w.dtype))
            else:
                row.append(w[:, :, kz, ky, kx])
        blocks.append(jnp.stack(row, axis=0))           # (8o, cin, cout)
    w_q_o = jnp.stack(blocks, axis=0)                   # (8q, 8o, cin, cout)
    w_r3 = jnp.transpose(w_q_o, (3, 0, 2, 1)).reshape(cout * 8, cin_total, 8)
    b_rows = jnp.repeat(b, 8)

    # One zero voxel of high-side padding so "input index m+1" is always valid.
    y = _conv_matmul(parts, w_r3, b_rows, offsets, 1, (d, h, wd), (0, 1), out_dtype)

    # De-interleave the 8 phases (bf16, single pass).
    y = y.reshape(n, cout, 2, 2, 2, d, h, wd)
    y = jnp.transpose(y, (0, 1, 5, 2, 6, 3, 7, 4)).reshape(n, cout, 2 * d, 2 * h, 2 * wd)
    return y


# ----------------------------------------------------------------------------
# Parameter init (deterministic, synthetic) + module application
# ----------------------------------------------------------------------------
class KeyGen:
    def __init__(self, key):
        self.key = key

    def __call__(self):
        self.key, sub = jax.random.split(self.key)
        return sub


def _init_conv_wb(kg, cin, cout, k, transposed=False):
    shape = (cin, cout, k, k, k) if transposed else (cout, cin, k, k, k)
    w = jax.random.normal(kg(), shape, jnp.float32) / math.sqrt(cin * k ** 3)
    b = jax.random.normal(kg(), (cout,), jnp.float32) * 0.01
    return w, b


def init_convolution(kg, cin, cout, stride, conv_only=False, transposed=False):
    w, b = _init_conv_wb(kg, cin, cout, 3, transposed)
    p = {"w": w, "b": b, "stride": stride,
         "transposed": transposed, "conv_only": conv_only}
    if not conv_only:
        p["alpha"] = jnp.array(0.25, jnp.float32)        # nn.PReLU default init
    return p


def apply_convolution(p, x):
    if p["transposed"]:
        y = conv_transpose3d(x, p["w"], p["b"], stride=p["stride"],
                             padding=1, output_padding=p["stride"] - 1)
    else:
        y = conv3d(x, p["w"], p["b"], stride=p["stride"], padding=1)
    if not p["conv_only"]:                               # ADN "NDA", dropout=0
        y = instance_norm_prelu(y, p["alpha"])
    return y


def init_residual_unit(kg, cin, cout, stride, subunits, last_conv_only=False):
    units = []
    sc, ss = cin, stride
    for su in range(subunits):
        co = last_conv_only and (su == subunits - 1)
        units.append(init_convolution(kg, sc, cout, ss, conv_only=co))
        sc, ss = cout, 1
    ru = {"units": units, "res": None}
    if stride != 1 or cin != cout:
        rk = 3 if stride != 1 else 1                     # 1x1 conv when only changing channels
        rw, rb = _init_conv_wb(kg, cin, cout, rk)
        ru["res"] = {"w": rw, "b": rb, "stride": stride, "k": rk}
    return ru


def apply_residual_unit(p, x):
    if p["res"] is None:
        res = x
    else:
        r = p["res"]
        res = conv3d(x, r["w"], r["b"], stride=r["stride"], padding=(r["k"] - 1) // 2)
    cx = x
    for u in p["units"]:
        cx = apply_convolution(u, cx)
    return cx + res


def init_up(kg, cin, cout, stride, is_top):
    convt = init_convolution(kg, cin, cout, stride, conv_only=False, transposed=True)
    ru = init_residual_unit(kg, cout, cout, 1, 1, last_conv_only=is_top)
    return {"convt": convt, "ru": ru}


def apply_up(p, x):
    return apply_residual_unit(p["ru"], apply_convolution(p["convt"], x))


def init_generator(key, channels_img, features_g):
    kg = KeyGen(key)
    c, f = channels_img, features_g
    return {
        "down0": init_residual_unit(kg, c, f, 2, 2),
        "down1": init_residual_unit(kg, f, 2 * f, 2, 2),
        "down2": init_residual_unit(kg, 2 * f, 4 * f, 2, 2),
        "down3": init_residual_unit(kg, 4 * f, 8 * f, 2, 2),
        "bottom": init_residual_unit(kg, 8 * f, 16 * f, 1, 2),
        "up3": init_up(kg, 24 * f, 4 * f, 2, False),
        "up2": init_up(kg, 8 * f, 2 * f, 2, False),
        "up1": init_up(kg, 4 * f, f, 2, False),
        "up0": init_up(kg, 2 * f, c, 2, True),
    }


def generator_forward(p, x):
    # Skip connections are passed as LISTS (concat is folded into the consumer
    # conv's K reduction axis, never materialized in HBM).
    d0 = apply_residual_unit(p["down0"], x)                       # (N,  f, D/2)
    d1 = apply_residual_unit(p["down1"], d0)                      # (N, 2f, D/4)
    d2 = apply_residual_unit(p["down2"], d1)                      # (N, 4f, D/8)
    d3 = apply_residual_unit(p["down3"], d2)                      # (N, 8f, D/16)
    bt = apply_residual_unit(p["bottom"], d3)                     # (N,16f, D/16)
    u3 = apply_up(p["up3"], [d3, bt])                             # (N, 4f, D/8)
    u2 = apply_up(p["up2"], [d2, u3])                             # (N, 2f, D/4)
    u1 = apply_up(p["up1"], [d1, u2])                             # (N,  f, D/2)
    u0 = apply_up(p["up0"], [d0, u1])                             # (N,  C, D)
    return u0.astype(jnp.float32)


# ----------------------------------------------------------------------------
if __name__ == "__main__":
    channels_img, features_g = 2, 4
    n, sp = 2, 16                     # spatial must be divisible by 2^4

    key = jax.random.PRNGKey(0)
    kparams, kx = jax.random.split(key)
    params = init_generator(kparams, channels_img, features_g)
    x = jax.random.normal(kx, (n, channels_img, sp, sp, sp), jnp.float32)

    # TODO(synk): params are closed over as compile-time constants (fine at this
    # size); at real model sizes pass the weight arrays as traced jit arguments.
    fwd = jax.jit(lambda inp: generator_forward(params, inp))

    y = jax.block_until_ready(fwd(x))
    assert y.shape == x.shape, (y.shape, x.shape)
    assert bool(jnp.all(jnp.isfinite(y)))
    print("KERNEL_OK")
</pallas_src>

<mosaic_0001>
module attributes {stable_mosaic.version = 11 : i64} {
  func.func @_matmul_bias_kernel(%arg0: i32, %arg1: i32, %arg2: i32, %arg3: memref<8x54xbf16, #tpu.memory_space<vmem>>, %arg4: memref<1x54x512xbf16, #tpu.memory_space<vmem>>, %arg5: memref<8x1xf32, #tpu.memory_space<vmem>>, %arg6: memref<1x8x512xbf16, #tpu.memory_space<vmem>>, %arg7: memref<8x512xf32, #tpu.memory_space<vmem>>) attributes {dimension_semantics = [#tpu.dimension_semantics<parallel>, #tpu.dimension_semantics<parallel>, #tpu.dimension_semantics<arbitrary>], iteration_bounds = array<i64: 2, 1, 1>, scalar_prefetch = 0 : i64, scratch_operands = 1 : i64, tpu.core_type = #tpu.core_type<tc>, window_params = [{pipeline_mode = #tpu.pipeline_mode<synchronous>, transform_indices = @transform_0, window_bounds = array<i64: 8, 54>}, {transform_indices = @transform_1, window_bounds = array<i64: 1, 54, 512>}, {pipeline_mode = #tpu.pipeline_mode<synchronous>, transform_indices = @transform_2, window_bounds = array<i64: 8, 1>}, {transform_indices = @transform_3, window_bounds = array<i64: 1, 8, 512>}]} {
    %c0_i32 = arith.constant 0 : i32
    %0 = arith.cmpi eq, %arg2, %c0_i32 : i32
    %1 = arith.extui %0 : i1 to i32
    %c0_i32_0 = arith.constant 0 : i32
    %2 = arith.cmpi ne, %1, %c0_i32_0 : i32
    scf.if %2 {
      %cst_11 = arith.constant 0.000000e+00 : f32
      %13 = vector.broadcast %cst_11 : f32 to vector<8x512xf32>
      %c0_12 = arith.constant 0 : index
      %c0_13 = arith.constant 0 : index
      %14 = vector.load %arg7[%c0_12, %c0_13] : memref<8x512xf32, #tpu.memory_space<vmem>>, vector<8x512xf32>
      tpu.vector_store %arg7[%c0_12, %c0_13], %13 {strides = array<i32>} : memref<8x512xf32, #tpu.memory_space<vmem>>, vector<8x512xf32>,
    } else {
    }
    %c0 = arith.constant 0 : index
    %c0_1 = arith.constant 0 : index
    %3 = vector.load %arg3[%c0, %c0_1] : memref<8x54xbf16, #tpu.memory_space<vmem>>, vector<8x54xbf16>
    %c0_2 = arith.constant 0 : index
    %c0_3 = arith.constant 0 : index
    %4 = vector.load %arg7[%c0_2, %c0_3] : memref<8x512xf32, #tpu.memory_space<vmem>>, vector<8x512xf32>
    %c0_4 = arith.constant 0 : index
    %c0_5 = arith.constant 0 : index
    %c0_6 = arith.constant 0 : index
    %5 = vector.load %arg4[%c0_4, %c0_5, %c0_6] : memref<1x54x512xbf16, #tpu.memory_space<vmem>>, vector<1x54x512xbf16>
    %6 = vector.shape_cast %5 : vector<1x54x512xbf16> to vector<54x512xbf16>
    %cst = arith.constant dense<0.000000e+00> : vector<8x512xf32>
    %7 = tpu.matmul %3, %6, %cst {dimension_numbers = #tpu.dot_dimension_numbers<[1], [0], [0], [1], [0, 0, 1, 1], [], []>} : vector<8x54xbf16>, vector<54x512xbf16>, vector<8x512xf32> -> vector<8x512xf32>
    %8 = arith.addf %4, %7 : vector<8x512xf32>
    %c0_7 = arith.constant 0 : index
    %c0_8 = arith.constant 0 : index
    %9 = vector.load %arg7[%c0_7, %c0_8] : memref<8x512xf32, #tpu.memory_space<vmem>>, vector<8x512xf32>
    tpu.vector_store %arg7[%c0_7, %c0_8], %8 {strides = array<i32>} : memref<8x512xf32, #tpu.memory_space<vmem>>, vector<8x512xf32>,
    %c0_i32_9 = arith.constant 0 : i32
    %10 = arith.cmpi eq, %arg2, %c0_i32_9 : i32
    %11 = arith.extui %10 : i1 to i32
    %c0_i32_10 = arith.constant 0 : i32
    %12 = arith.cmpi ne, %11, %c0_i32_10 : i32
    scf.if %12 {
      %c0_11 = arith.constant 0 : index
      %c0_12 = arith.constant 0 : index
      %13 = vector.load %arg7[%c0_11, %c0_12] : memref<8x512xf32, #tpu.memory_space<vmem>>, vector<8x512xf32>
      %c0_13 = arith.constant 0 : index
      %c0_14 = arith.constant 0 : index
      %14 = vector.load %arg5[%c0_13, %c0_14] : memref<8x1xf32, #tpu.memory_space<vmem>>, vector<8x1xf32>
      %15 = vector.broadcast %14 : vector<8x1xf32> to vector<8x512xf32>
      %16 = arith.addf %13, %15 : vector<8x512xf32>
      %17 = arith.truncf %16 : vector<8x512xf32> to vector<8x512xbf16>
      %c0_15 = arith.constant 0 : index
      %c0_16 = arith.constant 0 : index
      %c0_17 = arith.constant 0 : index
      %18 = vector.load %arg6[%c0_15, %c0_16, %c0_17] : memref<1x8x512xbf16, #tpu.memory_space<vmem>>, vector<1x8x512xbf16>
      %19 = vector.shape_cast %18 : vector<1x8x512xbf16> to vector<8x512xbf16>
      %20 = vector.shape_cast %17 : vector<8x512xbf16> to vector<1x8x512xbf16>
      tpu.vector_store %arg6[%c0_15, %c0_16, %c0_17], %20 {strides = array<i32>} : memref<1x8x512xbf16, #tpu.memory_space<vmem>>, vector<1x8x512xbf16>,
    } else {
    }
    return
  }
  func.func @transform_0(%arg0: i32, %arg1: i32, %arg2: i32) -> (i32, i32) {
    %c0_i32 = arith.constant 0 : i32
    %c0_i32_0 = arith.constant 0 : i32
    %c0_i32_1 = arith.constant 0 : i32
    return %c0_i32, %c0_i32_0 : i32, i32
  }
  func.func @transform_1(%arg0: i32, %arg1: i32, %arg2: i32) -> (i32, i32, i32) {
    %c0_i32 = arith.constant 0 : i32
    return %arg0, %arg2, %arg1 : i32, i32, i32
  }
  func.func @transform_2(%arg0: i32, %arg1: i32, %arg2: i32) -> (i32, i32) {
    %c0_i32 = arith.constant 0 : i32
    %c0_i32_0 = arith.constant 0 : i32
    %c0_i32_1 = arith.constant 0 : i32
    return %c0_i32, %c0_i32_0 : i32, i32
  }
  func.func @transform_3(%arg0: i32, %arg1: i32, %arg2: i32) -> (i32, i32, i32) {
    %c0_i32 = arith.constant 0 : i32
    %c0_i32_0 = arith.constant 0 : i32
    return %arg0, %c0_i32, %arg1 : i32, i32, i32
  }
}

module attributes {stable_mosaic.version = 11 : i64} {
  func.func @_in_fused_kernel(%arg0: i32, %arg1: memref<8x512xbf16, #tpu.memory_space<vmem>>, %arg2: memref<1x1xf32, #tpu.memory_space<vmem>>, %arg3: memref<8x512xbf16, #tpu.memory_space<vmem>>) attributes {dimension_semantics = [#tpu.dimension_semantics<parallel>], iteration_bounds = array<i64: 1>, scalar_prefetch = 0 : i64, scratch_operands = 0 : i64, tpu.core_type = #tpu.core_type<tc>, window_params = [{transform_indices = @transform_0, window_bounds = array<i64: 8, 512>}, {pipeline_mode = #tpu.pipeline_mode<synchronous>, transform_indices = @transform_1, window_bounds = array<i64: 1, 1>}, {transform_indices = @transform_2, window_bounds = array<i64: 8, 512>}]} {
    %c0 = arith.constant 0 : index
    %c0_0 = arith.constant 0 : index
    %0 = vector.load %arg1[%c0, %c0_0] : memref<8x512xbf16, #tpu.memory_space<vmem>>, vector<8x512xbf16>
    %1 = arith.extf %0 : vector<8x512xbf16> to vector<8x512xf32>
    %cst = arith.constant dense<0.000000e+00> : vector<8xf32>
    %2 = vector.multi_reduction <add>, %1, %cst [1] : vector<8x512xf32> to vector<8xf32>
    %3 = vector.shape_cast %2 : vector<8xf32> to vector<8x1xf32>
    %cst_1 = arith.constant 0.001953125 : f32
    %4 = vector.broadcast %cst_1 : f32 to vector<8x1xf32>
    %5 = arith.mulf %3, %4 : vector<8x1xf32>
    %6 = arith.mulf %1, %1 : vector<8x512xf32>
    %cst_2 = arith.constant dense<0.000000e+00> : vector<8xf32>
    %7 = vector.multi_reduction <add>, %6, %cst_2 [1] : vector<8x512xf32> to vector<8xf32>
    %8 = vector.shape_cast %7 : vector<8xf32> to vector<8x1xf32>
    %cst_3 = arith.constant 0.001953125 : f32
    %9 = vector.broadcast %cst_3 : f32 to vector<8x1xf32>
    %10 = arith.mulf %8, %9 : vector<8x1xf32>
    %11 = arith.mulf %5, %5 : vector<8x1xf32>
    %12 = arith.subf %10, %11 : vector<8x1xf32>
    %cst_4 = arith.constant 0.000000e+00 : f32
    %13 = vector.broadcast %cst_4 : f32 to vector<8x1xf32>
    %14 = arith.maximumf %12, %13 : vector<8x1xf32>
    %15 = vector.broadcast %5 : vector<8x1xf32> to vector<8x512xf32>
    %16 = arith.subf %1, %15 : vector<8x512xf32>
    %cst_5 = arith.constant 9.99999974E-6 : f32
    %17 = vector.broadcast %cst_5 : f32 to vector<8x1xf32>
    %18 = arith.addf %14, %17 : vector<8x1xf32>
    %19 = math.rsqrt %18 : vector<8x1xf32>
    %20 = vector.broadcast %19 : vector<8x1xf32> to vector<8x512xf32>
    %21 = arith.mulf %16, %20 : vector<8x512xf32>
    %c0_6 = arith.constant 0 : index
    %c0_7 = arith.constant 0 : index
    %22 = vector.load %arg2[%c0_6, %c0_7] : memref<1x1xf32, #tpu.memory_space<vmem>>, vector<1x1xf32>
    %23 = vector.extract %22[0, 0] : f32 from vector<1x1xf32>
    %cst_8 = arith.constant 0.000000e+00 : f32
    %24 = vector.broadcast %cst_8 : f32 to vector<8x512xf32>
    %25 = arith.cmpf oge, %21, %24 : vector<8x512xf32>
    %26 = vector.broadcast %23 : f32 to vector<8x512xf32>
    %27 = arith.mulf %26, %21 : vector<8x512xf32>
    %28 = arith.select %25, %21, %27 : vector<8x512xi1>, vector<8x512xf32>
    %29 = arith.truncf %28 : vector<8x512xf32> to vector<8x512xbf16>
    %c0_9 = arith.constant 0 : index
    %c0_10 = arith.constant 0 : index
    %30 = vector.load %arg3[%c0_9, %c0_10] : memref<8x512xbf16, #tpu.memory_space<vmem>>, vector<8x512xbf16>
    tpu.vector_store %arg3[%c0_9, %c0_10], %29 {strides = array<i32>} : memref<8x512xbf16, #tpu.memory_space<vmem>>, vector<8x512xbf16>,
    return
  }
  func.func @transform_0(%arg0: i32) -> (i32, i32) {
    %c0_i32 = arith.constant 0 : i32
    %c0_i32_0 = arith.constant 0 : i32
    return %arg0, %c0_i32 : i32, i32
  }
  func.func @transform_1(%arg0: i32) -> (i32, i32) {
    %c0_i32 = arith.constant 0 : i32
    %c0_i32_0 = arith.constant 0 : i32
    %c0_i32_1 = arith.constant 0 : i32
    return %c0_i32, %c0_i32_0 : i32, i32
  }
  func.func @transform_2(%arg0: i32) -> (i32, i32) {
    %c0_i32 = arith.constant 0 : i32
    %c0_i32_0 = arith.constant 0 : i32
    return %arg0, %c0_i32 : i32, i32
  }
}

module attributes {stable_mosaic.version = 11 : i64} {
  func.func @_matmul_bias_kernel(%arg0: i32, %arg1: i32, %arg2: i32, %arg3: memref<8x108xbf16, #tpu.memory_space<vmem>>, %arg4: memref<1x108x512xbf16, #tpu.memory_space<vmem>>, %arg5: memref<8x1xf32, #tpu.memory_space<vmem>>, %arg6: memref<1x8x512xbf16, #tpu.memory_space<vmem>>, %arg7: memref<8x512xf32, #tpu.memory_space<vmem>>) attributes {dimension_semantics = [#tpu.dimension_semantics<parallel>, #tpu.dimension_semantics<parallel>, #tpu.dimension_semantics<arbitrary>], iteration_bounds = array<i64: 2, 1, 1>, scalar_prefetch = 0 : i64, scratch_operands = 1 : i64, tpu.core_type = #tpu.core_type<tc>, window_params = [{pipeline_mode = #tpu.pipeline_mode<synchronous>, transform_indices = @transform_0, window_bounds = array<i64: 8, 108>}, {transform_indices = @transform_1, window_bounds = array<i64: 1, 108, 512>}, {pipeline_mode = #tpu.pipeline_mode<synchronous>, transform_indices = @transform_2, window_bounds = array<i64: 8, 1>}, {transform_indices = @transform_3, window_bounds = array<i64: 1, 8, 512>}]} {
    %c0_i32 = arith.constant 0 : i32
    %0 = arith.cmpi eq, %arg2, %c0_i32 : i32
    %1 = arith.extui %0 : i1 to i32
    %c0_i32_0 = arith.constant 0 : i32
    %2 = arith.cmpi ne, %1, %c0_i32_0 : i32
    scf.if %2 {
      %cst_11 = arith.constant 0.000000e+00 : f32
      %13 = vector.broadcast %cst_11 : f32 to vector<8x512xf32>
      %c0_12 = arith.constant 0 : index
      %c0_13 = arith.constant 0 : index
      %14 = vector.load %arg7[%c0_12, %c0_13] : memref<8x512xf32, #tpu.memory_space<vmem>>, vector<8x512xf32>
      tpu.vector_store %arg7[%c0_12, %c0_13], %13 {strides = array<i32>} : memref<8x512xf32, #tpu.memory_space<vmem>>, vector<8x512xf32>,
    } else {
    }
    %c0 = arith.constant 0 : index
    %c0_1 = arith.constant 0 : index
    %3 = vector.load %arg3[%c0, %c0_1] : memref<8x108xbf16, #tpu.memory_space<vmem>>, vector<8x108xbf16>
    %c0_2 = arith.constant 0 : index
    %c0_3 = arith.constant 0 : index
    %4 = vector.load %arg7[%c0_2, %c0_3] : memref<8x512xf32, #tpu.memory_space<vmem>>, vector<8x512xf32>
    %c0_4 = arith.constant 0 : index
    %c0_5 = arith.constant 0 : index
    %c0_6 = arith.constant 0 : index
    %5 = vector.load %arg4[%c0_4, %c0_5, %c0_6] : memref<1x108x512xbf16, #tpu.memory_space<vmem>>, vector<1x108x512xbf16>
    %6 = vector.shape_cast %5 : vector<1x108x512xbf16> to vector<108x512xbf16>
    %cst = arith.constant dense<0.000000e+00> : vector<8x512xf32>
    %7 = tpu.matmul %3, %6, %cst {dimension_numbers = #tpu.dot_dimension_numbers<[1], [0], [0], [1], [0, 0, 1, 1], [], []>} : vector<8x108xbf16>, vector<108x512xbf16>, vector<8x512xf32> -> vector<8x512xf32>
    %8 = arith.addf %4, %7 : vector<8x512xf32>
    %c0_7 = arith.constant 0 : index
    %c0_8 = arith.constant 0 : index
    %9 = vector.load %arg7[%c0_7, %c0_8] : memref<8x512xf32, #tpu.memory_space<vmem>>, vector<8x512xf32>
    tpu.vector_store %arg7[%c0_7, %c0_8], %8 {strides = array<i32>} : memref<8x512xf32, #tpu.memory_space<vmem>>, vector<8x512xf32>,
    %c0_i32_9 = arith.constant 0 : i32
    %10 = arith.cmpi eq, %arg2, %c0_i32_9 : i32
    %11 = arith.extui %10 : i1 to i32
    %c0_i32_10 = arith.constant 0 : i32
    %12 = arith.cmpi ne, %11, %c0_i32_10 : i32
    scf.if %12 {
      %c0_11 = arith.constant 0 : index
      %c0_12 = arith.constant 0 : index
      %13 = vector.load %arg7[%c0_11, %c0_12] : memref<8x512xf32, #tpu.memory_space<vmem>>, vector<8x512xf32>
      %c0_13 = arith.constant 0 : index
      %c0_14 = arith.constant 0 : index
      %14 = vector.load %arg5[%c0_13, %c0_14] : memref<8x1xf32, #tpu.memory_space<vmem>>, vector<8x1xf32>
      %15 = vector.broadcast %14 : vector<8x1xf32> to vector<8x512xf32>
      %16 = arith.addf %13, %15 : vector<8x512xf32>
      %17 = arith.truncf %16 : vector<8x512xf32> to vector<8x512xbf16>
      %c0_15 = arith.constant 0 : index
      %c0_16 = arith.constant 0 : index
      %c0_17 = arith.constant 0 : index
      %18 = vector.load %arg6[%c0_15, %c0_16, %c0_17] : memref<1x8x512xbf16, #tpu.memory_space<vmem>>, vector<1x8x512xbf16>
      %19 = vector.shape_cast %18 : vector<1x8x512xbf16> to vector<8x512xbf16>
      %20 = vector.shape_cast %17 : vector<8x512xbf16> to vector<1x8x512xbf16>
      tpu.vector_store %arg6[%c0_15, %c0_16, %c0_17], %20 {strides = array<i32>} : memref<1x8x512xbf16, #tpu.memory_space<vmem>>, vector<1x8x512xbf16>,
    } else {
    }
    return
  }
  func.func @transform_0(%arg0: i32, %arg1: i32, %arg2: i32) -> (i32, i32) {
    %c0_i32 = arith.constant 0 : i32
    %c0_i32_0 = arith.constant 0 : i32
    %c0_i32_1 = arith.constant 0 : i32
    return %c0_i32, %c0_i32_0 : i32, i32
  }
  func.func @transform_1(%arg0: i32, %arg1: i32, %arg2: i32) -> (i32, i32, i32) {
    %c0_i32 = arith.constant 0 : i32
    return %arg0, %arg2, %arg1 : i32, i32, i32
  }
  func.func @transform_2(%arg0: i32, %arg1: i32, %arg2: i32) -> (i32, i32) {
    %c0_i32 = arith.constant 0 : i32
    %c0_i32_0 = arith.constant 0 : i32
    %c0_i32_1 = arith.constant 0 : i32
    return %c0_i32, %c0_i32_0 : i32, i32
  }
  func.func @transform_3(%arg0: i32, %arg1: i32, %arg2: i32) -> (i32, i32, i32) {
    %c0_i32 = arith.constant 0 : i32
    %c0_i32_0 = arith.constant 0 : i32
    return %arg0, %c0_i32, %arg1 : i32, i32, i32
  }
}

module attributes {stable_mosaic.version = 11 : i64} {
  func.func @_matmul_bias_kernel(%arg0: i32, %arg1: i32, %arg2: i32, %arg3: memref<8x108xbf16, #tpu.memory_space<vmem>>, %arg4: memref<1x108x128xbf16, #tpu.memory_space<vmem>>, %arg5: memref<8x1xf32, #tpu.memory_space<vmem>>, %arg6: memref<1x8x128xbf16, #tpu.memory_space<vmem>>, %arg7: memref<8x128xf32, #tpu.memory_space<vmem>>) attributes {dimension_semantics = [#tpu.dimension_semantics<parallel>, #tpu.dimension_semantics<parallel>, #tpu.dimension_semantics<arbitrary>], iteration_bounds = array<i64: 2, 1, 1>, scalar_prefetch = 0 : i64, scratch_operands = 1 : i64, tpu.core_type = #tpu.core_type<tc>, window_params = [{pipeline_mode = #tpu.pipeline_mode<synchronous>, transform_indices = @transform_0, window_bounds = array<i64: 8, 108>}, {transform_indices = @transform_1, window_bounds = array<i64: 1, 108, 128>}, {pipeline_mode = #tpu.pipeline_mode<synchronous>, transform_indices = @transform_2, window_bounds = array<i64: 8, 1>}, {transform_indices = @transform_3, window_bounds = array<i64: 1, 8, 128>}]} {
    %c0_i32 = arith.constant 0 : i32
    %0 = arith.cmpi eq, %arg2, %c0_i32 : i32
    %1 = arith.extui %0 : i1 to i32
    %c0_i32_0 = arith.constant 0 : i32
    %2 = arith.cmpi ne, %1, %c0_i32_0 : i32
    scf.if %2 {
      %cst_11 = arith.constant 0.000000e+00 : f32
      %13 = vector.broadcast %cst_11 : f32 to vector<8x128xf32>
      %c0_12 = arith.constant 0 : index
      %c0_13 = arith.constant 0 : index
      %14 = vector.load %arg7[%c0_12, %c0_13] : memref<8x128xf32, #tpu.memory_space<vmem>>, vector<8x128xf32>
      tpu.vector_store %arg7[%c0_12, %c0_13], %13 {strides = array<i32>} : memref<8x128xf32, #tpu.memory_space<vmem>>, vector<8x128xf32>,
    } else {
    }
    %c0 = arith.constant 0 : index
    %c0_1 = arith.constant 0 : index
    %3 = vector.load %arg3[%c0, %c0_1] : memref<8x108xbf16, #tpu.memory_space<vmem>>, vector<8x108xbf16>
    %c0_2 = arith.constant 0 : index
    %c0_3 = arith.constant 0 : index
    %4 = vector.load %arg7[%c0_2, %c0_3] : memref<8x128xf32, #tpu.memory_space<vmem>>, vector<8x128xf32>
    %c0_4 = arith.constant 0 : index
    %c0_5 = arith.constant 0 : index
    %c0_6 = arith.constant 0 : index
    %5 = vector.load %arg4[%c0_4, %c0_5, %c0_6] : memref<1x108x128xbf16, #tpu.memory_space<vmem>>, vector<1x108x128xbf16>
    %6 = vector.shape_cast %5 : vector<1x108x128xbf16> to vector<108x128xbf16>
    %cst = arith.constant dense<0.000000e+00> : vector<8x128xf32>
    %7 = tpu.matmul %3, %6, %cst {dimension_numbers = #tpu.dot_dimension_numbers<[1], [0], [0], [1], [0, 0, 1, 1], [], []>} : vector<8x108xbf16>, vector<108x128xbf16>, vector<8x128xf32> -> vector<8x128xf32>
    %8 = arith.addf %4, %7 : vector<8x128xf32>
    %c0_7 = arith.constant 0 : index
    %c0_8 = arith.constant 0 : index
    %9 = vector.load %arg7[%c0_7, %c0_8] : memref<8x128xf32, #tpu.memory_space<vmem>>, vector<8x128xf32>
    tpu.vector_store %arg7[%c0_7, %c0_8], %8 {strides = array<i32>} : memref<8x128xf32, #tpu.memory_space<vmem>>, vector<8x128xf32>,
    %c0_i32_9 = arith.constant 0 : i32
    %10 = arith.cmpi eq, %arg2, %c0_i32_9 : i32
    %11 = arith.extui %10 : i1 to i32
    %c0_i32_10 = arith.constant 0 : i32
    %12 = arith.cmpi ne, %11, %c0_i32_10 : i32
    scf.if %12 {
      %c0_11 = arith.constant 0 : index
      %c0_12 = arith.constant 0 : index
      %13 = vector.load %arg7[%c0_11, %c0_12] : memref<8x128xf32, #tpu.memory_space<vmem>>, vector<8x128xf32>
      %c0_13 = arith.constant 0 : index
      %c0_14 = arith.constant 0 : index
      %14 = vector.load %arg5[%c0_13, %c0_14] : memref<8x1xf32, #tpu.memory_space<vmem>>, vector<8x1xf32>
      %15 = vector.broadcast %14 : vector<8x1xf32> to vector<8x128xf32>
      %16 = arith.addf %13, %15 : vector<8x128xf32>
      %17 = arith.truncf %16 : vector<8x128xf32> to vector<8x128xbf16>
      %c0_15 = arith.constant 0 : index
      %c0_16 = arith.constant 0 : index
      %c0_17 = arith.constant 0 : index
      %18 = vector.load %arg6[%c0_15, %c0_16, %c0_17] : memref<1x8x128xbf16, #tpu.memory_space<vmem>>, vector<1x8x128xbf16>
      %19 = vector.shape_cast %18 : vector<1x8x128xbf16> to vector<8x128xbf16>
      %20 = vector.shape_cast %17 : vector<8x128xbf16> to vector<1x8x128xbf16>
      tpu.vector_store %arg6[%c0_15, %c0_16, %c0_17], %20 {strides = array<i32>} : memref<1x8x128xbf16, #tpu.memory_space<vmem>>, vector<1x8x128xbf16>,
    } else {
    }
    return
  }
  func.func @transform_0(%arg0: i32, %arg1: i32, %arg2: i32) -> (i32, i32) {
    %c0_i32 = arith.constant 0 : i32
    %c0_i32_0 = arith.constant 0 : i32
    %c0_i32_1 = arith.constant 0 : i32
    return %c0_i32, %c0_i32_0 : i32, i32
  }
  func.func @transform_1(%arg0: i32, %arg1: i32, %arg2: i32) -> (i32, i32, i32) {
    %c0_i32 = arith.constant 0 : i32
    return %arg0, %arg2, %arg1 : i32, i32, i32
  }
  func.func @transform_2(%arg0: i32, %arg1: i32, %arg2: i32) -> (i32, i32) {
    %c0_i32 = arith.constant 0 : i32
    %c0_i32_0 = arith.constant 0 : i32
    %c0_i32_1 = arith.constant 0 : i32
    return %c0_i32, %c0_i32_0 : i32, i32
  }
  func.func @transform_3(%arg0: i32, %arg1: i32, %arg2: i32) -> (i32, i32, i32) {
    %c0_i32 = arith.constant 0 : i32
    %c0_i32_0 = arith.constant 0 : i32
    return %arg0, %c0_i32, %arg1 : i32, i32, i32
  }
}

module attributes {stable_mosaic.version = 11 : i64} {
  func.func @_in_fused_kernel(%arg0: i32, %arg1: memref<16x64xbf16, #tpu.memory_space<vmem>>, %arg2: memref<1x1xf32, #tpu.memory_space<vmem>>, %arg3: memref<16x64xbf16, #tpu.memory_space<vmem>>) attributes {dimension_semantics = [#tpu.dimension_semantics<parallel>], iteration_bounds = array<i64: 1>, scalar_prefetch = 0 : i64, scratch_operands = 0 : i64, tpu.core_type = #tpu.core_type<tc>, window_params = [{transform_indices = @transform_0, window_bounds = array<i64: 16, 64>}, {pipeline_mode = #tpu.pipeline_mode<synchronous>, transform_indices = @transform_1, window_bounds = array<i64: 1, 1>}, {transform_indices = @transform_2, window_bounds = array<i64: 16, 64>}]} {
    %c0 = arith.constant 0 : index
    %c0_0 = arith.constant 0 : index
    %0 = vector.load %arg1[%c0, %c0_0] : memref<16x64xbf16, #tpu.memory_space<vmem>>, vector<16x64xbf16>
    %1 = arith.extf %0 : vector<16x64xbf16> to vector<16x64xf32>
    %cst = arith.constant dense<0.000000e+00> : vector<16xf32>
    %2 = vector.multi_reduction <add>, %1, %cst [1] : vector<16x64xf32> to vector<16xf32>
    %3 = vector.shape_cast %2 : vector<16xf32> to vector<16x1xf32>
    %cst_1 = arith.constant 1.562500e-02 : f32
    %4 = vector.broadcast %cst_1 : f32 to vector<16x1xf32>
    %5 = arith.mulf %3, %4 : vector<16x1xf32>
    %6 = arith.mulf %1, %1 : vector<16x64xf32>
    %cst_2 = arith.constant dense<0.000000e+00> : vector<16xf32>
    %7 = vector.multi_reduction <add>, %6, %cst_2 [1] : vector<16x64xf32> to vector<16xf32>
    %8 = vector.shape_cast %7 : vector<16xf32> to vector<16x1xf32>
    %cst_3 = arith.constant 1.562500e-02 : f32
    %9 = vector.broadcast %cst_3 : f32 to vector<16x1xf32>
    %10 = arith.mulf %8, %9 : vector<16x1xf32>
    %11 = arith.mulf %5, %5 : vector<16x1xf32>
    %12 = arith.subf %10, %11 : vector<16x1xf32>
    %cst_4 = arith.constant 0.000000e+00 : f32
    %13 = vector.broadcast %cst_4 : f32 to vector<16x1xf32>
    %14 = arith.maximumf %12, %13 : vector<16x1xf32>
    %15 = vector.broadcast %5 : vector<16x1xf32> to vector<16x64xf32>
    %16 = arith.subf %1, %15 : vector<16x64xf32>
    %cst_5 = arith.constant 9.99999974E-6 : f32
    %17 = vector.broadcast %cst_5 : f32 to vector<16x1xf32>
    %18 = arith.addf %14, %17 : vector<16x1xf32>
    %19 = math.rsqrt %18 : vector<16x1xf32>
    %20 = vector.broadcast %19 : vector<16x1xf32> to vector<16x64xf32>
    %21 = arith.mulf %16, %20 : vector<16x64xf32>
    %c0_6 = arith.constant 0 : index
    %c0_7 = arith.constant 0 : index
    %22 = vector.load %arg2[%c0_6, %c0_7] : memref<1x1xf32, #tpu.memory_space<vmem>>, vector<1x1xf32>
    %23 = vector.extract %22[0, 0] : f32 from vector<1x1xf32>
    %cst_8 = arith.constant 0.000000e+00 : f32
    %24 = vector.broadcast %cst_8 : f32 to vector<16x64xf32>
    %25 = arith.cmpf oge, %21, %24 : vector<16x64xf32>
    %26 = vector.broadcast %23 : f32 to vector<16x64xf32>
    %27 = arith.mulf %26, %21 : vector<16x64xf32>
    %28 = arith.select %25, %21, %27 : vector<16x64xi1>, vector<16x64xf32>
    %29 = arith.truncf %28 : vector<16x64xf32> to vector<16x64xbf16>
    %c0_9 = arith.constant 0 : index
    %c0_10 = arith.constant 0 : index
    %30 = vector.load %arg3[%c0_9, %c0_10] : memref<16x64xbf16, #tpu.memory_space<vmem>>, vector<16x64xbf16>
    tpu.vector_store %arg3[%c0_9, %c0_10], %29 {strides = array<i32>} : memref<16x64xbf16, #tpu.memory_space<vmem>>, vector<16x64xbf16>,
    return
  }
  func.func @transform_0(%arg0: i32) -> (i32, i32) {
    %c0_i32 = arith.constant 0 : i32
    %c0_i32_0 = arith.constant 0 : i32
    return %arg0, %c0_i32 : i32, i32
  }
  func.func @transform_1(%arg0: i32) -> (i32, i32) {
    %c0_i32 = arith.constant 0 : i32
    %c0_i32_0 = arith.constant 0 : i32
    %c0_i32_1 = arith.constant 0 : i32
    return %c0_i32, %c0_i32_0 : i32, i32
  }
  func.func @transform_2(%arg0: i32) -> (i32, i32) {
    %c0_i32 = arith.constant 0 : i32
    %c0_i32_0 = arith.constant 0 : i32
    return %arg0, %c0_i32 : i32, i32
  }
}

module attributes {stable_mosaic.version = 11 : i64} {
  func.func @_matmul_bias_kernel(%arg0: i32, %arg1: i32, %arg2: i32, %arg3: memref<8x216xbf16, #tpu.memory_space<vmem>>, %arg4: memref<1x216x128xbf16, #tpu.memory_space<vmem>>, %arg5: memref<8x1xf32, #tpu.memory_space<vmem>>, %arg6: memref<1x8x128xbf16, #tpu.memory_space<vmem>>, %arg7: memref<8x128xf32, #tpu.memory_space<vmem>>) attributes {dimension_semantics = [#tpu.dimension_semantics<parallel>, #tpu.dimension_semantics<parallel>, #tpu.dimension_semantics<arbitrary>], iteration_bounds = array<i64: 2, 1, 1>, scalar_prefetch = 0 : i64, scratch_operands = 1 : i64, tpu.core_type = #tpu.core_type<tc>, window_params = [{pipeline_mode = #tpu.pipeline_mode<synchronous>, transform_indices = @transform_0, window_bounds = array<i64: 8, 216>}, {transform_indices = @transform_1, window_bounds = array<i64: 1, 216, 128>}, {pipeline_mode = #tpu.pipeline_mode<synchronous>, transform_indices = @transform_2, window_bounds = array<i64: 8, 1>}, {transform_indices = @transform_3, window_bounds = array<i64: 1, 8, 128>}]} {
    %c0_i32 = arith.constant 0 : i32
    %0 = arith.cmpi eq, %arg2, %c0_i32 : i32
    %1 = arith.extui %0 : i1 to i32
    %c0_i32_0 = arith.constant 0 : i32
    %2 = arith.cmpi ne, %1, %c0_i32_0 : i32
    scf.if %2 {
      %cst_11 = arith.constant 0.000000e+00 : f32
      %13 = vector.broadcast %cst_11 : f32 to vector<8x128xf32>
      %c0_12 = arith.constant 0 : index
      %c0_13 = arith.constant 0 : index
      %14 = vector.load %arg7[%c0_12, %c0_13] : memref<8x128xf32, #tpu.memory_space<vmem>>, vector<8x128xf32>
      tpu.vector_store %arg7[%c0_12, %c0_13], %13 {strides = array<i32>} : memref<8x128xf32, #tpu.memory_space<vmem>>, vector<8x128xf32>,
    } else {
    }
    %c0 = arith.constant 0 : index
    %c0_1 = arith.constant 0 : index
    %3 = vector.load %arg3[%c0, %c0_1] : memref<8x216xbf16, #tpu.memory_space<vmem>>, vector<8x216xbf16>
    %c0_2 = arith.constant 0 : index
    %c0_3 = arith.constant 0 : index
    %4 = vector.load %arg7[%c0_2, %c0_3] : memref<8x128xf32, #tpu.memory_space<vmem>>, vector<8x128xf32>
    %c0_4 = arith.constant 0 : index
    %c0_5 = arith.constant 0 : index
    %c0_6 = arith.constant 0 : index
    %5 = vector.load %arg4[%c0_4, %c0_5, %c0_6] : memref<1x216x128xbf16, #tpu.memory_space<vmem>>, vector<1x216x128xbf16>
    %6 = vector.shape_cast %5 : vector<1x216x128xbf16> to vector<216x128xbf16>
    %cst = arith.constant dense<0.000000e+00> : vector<8x128xf32>
    %7 = tpu.matmul %3, %6, %cst {dimension_numbers = #tpu.dot_dimension_numbers<[1], [0], [0], [1], [0, 0, 1, 1], [], []>} : vector<8x216xbf16>, vector<216x128xbf16>, vector<8x128xf32> -> vector<8x128xf32>
    %8 = arith.addf %4, %7 : vector<8x128xf32>
    %c0_7 = arith.constant 0 : index
    %c0_8 = arith.constant 0 : index
    %9 = vector.load %arg7[%c0_7, %c0_8] : memref<8x128xf32, #tpu.memory_space<vmem>>, vector<8x128xf32>
    tpu.vector_store %arg7[%c0_7, %c0_8], %8 {strides = array<i32>} : memref<8x128xf32, #tpu.memory_space<vmem>>, vector<8x128xf32>,
    %c0_i32_9 = arith.constant 0 : i32
    %10 = arith.cmpi eq, %arg2, %c0_i32_9 : i32
    %11 = arith.extui %10 : i1 to i32
    %c0_i32_10 = arith.constant 0 : i32
    %12 = arith.cmpi ne, %11, %c0_i32_10 : i32
    scf.if %12 {
      %c0_11 = arith.constant 0 : index
      %c0_12 = arith.constant 0 : index
      %13 = vector.load %arg7[%c0_11, %c0_12] : memref<8x128xf32, #tpu.memory_space<vmem>>, vector<8x128xf32>
      %c0_13 = arith.constant 0 : index
      %c0_14 = arith.constant 0 : index
      %14 = vector.load %arg5[%c0_13, %c0_14] : memref<8x1xf32, #tpu.memory_space<vmem>>, vector<8x1xf32>
      %15 = vector.broadcast %14 : vector<8x1xf32> to vector<8x128xf32>
      %16 = arith.addf %13, %15 : vector<8x128xf32>
      %17 = arith.truncf %16 : vector<8x128xf32> to vector<8x128xbf16>
      %c0_15 = arith.constant 0 : index
      %c0_16 = arith.constant 0 : index
      %c0_17 = arith.constant 0 : index
      %18 = vector.load %arg6[%c0_15, %c0_16, %c0_17] : memref<1x8x128xbf16, #tpu.memory_space<vmem>>, vector<1x8x128xbf16>
      %19 = vector.shape_cast %18 : vector<1x8x128xbf16> to vector<8x128xbf16>
      %20 = vector.shape_cast %17 : vector<8x128xbf16> to vector<1x8x128xbf16>
      tpu.vector_store %arg6[%c0_15, %c0_16, %c0_17], %20 {strides = array<i32>} : memref<1x8x128xbf16, #tpu.memory_space<vmem>>, vector<1x8x128xbf16>,
    } else {
    }
    return
  }
  func.func @transform_0(%arg0: i32, %arg1: i32, %arg2: i32) -> (i32, i32) {
    %c0_i32 = arith.constant 0 : i32
    %c0_i32_0 = arith.constant 0 : i32
    %c0_i32_1 = arith.constant 0 : i32
    return %c0_i32, %c0_i32_0 : i32, i32
  }
  func.func @transform_1(%arg0: i32, %arg1: i32, %arg2: i32) -> (i32, i32, i32) {
    %c0_i32 = arith.constant 0 : i32
    return %arg0, %arg2, %arg1 : i32, i32, i32
  }
  func.func @transform_2(%arg0: i32, %arg1: i32, %arg2: i32) -> (i32, i32) {
    %c0_i32 = arith.constant 0 : i32
    %c0_i32_0 = arith.constant 0 : i32
    %c0_i32_1 = arith.constant 0 : i32
    return %c0_i32, %c0_i32_0 : i32, i32
  }
  func.func @transform_3(%arg0: i32, %arg1: i32, %arg2: i32) -> (i32, i32, i32) {
    %c0_i32 = arith.constant 0 : i32
    %c0_i32_0 = arith.constant 0 : i32
    return %arg0, %c0_i32, %arg1 : i32, i32, i32
  }
}

module attributes {stable_mosaic.version = 11 : i64} {
  func.func @_matmul_bias_kernel(%arg0: i32, %arg1: i32, %arg2: i32, %arg3: memref<16x216xbf16, #tpu.memory_space<vmem>>, %arg4: memref<1x216x128xbf16, #tpu.memory_space<vmem>>, %arg5: memref<16x1xf32, #tpu.memory_space<vmem>>, %arg6: memref<1x16x128xbf16, #tpu.memory_space<vmem>>, %arg7: memref<16x128xf32, #tpu.memory_space<vmem>>) attributes {dimension_semantics = [#tpu.dimension_semantics<parallel>, #tpu.dimension_semantics<parallel>, #tpu.dimension_semantics<arbitrary>], iteration_bounds = array<i64: 2, 1, 1>, scalar_prefetch = 0 : i64, scratch_operands = 1 : i64, tpu.core_type = #tpu.core_type<tc>, window_params = [{pipeline_mode = #tpu.pipeline_mode<synchronous>, transform_indices = @transform_0, window_bounds = array<i64: 16, 216>}, {transform_indices = @transform_1, window_bounds = array<i64: 1, 216, 128>}, {pipeline_mode = #tpu.pipeline_mode<synchronous>, transform_indices = @transform_2, window_bounds = array<i64: 16, 1>}, {transform_indices = @transform_3, window_bounds = array<i64: 1, 16, 128>}]} {
    %c0_i32 = arith.constant 0 : i32
    %0 = arith.cmpi eq, %arg2, %c0_i32 : i32
    %1 = arith.extui %0 : i1 to i32
    %c0_i32_0 = arith.constant 0 : i32
    %2 = arith.cmpi ne, %1, %c0_i32_0 : i32
    scf.if %2 {
      %cst_11 = arith.constant 0.000000e+00 : f32
      %13 = vector.broadcast %cst_11 : f32 to vector<16x128xf32>
      %c0_12 = arith.constant 0 : index
      %c0_13 = arith.constant 0 : index
      %14 = vector.load %arg7[%c0_12, %c0_13] : memref<16x128xf32, #tpu.memory_space<vmem>>, vector<16x128xf32>
      tpu.vector_store %arg7[%c0_12, %c0_13], %13 {strides = array<i32>} : memref<16x128xf32, #tpu.memory_space<vmem>>, vector<16x128xf32>,
    } else {
    }
    %c0 = arith.constant 0 : index
    %c0_1 = arith.constant 0 : index
    %3 = vector.load %arg3[%c0, %c0_1] : memref<16x216xbf16, #tpu.memory_space<vmem>>, vector<16x216xbf16>
    %c0_2 = arith.constant 0 : index
    %c0_3 = arith.constant 0 : index
    %4 = vector.load %arg7[%c0_2, %c0_3] : memref<16x128xf32, #tpu.memory_space<vmem>>, vector<16x128xf32>
    %c0_4 = arith.constant 0 : index
    %c0_5 = arith.constant 0 : index
    %c0_6 = arith.constant 0 : index
    %5 = vector.load %arg4[%c0_4, %c0_5, %c0_6] : memref<1x216x128xbf16, #tpu.memory_space<vmem>>, vector<1x216x128xbf16>
    %6 = vector.shape_cast %5 : vector<1x216x128xbf16> to vector<216x128xbf16>
    %cst = arith.constant dense<0.000000e+00> : vector<16x128xf32>
    %7 = tpu.matmul %3, %6, %cst {dimension_numbers = #tpu.dot_dimension_numbers<[1], [0], [0], [1], [0, 0, 1, 1], [], []>} : vector<16x216xbf16>, vector<216x128xbf16>, vector<16x128xf32> -> vector<16x128xf32>
    %8 = arith.addf %4, %7 : vector<16x128xf32>
    %c0_7 = arith.constant 0 : index
    %c0_8 = arith.constant 0 : index
    %9 = vector.load %arg7[%c0_7, %c0_8] : memref<16x128xf32, #tpu.memory_space<vmem>>, vector<16x128xf32>
    tpu.vector_store %arg7[%c0_7, %c0_8], %8 {strides = array<i32>} : memref<16x128xf32, #tpu.memory_space<vmem>>, vector<16x128xf32>,
    %c0_i32_9 = arith.constant 0 : i32
    %10 = arith.cmpi eq, %arg2, %c0_i32_9 : i32
    %11 = arith.extui %10 : i1 to i32
    %c0_i32_10 = arith.constant 0 : i32
    %12 = arith.cmpi ne, %11, %c0_i32_10 : i32
    scf.if %12 {
      %c0_11 = arith.constant 0 : index
      %c0_12 = arith.constant 0 : index
      %13 = vector.load %arg7[%c0_11, %c0_12] : memref<16x128xf32, #tpu.memory_space<vmem>>, vector<16x128xf32>
      %c0_13 = arith.constant 0 : index
      %c0_14 = arith.constant 0 : index
      %14 = vector.load %arg5[%c0_13, %c0_14] : memref<16x1xf32, #tpu.memory_space<vmem>>, vector<16x1xf32>
      %15 = vector.broadcast %14 : vector<16x1xf32> to vector<16x128xf32>
      %16 = arith.addf %13, %15 : vector<16x128xf32>
      %17 = arith.truncf %16 : vector<16x128xf32> to vector<16x128xbf16>
      %c0_15 = arith.constant 0 : index
      %c0_16 = arith.constant 0 : index
      %c0_17 = arith.constant 0 : index
      %18 = vector.load %arg6[%c0_15, %c0_16, %c0_17] : memref<1x16x128xbf16, #tpu.memory_space<vmem>>, vector<1x16x128xbf16>
      %19 = vector.shape_cast %18 : vector<1x16x128xbf16> to vector<16x128xbf16>
      %20 = vector.shape_cast %17 : vector<16x128xbf16> to vector<1x16x128xbf16>
      tpu.vector_store %arg6[%c0_15, %c0_16, %c0_17], %20 {strides = array<i32>} : memref<1x16x128xbf16, #tpu.memory_space<vmem>>, vector<1x16x128xbf16>,
    } else {
    }
    return
  }
  func.func @transform_0(%arg0: i32, %arg1: i32, %arg2: i32) -> (i32, i32) {
    %c0_i32 = arith.constant 0 : i32
    %c0_i32_0 = arith.constant 0 : i32
    %c0_i32_1 = arith.constant 0 : i32
    return %c0_i32, %c0_i32_0 : i32, i32
  }
  func.func @transform_1(%arg0: i32, %arg1: i32, %arg2: i32) -> (i32, i32, i32) {
    %c0_i32 = arith.constant 0 : i32
    return %arg0, %arg2, %arg1 : i32, i32, i32
  }
  func.func @transform_2(%arg0: i32, %arg1: i32, %arg2: i32) -> (i32, i32) {
    %c0_i32 = arith.constant 0 : i32
    %c0_i32_0 = arith.constant 0 : i32
    %c0_i32_1 = arith.constant 0 : i32
    return %c0_i32, %c0_i32_0 : i32, i32
  }
  func.func @transform_3(%arg0: i32, %arg1: i32, %arg2: i32) -> (i32, i32, i32) {
    %c0_i32 = arith.constant 0 : i32
    %c0_i32_0 = arith.constant 0 : i32
    return %arg0, %c0_i32, %arg1 : i32, i32, i32
  }
}

module attributes {stable_mosaic.version = 11 : i64} {
  func.func @_in_fused_kernel(%arg0: i32, %arg1: memref<32x8xbf16, #tpu.memory_space<vmem>>, %arg2: memref<1x1xf32, #tpu.memory_space<vmem>>, %arg3: memref<32x8xbf16, #tpu.memory_space<vmem>>) attributes {dimension_semantics = [#tpu.dimension_semantics<parallel>], iteration_bounds = array<i64: 1>, scalar_prefetch = 0 : i64, scratch_operands = 0 : i64, tpu.core_type = #tpu.core_type<tc>, window_params = [{transform_indices = @transform_0, window_bounds = array<i64: 32, 8>}, {pipeline_mode = #tpu.pipeline_mode<synchronous>, transform_indices = @transform_1, window_bounds = array<i64: 1, 1>}, {transform_indices = @transform_2, window_bounds = array<i64: 32, 8>}]} {
    %c0 = arith.constant 0 : index
    %c0_0 = arith.constant 0 : index
    %0 = vector.load %arg1[%c0, %c0_0] : memref<32x8xbf16, #tpu.memory_space<vmem>>, vector<32x8xbf16>
    %1 = arith.extf %0 : vector<32x8xbf16> to vector<32x8xf32>
    %cst = arith.constant dense<0.000000e+00> : vector<32xf32>
    %2 = vector.multi_reduction <add>, %1, %cst [1] : vector<32x8xf32> to vector<32xf32>
    %3 = vector.shape_cast %2 : vector<32xf32> to vector<32x1xf32>
    %cst_1 = arith.constant 1.250000e-01 : f32
    %4 = vector.broadcast %cst_1 : f32 to vector<32x1xf32>
    %5 = arith.mulf %3, %4 : vector<32x1xf32>
    %6 = arith.mulf %1, %1 : vector<32x8xf32>
    %cst_2 = arith.constant dense<0.000000e+00> : vector<32xf32>
    %7 = vector.multi_reduction <add>, %6, %cst_2 [1] : vector<32x8xf32> to vector<32xf32>
    %8 = vector.shape_cast %7 : vector<32xf32> to vector<32x1xf32>
    %cst_3 = arith.constant 1.250000e-01 : f32
    %9 = vector.broadcast %cst_3 : f32 to vector<32x1xf32>
    %10 = arith.mulf %8, %9 : vector<32x1xf32>
    %11 = arith.mulf %5, %5 : vector<32x1xf32>
    %12 = arith.subf %10, %11 : vector<32x1xf32>
    %cst_4 = arith.constant 0.000000e+00 : f32
    %13 = vector.broadcast %cst_4 : f32 to vector<32x1xf32>
    %14 = arith.maximumf %12, %13 : vector<32x1xf32>
    %15 = vector.broadcast %5 : vector<32x1xf32> to vector<32x8xf32>
    %16 = arith.subf %1, %15 : vector<32x8xf32>
    %cst_5 = arith.constant 9.99999974E-6 : f32
    %17 = vector.broadcast %cst_5 : f32 to vector<32x1xf32>
    %18 = arith.addf %14, %17 : vector<32x1xf32>
    %19 = math.rsqrt %18 : vector<32x1xf32>
    %20 = vector.broadcast %19 : vector<32x1xf32> to vector<32x8xf32>
    %21 = arith.mulf %16, %20 : vector<32x8xf32>
    %c0_6 = arith.constant 0 : index
    %c0_7 = arith.constant 0 : index
    %22 = vector.load %arg2[%c0_6, %c0_7] : memref<1x1xf32, #tpu.memory_space<vmem>>, vector<1x1xf32>
    %23 = vector.extract %22[0, 0] : f32 from vector<1x1xf32>
    %cst_8 = arith.constant 0.000000e+00 : f32
    %24 = vector.broadcast %cst_8 : f32 to vector<32x8xf32>
    %25 = arith.cmpf oge, %21, %24 : vector<32x8xf32>
    %26 = vector.broadcast %23 : f32 to vector<32x8xf32>
    %27 = arith.mulf %26, %21 : vector<32x8xf32>
    %28 = arith.select %25, %21, %27 : vector<32x8xi1>, vector<32x8xf32>
    %29 = arith.truncf %28 : vector<32x8xf32> to vector<32x8xbf16>
    %c0_9 = arith.constant 0 : index
    %c0_10 = arith.constant 0 : index
    %30 = vector.load %arg3[%c0_9, %c0_10] : memref<32x8xbf16, #tpu.memory_space<vmem>>, vector<32x8xbf16>
    tpu.vector_store %arg3[%c0_9, %c0_10], %29 {strides = array<i32>} : memref<32x8xbf16, #tpu.memory_space<vmem>>, vector<32x8xbf16>,
    return
  }
  func.func @transform_0(%arg0: i32) -> (i32, i32) {
    %c0_i32 = arith.constant 0 : i32
    %c0_i32_0 = arith.constant 0 : i32
    return %arg0, %c0_i32 : i32, i32
  }
  func.func @transform_1(%arg0: i32) -> (i32, i32) {
    %c0_i32 = arith.constant 0 : i32
    %c0_i32_0 = arith.constant 0 : i32
    %c0_i32_1 = arith.constant 0 : i32
    return %c0_i32, %c0_i32_0 : i32, i32
  }
  func.func @transform_2(%arg0: i32) -> (i32, i32) {
    %c0_i32 = arith.constant 0 : i32
    %c0_i32_0 = arith.constant 0 : i32
    return %arg0, %c0_i32 : i32, i32
  }
}

module attributes {stable_mosaic.version = 11 : i64} {
  func.func @_matmul_bias_kernel(%arg0: i32, %arg1: i32, %arg2: i32, %arg3: memref<16x432xbf16, #tpu.memory_space<vmem>>, %arg4: memref<1x432x128xbf16, #tpu.memory_space<vmem>>, %arg5: memref<16x1xf32, #tpu.memory_space<vmem>>, %arg6: memref<1x16x128xbf16, #tpu.memory_space<vmem>>, %arg7: memref<16x128xf32, #tpu.memory_space<vmem>>) attributes {dimension_semantics = [#tpu.dimension_semantics<parallel>, #tpu.dimension_semantics<parallel>, #tpu.dimension_semantics<arbitrary>], iteration_bounds = array<i64: 2, 1, 1>, scalar_prefetch = 0 : i64, scratch_operands = 1 : i64, tpu.core_type = #tpu.core_type<tc>, window_params = [{pipeline_mode = #tpu.pipeline_mode<synchronous>, transform_indices = @transform_0, window_bounds = array<i64: 16, 432>}, {transform_indices = @transform_1, window_bounds = array<i64: 1, 432, 128>}, {pipeline_mode = #tpu.pipeline_mode<synchronous>, transform_indices = @transform_2, window_bounds = array<i64: 16, 1>}, {transform_indices = @transform_3, window_bounds = array<i64: 1, 16, 128>}]} {
    %c0_i32 = arith.constant 0 : i32
    %0 = arith.cmpi eq, %arg2, %c0_i32 : i32
    %1 = arith.extui %0 : i1 to i32
    %c0_i32_0 = arith.constant 0 : i32
    %2 = arith.cmpi ne, %1, %c0_i32_0 : i32
    scf.if %2 {
      %cst_11 = arith.constant 0.000000e+00 : f32
      %13 = vector.broadcast %cst_11 : f32 to vector<16x128xf32>
      %c0_12 = arith.constant 0 : index
      %c0_13 = arith.constant 0 : index
      %14 = vector.load %arg7[%c0_12, %c0_13] : memref<16x128xf32, #tpu.memory_space<vmem>>, vector<16x128xf32>
      tpu.vector_store %arg7[%c0_12, %c0_13], %13 {strides = array<i32>} : memref<16x128xf32, #tpu.memory_space<vmem>>, vector<16x128xf32>,
    } else {
    }
    %c0 = arith.constant 0 : index
    %c0_1 = arith.constant 0 : index
    %3 = vector.load %arg3[%c0, %c0_1] : memref<16x432xbf16, #tpu.memory_space<vmem>>, vector<16x432xbf16>
    %c0_2 = arith.constant 0 : index
    %c0_3 = arith.constant 0 : index
    %4 = vector.load %arg7[%c0_2, %c0_3] : memref<16x128xf32, #tpu.memory_space<vmem>>, vector<16x128xf32>
    %c0_4 = arith.constant 0 : index
    %c0_5 = arith.constant 0 : index
    %c0_6 = arith.constant 0 : index
    %5 = vector.load %arg4[%c0_4, %c0_5, %c0_6] : memref<1x432x128xbf16, #tpu.memory_space<vmem>>, vector<1x432x128xbf16>
    %6 = vector.shape_cast %5 : vector<1x432x128xbf16> to vector<432x128xbf16>
    %cst = arith.constant dense<0.000000e+00> : vector<16x128xf32>
    %7 = tpu.matmul %3, %6, %cst {dimension_numbers = #tpu.dot_dimension_numbers<[1], [0], [0], [1], [0, 0, 1, 1], [], []>} : vector<16x432xbf16>, vector<432x128xbf16>, vector<16x128xf32> -> vector<16x128xf32>
    %8 = arith.addf %4, %7 : vector<16x128xf32>
    %c0_7 = arith.constant 0 : index
    %c0_8 = arith.constant 0 : index
    %9 = vector.load %arg7[%c0_7, %c0_8] : memref<16x128xf32, #tpu.memory_space<vmem>>, vector<16x128xf32>
    tpu.vector_store %arg7[%c0_7, %c0_8], %8 {strides = array<i32>} : memref<16x128xf32, #tpu.memory_space<vmem>>, vector<16x128xf32>,
    %c0_i32_9 = arith.constant 0 : i32
    %10 = arith.cmpi eq, %arg2, %c0_i32_9 : i32
    %11 = arith.extui %10 : i1 to i32
    %c0_i32_10 = arith.constant 0 : i32
    %12 = arith.cmpi ne, %11, %c0_i32_10 : i32
    scf.if %12 {
      %c0_11 = arith.constant 0 : index
      %c0_12 = arith.constant 0 : index
      %13 = vector.load %arg7[%c0_11, %c0_12] : memref<16x128xf32, #tpu.memory_space<vmem>>, vector<16x128xf32>
      %c0_13 = arith.constant 0 : index
      %c0_14 = arith.constant 0 : index
      %14 = vector.load %arg5[%c0_13, %c0_14] : memref<16x1xf32, #tpu.memory_space<vmem>>, vector<16x1xf32>
      %15 = vector.broadcast %14 : vector<16x1xf32> to vector<16x128xf32>
      %16 = arith.addf %13, %15 : vector<16x128xf32>
      %17 = arith.truncf %16 : vector<16x128xf32> to vector<16x128xbf16>
      %c0_15 = arith.constant 0 : index
      %c0_16 = arith.constant 0 : index
      %c0_17 = arith.constant 0 : index
      %18 = vector.load %arg6[%c0_15, %c0_16, %c0_17] : memref<1x16x128xbf16, #tpu.memory_space<vmem>>, vector<1x16x128xbf16>
      %19 = vector.shape_cast %18 : vector<1x16x128xbf16> to vector<16x128xbf16>
      %20 = vector.shape_cast %17 : vector<16x128xbf16> to vector<1x16x128xbf16>
      tpu.vector_store %arg6[%c0_15, %c0_16, %c0_17], %20 {strides = array<i32>} : memref<1x16x128xbf16, #tpu.memory_space<vmem>>, vector<1x16x128xbf16>,
    } else {
    }
    return
  }
  func.func @transform_0(%arg0: i32, %arg1: i32, %arg2: i32) -> (i32, i32) {
    %c0_i32 = arith.constant 0 : i32
    %c0_i32_0 = arith.constant 0 : i32
    %c0_i32_1 = arith.constant 0 : i32
    return %c0_i32, %c0_i32_0 : i32, i32
  }
  func.func @transform_1(%arg0: i32, %arg1: i32, %arg2: i32) -> (i32, i32, i32) {
    %c0_i32 = arith.constant 0 : i32
    return %arg0, %arg2, %arg1 : i32, i32, i32
  }
  func.func @transform_2(%arg0: i32, %arg1: i32, %arg2: i32) -> (i32, i32) {
    %c0_i32 = arith.constant 0 : i32
    %c0_i32_0 = arith.constant 0 : i32
    %c0_i32_1 = arith.constant 0 : i32
    return %c0_i32, %c0_i32_0 : i32, i32
  }
  func.func @transform_3(%arg0: i32, %arg1: i32, %arg2: i32) -> (i32, i32, i32) {
    %c0_i32 = arith.constant 0 : i32
    %c0_i32_0 = arith.constant 0 : i32
    return %arg0, %c0_i32, %arg1 : i32, i32, i32
  }
}

module attributes {stable_mosaic.version = 11 : i64} {
  func.func @_matmul_bias_kernel(%arg0: i32, %arg1: i32, %arg2: i32, %arg3: memref<32x432xbf16, #tpu.memory_space<vmem>>, %arg4: memref<1x432x128xbf16, #tpu.memory_space<vmem>>, %arg5: memref<32x1xf32, #tpu.memory_space<vmem>>, %arg6: memref<1x32x128xbf16, #tpu.memory_space<vmem>>, %arg7: memref<32x128xf32, #tpu.memory_space<vmem>>) attributes {dimension_semantics = [#tpu.dimension_semantics<parallel>, #tpu.dimension_semantics<parallel>, #tpu.dimension_semantics<arbitrary>], iteration_bounds = array<i64: 2, 1, 1>, scalar_prefetch = 0 : i64, scratch_operands = 1 : i64, tpu.core_type = #tpu.core_type<tc>, window_params = [{pipeline_mode = #tpu.pipeline_mode<synchronous>, transform_indices = @transform_0, window_bounds = array<i64: 32, 432>}, {transform_indices = @transform_1, window_bounds = array<i64: 1, 432, 128>}, {pipeline_mode = #tpu.pipeline_mode<synchronous>, transform_indices = @transform_2, window_bounds = array<i64: 32, 1>}, {transform_indices = @transform_3, window_bounds = array<i64: 1, 32, 128>}]} {
    %c0_i32 = arith.constant 0 : i32
    %0 = arith.cmpi eq, %arg2, %c0_i32 : i32
    %1 = arith.extui %0 : i1 to i32
    %c0_i32_0 = arith.constant 0 : i32
    %2 = arith.cmpi ne, %1, %c0_i32_0 : i32
    scf.if %2 {
      %cst_11 = arith.constant 0.000000e+00 : f32
      %13 = vector.broadcast %cst_11 : f32 to vector<32x128xf32>
      %c0_12 = arith.constant 0 : index
      %c0_13 = arith.constant 0 : index
      %14 = vector.load %arg7[%c0_12, %c0_13] : memref<32x128xf32, #tpu.memory_space<vmem>>, vector<32x128xf32>
      tpu.vector_store %arg7[%c0_12, %c0_13], %13 {strides = array<i32>} : memref<32x128xf32, #tpu.memory_space<vmem>>, vector<32x128xf32>,
    } else {
    }
    %c0 = arith.constant 0 : index
    %c0_1 = arith.constant 0 : index
    %3 = vector.load %arg3[%c0, %c0_1] : memref<32x432xbf16, #tpu.memory_space<vmem>>, vector<32x432xbf16>
    %c0_2 = arith.constant 0 : index
    %c0_3 = arith.constant 0 : index
    %4 = vector.load %arg7[%c0_2, %c0_3] : memref<32x128xf32, #tpu.memory_space<vmem>>, vector<32x128xf32>
    %c0_4 = arith.constant 0 : index
    %c0_5 = arith.constant 0 : index
    %c0_6 = arith.constant 0 : index
    %5 = vector.load %arg4[%c0_4, %c0_5, %c0_6] : memref<1x432x128xbf16, #tpu.memory_space<vmem>>, vector<1x432x128xbf16>
    %6 = vector.shape_cast %5 : vector<1x432x128xbf16> to vector<432x128xbf16>
    %cst = arith.constant dense<0.000000e+00> : vector<32x128xf32>
    %7 = tpu.matmul %3, %6, %cst {dimension_numbers = #tpu.dot_dimension_numbers<[1], [0], [0], [1], [0, 0, 1, 1], [], []>} : vector<32x432xbf16>, vector<432x128xbf16>, vector<32x128xf32> -> vector<32x128xf32>
    %8 = arith.addf %4, %7 : vector<32x128xf32>
    %c0_7 = arith.constant 0 : index
    %c0_8 = arith.constant 0 : index
    %9 = vector.load %arg7[%c0_7, %c0_8] : memref<32x128xf32, #tpu.memory_space<vmem>>, vector<32x128xf32>
    tpu.vector_store %arg7[%c0_7, %c0_8], %8 {strides = array<i32>} : memref<32x128xf32, #tpu.memory_space<vmem>>, vector<32x128xf32>,
    %c0_i32_9 = arith.constant 0 : i32
    %10 = arith.cmpi eq, %arg2, %c0_i32_9 : i32
    %11 = arith.extui %10 : i1 to i32
    %c0_i32_10 = arith.constant 0 : i32
    %12 = arith.cmpi ne, %11, %c0_i32_10 : i32
    scf.if %12 {
      %c0_11 = arith.constant 0 : index
      %c0_12 = arith.constant 0 : index
      %13 = vector.load %arg7[%c0_11, %c0_12] : memref<32x128xf32, #tpu.memory_space<vmem>>, vector<32x128xf32>
      %c0_13 = arith.constant 0 : index
      %c0_14 = arith.constant 0 : index
      %14 = vector.load %arg5[%c0_13, %c0_14] : memref<32x1xf32, #tpu.memory_space<vmem>>, vector<32x1xf32>
      %15 = vector.broadcast %14 : vector<32x1xf32> to vector<32x128xf32>
      %16 = arith.addf %13, %15 : vector<32x128xf32>
      %17 = arith.truncf %16 : vector<32x128xf32> to vector<32x128xbf16>
      %c0_15 = arith.constant 0 : index
      %c0_16 = arith.constant 0 : index
      %c0_17 = arith.constant 0 : index
      %18 = vector.load %arg6[%c0_15, %c0_16, %c0_17] : memref<1x32x128xbf16, #tpu.memory_space<vmem>>, vector<1x32x128xbf16>
      %19 = vector.shape_cast %18 : vector<1x32x128xbf16> to vector<32x128xbf16>
      %20 = vector.shape_cast %17 : vector<32x128xbf16> to vector<1x32x128xbf16>
      tpu.vector_store %arg6[%c0_15, %c0_16, %c0_17], %20 {strides = array<i32>} : memref<1x32x128xbf16, #tpu.memory_space<vmem>>, vector<1x32x128xbf16>,
    } else {
    }
    return
  }
  func.func @transform_0(%arg0: i32, %arg1: i32, %arg2: i32) -> (i32, i32) {
    %c0_i32 = arith.constant 0 : i32
    %c0_i32_0 = arith.constant 0 : i32
    %c0_i32_1 = arith.constant 0 : i32
    return %c0_i32, %c0_i32_0 : i32, i32
  }
  func.func @transform_1(%arg0: i32, %arg1: i32, %arg2: i32) -> (i32, i32, i32) {
    %c0_i32 = arith.constant 0 : i32
    return %arg0, %arg2, %arg1 : i32, i32, i32
  }
  func.func @transform_2(%arg0: i32, %arg1: i32, %arg2: i32) -> (i32, i32) {
    %c0_i32 = arith.constant 0 : i32
    %c0_i32_0 = arith.constant 0 : i32
    %c0_i32_1 = arith.constant 0 : i32
    return %c0_i32, %c0_i32_0 : i32, i32
  }
  func.func @transform_3(%arg0: i32, %arg1: i32, %arg2: i32) -> (i32, i32, i32) {
    %c0_i32 = arith.constant 0 : i32
    %c0_i32_0 = arith.constant 0 : i32
    return %arg0, %c0_i32, %arg1 : i32, i32, i32
  }
}

module attributes {stable_mosaic.version = 11 : i64} {
  func.func @_in_fused_kernel(%arg0: i32, %arg1: memref<64x1xbf16, #tpu.memory_space<vmem>>, %arg2: memref<1x1xf32, #tpu.memory_space<vmem>>, %arg3: memref<64x1xbf16, #tpu.memory_space<vmem>>) attributes {dimension_semantics = [#tpu.dimension_semantics<parallel>], iteration_bounds = array<i64: 1>, scalar_prefetch = 0 : i64, scratch_operands = 0 : i64, tpu.core_type = #tpu.core_type<tc>, window_params = [{transform_indices = @transform_0, window_bounds = array<i64: 64, 1>}, {pipeline_mode = #tpu.pipeline_mode<synchronous>, transform_indices = @transform_1, window_bounds = array<i64: 1, 1>}, {transform_indices = @transform_2, window_bounds = array<i64: 64, 1>}]} {
    %c0 = arith.constant 0 : index
    %c0_0 = arith.constant 0 : index
    %0 = vector.load %arg1[%c0, %c0_0] : memref<64x1xbf16, #tpu.memory_space<vmem>>, vector<64x1xbf16>
    %1 = arith.extf %0 : vector<64x1xbf16> to vector<64x1xf32>
    %cst = arith.constant dense<0.000000e+00> : vector<64xf32>
    %2 = vector.multi_reduction <add>, %1, %cst [1] : vector<64x1xf32> to vector<64xf32>
    %3 = vector.shape_cast %2 : vector<64xf32> to vector<64x1xf32>
    %cst_1 = arith.constant 1.000000e+00 : f32
    %4 = vector.broadcast %cst_1 : f32 to vector<64x1xf32>
    %5 = arith.mulf %3, %4 : vector<64x1xf32>
    %6 = arith.mulf %1, %1 : vector<64x1xf32>
    %cst_2 = arith.constant dense<0.000000e+00> : vector<64xf32>
    %7 = vector.multi_reduction <add>, %6, %cst_2 [1] : vector<64x1xf32> to vector<64xf32>
    %8 = vector.shape_cast %7 : vector<64xf32> to vector<64x1xf32>
    %cst_3 = arith.constant 1.000000e+00 : f32
    %9 = vector.broadcast %cst_3 : f32 to vector<64x1xf32>
    %10 = arith.mulf %8, %9 : vector<64x1xf32>
    %11 = arith.mulf %5, %5 : vector<64x1xf32>
    %12 = arith.subf %10, %11 : vector<64x1xf32>
    %cst_4 = arith.constant 0.000000e+00 : f32
    %13 = vector.broadcast %cst_4 : f32 to vector<64x1xf32>
    %14 = arith.maximumf %12, %13 : vector<64x1xf32>
    %15 = arith.subf %1, %5 : vector<64x1xf32>
    %cst_5 = arith.constant 9.99999974E-6 : f32
    %16 = vector.broadcast %cst_5 : f32 to vector<64x1xf32>
    %17 = arith.addf %14, %16 : vector<64x1xf32>
    %18 = math.rsqrt %17 : vector<64x1xf32>
    %19 = arith.mulf %15, %18 : vector<64x1xf32>
    %c0_6 = arith.constant 0 : index
    %c0_7 = arith.constant 0 : index
    %20 = vector.load %arg2[%c0_6, %c0_7] : memref<1x1xf32, #tpu.memory_space<vmem>>, vector<1x1xf32>
    %21 = vector.extract %20[0, 0] : f32 from vector<1x1xf32>
    %cst_8 = arith.constant 0.000000e+00 : f32
    %22 = vector.broadcast %cst_8 : f32 to vector<64x1xf32>
    %23 = arith.cmpf oge, %19, %22 : vector<64x1xf32>
    %24 = vector.broadcast %21 : f32 to vector<64x1xf32>
    %25 = arith.mulf %24, %19 : vector<64x1xf32>
    %26 = arith.select %23, %19, %25 : vector<64x1xi1>, vector<64x1xf32>
    %27 = arith.truncf %26 : vector<64x1xf32> to vector<64x1xbf16>
    %c0_9 = arith.constant 0 : index
    %c0_10 = arith.constant 0 : index
    %28 = vector.load %arg3[%c0_9, %c0_10] : memref<64x1xbf16, #tpu.memory_space<vmem>>, vector<64x1xbf16>
    tpu.vector_store %arg3[%c0_9, %c0_10], %27 {strides = array<i32>} : memref<64x1xbf16, #tpu.memory_space<vmem>>, vector<64x1xbf16>,
    return
  }
  func.func @transform_0(%arg0: i32) -> (i32, i32) {
    %c0_i32 = arith.constant 0 : i32
    %c0_i32_0 = arith.constant 0 : i32
    return %arg0, %c0_i32 : i32, i32
  }
  func.func @transform_1(%arg0: i32) -> (i32, i32) {
    %c0_i32 = arith.constant 0 : i32
    %c0_i32_0 = arith.constant 0 : i32
    %c0_i32_1 = arith.constant 0 : i32
    return %c0_i32, %c0_i32_0 : i32, i32
  }
  func.func @transform_2(%arg0: i32) -> (i32, i32) {
    %c0_i32 = arith.constant 0 : i32
    %c0_i32_0 = arith.constant 0 : i32
    return %arg0, %c0_i32 : i32, i32
  }
}

module attributes {stable_mosaic.version = 11 : i64} {
  func.func @_matmul_bias_kernel(%arg0: i32, %arg1: i32, %arg2: i32, %arg3: memref<32x1024xbf16, #tpu.memory_space<vmem>>, %arg4: memref<1x512x128xbf16, #tpu.memory_space<vmem>>, %arg5: memref<32x1xf32, #tpu.memory_space<vmem>>, %arg6: memref<1x32x128xbf16, #tpu.memory_space<vmem>>, %arg7: memref<32x128xf32, #tpu.memory_space<vmem>>) attributes {dimension_semantics = [#tpu.dimension_semantics<parallel>, #tpu.dimension_semantics<parallel>, #tpu.dimension_semantics<arbitrary>], iteration_bounds = array<i64: 2, 1, 2>, scalar_prefetch = 0 : i64, scratch_operands = 1 : i64, tpu.core_type = #tpu.core_type<tc>, window_params = [{pipeline_mode = #tpu.pipeline_mode<synchronous>, transform_indices = @transform_0, window_bounds = array<i64: 32, 1024>}, {transform_indices = @transform_1, window_bounds = array<i64: 1, 512, 128>}, {pipeline_mode = #tpu.pipeline_mode<synchronous>, transform_indices = @transform_2, window_bounds = array<i64: 32, 1>}, {transform_indices = @transform_3, window_bounds = array<i64: 1, 32, 128>}]} {
    %c0_i32 = arith.constant 0 : i32
    %0 = arith.cmpi eq, %arg2, %c0_i32 : i32
    %1 = arith.extui %0 : i1 to i32
    %c0_i32_0 = arith.constant 0 : i32
    %2 = arith.cmpi ne, %1, %c0_i32_0 : i32
    scf.if %2 {
      %cst_9 = arith.constant 0.000000e+00 : f32
      %16 = vector.broadcast %cst_9 : f32 to vector<32x128xf32>
      %c0_10 = arith.constant 0 : index
      %c0_11 = arith.constant 0 : index
      %17 = vector.load %arg7[%c0_10, %c0_11] : memref<32x128xf32, #tpu.memory_space<vmem>>, vector<32x128xf32>
      tpu.vector_store %arg7[%c0_10, %c0_11], %16 {strides = array<i32>} : memref<32x128xf32, #tpu.memory_space<vmem>>, vector<32x128xf32>,
    } else {
    }
    %c512_i32 = arith.constant 512 : i32
    %3 = arith.muli %arg2, %c512_i32 : i32
    %4 = tpu.assume_multiple %3, 512 : i32
    %c0 = arith.constant 0 : index
    %5 = arith.index_cast %4 : i32 to index
    %6 = vector.load %arg3[%c0, %5] : memref<32x1024xbf16, #tpu.memory_space<vmem>>, vector<32x512xbf16>
    %c0_1 = arith.constant 0 : index
    %c0_2 = arith.constant 0 : index
    %7 = vector.load %arg7[%c0_1, %c0_2] : memref<32x128xf32, #tpu.memory_space<vmem>>, vector<32x128xf32>
    %c0_3 = arith.constant 0 : index
    %c0_4 = arith.constant 0 : index
    %c0_5 = arith.constant 0 : index
    %8 = vector.load %arg4[%c0_3, %c0_4, %c0_5] : memref<1x512x128xbf16, #tpu.memory_space<vmem>>, vector<1x512x128xbf16>
    %9 = vector.shape_cast %8 : vector<1x512x128xbf16> to vector<512x128xbf16>
    %cst = arith.constant dense<0.000000e+00> : vector<32x128xf32>
    %10 = tpu.matmul %6, %9, %cst {dimension_numbers = #tpu.dot_dimension_numbers<[1], [0], [0], [1], [0, 0, 1, 1], [], []>} : vector<32x512xbf16>, vector<512x128xbf16>, vector<32x128xf32> -> vector<32x128xf32>
    %11 = arith.addf %7, %10 : vector<32x128xf32>
    %c0_6 = arith.constant 0 : index
    %c0_7 = arith.constant 0 : index
    %12 = vector.load %arg7[%c0_6, %c0_7] : memref<32x128xf32, #tpu.memory_space<vmem>>, vector<32x128xf32>
    tpu.vector_store %arg7[%c0_6, %c0_7], %11 {strides = array<i32>} : memref<32x128xf32, #tpu.memory_space<vmem>>, vector<32x128xf32>,
    %c1_i32 = arith.constant 1 : i32
    %13 = arith.cmpi eq, %arg2, %c1_i32 : i32
    %14 = arith.extui %13 : i1 to i32
    %c0_i32_8 = arith.constant 0 : i32
    %15 = arith.cmpi ne, %14, %c0_i32_8 : i32
    scf.if %15 {
      %c0_9 = arith.constant 0 : index
      %c0_10 = arith.constant 0 : index
      %16 = vector.load %arg7[%c0_9, %c0_10] : memref<32x128xf32, #tpu.memory_space<vmem>>, vector<32x128xf32>
      %c0_11 = arith.constant 0 : index
      %c0_12 = arith.constant 0 : index
      %17 = vector.load %arg5[%c0_11, %c0_12] : memref<32x1xf32, #tpu.memory_space<vmem>>, vector<32x1xf32>
      %18 = vector.broadcast %17 : vector<32x1xf32> to vector<32x128xf32>
      %19 = arith.addf %16, %18 : vector<32x128xf32>
      %20 = arith.truncf %19 : vector<32x128xf32> to vector<32x128xbf16>
      %c0_13 = arith.constant 0 : index
      %c0_14 = arith.constant 0 : index
      %c0_15 = arith.constant 0 : index
      %21 = vector.load %arg6[%c0_13, %c0_14, %c0_15] : memref<1x32x128xbf16, #tpu.memory_space<vmem>>, vector<1x32x128xbf16>
      %22 = vector.shape_cast %21 : vector<1x32x128xbf16> to vector<32x128xbf16>
      %23 = vector.shape_cast %20 : vector<32x128xbf16> to vector<1x32x128xbf16>
      tpu.vector_store %arg6[%c0_13, %c0_14, %c0_15], %23 {strides = array<i32>} : memref<1x32x128xbf16, #tpu.memory_space<vmem>>, vector<1x32x128xbf16>,
    } else {
    }
    return
  }
  func.func @transform_0(%arg0: i32, %arg1: i32, %arg2: i32) -> (i32, i32) {
    %c0_i32 = arith.constant 0 : i32
    %c0_i32_0 = arith.constant 0 : i32
    %c0_i32_1 = arith.constant 0 : i32
    return %c0_i32, %c0_i32_0 : i32, i32
  }
  func.func @transform_1(%arg0: i32, %arg1: i32, %arg2: i32) -> (i32, i32, i32) {
    %c0_i32 = arith.constant 0 : i32
    return %arg0, %arg2, %arg1 : i32, i32, i32
  }
  func.func @transform_2(%arg0: i32, %arg1: i32, %arg2: i32) -> (i32, i32) {
    %c0_i32 = arith.constant 0 : i32
    %c0_i32_0 = arith.constant 0 : i32
    %c0_i32_1 = arith.constant 0 : i32
    return %c0_i32, %c0_i32_0 : i32, i32
  }
  func.func @transform_3(%arg0: i32, %arg1: i32, %arg2: i32) -> (i32, i32, i32) {
    %c0_i32 = arith.constant 0 : i32
    %c0_i32_0 = arith.constant 0 : i32
    return %arg0, %c0_i32, %arg1 : i32, i32, i32
  }
}

module attributes {stable_mosaic.version = 11 : i64} {
  func.func @_matmul_bias_kernel(%arg0: i32, %arg1: i32, %arg2: i32, %arg3: memref<64x32xbf16, #tpu.memory_space<vmem>>, %arg4: memref<1x32x128xbf16, #tpu.memory_space<vmem>>, %arg5: memref<64x1xf32, #tpu.memory_space<vmem>>, %arg6: memref<1x64x128xbf16, #tpu.memory_space<vmem>>, %arg7: memref<64x128xf32, #tpu.memory_space<vmem>>) attributes {dimension_semantics = [#tpu.dimension_semantics<parallel>, #tpu.dimension_semantics<parallel>, #tpu.dimension_semantics<arbitrary>], iteration_bounds = array<i64: 2, 1, 1>, scalar_prefetch = 0 : i64, scratch_operands = 1 : i64, tpu.core_type = #tpu.core_type<tc>, window_params = [{pipeline_mode = #tpu.pipeline_mode<synchronous>, transform_indices = @transform_0, window_bounds = array<i64: 64, 32>}, {transform_indices = @transform_1, window_bounds = array<i64: 1, 32, 128>}, {pipeline_mode = #tpu.pipeline_mode<synchronous>, transform_indices = @transform_2, window_bounds = array<i64: 64, 1>}, {transform_indices = @transform_3, window_bounds = array<i64: 1, 64, 128>}]} {
    %c0_i32 = arith.constant 0 : i32
    %0 = arith.cmpi eq, %arg2, %c0_i32 : i32
    %1 = arith.extui %0 : i1 to i32
    %c0_i32_0 = arith.constant 0 : i32
    %2 = arith.cmpi ne, %1, %c0_i32_0 : i32
    scf.if %2 {
      %cst_11 = arith.constant 0.000000e+00 : f32
      %13 = vector.broadcast %cst_11 : f32 to vector<64x128xf32>
      %c0_12 = arith.constant 0 : index
      %c0_13 = arith.constant 0 : index
      %14 = vector.load %arg7[%c0_12, %c0_13] : memref<64x128xf32, #tpu.memory_space<vmem>>, vector<64x128xf32>
      tpu.vector_store %arg7[%c0_12, %c0_13], %13 {strides = array<i32>} : memref<64x128xf32, #tpu.memory_space<vmem>>, vector<64x128xf32>,
    } else {
    }
    %c0 = arith.constant 0 : index
    %c0_1 = arith.constant 0 : index
    %3 = vector.load %arg3[%c0, %c0_1] : memref<64x32xbf16, #tpu.memory_space<vmem>>, vector<64x32xbf16>
    %c0_2 = arith.constant 0 : index
    %c0_3 = arith.constant 0 : index
    %4 = vector.load %arg7[%c0_2, %c0_3] : memref<64x128xf32, #tpu.memory_space<vmem>>, vector<64x128xf32>
    %c0_4 = arith.constant 0 : index
    %c0_5 = arith.constant 0 : index
    %c0_6 = arith.constant 0 : index
    %5 = vector.load %arg4[%c0_4, %c0_5, %c0_6] : memref<1x32x128xbf16, #tpu.memory_space<vmem>>, vector<1x32x128xbf16>
    %6 = vector.shape_cast %5 : vector<1x32x128xbf16> to vector<32x128xbf16>
    %cst = arith.constant dense<0.000000e+00> : vector<64x128xf32>
    %7 = tpu.matmul %3, %6, %cst {dimension_numbers = #tpu.dot_dimension_numbers<[1], [0], [0], [1], [0, 0, 1, 1], [], []>} : vector<64x32xbf16>, vector<32x128xbf16>, vector<64x128xf32> -> vector<64x128xf32>
    %8 = arith.addf %4, %7 : vector<64x128xf32>
    %c0_7 = arith.constant 0 : index
    %c0_8 = arith.constant 0 : index
    %9 = vector.load %arg7[%c0_7, %c0_8] : memref<64x128xf32, #tpu.memory_space<vmem>>, vector<64x128xf32>
    tpu.vector_store %arg7[%c0_7, %c0_8], %8 {strides = array<i32>} : memref<64x128xf32, #tpu.memory_space<vmem>>, vector<64x128xf32>,
    %c0_i32_9 = arith.constant 0 : i32
    %10 = arith.cmpi eq, %arg2, %c0_i32_9 : i32
    %11 = arith.extui %10 : i1 to i32
    %c0_i32_10 = arith.constant 0 : i32
    %12 = arith.cmpi ne, %11, %c0_i32_10 : i32
    scf.if %12 {
      %c0_11 = arith.constant 0 : index
      %c0_12 = arith.constant 0 : index
      %13 = vector.load %arg7[%c0_11, %c0_12] : memref<64x128xf32, #tpu.memory_space<vmem>>, vector<64x128xf32>
      %c0_13 = arith.constant 0 : index
      %c0_14 = arith.constant 0 : index
      %14 = vector.load %arg5[%c0_13, %c0_14] : memref<64x1xf32, #tpu.memory_space<vmem>>, vector<64x1xf32>
      %15 = vector.broadcast %14 : vector<64x1xf32> to vector<64x128xf32>
      %16 = arith.addf %13, %15 : vector<64x128xf32>
      %17 = arith.truncf %16 : vector<64x128xf32> to vector<64x128xbf16>
      %c0_15 = arith.constant 0 : index
      %c0_16 = arith.constant 0 : index
      %c0_17 = arith.constant 0 : index
      %18 = vector.load %arg6[%c0_15, %c0_16, %c0_17] : memref<1x64x128xbf16, #tpu.memory_space<vmem>>, vector<1x64x128xbf16>
      %19 = vector.shape_cast %18 : vector<1x64x128xbf16> to vector<64x128xbf16>
      %20 = vector.shape_cast %17 : vector<64x128xbf16> to vector<1x64x128xbf16>
      tpu.vector_store %arg6[%c0_15, %c0_16, %c0_17], %20 {strides = array<i32>} : memref<1x64x128xbf16, #tpu.memory_space<vmem>>, vector<1x64x128xbf16>,
    } else {
    }
    return
  }
  func.func @transform_0(%arg0: i32, %arg1: i32, %arg2: i32) -> (i32, i32) {
    %c0_i32 = arith.constant 0 : i32
    %c0_i32_0 = arith.constant 0 : i32
    %c0_i32_1 = arith.constant 0 : i32
    return %c0_i32, %c0_i32_0 : i32, i32
  }
  func.func @transform_1(%arg0: i32, %arg1: i32, %arg2: i32) -> (i32, i32, i32) {
    %c0_i32 = arith.constant 0 : i32
    return %arg0, %arg2, %arg1 : i32, i32, i32
  }
  func.func @transform_2(%arg0: i32, %arg1: i32, %arg2: i32) -> (i32, i32) {
    %c0_i32 = arith.constant 0 : i32
    %c0_i32_0 = arith.constant 0 : i32
    %c0_i32_1 = arith.constant 0 : i32
    return %c0_i32, %c0_i32_0 : i32, i32
  }
  func.func @transform_3(%arg0: i32, %arg1: i32, %arg2: i32) -> (i32, i32, i32) {
    %c0_i32 = arith.constant 0 : i32
    %c0_i32_0 = arith.constant 0 : i32
    return %arg0, %c0_i32, %arg1 : i32, i32, i32
  }
}

module attributes {stable_mosaic.version = 11 : i64} {
  func.func @_matmul_bias_kernel(%arg0: i32, %arg1: i32, %arg2: i32, %arg3: memref<64x1024xbf16, #tpu.memory_space<vmem>>, %arg4: memref<1x512x128xbf16, #tpu.memory_space<vmem>>, %arg5: memref<64x1xf32, #tpu.memory_space<vmem>>, %arg6: memref<1x64x128xbf16, #tpu.memory_space<vmem>>, %arg7: memref<64x128xf32, #tpu.memory_space<vmem>>) attributes {dimension_semantics = [#tpu.dimension_semantics<parallel>, #tpu.dimension_semantics<parallel>, #tpu.dimension_semantics<arbitrary>], iteration_bounds = array<i64: 2, 1, 2>, scalar_prefetch = 0 : i64, scratch_operands = 1 : i64, tpu.core_type = #tpu.core_type<tc>, window_params = [{pipeline_mode = #tpu.pipeline_mode<synchronous>, transform_indices = @transform_0, window_bounds = array<i64: 64, 1024>}, {transform_indices = @transform_1, window_bounds = array<i64: 1, 512, 128>}, {pipeline_mode = #tpu.pipeline_mode<synchronous>, transform_indices = @transform_2, window_bounds = array<i64: 64, 1>}, {transform_indices = @transform_3, window_bounds = array<i64: 1, 64, 128>}]} {
    %c0_i32 = arith.constant 0 : i32
    %0 = arith.cmpi eq, %arg2, %c0_i32 : i32
    %1 = arith.extui %0 : i1 to i32
    %c0_i32_0 = arith.constant 0 : i32
    %2 = arith.cmpi ne, %1, %c0_i32_0 : i32
    scf.if %2 {
      %cst_9 = arith.constant 0.000000e+00 : f32
      %16 = vector.broadcast %cst_9 : f32 to vector<64x128xf32>
      %c0_10 = arith.constant 0 : index
      %c0_11 = arith.constant 0 : index
      %17 = vector.load %arg7[%c0_10, %c0_11] : memref<64x128xf32, #tpu.memory_space<vmem>>, vector<64x128xf32>
      tpu.vector_store %arg7[%c0_10, %c0_11], %16 {strides = array<i32>} : memref<64x128xf32, #tpu.memory_space<vmem>>, vector<64x128xf32>,
    } else {
    }
    %c512_i32 = arith.constant 512 : i32
    %3 = arith.muli %arg2, %c512_i32 : i32
    %4 = tpu.assume_multiple %3, 512 : i32
    %c0 = arith.constant 0 : index
    %5 = arith.index_cast %4 : i32 to index
    %6 = vector.load %arg3[%c0, %5] : memref<64x1024xbf16, #tpu.memory_space<vmem>>, vector<64x512xbf16>
    %c0_1 = arith.constant 0 : index
    %c0_2 = arith.constant 0 : index
    %7 = vector.load %arg7[%c0_1, %c0_2] : memref<64x128xf32, #tpu.memory_space<vmem>>, vector<64x128xf32>
    %c0_3 = arith.constant 0 : index
    %c0_4 = arith.constant 0 : index
    %c0_5 = arith.constant 0 : index
    %8 = vector.load %arg4[%c0_3, %c0_4, %c0_5] : memref<1x512x128xbf16, #tpu.memory_space<vmem>>, vector<1x512x128xbf16>
    %9 = vector.shape_cast %8 : vector<1x512x128xbf16> to vector<512x128xbf16>
    %cst = arith.constant dense<0.000000e+00> : vector<64x128xf32>
    %10 = tpu.matmul %6, %9, %cst {dimension_numbers = #tpu.dot_dimension_numbers<[1], [0], [0], [1], [0, 0, 1, 1], [], []>} : vector<64x512xbf16>, vector<512x128xbf16>, vector<64x128xf32> -> vector<64x128xf32>
    %11 = arith.addf %7, %10 : vector<64x128xf32>
    %c0_6 = arith.constant 0 : index
    %c0_7 = arith.constant 0 : index
    %12 = vector.load %arg7[%c0_6, %c0_7] : memref<64x128xf32, #tpu.memory_space<vmem>>, vector<64x128xf32>
    tpu.vector_store %arg7[%c0_6, %c0_7], %11 {strides = array<i32>} : memref<64x128xf32, #tpu.memory_space<vmem>>, vector<64x128xf32>,
    %c1_i32 = arith.constant 1 : i32
    %13 = arith.cmpi eq, %arg2, %c1_i32 : i32
    %14 = arith.extui %13 : i1 to i32
    %c0_i32_8 = arith.constant 0 : i32
    %15 = arith.cmpi ne, %14, %c0_i32_8 : i32
    scf.if %15 {
      %c0_9 = arith.constant 0 : index
      %c0_10 = arith.constant 0 : index
      %16 = vector.load %arg7[%c0_9, %c0_10] : memref<64x128xf32, #tpu.memory_space<vmem>>, vector<64x128xf32>
      %c0_11 = arith.constant 0 : index
      %c0_12 = arith.constant 0 : index
      %17 = vector.load %arg5[%c0_11, %c0_12] : memref<64x1xf32, #tpu.memory_space<vmem>>, vector<64x1xf32>
      %18 = vector.broadcast %17 : vector<64x1xf32> to vector<64x128xf32>
      %19 = arith.addf %16, %18 : vector<64x128xf32>
      %20 = arith.truncf %19 : vector<64x128xf32> to vector<64x128xbf16>
      %c0_13 = arith.constant 0 : index
      %c0_14 = arith.constant 0 : index
      %c0_15 = arith.constant 0 : index
      %21 = vector.load %arg6[%c0_13, %c0_14, %c0_15] : memref<1x64x128xbf16, #tpu.memory_space<vmem>>, vector<1x64x128xbf16>
      %22 = vector.shape_cast %21 : vector<1x64x128xbf16> to vector<64x128xbf16>
      %23 = vector.shape_cast %20 : vector<64x128xbf16> to vector<1x64x128xbf16>
      tpu.vector_store %arg6[%c0_13, %c0_14, %c0_15], %23 {strides = array<i32>} : memref<1x64x128xbf16, #tpu.memory_space<vmem>>, vector<1x64x128xbf16>,
    } else {
    }
    return
  }
  func.func @transform_0(%arg0: i32, %arg1: i32, %arg2: i32) -> (i32, i32) {
    %c0_i32 = arith.constant 0 : i32
    %c0_i32_0 = arith.constant 0 : i32
    %c0_i32_1 = arith.constant 0 : i32
    return %c0_i32, %c0_i32_0 : i32, i32
  }
  func.func @transform_1(%arg0: i32, %arg1: i32, %arg2: i32) -> (i32, i32, i32) {
    %c0_i32 = arith.constant 0 : i32
    return %arg0, %arg2, %arg1 : i32, i32, i32
  }
  func.func @transform_2(%arg0: i32, %arg1: i32, %arg2: i32) -> (i32, i32) {
    %c0_i32 = arith.constant 0 : i32
    %c0_i32_0 = arith.constant 0 : i32
    %c0_i32_1 = arith.constant 0 : i32
    return %c0_i32, %c0_i32_0 : i32, i32
  }
  func.func @transform_3(%arg0: i32, %arg1: i32, %arg2: i32) -> (i32, i32, i32) {
    %c0_i32 = arith.constant 0 : i32
    %c0_i32_0 = arith.constant 0 : i32
    return %arg0, %c0_i32, %arg1 : i32, i32, i32
  }
}

module attributes {stable_mosaic.version = 11 : i64} {
  func.func @_in_fused_kernel(%arg0: i32, %arg1: memref<64x1xbf16, #tpu.memory_space<vmem>>, %arg2: memref<1x1xf32, #tpu.memory_space<vmem>>, %arg3: memref<64x1xbf16, #tpu.memory_space<vmem>>) attributes {dimension_semantics = [#tpu.dimension_semantics<parallel>], iteration_bounds = array<i64: 2>, scalar_prefetch = 0 : i64, scratch_operands = 0 : i64, tpu.core_type = #tpu.core_type<tc>, window_params = [{transform_indices = @transform_0, window_bounds = array<i64: 64, 1>}, {pipeline_mode = #tpu.pipeline_mode<synchronous>, transform_indices = @transform_1, window_bounds = array<i64: 1, 1>}, {transform_indices = @transform_2, window_bounds = array<i64: 64, 1>}]} {
    %c0 = arith.constant 0 : index
    %c0_0 = arith.constant 0 : index
    %0 = vector.load %arg1[%c0, %c0_0] : memref<64x1xbf16, #tpu.memory_space<vmem>>, vector<64x1xbf16>
    %1 = arith.extf %0 : vector<64x1xbf16> to vector<64x1xf32>
    %cst = arith.constant dense<0.000000e+00> : vector<64xf32>
    %2 = vector.multi_reduction <add>, %1, %cst [1] : vector<64x1xf32> to vector<64xf32>
    %3 = vector.shape_cast %2 : vector<64xf32> to vector<64x1xf32>
    %cst_1 = arith.constant 1.000000e+00 : f32
    %4 = vector.broadcast %cst_1 : f32 to vector<64x1xf32>
    %5 = arith.mulf %3, %4 : vector<64x1xf32>
    %6 = arith.mulf %1, %1 : vector<64x1xf32>
    %cst_2 = arith.constant dense<0.000000e+00> : vector<64xf32>
    %7 = vector.multi_reduction <add>, %6, %cst_2 [1] : vector<64x1xf32> to vector<64xf32>
    %8 = vector.shape_cast %7 : vector<64xf32> to vector<64x1xf32>
    %cst_3 = arith.constant 1.000000e+00 : f32
    %9 = vector.broadcast %cst_3 : f32 to vector<64x1xf32>
    %10 = arith.mulf %8, %9 : vector<64x1xf32>
    %11 = arith.mulf %5, %5 : vector<64x1xf32>
    %12 = arith.subf %10, %11 : vector<64x1xf32>
    %cst_4 = arith.constant 0.000000e+00 : f32
    %13 = vector.broadcast %cst_4 : f32 to vector<64x1xf32>
    %14 = arith.maximumf %12, %13 : vector<64x1xf32>
    %15 = arith.subf %1, %5 : vector<64x1xf32>
    %cst_5 = arith.constant 9.99999974E-6 : f32
    %16 = vector.broadcast %cst_5 : f32 to vector<64x1xf32>
    %17 = arith.addf %14, %16 : vector<64x1xf32>
    %18 = math.rsqrt %17 : vector<64x1xf32>
    %19 = arith.mulf %15, %18 : vector<64x1xf32>
    %c0_6 = arith.constant 0 : index
    %c0_7 = arith.constant 0 : index
    %20 = vector.load %arg2[%c0_6, %c0_7] : memref<1x1xf32, #tpu.memory_space<vmem>>, vector<1x1xf32>
    %21 = vector.extract %20[0, 0] : f32 from vector<1x1xf32>
    %cst_8 = arith.constant 0.000000e+00 : f32
    %22 = vector.broadcast %cst_8 : f32 to vector<64x1xf32>
    %23 = arith.cmpf oge, %19, %22 : vector<64x1xf32>
    %24 = vector.broadcast %21 : f32 to vector<64x1xf32>
    %25 = arith.mulf %24, %19 : vector<64x1xf32>
    %26 = arith.select %23, %19, %25 : vector<64x1xi1>, vector<64x1xf32>
    %27 = arith.truncf %26 : vector<64x1xf32> to vector<64x1xbf16>
    %c0_9 = arith.constant 0 : index
    %c0_10 = arith.constant 0 : index
    %28 = vector.load %arg3[%c0_9, %c0_10] : memref<64x1xbf16, #tpu.memory_space<vmem>>, vector<64x1xbf16>
    tpu.vector_store %arg3[%c0_9, %c0_10], %27 {strides = array<i32>} : memref<64x1xbf16, #tpu.memory_space<vmem>>, vector<64x1xbf16>,
    return
  }
  func.func @transform_0(%arg0: i32) -> (i32, i32) {
    %c0_i32 = arith.constant 0 : i32
    %c0_i32_0 = arith.constant 0 : i32
    return %arg0, %c0_i32 : i32, i32
  }
  func.func @transform_1(%arg0: i32) -> (i32, i32) {
    %c0_i32 = arith.constant 0 : i32
    %c0_i32_0 = arith.constant 0 : i32
    %c0_i32_1 = arith.constant 0 : i32
    return %c0_i32, %c0_i32_0 : i32, i32
  }
  func.func @transform_2(%arg0: i32) -> (i32, i32) {
    %c0_i32 = arith.constant 0 : i32
    %c0_i32_0 = arith.constant 0 : i32
    return %arg0, %c0_i32 : i32, i32
  }
}

module attributes {stable_mosaic.version = 11 : i64} {
  func.func @_matmul_bias_kernel(%arg0: i32, %arg1: i32, %arg2: i32, %arg3: memref<64x2048xbf16, #tpu.memory_space<vmem>>, %arg4: memref<1x512x128xbf16, #tpu.memory_space<vmem>>, %arg5: memref<64x1xf32, #tpu.memory_space<vmem>>, %arg6: memref<1x64x128xbf16, #tpu.memory_space<vmem>>, %arg7: memref<64x128xf32, #tpu.memory_space<vmem>>) attributes {dimension_semantics = [#tpu.dimension_semantics<parallel>, #tpu.dimension_semantics<parallel>, #tpu.dimension_semantics<arbitrary>], iteration_bounds = array<i64: 2, 1, 4>, scalar_prefetch = 0 : i64, scratch_operands = 1 : i64, tpu.core_type = #tpu.core_type<tc>, window_params = [{pipeline_mode = #tpu.pipeline_mode<synchronous>, transform_indices = @transform_0, window_bounds = array<i64: 64, 2048>}, {transform_indices = @transform_1, window_bounds = array<i64: 1, 512, 128>}, {pipeline_mode = #tpu.pipeline_mode<synchronous>, transform_indices = @transform_2, window_bounds = array<i64: 64, 1>}, {transform_indices = @transform_3, window_bounds = array<i64: 1, 64, 128>}]} {
    %c0_i32 = arith.constant 0 : i32
    %0 = arith.cmpi eq, %arg2, %c0_i32 : i32
    %1 = arith.extui %0 : i1 to i32
    %c0_i32_0 = arith.constant 0 : i32
    %2 = arith.cmpi ne, %1, %c0_i32_0 : i32
    scf.if %2 {
      %cst_9 = arith.constant 0.000000e+00 : f32
      %16 = vector.broadcast %cst_9 : f32 to vector<64x128xf32>
      %c0_10 = arith.constant 0 : index
      %c0_11 = arith.constant 0 : index
      %17 = vector.load %arg7[%c0_10, %c0_11] : memref<64x128xf32, #tpu.memory_space<vmem>>, vector<64x128xf32>
      tpu.vector_store %arg7[%c0_10, %c0_11], %16 {strides = array<i32>} : memref<64x128xf32, #tpu.memory_space<vmem>>, vector<64x128xf32>,
    } else {
    }
    %c512_i32 = arith.constant 512 : i32
    %3 = arith.muli %arg2, %c512_i32 : i32
    %4 = tpu.assume_multiple %3, 512 : i32
    %c0 = arith.constant 0 : index
    %5 = arith.index_cast %4 : i32 to index
    %6 = vector.load %arg3[%c0, %5] : memref<64x2048xbf16, #tpu.memory_space<vmem>>, vector<64x512xbf16>
    %c0_1 = arith.constant 0 : index
    %c0_2 = arith.constant 0 : index
    %7 = vector.load %arg7[%c0_1, %c0_2] : memref<64x128xf32, #tpu.memory_space<vmem>>, vector<64x128xf32>
    %c0_3 = arith.constant 0 : index
    %c0_4 = arith.constant 0 : index
    %c0_5 = arith.constant 0 : index
    %8 = vector.load %arg4[%c0_3, %c0_4, %c0_5] : memref<1x512x128xbf16, #tpu.memory_space<vmem>>, vector<1x512x128xbf16>
    %9 = vector.shape_cast %8 : vector<1x512x128xbf16> to vector<512x128xbf16>
    %cst = arith.constant dense<0.000000e+00> : vector<64x128xf32>
    %10 = tpu.matmul %6, %9, %cst {dimension_numbers = #tpu.dot_dimension_numbers<[1], [0], [0], [1], [0, 0, 1, 1], [], []>} : vector<64x512xbf16>, vector<512x128xbf16>, vector<64x128xf32> -> vector<64x128xf32>
    %11 = arith.addf %7, %10 : vector<64x128xf32>
    %c0_6 = arith.constant 0 : index
    %c0_7 = arith.constant 0 : index
    %12 = vector.load %arg7[%c0_6, %c0_7] : memref<64x128xf32, #tpu.memory_space<vmem>>, vector<64x128xf32>
    tpu.vector_store %arg7[%c0_6, %c0_7], %11 {strides = array<i32>} : memref<64x128xf32, #tpu.memory_space<vmem>>, vector<64x128xf32>,
    %c3_i32 = arith.constant 3 : i32
    %13 = arith.cmpi eq, %arg2, %c3_i32 : i32
    %14 = arith.extui %13 : i1 to i32
    %c0_i32_8 = arith.constant 0 : i32
    %15 = arith.cmpi ne, %14, %c0_i32_8 : i32
    scf.if %15 {
      %c0_9 = arith.constant 0 : index
      %c0_10 = arith.constant 0 : index
      %16 = vector.load %arg7[%c0_9, %c0_10] : memref<64x128xf32, #tpu.memory_space<vmem>>, vector<64x128xf32>
      %c0_11 = arith.constant 0 : index
      %c0_12 = arith.constant 0 : index
      %17 = vector.load %arg5[%c0_11, %c0_12] : memref<64x1xf32, #tpu.memory_space<vmem>>, vector<64x1xf32>
      %18 = vector.broadcast %17 : vector<64x1xf32> to vector<64x128xf32>
      %19 = arith.addf %16, %18 : vector<64x128xf32>
      %20 = arith.truncf %19 : vector<64x128xf32> to vector<64x128xbf16>
      %c0_13 = arith.constant 0 : index
      %c0_14 = arith.constant 0 : index
      %c0_15 = arith.constant 0 : index
      %21 = vector.load %arg6[%c0_13, %c0_14, %c0_15] : memref<1x64x128xbf16, #tpu.memory_space<vmem>>, vector<1x64x128xbf16>
      %22 = vector.shape_cast %21 : vector<1x64x128xbf16> to vector<64x128xbf16>
      %23 = vector.shape_cast %20 : vector<64x128xbf16> to vector<1x64x128xbf16>
      tpu.vector_store %arg6[%c0_13, %c0_14, %c0_15], %23 {strides = array<i32>} : memref<1x64x128xbf16, #tpu.memory_space<vmem>>, vector<1x64x128xbf16>,
    } else {
    }
    return
  }
  func.func @transform_0(%arg0: i32, %arg1: i32, %arg2: i32) -> (i32, i32) {
    %c0_i32 = arith.constant 0 : i32
    %c0_i32_0 = arith.constant 0 : i32
    %c0_i32_1 = arith.constant 0 : i32
    return %c0_i32, %c0_i32_0 : i32, i32
  }
  func.func @transform_1(%arg0: i32, %arg1: i32, %arg2: i32) -> (i32, i32, i32) {
    %c0_i32 = arith.constant 0 : i32
    return %arg0, %arg2, %arg1 : i32, i32, i32
  }
  func.func @transform_2(%arg0: i32, %arg1: i32, %arg2: i32) -> (i32, i32) {
    %c0_i32 = arith.constant 0 : i32
    %c0_i32_0 = arith.constant 0 : i32
    %c0_i32_1 = arith.constant 0 : i32
    return %c0_i32, %c0_i32_0 : i32, i32
  }
  func.func @transform_3(%arg0: i32, %arg1: i32, %arg2: i32) -> (i32, i32, i32) {
    %c0_i32 = arith.constant 0 : i32
    %c0_i32_0 = arith.constant 0 : i32
    return %arg0, %c0_i32, %arg1 : i32, i32, i32
  }
}

module attributes {stable_mosaic.version = 11 : i64} {
  func.func @_matmul_bias_kernel(%arg0: i32, %arg1: i32, %arg2: i32, %arg3: memref<128x1024xbf16, #tpu.memory_space<vmem>>, %arg4: memref<1x512x128xbf16, #tpu.memory_space<vmem>>, %arg5: memref<128x1xf32, #tpu.memory_space<vmem>>, %arg6: memref<1x128x128xbf16, #tpu.memory_space<vmem>>, %arg7: memref<128x128xf32, #tpu.memory_space<vmem>>) attributes {dimension_semantics = [#tpu.dimension_semantics<parallel>, #tpu.dimension_semantics<parallel>, #tpu.dimension_semantics<arbitrary>], iteration_bounds = array<i64: 2, 1, 2>, scalar_prefetch = 0 : i64, scratch_operands = 1 : i64, tpu.core_type = #tpu.core_type<tc>, window_params = [{pipeline_mode = #tpu.pipeline_mode<synchronous>, transform_indices = @transform_0, window_bounds = array<i64: 128, 1024>}, {transform_indices = @transform_1, window_bounds = array<i64: 1, 512, 128>}, {pipeline_mode = #tpu.pipeline_mode<synchronous>, transform_indices = @transform_2, window_bounds = array<i64: 128, 1>}, {transform_indices = @transform_3, window_bounds = array<i64: 1, 128, 128>}]} {
    %c0_i32 = arith.constant 0 : i32
    %0 = arith.cmpi eq, %arg2, %c0_i32 : i32
    %1 = arith.extui %0 : i1 to i32
    %c0_i32_0 = arith.constant 0 : i32
    %2 = arith.cmpi ne, %1, %c0_i32_0 : i32
    scf.if %2 {
      %cst_9 = arith.constant 0.000000e+00 : f32
      %16 = vector.broadcast %cst_9 : f32 to vector<128x128xf32>
      %c0_10 = arith.constant 0 : index
      %c0_11 = arith.constant 0 : index
      %17 = vector.load %arg7[%c0_10, %c0_11] : memref<128x128xf32, #tpu.memory_space<vmem>>, vector<128x128xf32>
      tpu.vector_store %arg7[%c0_10, %c0_11], %16 {strides = array<i32>} : memref<128x128xf32, #tpu.memory_space<vmem>>, vector<128x128xf32>,
    } else {
    }
    %c512_i32 = arith.constant 512 : i32
    %3 = arith.muli %arg2, %c512_i32 : i32
    %4 = tpu.assume_multiple %3, 512 : i32
    %c0 = arith.constant 0 : index
    %5 = arith.index_cast %4 : i32 to index
    %6 = vector.load %arg3[%c0, %5] : memref<128x1024xbf16, #tpu.memory_space<vmem>>, vector<128x512xbf16>
    %c0_1 = arith.constant 0 : index
    %c0_2 = arith.constant 0 : index
    %7 = vector.load %arg7[%c0_1, %c0_2] : memref<128x128xf32, #tpu.memory_space<vmem>>, vector<128x128xf32>
    %c0_3 = arith.constant 0 : index
    %c0_4 = arith.constant 0 : index
    %c0_5 = arith.constant 0 : index
    %8 = vector.load %arg4[%c0_3, %c0_4, %c0_5] : memref<1x512x128xbf16, #tpu.memory_space<vmem>>, vector<1x512x128xbf16>
    %9 = vector.shape_cast %8 : vector<1x512x128xbf16> to vector<512x128xbf16>
    %cst = arith.constant dense<0.000000e+00> : vector<128x128xf32>
    %10 = tpu.matmul %6, %9, %cst {dimension_numbers = #tpu.dot_dimension_numbers<[1], [0], [0], [1], [0, 0, 1, 1], [], []>} : vector<128x512xbf16>, vector<512x128xbf16>, vector<128x128xf32> -> vector<128x128xf32>
    %11 = arith.addf %7, %10 : vector<128x128xf32>
    %c0_6 = arith.constant 0 : index
    %c0_7 = arith.constant 0 : index
    %12 = vector.load %arg7[%c0_6, %c0_7] : memref<128x128xf32, #tpu.memory_space<vmem>>, vector<128x128xf32>
    tpu.vector_store %arg7[%c0_6, %c0_7], %11 {strides = array<i32>} : memref<128x128xf32, #tpu.memory_space<vmem>>, vector<128x128xf32>,
    %c1_i32 = arith.constant 1 : i32
    %13 = arith.cmpi eq, %arg2, %c1_i32 : i32
    %14 = arith.extui %13 : i1 to i32
    %c0_i32_8 = arith.constant 0 : i32
    %15 = arith.cmpi ne, %14, %c0_i32_8 : i32
    scf.if %15 {
      %c0_9 = arith.constant 0 : index
      %c0_10 = arith.constant 0 : index
      %16 = vector.load %arg7[%c0_9, %c0_10] : memref<128x128xf32, #tpu.memory_space<vmem>>, vector<128x128xf32>
      %c0_11 = arith.constant 0 : index
      %c0_12 = arith.constant 0 : index
      %17 = vector.load %arg5[%c0_11, %c0_12] : memref<128x1xf32, #tpu.memory_space<vmem>>, vector<128x1xf32>
      %18 = vector.broadcast %17 : vector<128x1xf32> to vector<128x128xf32>
      %19 = arith.addf %16, %18 : vector<128x128xf32>
      %20 = arith.truncf %19 : vector<128x128xf32> to vector<128x128xbf16>
      %c0_13 = arith.constant 0 : index
      %c0_14 = arith.constant 0 : index
      %c0_15 = arith.constant 0 : index
      %21 = vector.load %arg6[%c0_13, %c0_14, %c0_15] : memref<1x128x128xbf16, #tpu.memory_space<vmem>>, vector<1x128x128xbf16>
      %22 = vector.shape_cast %21 : vector<1x128x128xbf16> to vector<128x128xbf16>
      %23 = vector.shape_cast %20 : vector<128x128xbf16> to vector<1x128x128xbf16>
      tpu.vector_store %arg6[%c0_13, %c0_14, %c0_15], %23 {strides = array<i32>} : memref<1x128x128xbf16, #tpu.memory_space<vmem>>, vector<1x128x128xbf16>,
    } else {
    }
    return
  }
  func.func @transform_0(%arg0: i32, %arg1: i32, %arg2: i32) -> (i32, i32) {
    %c0_i32 = arith.constant 0 : i32
    %c0_i32_0 = arith.constant 0 : i32
    %c0_i32_1 = arith.constant 0 : i32
    return %c0_i32, %c0_i32_0 : i32, i32
  }
  func.func @transform_1(%arg0: i32, %arg1: i32, %arg2: i32) -> (i32, i32, i32) {
    %c0_i32 = arith.constant 0 : i32
    return %arg0, %arg2, %arg1 : i32, i32, i32
  }
  func.func @transform_2(%arg0: i32, %arg1: i32, %arg2: i32) -> (i32, i32) {
    %c0_i32 = arith.constant 0 : i32
    %c0_i32_0 = arith.constant 0 : i32
    %c0_i32_1 = arith.constant 0 : i32
    return %c0_i32, %c0_i32_0 : i32, i32
  }
  func.func @transform_3(%arg0: i32, %arg1: i32, %arg2: i32) -> (i32, i32, i32) {
    %c0_i32 = arith.constant 0 : i32
    %c0_i32_0 = arith.constant 0 : i32
    return %arg0, %c0_i32, %arg1 : i32, i32, i32
  }
}

module attributes {stable_mosaic.version = 11 : i64} {
  func.func @_matmul_bias_kernel(%arg0: i32, %arg1: i32, %arg2: i32, %arg3: memref<64x256xbf16, #tpu.memory_space<vmem>>, %arg4: memref<1x256x128xbf16, #tpu.memory_space<vmem>>, %arg5: memref<64x1xf32, #tpu.memory_space<vmem>>, %arg6: memref<1x64x128xbf16, #tpu.memory_space<vmem>>, %arg7: memref<64x128xf32, #tpu.memory_space<vmem>>) attributes {dimension_semantics = [#tpu.dimension_semantics<parallel>, #tpu.dimension_semantics<parallel>, #tpu.dimension_semantics<arbitrary>], iteration_bounds = array<i64: 2, 1, 1>, scalar_prefetch = 0 : i64, scratch_operands = 1 : i64, tpu.core_type = #tpu.core_type<tc>, window_params = [{pipeline_mode = #tpu.pipeline_mode<synchronous>, transform_indices = @transform_0, window_bounds = array<i64: 64, 256>}, {transform_indices = @transform_1, window_bounds = array<i64: 1, 256, 128>}, {pipeline_mode = #tpu.pipeline_mode<synchronous>, transform_indices = @transform_2, window_bounds = array<i64: 64, 1>}, {transform_indices = @transform_3, window_bounds = array<i64: 1, 64, 128>}]} {
    %c0_i32 = arith.constant 0 : i32
    %0 = arith.cmpi eq, %arg2, %c0_i32 : i32
    %1 = arith.extui %0 : i1 to i32
    %c0_i32_0 = arith.constant 0 : i32
    %2 = arith.cmpi ne, %1, %c0_i32_0 : i32
    scf.if %2 {
      %cst_11 = arith.constant 0.000000e+00 : f32
      %13 = vector.broadcast %cst_11 : f32 to vector<64x128xf32>
      %c0_12 = arith.constant 0 : index
      %c0_13 = arith.constant 0 : index
      %14 = vector.load %arg7[%c0_12, %c0_13] : memref<64x128xf32, #tpu.memory_space<vmem>>, vector<64x128xf32>
      tpu.vector_store %arg7[%c0_12, %c0_13], %13 {strides = array<i32>} : memref<64x128xf32, #tpu.memory_space<vmem>>, vector<64x128xf32>,
    } else {
    }
    %c0 = arith.constant 0 : index
    %c0_1 = arith.constant 0 : index
    %3 = vector.load %arg3[%c0, %c0_1] : memref<64x256xbf16, #tpu.memory_space<vmem>>, vector<64x256xbf16>
    %c0_2 = arith.constant 0 : index
    %c0_3 = arith.constant 0 : index
    %4 = vector.load %arg7[%c0_2, %c0_3] : memref<64x128xf32, #tpu.memory_space<vmem>>, vector<64x128xf32>
    %c0_4 = arith.constant 0 : index
    %c0_5 = arith.constant 0 : index
    %c0_6 = arith.constant 0 : index
    %5 = vector.load %arg4[%c0_4, %c0_5, %c0_6] : memref<1x256x128xbf16, #tpu.memory_space<vmem>>, vector<1x256x128xbf16>
    %6 = vector.shape_cast %5 : vector<1x256x128xbf16> to vector<256x128xbf16>
    %cst = arith.constant dense<0.000000e+00> : vector<64x128xf32>
    %7 = tpu.matmul %3, %6, %cst {dimension_numbers = #tpu.dot_dimension_numbers<[1], [0], [0], [1], [0, 0, 1, 1], [], []>} : vector<64x256xbf16>, vector<256x128xbf16>, vector<64x128xf32> -> vector<64x128xf32>
    %8 = arith.addf %4, %7 : vector<64x128xf32>
    %c0_7 = arith.constant 0 : index
    %c0_8 = arith.constant 0 : index
    %9 = vector.load %arg7[%c0_7, %c0_8] : memref<64x128xf32, #tpu.memory_space<vmem>>, vector<64x128xf32>
    tpu.vector_store %arg7[%c0_7, %c0_8], %8 {strides = array<i32>} : memref<64x128xf32, #tpu.memory_space<vmem>>, vector<64x128xf32>,
    %c0_i32_9 = arith.constant 0 : i32
    %10 = arith.cmpi eq, %arg2, %c0_i32_9 : i32
    %11 = arith.extui %10 : i1 to i32
    %c0_i32_10 = arith.constant 0 : i32
    %12 = arith.cmpi ne, %11, %c0_i32_10 : i32
    scf.if %12 {
      %c0_11 = arith.constant 0 : index
      %c0_12 = arith.constant 0 : index
      %13 = vector.load %arg7[%c0_11, %c0_12] : memref<64x128xf32, #tpu.memory_space<vmem>>, vector<64x128xf32>
      %c0_13 = arith.constant 0 : index
      %c0_14 = arith.constant 0 : index
      %14 = vector.load %arg5[%c0_13, %c0_14] : memref<64x1xf32, #tpu.memory_space<vmem>>, vector<64x1xf32>
      %15 = vector.broadcast %14 : vector<64x1xf32> to vector<64x128xf32>
      %16 = arith.addf %13, %15 : vector<64x128xf32>
      %17 = arith.truncf %16 : vector<64x128xf32> to vector<64x128xbf16>
      %c0_15 = arith.constant 0 : index
      %c0_16 = arith.constant 0 : index
      %c0_17 = arith.constant 0 : index
      %18 = vector.load %arg6[%c0_15, %c0_16, %c0_17] : memref<1x64x128xbf16, #tpu.memory_space<vmem>>, vector<1x64x128xbf16>
      %19 = vector.shape_cast %18 : vector<1x64x128xbf16> to vector<64x128xbf16>
      %20 = vector.shape_cast %17 : vector<64x128xbf16> to vector<1x64x128xbf16>
      tpu.vector_store %arg6[%c0_15, %c0_16, %c0_17], %20 {strides = array<i32>} : memref<1x64x128xbf16, #tpu.memory_space<vmem>>, vector<1x64x128xbf16>,
    } else {
    }
    return
  }
  func.func @transform_0(%arg0: i32, %arg1: i32, %arg2: i32) -> (i32, i32) {
    %c0_i32 = arith.constant 0 : i32
    %c0_i32_0 = arith.constant 0 : i32
    %c0_i32_1 = arith.constant 0 : i32
    return %c0_i32, %c0_i32_0 : i32, i32
  }
  func.func @transform_1(%arg0: i32, %arg1: i32, %arg2: i32) -> (i32, i32, i32) {
    %c0_i32 = arith.constant 0 : i32
    return %arg0, %arg2, %arg1 : i32, i32, i32
  }
  func.func @transform_2(%arg0: i32, %arg1: i32, %arg2: i32) -> (i32, i32) {
    %c0_i32 = arith.constant 0 : i32
    %c0_i32_0 = arith.constant 0 : i32
    %c0_i32_1 = arith.constant 0 : i32
    return %c0_i32, %c0_i32_0 : i32, i32
  }
  func.func @transform_3(%arg0: i32, %arg1: i32, %arg2: i32) -> (i32, i32, i32) {
    %c0_i32 = arith.constant 0 : i32
    %c0_i32_0 = arith.constant 0 : i32
    return %arg0, %c0_i32, %arg1 : i32, i32, i32
  }
}

module attributes {stable_mosaic.version = 11 : i64} {
  func.func @_matmul_bias_kernel(%arg0: i32, %arg1: i32, %arg2: i32, %arg3: memref<32x128xbf16, #tpu.memory_space<vmem>>, %arg4: memref<1x128x128xbf16, #tpu.memory_space<vmem>>, %arg5: memref<32x1xf32, #tpu.memory_space<vmem>>, %arg6: memref<1x32x128xbf16, #tpu.memory_space<vmem>>, %arg7: memref<32x128xf32, #tpu.memory_space<vmem>>) attributes {dimension_semantics = [#tpu.dimension_semantics<parallel>, #tpu.dimension_semantics<parallel>, #tpu.dimension_semantics<arbitrary>], iteration_bounds = array<i64: 2, 1, 1>, scalar_prefetch = 0 : i64, scratch_operands = 1 : i64, tpu.core_type = #tpu.core_type<tc>, window_params = [{pipeline_mode = #tpu.pipeline_mode<synchronous>, transform_indices = @transform_0, window_bounds = array<i64: 32, 128>}, {transform_indices = @transform_1, window_bounds = array<i64: 1, 128, 128>}, {pipeline_mode = #tpu.pipeline_mode<synchronous>, transform_indices = @transform_2, window_bounds = array<i64: 32, 1>}, {transform_indices = @transform_3, window_bounds = array<i64: 1, 32, 128>}]} {
    %c0_i32 = arith.constant 0 : i32
    %0 = arith.cmpi eq, %arg2, %c0_i32 : i32
    %1 = arith.extui %0 : i1 to i32
    %c0_i32_0 = arith.constant 0 : i32
    %2 = arith.cmpi ne, %1, %c0_i32_0 : i32
    scf.if %2 {
      %cst_11 = arith.constant 0.000000e+00 : f32
      %13 = vector.broadcast %cst_11 : f32 to vector<32x128xf32>
      %c0_12 = arith.constant 0 : index
      %c0_13 = arith.constant 0 : index
      %14 = vector.load %arg7[%c0_12, %c0_13] : memref<32x128xf32, #tpu.memory_space<vmem>>, vector<32x128xf32>
      tpu.vector_store %arg7[%c0_12, %c0_13], %13 {strides = array<i32>} : memref<32x128xf32, #tpu.memory_space<vmem>>, vector<32x128xf32>,
    } else {
    }
    %c0 = arith.constant 0 : index
    %c0_1 = arith.constant 0 : index
    %3 = vector.load %arg3[%c0, %c0_1] : memref<32x128xbf16, #tpu.memory_space<vmem>>, vector<32x128xbf16>
    %c0_2 = arith.constant 0 : index
    %c0_3 = arith.constant 0 : index
    %4 = vector.load %arg7[%c0_2, %c0_3] : memref<32x128xf32, #tpu.memory_space<vmem>>, vector<32x128xf32>
    %c0_4 = arith.constant 0 : index
    %c0_5 = arith.constant 0 : index
    %c0_6 = arith.constant 0 : index
    %5 = vector.load %arg4[%c0_4, %c0_5, %c0_6] : memref<1x128x128xbf16, #tpu.memory_space<vmem>>, vector<1x128x128xbf16>
    %6 = vector.shape_cast %5 : vector<1x128x128xbf16> to vector<128x128xbf16>
    %cst = arith.constant dense<0.000000e+00> : vector<32x128xf32>
    %7 = tpu.matmul %3, %6, %cst {dimension_numbers = #tpu.dot_dimension_numbers<[1], [0], [0], [1], [0, 0, 1, 1], [], []>} : vector<32x128xbf16>, vector<128x128xbf16>, vector<32x128xf32> -> vector<32x128xf32>
    %8 = arith.addf %4, %7 : vector<32x128xf32>
    %c0_7 = arith.constant 0 : index
    %c0_8 = arith.constant 0 : index
    %9 = vector.load %arg7[%c0_7, %c0_8] : memref<32x128xf32, #tpu.memory_space<vmem>>, vector<32x128xf32>
    tpu.vector_store %arg7[%c0_7, %c0_8], %8 {strides = array<i32>} : memref<32x128xf32, #tpu.memory_space<vmem>>, vector<32x128xf32>,
    %c0_i32_9 = arith.constant 0 : i32
    %10 = arith.cmpi eq, %arg2, %c0_i32_9 : i32
    %11 = arith.extui %10 : i1 to i32
    %c0_i32_10 = arith.constant 0 : i32
    %12 = arith.cmpi ne, %11, %c0_i32_10 : i32
    scf.if %12 {
      %c0_11 = arith.constant 0 : index
      %c0_12 = arith.constant 0 : index
      %13 = vector.load %arg7[%c0_11, %c0_12] : memref<32x128xf32, #tpu.memory_space<vmem>>, vector<32x128xf32>
      %c0_13 = arith.constant 0 : index
      %c0_14 = arith.constant 0 : index
      %14 = vector.load %arg5[%c0_13, %c0_14] : memref<32x1xf32, #tpu.memory_space<vmem>>, vector<32x1xf32>
      %15 = vector.broadcast %14 : vector<32x1xf32> to vector<32x128xf32>
      %16 = arith.addf %13, %15 : vector<32x128xf32>
      %17 = arith.truncf %16 : vector<32x128xf32> to vector<32x128xbf16>
      %c0_15 = arith.constant 0 : index
      %c0_16 = arith.constant 0 : index
      %c0_17 = arith.constant 0 : index
      %18 = vector.load %arg6[%c0_15, %c0_16, %c0_17] : memref<1x32x128xbf16, #tpu.memory_space<vmem>>, vector<1x32x128xbf16>
      %19 = vector.shape_cast %18 : vector<1x32x128xbf16> to vector<32x128xbf16>
      %20 = vector.shape_cast %17 : vector<32x128xbf16> to vector<1x32x128xbf16>
      tpu.vector_store %arg6[%c0_15, %c0_16, %c0_17], %20 {strides = array<i32>} : memref<1x32x128xbf16, #tpu.memory_space<vmem>>, vector<1x32x128xbf16>,
    } else {
    }
    return
  }
  func.func @transform_0(%arg0: i32, %arg1: i32, %arg2: i32) -> (i32, i32) {
    %c0_i32 = arith.constant 0 : i32
    %c0_i32_0 = arith.constant 0 : i32
    %c0_i32_1 = arith.constant 0 : i32
    return %c0_i32, %c0_i32_0 : i32, i32
  }
  func.func @transform_1(%arg0: i32, %arg1: i32, %arg2: i32) -> (i32, i32, i32) {
    %c0_i32 = arith.constant 0 : i32
    return %arg0, %arg2, %arg1 : i32, i32, i32
  }
  func.func @transform_2(%arg0: i32, %arg1: i32, %arg2: i32) -> (i32, i32) {
    %c0_i32 = arith.constant 0 : i32
    %c0_i32_0 = arith.constant 0 : i32
    %c0_i32_1 = arith.constant 0 : i32
    return %c0_i32, %c0_i32_0 : i32, i32
  }
  func.func @transform_3(%arg0: i32, %arg1: i32, %arg2: i32) -> (i32, i32, i32) {
    %c0_i32 = arith.constant 0 : i32
    %c0_i32_0 = arith.constant 0 : i32
    return %arg0, %c0_i32, %arg1 : i32, i32, i32
  }
}

module attributes {stable_mosaic.version = 11 : i64} {
  func.func @_matmul_bias_kernel(%arg0: i32, %arg1: i32, %arg2: i32, %arg3: memref<16x64xbf16, #tpu.memory_space<vmem>>, %arg4: memref<1x64x512xbf16, #tpu.memory_space<vmem>>, %arg5: memref<16x1xf32, #tpu.memory_space<vmem>>, %arg6: memref<1x16x512xbf16, #tpu.memory_space<vmem>>, %arg7: memref<16x512xf32, #tpu.memory_space<vmem>>) attributes {dimension_semantics = [#tpu.dimension_semantics<parallel>, #tpu.dimension_semantics<parallel>, #tpu.dimension_semantics<arbitrary>], iteration_bounds = array<i64: 2, 1, 1>, scalar_prefetch = 0 : i64, scratch_operands = 1 : i64, tpu.core_type = #tpu.core_type<tc>, window_params = [{pipeline_mode = #tpu.pipeline_mode<synchronous>, transform_indices = @transform_0, window_bounds = array<i64: 16, 64>}, {transform_indices = @transform_1, window_bounds = array<i64: 1, 64, 512>}, {pipeline_mode = #tpu.pipeline_mode<synchronous>, transform_indices = @transform_2, window_bounds = array<i64: 16, 1>}, {transform_indices = @transform_3, window_bounds = array<i64: 1, 16, 512>}]} {
    %c0_i32 = arith.constant 0 : i32
    %0 = arith.cmpi eq, %arg2, %c0_i32 : i32
    %1 = arith.extui %0 : i1 to i32
    %c0_i32_0 = arith.constant 0 : i32
    %2 = arith.cmpi ne, %1, %c0_i32_0 : i32
    scf.if %2 {
      %cst_11 = arith.constant 0.000000e+00 : f32
      %13 = vector.broadcast %cst_11 : f32 to vector<16x512xf32>
      %c0_12 = arith.constant 0 : index
      %c0_13 = arith.constant 0 : index
      %14 = vector.load %arg7[%c0_12, %c0_13] : memref<16x512xf32, #tpu.memory_space<vmem>>, vector<16x512xf32>
      tpu.vector_store %arg7[%c0_12, %c0_13], %13 {strides = array<i32>} : memref<16x512xf32, #tpu.memory_space<vmem>>, vector<16x512xf32>,
    } else {
    }
    %c0 = arith.constant 0 : index
    %c0_1 = arith.constant 0 : index
    %3 = vector.load %arg3[%c0, %c0_1] : memref<16x64xbf16, #tpu.memory_space<vmem>>, vector<16x64xbf16>
    %c0_2 = arith.constant 0 : index
    %c0_3 = arith.constant 0 : index
    %4 = vector.load %arg7[%c0_2, %c0_3] : memref<16x512xf32, #tpu.memory_space<vmem>>, vector<16x512xf32>
    %c0_4 = arith.constant 0 : index
    %c0_5 = arith.constant 0 : index
    %c0_6 = arith.constant 0 : index
    %5 = vector.load %arg4[%c0_4, %c0_5, %c0_6] : memref<1x64x512xbf16, #tpu.memory_space<vmem>>, vector<1x64x512xbf16>
    %6 = vector.shape_cast %5 : vector<1x64x512xbf16> to vector<64x512xbf16>
    %cst = arith.constant dense<0.000000e+00> : vector<16x512xf32>
    %7 = tpu.matmul %3, %6, %cst {dimension_numbers = #tpu.dot_dimension_numbers<[1], [0], [0], [1], [0, 0, 1, 1], [], []>} : vector<16x64xbf16>, vector<64x512xbf16>, vector<16x512xf32> -> vector<16x512xf32>
    %8 = arith.addf %4, %7 : vector<16x512xf32>
    %c0_7 = arith.constant 0 : index
    %c0_8 = arith.constant 0 : index
    %9 = vector.load %arg7[%c0_7, %c0_8] : memref<16x512xf32, #tpu.memory_space<vmem>>, vector<16x512xf32>
    tpu.vector_store %arg7[%c0_7, %c0_8], %8 {strides = array<i32>} : memref<16x512xf32, #tpu.memory_space<vmem>>, vector<16x512xf32>,
    %c0_i32_9 = arith.constant 0 : i32
    %10 = arith.cmpi eq, %arg2, %c0_i32_9 : i32
    %11 = arith.extui %10 : i1 to i32
    %c0_i32_10 = arith.constant 0 : i32
    %12 = arith.cmpi ne, %11, %c0_i32_10 : i32
    scf.if %12 {
      %c0_11 = arith.constant 0 : index
      %c0_12 = arith.constant 0 : index
      %13 = vector.load %arg7[%c0_11, %c0_12] : memref<16x512xf32, #tpu.memory_space<vmem>>, vector<16x512xf32>
      %c0_13 = arith.constant 0 : index
      %c0_14 = arith.constant 0 : index
      %14 = vector.load %arg5[%c0_13, %c0_14] : memref<16x1xf32, #tpu.memory_space<vmem>>, vector<16x1xf32>
      %15 = vector.broadcast %14 : vector<16x1xf32> to vector<16x512xf32>
      %16 = arith.addf %13, %15 : vector<16x512xf32>
      %17 = arith.truncf %16 : vector<16x512xf32> to vector<16x512xbf16>
      %c0_15 = arith.constant 0 : index
      %c0_16 = arith.constant 0 : index
      %c0_17 = arith.constant 0 : index
      %18 = vector.load %arg6[%c0_15, %c0_16, %c0_17] : memref<1x16x512xbf16, #tpu.memory_space<vmem>>, vector<1x16x512xbf16>
      %19 = vector.shape_cast %18 : vector<1x16x512xbf16> to vector<16x512xbf16>
      %20 = vector.shape_cast %17 : vector<16x512xbf16> to vector<1x16x512xbf16>
      tpu.vector_store %arg6[%c0_15, %c0_16, %c0_17], %20 {strides = array<i32>} : memref<1x16x512xbf16, #tpu.memory_space<vmem>>, vector<1x16x512xbf16>,
    } else {
    }
    return
  }
  func.func @transform_0(%arg0: i32, %arg1: i32, %arg2: i32) -> (i32, i32) {
    %c0_i32 = arith.constant 0 : i32
    %c0_i32_0 = arith.constant 0 : i32
    %c0_i32_1 = arith.constant 0 : i32
    return %c0_i32, %c0_i32_0 : i32, i32
  }
  func.func @transform_1(%arg0: i32, %arg1: i32, %arg2: i32) -> (i32, i32, i32) {
    %c0_i32 = arith.constant 0 : i32
    return %arg0, %arg2, %arg1 : i32, i32, i32
  }
  func.func @transform_2(%arg0: i32, %arg1: i32, %arg2: i32) -> (i32, i32) {
    %c0_i32 = arith.constant 0 : i32
    %c0_i32_0 = arith.constant 0 : i32
    %c0_i32_1 = arith.constant 0 : i32
    return %c0_i32, %c0_i32_0 : i32, i32
  }
  func.func @transform_3(%arg0: i32, %arg1: i32, %arg2: i32) -> (i32, i32, i32) {
    %c0_i32 = arith.constant 0 : i32
    %c0_i32_0 = arith.constant 0 : i32
    return %arg0, %c0_i32, %arg1 : i32, i32, i32
  }
}

module attributes {stable_mosaic.version = 11 : i64} {
  func.func @_in_stats_kernel(%arg0: i32, %arg1: i32, %arg2: memref<4x2048xbf16, #tpu.memory_space<vmem>>, %arg3: memref<4x1xf32, #tpu.memory_space<vmem>>, %arg4: memref<4x1xf32, #tpu.memory_space<vmem>>, %arg5: memref<4x1xf32, #tpu.memory_space<vmem>>, %arg6: memref<4x1xf32, #tpu.memory_space<vmem>>) attributes {dimension_semantics = [#tpu.dimension_semantics<parallel>, #tpu.dimension_semantics<arbitrary>], iteration_bounds = array<i64: 1, 2>, scalar_prefetch = 0 : i64, scratch_operands = 2 : i64, tpu.core_type = #tpu.core_type<tc>, window_params = [{transform_indices = @transform_0, window_bounds = array<i64: 4, 2048>}, {transform_indices = @transform_1, window_bounds = array<i64: 4, 1>}, {transform_indices = @transform_2, window_bounds = array<i64: 4, 1>}]} {
    %c0_i32 = arith.constant 0 : i32
    %0 = arith.cmpi eq, %arg1, %c0_i32 : i32
    %1 = arith.extui %0 : i1 to i32
    %c0_i32_0 = arith.constant 0 : i32
    %2 = arith.cmpi ne, %1, %c0_i32_0 : i32
    scf.if %2 {
      %cst_12 = arith.constant 0.000000e+00 : f32
      %19 = vector.broadcast %cst_12 : f32 to vector<4x1xf32>
      %c0_13 = arith.constant 0 : index
      %c0_14 = arith.constant 0 : index
      %20 = vector.load %arg5[%c0_13, %c0_14] : memref<4x1xf32, #tpu.memory_space<vmem>>, vector<4x1xf32>
      tpu.vector_store %arg5[%c0_13, %c0_14], %19 {strides = array<i32>} : memref<4x1xf32, #tpu.memory_space<vmem>>, vector<4x1xf32>,
      %cst_15 = arith.constant 0.000000e+00 : f32
      %21 = vector.broadcast %cst_15 : f32 to vector<4x1xf32>
      %c0_16 = arith.constant 0 : index
      %c0_17 = arith.constant 0 : index
      %22 = vector.load %arg6[%c0_16, %c0_17] : memref<4x1xf32, #tpu.memory_space<vmem>>, vector<4x1xf32>
      tpu.vector_store %arg6[%c0_16, %c0_17], %21 {strides = array<i32>} : memref<4x1xf32, #tpu.memory_space<vmem>>, vector<4x1xf32>,
    } else {
    }
    %c0 = arith.constant 0 : index
    %c0_1 = arith.constant 0 : index
    %3 = vector.load %arg2[%c0, %c0_1] : memref<4x2048xbf16, #tpu.memory_space<vmem>>, vector<4x2048xbf16>
    %4 = arith.extf %3 : vector<4x2048xbf16> to vector<4x2048xf32>
    %c0_2 = arith.constant 0 : index
    %c0_3 = arith.constant 0 : index
    %5 = vector.load %arg5[%c0_2, %c0_3] : memref<4x1xf32, #tpu.memory_space<vmem>>, vector<4x1xf32>
    %cst = arith.constant dense<0.000000e+00> : vector<4xf32>
    %6 = vector.multi_reduction <add>, %4, %cst [1] : vector<4x2048xf32> to vector<4xf32>
    %7 = vector.shape_cast %6 : vector<4xf32> to vector<4x1xf32>
    %8 = arith.addf %5, %7 : vector<4x1xf32>
    %c0_4 = arith.constant 0 : index
    %c0_5 = arith.constant 0 : index
    %9 = vector.load %arg5[%c0_4, %c0_5] : memref<4x1xf32, #tpu.memory_space<vmem>>, vector<4x1xf32>
    tpu.vector_store %arg5[%c0_4, %c0_5], %8 {strides = array<i32>} : memref<4x1xf32, #tpu.memory_space<vmem>>, vector<4x1xf32>,
    %c0_6 = arith.constant 0 : index
    %c0_7 = arith.constant 0 : index
    %10 = vector.load %arg6[%c0_6, %c0_7] : memref<4x1xf32, #tpu.memory_space<vmem>>, vector<4x1xf32>
    %11 = arith.mulf %4, %4 : vector<4x2048xf32>
    %cst_8 = arith.constant dense<0.000000e+00> : vector<4xf32>
    %12 = vector.multi_reduction <add>, %11, %cst_8 [1] : vector<4x2048xf32> to vector<4xf32>
    %13 = vector.shape_cast %12 : vector<4xf32> to vector<4x1xf32>
    %14 = arith.addf %10, %13 : vector<4x1xf32>
    %c0_9 = arith.constant 0 : index
    %c0_10 = arith.constant 0 : index
    %15 = vector.load %arg6[%c0_9, %c0_10] : memref<4x1xf32, #tpu.memory_space<vmem>>, vector<4x1xf32>
    tpu.vector_store %arg6[%c0_9, %c0_10], %14 {strides = array<i32>} : memref<4x1xf32, #tpu.memory_space<vmem>>, vector<4x1xf32>,
    %c1_i32 = arith.constant 1 : i32
    %16 = arith.cmpi eq, %arg1, %c1_i32 : i32
    %17 = arith.extui %16 : i1 to i32
    %c0_i32_11 = arith.constant 0 : i32
    %18 = arith.cmpi ne, %17, %c0_i32_11 : i32
    scf.if %18 {
      %c0_12 = arith.constant 0 : index
      %c0_13 = arith.constant 0 : index
      %19 = vector.load %arg5[%c0_12, %c0_13] : memref<4x1xf32, #tpu.memory_space<vmem>>, vector<4x1xf32>
      %cst_14 = arith.constant 2.44140625E-4 : f32
      %20 = vector.broadcast %cst_14 : f32 to vector<4x1xf32>
      %21 = arith.mulf %19, %20 : vector<4x1xf32>
      %c0_15 = arith.constant 0 : index
      %c0_16 = arith.constant 0 : index
      %22 = vector.load %arg6[%c0_15, %c0_16] : memref<4x1xf32, #tpu.memory_space<vmem>>, vector<4x1xf32>
      %cst_17 = arith.constant 2.44140625E-4 : f32
      %23 = vector.broadcast %cst_17 : f32 to vector<4x1xf32>
      %24 = arith.mulf %22, %23 : vector<4x1xf32>
      %25 = arith.mulf %21, %21 : vector<4x1xf32>
      %26 = arith.subf %24, %25 : vector<4x1xf32>
      %cst_18 = arith.constant 0.000000e+00 : f32
      %27 = vector.broadcast %cst_18 : f32 to vector<4x1xf32>
      %28 = arith.maximumf %26, %27 : vector<4x1xf32>
      %c0_19 = arith.constant 0 : index
      %c0_20 = arith.constant 0 : index
      %29 = vector.load %arg3[%c0_19, %c0_20] : memref<4x1xf32, #tpu.memory_space<vmem>>, vector<4x1xf32>
      tpu.vector_store %arg3[%c0_19, %c0_20], %21 {strides = array<i32>} : memref<4x1xf32, #tpu.memory_space<vmem>>, vector<4x1xf32>,
      %cst_21 = arith.constant 9.99999974E-6 : f32
      %30 = vector.broadcast %cst_21 : f32 to vector<4x1xf32>
      %31 = arith.addf %28, %30 : vector<4x1xf32>
      %32 = math.rsqrt %31 : vector<4x1xf32>
      %c0_22 = arith.constant 0 : index
      %c0_23 = arith.constant 0 : index
      %33 = vector.load %arg4[%c0_22, %c0_23] : memref<4x1xf32, #tpu.memory_space<vmem>>, vector<4x1xf32>
      tpu.vector_store %arg4[%c0_22, %c0_23], %32 {strides = array<i32>} : memref<4x1xf32, #tpu.memory_space<vmem>>, vector<4x1xf32>,
    } else {
    }
    return
  }
  func.func @transform_0(%arg0: i32, %arg1: i32) -> (i32, i32) {
    %c0_i32 = arith.constant 0 : i32
    return %arg0, %arg1 : i32, i32
  }
  func.func @transform_1(%arg0: i32, %arg1: i32) -> (i32, i32) {
    %c0_i32 = arith.constant 0 : i32
    %c0_i32_0 = arith.constant 0 : i32
    return %arg0, %c0_i32 : i32, i32
  }
  func.func @transform_2(%arg0: i32, %arg1: i32) -> (i32, i32) {
    %c0_i32 = arith.constant 0 : i32
    %c0_i32_0 = arith.constant 0 : i32
    return %arg0, %c0_i32 : i32, i32
  }
}

module attributes {stable_mosaic.version = 11 : i64} {
  func.func @_in_apply_kernel(%arg0: i32, %arg1: i32, %arg2: memref<4x2048xbf16, #tpu.memory_space<vmem>>, %arg3: memref<4x1xf32, #tpu.memory_space<vmem>>, %arg4: memref<4x1xf32, #tpu.memory_space<vmem>>, %arg5: memref<1x1xf32, #tpu.memory_space<vmem>>, %arg6: memref<4x2048xbf16, #tpu.memory_space<vmem>>) attributes {dimension_semantics = [#tpu.dimension_semantics<parallel>, #tpu.dimension_semantics<parallel>], iteration_bounds = array<i64: 1, 2>, scalar_prefetch = 0 : i64, scratch_operands = 0 : i64, tpu.core_type = #tpu.core_type<tc>, window_params = [{transform_indices = @transform_0, window_bounds = array<i64: 4, 2048>}, {transform_indices = @transform_1, window_bounds = array<i64: 4, 1>}, {transform_indices = @transform_2, window_bounds = array<i64: 4, 1>}, {pipeline_mode = #tpu.pipeline_mode<synchronous>, transform_indices = @transform_3, window_bounds = array<i64: 1, 1>}, {transform_indices = @transform_4, window_bounds = array<i64: 4, 2048>}]} {
    %c0 = arith.constant 0 : index
    %c0_0 = arith.constant 0 : index
    %0 = vector.load %arg2[%c0, %c0_0] : memref<4x2048xbf16, #tpu.memory_space<vmem>>, vector<4x2048xbf16>
    %1 = arith.extf %0 : vector<4x2048xbf16> to vector<4x2048xf32>
    %c0_1 = arith.constant 0 : index
    %c0_2 = arith.constant 0 : index
    %2 = vector.load %arg3[%c0_1, %c0_2] : memref<4x1xf32, #tpu.memory_space<vmem>>, vector<4x1xf32>
    %3 = vector.broadcast %2 : vector<4x1xf32> to vector<4x2048xf32>
    %4 = arith.subf %1, %3 : vector<4x2048xf32>
    %c0_3 = arith.constant 0 : index
    %c0_4 = arith.constant 0 : index
    %5 = vector.load %arg4[%c0_3, %c0_4] : memref<4x1xf32, #tpu.memory_space<vmem>>, vector<4x1xf32>
    %6 = vector.broadcast %5 : vector<4x1xf32> to vector<4x2048xf32>
    %7 = arith.mulf %4, %6 : vector<4x2048xf32>
    %c0_5 = arith.constant 0 : index
    %c0_6 = arith.constant 0 : index
    %8 = vector.load %arg5[%c0_5, %c0_6] : memref<1x1xf32, #tpu.memory_space<vmem>>, vector<1x1xf32>
    %9 = vector.extract %8[0, 0] : f32 from vector<1x1xf32>
    %cst = arith.constant 0.000000e+00 : f32
    %10 = vector.broadcast %cst : f32 to vector<4x2048xf32>
    %11 = arith.cmpf oge, %7, %10 : vector<4x2048xf32>
    %12 = vector.broadcast %9 : f32 to vector<4x2048xf32>
    %13 = arith.mulf %12, %7 : vector<4x2048xf32>
    %14 = arith.select %11, %7, %13 : vector<4x2048xi1>, vector<4x2048xf32>
    %15 = arith.truncf %14 : vector<4x2048xf32> to vector<4x2048xbf16>
    %c0_7 = arith.constant 0 : index
    %c0_8 = arith.constant 0 : index
    %16 = vector.load %arg6[%c0_7, %c0_8] : memref<4x2048xbf16, #tpu.memory_space<vmem>>, vector<4x2048xbf16>
    tpu.vector_store %arg6[%c0_7, %c0_8], %15 {strides = array<i32>} : memref<4x2048xbf16, #tpu.memory_space<vmem>>, vector<4x2048xbf16>,
    return
  }
  func.func @transform_0(%arg0: i32, %arg1: i32) -> (i32, i32) {
    %c0_i32 = arith.constant 0 : i32
    return %arg0, %arg1 : i32, i32
  }
  func.func @transform_1(%arg0: i32, %arg1: i32) -> (i32, i32) {
    %c0_i32 = arith.constant 0 : i32
    %c0_i32_0 = arith.constant 0 : i32
    return %arg0, %c0_i32 : i32, i32
  }
  func.func @transform_2(%arg0: i32, %arg1: i32) -> (i32, i32) {
    %c0_i32 = arith.constant 0 : i32
    %c0_i32_0 = arith.constant 0 : i32
    return %arg0, %c0_i32 : i32, i32
  }
  func.func @transform_3(%arg0: i32, %arg1: i32) -> (i32, i32) {
    %c0_i32 = arith.constant 0 : i32
    %c0_i32_0 = arith.constant 0 : i32
    %c0_i32_1 = arith.constant 0 : i32
    return %c0_i32, %c0_i32_0 : i32, i32
  }
  func.func @transform_4(%arg0: i32, %arg1: i32) -> (i32, i32) {
    %c0_i32 = arith.constant 0 : i32
    return %arg0, %arg1 : i32, i32
  }
}

module attributes {stable_mosaic.version = 11 : i64} {
  func.func @_matmul_bias_kernel(%arg0: i32, %arg1: i32, %arg2: i32, %arg3: memref<8x54xbf16, #tpu.memory_space<vmem>>, %arg4: memref<1x54x2048xbf16, #tpu.memory_space<vmem>>, %arg5: memref<8x1xf32, #tpu.memory_space<vmem>>, %arg6: memref<1x8x2048xbf16, #tpu.memory_space<vmem>>, %arg7: memref<8x2048xf32, #tpu.memory_space<vmem>>) attributes {dimension_semantics = [#tpu.dimension_semantics<parallel>, #tpu.dimension_semantics<parallel>, #tpu.dimension_semantics<arbitrary>], iteration_bounds = array<i64: 2, 2, 1>, scalar_prefetch = 0 : i64, scratch_operands = 1 : i64, tpu.core_type = #tpu.core_type<tc>, window_params = [{pipeline_mode = #tpu.pipeline_mode<synchronous>, transform_indices = @transform_0, window_bounds = array<i64: 8, 54>}, {transform_indices = @transform_1, window_bounds = array<i64: 1, 54, 2048>}, {pipeline_mode = #tpu.pipeline_mode<synchronous>, transform_indices = @transform_2, window_bounds = array<i64: 8, 1>}, {transform_indices = @transform_3, window_bounds = array<i64: 1, 8, 2048>}]} {
    %c0_i32 = arith.constant 0 : i32
    %0 = arith.cmpi eq, %arg2, %c0_i32 : i32
    %1 = arith.extui %0 : i1 to i32
    %c0_i32_0 = arith.constant 0 : i32
    %2 = arith.cmpi ne, %1, %c0_i32_0 : i32
    scf.if %2 {
      %cst_11 = arith.constant 0.000000e+00 : f32
      %13 = vector.broadcast %cst_11 : f32 to vector<8x2048xf32>
      %c0_12 = arith.constant 0 : index
      %c0_13 = arith.constant 0 : index
      %14 = vector.load %arg7[%c0_12, %c0_13] : memref<8x2048xf32, #tpu.memory_space<vmem>>, vector<8x2048xf32>
      tpu.vector_store %arg7[%c0_12, %c0_13], %13 {strides = array<i32>} : memref<8x2048xf32, #tpu.memory_space<vmem>>, vector<8x2048xf32>,
    } else {
    }
    %c0 = arith.constant 0 : index
    %c0_1 = arith.constant 0 : index
    %3 = vector.load %arg3[%c0, %c0_1] : memref<8x54xbf16, #tpu.memory_space<vmem>>, vector<8x54xbf16>
    %c0_2 = arith.constant 0 : index
    %c0_3 = arith.constant 0 : index
    %4 = vector.load %arg7[%c0_2, %c0_3] : memref<8x2048xf32, #tpu.memory_space<vmem>>, vector<8x2048xf32>
    %c0_4 = arith.constant 0 : index
    %c0_5 = arith.constant 0 : index
    %c0_6 = arith.constant 0 : index
    %5 = vector.load %arg4[%c0_4, %c0_5, %c0_6] : memref<1x54x2048xbf16, #tpu.memory_space<vmem>>, vector<1x54x2048xbf16>
    %6 = vector.shape_cast %5 : vector<1x54x2048xbf16> to vector<54x2048xbf16>
    %cst = arith.constant dense<0.000000e+00> : vector<8x2048xf32>
    %7 = tpu.matmul %3, %6, %cst {dimension_numbers = #tpu.dot_dimension_numbers<[1], [0], [0], [1], [0, 0, 1, 1], [], []>} : vector<8x54xbf16>, vector<54x2048xbf16>, vector<8x2048xf32> -> vector<8x2048xf32>
    %8 = arith.addf %4, %7 : vector<8x2048xf32>
    %c0_7 = arith.constant 0 : index
    %c0_8 = arith.constant 0 : index
    %9 = vector.load %arg7[%c0_7, %c0_8] : memref<8x2048xf32, #tpu.memory_space<vmem>>, vector<8x2048xf32>
    tpu.vector_store %arg7[%c0_7, %c0_8], %8 {strides = array<i32>} : memref<8x2048xf32, #tpu.memory_space<vmem>>, vector<8x2048xf32>,
    %c0_i32_9 = arith.constant 0 : i32
    %10 = arith.cmpi eq, %arg2, %c0_i32_9 : i32
    %11 = arith.extui %10 : i1 to i32
    %c0_i32_10 = arith.constant 0 : i32
    %12 = arith.cmpi ne, %11, %c0_i32_10 : i32
    scf.if %12 {
      %c0_11 = arith.constant 0 : index
      %c0_12 = arith.constant 0 : index
      %13 = vector.load %arg7[%c0_11, %c0_12] : memref<8x2048xf32, #tpu.memory_space<vmem>>, vector<8x2048xf32>
      %c0_13 = arith.constant 0 : index
      %c0_14 = arith.constant 0 : index
      %14 = vector.load %arg5[%c0_13, %c0_14] : memref<8x1xf32, #tpu.memory_space<vmem>>, vector<8x1xf32>
      %15 = vector.broadcast %14 : vector<8x1xf32> to vector<8x2048xf32>
      %16 = arith.addf %13, %15 : vector<8x2048xf32>
      %17 = arith.truncf %16 : vector<8x2048xf32> to vector<8x2048xbf16>
      %c0_15 = arith.constant 0 : index
      %c0_16 = arith.constant 0 : index
      %c0_17 = arith.constant 0 : index
      %18 = vector.load %arg6[%c0_15, %c0_16, %c0_17] : memref<1x8x2048xbf16, #tpu.memory_space<vmem>>, vector<1x8x2048xbf16>
      %19 = vector.shape_cast %18 : vector<1x8x2048xbf16> to vector<8x2048xbf16>
      %20 = vector.shape_cast %17 : vector<8x2048xbf16> to vector<1x8x2048xbf16>
      tpu.vector_store %arg6[%c0_15, %c0_16, %c0_17], %20 {strides = array<i32>} : memref<1x8x2048xbf16, #tpu.memory_space<vmem>>, vector<1x8x2048xbf16>,
    } else {
    }
    return
  }
  func.func @transform_0(%arg0: i32, %arg1: i32, %arg2: i32) -> (i32, i32) {
    %c0_i32 = arith.constant 0 : i32
    %c0_i32_0 = arith.constant 0 : i32
    %c0_i32_1 = arith.constant 0 : i32
    return %c0_i32, %c0_i32_0 : i32, i32
  }
  func.func @transform_1(%arg0: i32, %arg1: i32, %arg2: i32) -> (i32, i32, i32) {
    %c0_i32 = arith.constant 0 : i32
    return %arg0, %arg2, %arg1 : i32, i32, i32
  }
  func.func @transform_2(%arg0: i32, %arg1: i32, %arg2: i32) -> (i32, i32) {
    %c0_i32 = arith.constant 0 : i32
    %c0_i32_0 = arith.constant 0 : i32
    %c0_i32_1 = arith.constant 0 : i32
    return %c0_i32, %c0_i32_0 : i32, i32
  }
  func.func @transform_3(%arg0: i32, %arg1: i32, %arg2: i32) -> (i32, i32, i32) {
    %c0_i32 = arith.constant 0 : i32
    %c0_i32_0 = arith.constant 0 : i32
    return %arg0, %c0_i32, %arg1 : i32, i32, i32
  }
}

</mosaic_0001>

<bundles_post_ra>
// kernel: _lambda_.41
= control target key start
LH: loop header
LB: loop body
LE: loop exit
PB: predicated region body
PF: predicated region fallthrough
CT: control target
= control target key end

     0   :  { %s701_s12 = smov 0   ;;  %s703_s13 = smov 0   ;;  %s744_s0 = inlined_call_operand.vmem [shape: bf16[8,54], index: 0, kind: input, shape index: {}]   ;;  %s745_s1 = inlined_call_operand.vmem [shape: bf16[2,54,512], index: 1, kind: input, shape index: {}]   ;;  %s746_s2 = inlined_call_operand.vmem [shape: f32[8,1], index: 2, kind: input, shape index: {}]   ;;  %s747_s3 = inlined_call_operand.vmem [shape: bf16[2,8,512], index: 3, kind: output, shape index: {}]  }
   0x1   :  { %s705_s14 = smov 0  }
   0x2 LB: > { %s32_s15 = sadd.s32 1, %s674_s13  ;;  %p576_p0 = scmp.ge.s32.totalorder %s678_s14, 1  ;;  %s678_s14 = sphi %s705_s14, %s13_s14   ;;  %s674_s13 = sphi %s703_s13, %s749_s13   ;;  %s670_s12 = sphi %s701_s12, %s748_s12  }
   0x3   : > { %p34_p1 = scmp.ge.s32.totalorder %s32_s15, 2  ;;  %p173_p2 = scmp.lt.s32.totalorder %s678_s14, 3 }
   0x5   : > { %s751_s15 = smov (%p34_p1, %s32_s15), 0  ;;  %p174_p3 = pnand %p576_p0, %p173_p2 }
   0x6   : > { %p212_p4 = scmp.lt.s32.totalorder (!%p174_p3), %s670_s12, 1  ;;  %v680_v0 = vmov (!%p174_p3), 0   ;;  %v448_v1 = vld [vmem:[%s746_s2] sm:$0xff] (!%p174_p3)  ;;  %vm338_vm0 = vcmask (!%p174_p3), 1042432   ;;  %vm334_vm1 = vcmask (!%p174_p3), 441344  }
   0x7   : > { %177 = sbr.rel (%p174_p3) target bundleno = 253 (0xfd), region = 32  ;;  %383 = vmatprep.mubr.bf16.mxu0 (!%p174_p3), %v680_v0  ;;  %424 = vmatprep.mubr.bf16.mxu1 (!%p174_p3), %v680_v0  ;;  %v245_v22 = vld [vmem:[%s744_s0] sm:$0xf] (!%p174_p3) }
   0x8   : > { %633 = vset.pattern.permute.xlu0 (!%p174_p3), %v680_v0 }
   0x9   : > { %451 = vperm.xlu0 (!%p174_p3), %633, %v448_v1  }
   0xe   : > { %s753_s12 = smov (!%p212_p4, %s670_s12), 1 }
   0xf   : > { %s607_s18 = smul.u32 112, %s753_s12  ;;  %s604_s24 = sshll.u32 %s753_s12, 4 }
  0x10   : > { %s234_s27 = scalar_lea.vmem %s747_s3, %s604_s24 }
  0x11   : > { %s223_s21 = scalar_lea.vmem %s745_s1, %s607_s18 }
  0x12   : > { %v634_v2 = vld [vmem:[%s223_s21 + $0x4] ss:$16 sps:$4 sm:$0xff]   ;;  %v636_v3 = vld [vmem:[%s223_s21 + $0xc] ss:$16 sps:$4 sm:$0xff]   ;;  %v638_v4 = vld [vmem:[%s223_s21] ss:$16 sps:$4 sm:$0xff]  }
  0x13   : > { %351 = vmatprep.subr.bf16.mxu0 %v634_v2  ;;  %v639_v5 = vld [vmem:[%s223_s21 + $0x8] ss:$16 sps:$4 sm:$0xff]   ;;  %392 = vmatprep.subr.bf16.mxu1 %v636_v3  ;;  %v640_v6 = vld [vmem:[%s223_s21 + $0x24] ss:$16 sps:$4 sm:$0xff]   ;;  %v642_v7 = vld [vmem:[%s223_s21 + $0x2c] ss:$16 sps:$4 sm:$0xff]  }
  0x14   : > { %352 = vmatpush1.bf16.msra.mxu0 %v638_v4  ;;  %393 = vmatpush1.bf16.msra.mxu1 %v639_v5  ;;  %v644_v8 = vld [vmem:[%s223_s21 + $0x20] ss:$16 sps:$4 sm:$0xff]   ;;  %v645_v9 = vld [vmem:[%s223_s21 + $0x28] ss:$16 sps:$4 sm:$0xff]   ;;  %v646_v10 = vld [vmem:[%s223_s21 + $0x44] ss:$16 sps:$4 sm:$0xff]  }
  0x15   : > { %353 = vmatprep.subr.bf16.mxu0 %v640_v6  ;;  %394 = vmatprep.subr.bf16.mxu1 %v642_v7  ;;  %v648_v11 = vld [vmem:[%s223_s21 + $0x4c] ss:$16 sps:$4 sm:$0xff]   ;;  %v650_v12 = vld [vmem:[%s223_s21 + $0x40] ss:$16 sps:$4 sm:$0xff]   ;;  %v651_v13 = vld [vmem:[%s223_s21 + $0x48] ss:$16 sps:$4 sm:$0xff]  }
  0x16   : > { %v262_v14 = vld [vmem:[%s223_s21 + $0x60] sm:$0x77]  ;;  %v263_v15 = vld [vmem:[%s223_s21 + $0x68] sm:$0x77] }
  0x17   : > { %v593_v16 = vcombine.high %v262_v14, %v262_v14  ;;  %v595_v17 = vcombine.high %v263_v15, %v263_v15  ;;  %v592_v18 = vcombine.low %v262_v14, %v262_v14  ;;  %v594_v19 = vcombine.low %v263_v15, %v263_v15 }
  0x18   : > { %354 = vmatpush1.bf16.msra.mxu0 %v644_v8  ;;  %395 = vmatpush1.bf16.msra.mxu1 %v645_v9 }
  0x19   : > { %355 = vmatprep.subr.bf16.mxu0 %v646_v10  ;;  %396 = vmatprep.subr.bf16.mxu1 %v648_v11  ;;  %v340_v20 = vsel %vm338_vm0, %v592_v18, 0  ;;  %v346_v21 = vsel %vm338_vm0, %v594_v19, 0 }
  0x1c   : > { %356 = vmatpush1.bf16.msra.mxu0 %v650_v12  ;;  %397 = vmatpush1.bf16.msra.mxu1 %v651_v13 }
  0x1d   : > { %596 = vmatprep.subr.msk.bf16.mxu0 %vm338_vm0, %v593_v16  ;;  %598 = vmatprep.subr.msk.bf16.mxu1 %vm338_vm0, %v595_v17 }
  0x20   : > { %358 = vmatpush1.bf16.msra.mxu0 %v340_v20  ;;  %399 = vmatpush1.bf16.msra.mxu1 %v346_v21 }
  0x23   : > { %597 = vmatmul.mubr.msk.bf16.vlgmr.msra.gmra.mrb[0].mxu0 %vm334_vm1, %v245_v22  ;;  %599 = vmatmul.mubr.msk.bf16.vlgmr.msra.gmra.mrb[0].mxu1 %vm334_vm1, %v245_v22 }
  0x88   : > { %v452_v23 = vpop.permute.xlu0 %451 }
  0xf6   : > { %v385_v24 = vpop.f32.mrb[0].mxu0  ;;  %v426_v25 = vpop.f32.mrb[0].mxu1 }
  0xf7   : > { %v454_v26 = vadd.f32 %v452_v23, %v385_v24  ;;  %v456_v27 = vadd.f32 %v452_v23, %v426_v25  ;;  %v387_v28 = vpop.f32.mrb[1].mxu0  ;;  %v428_v29 = vpop.f32.mrb[1].mxu1 }
  0xf8   : > { %v455_v30 = vadd.f32 %v452_v23, %v387_v28  ;;  %v457_v31 = vadd.f32 %v452_v23, %v428_v29  ;;  %v389_v32 = vpop.f32.mrb[2].mxu0  ;;  %v430_v33 = vpop.f32.mrb[2].mxu1 }
  0xf9   : > { %v390_v34 = vpop.f32.mrb[3].mxu0  ;;  %v431_v35 = vpop.f32.mrb[3].mxu1 }
  0xfa   : > { %v605_v36 = vpack.c.bf16 %v455_v30, %v454_v26  ;;  %v606_v37 = vpack.c.bf16 %v457_v31, %v456_v27 }
  0xfc   : > { %474 = vst [vmem:[%s234_s27] sm:$0xff] %v605_v36  ;;  %475 = vst [vmem:[%s234_s27 + $0x8] sm:$0xff] %v606_v37 }
  0xfd PF: > { %s13_s14 = sadd.s32 1, %s678_s14   ;;  %s748_s12 = smov %s674_s13 }
  0xfe   : > { %p10_p5 = scmp.ge.s32.totalorder %s13_s14, 4   ;;  %s749_s13 = smov %s751_s15 }
 0x100   :  { %12 = sbr.rel (!%p10_p5) target bundleno = 2 (0x2), region = 70 }

// kernel: _lambda_.43
= control target key start
LH: loop header
LB: loop body
LE: loop exit
PB: predicated region body
PF: predicated region fallthrough
CT: control target
= control target key end

     0   :  { %s123_s0 = inlined_call_operand.vmem [shape: bf16[8,512], index: 0, kind: input, shape index: {}]   ;;  %s124_s1 = inlined_call_operand.<no memory space> [shape: f32[1,1], index: 1, kind: input, shape index: {}]   ;;  %s125_s2 = inlined_call_operand.vmem [shape: bf16[8,512], index: 2, kind: output, shape index: {}]  }
   0x1   :  { %v13_v0 = vld [vmem:[%s123_s0] sm:$0xff]  ;;  %v14_v1 = vld [vmem:[%s123_s0 + $0x8] sm:$0xff]  ;;  %v7_v2 = vstv %s124_s1 }
   0x2   :  { %v15_v3 = vunpack.c.l.bf16 %v13_v0  ;;  %v16_v4 = vunpack.c.h.bf16 %v13_v0  ;;  %v17_v5 = vunpack.c.l.bf16 %v14_v1  ;;  %8 = vst [vmem:[#allocation2] sm:$0x1] %v7_v2  ;;  %v18_v6 = vunpack.c.h.bf16 %v14_v1 }
   0x4   :  { %v19_v7 = vadd.f32 %v16_v4, %v15_v3  ;;  %v25_v8 = vmul.f32 %v15_v3, %v15_v3  ;;  %v26_v9 = vmul.f32 %v16_v4, %v16_v4  ;;  %v27_v10 = vmul.f32 %v17_v5, %v17_v5 }
   0x5   :  { %v28_v12 = vmul.f32 %v18_v6, %v18_v6 }
   0x6   :  { %v20_v11 = vadd.f32 %v19_v7, %v17_v5  ;;  %v29_v13 = vadd.f32 %v26_v9, %v25_v8 }
   0x8   :  { %v21_v14 = vadd.f32 %v20_v11, %v18_v6  ;;  %v30_v15 = vadd.f32 %v29_v13, %v27_v10 }
   0x9   :  { %v48_v16 = vld [vmem:[#allocation2] sm:$0x1] }
   0xa   :  { %22 = vadd.xlane.f32.xlu0 %v21_v14  ;;  %v31_v17 = vadd.f32 %v30_v15, %v28_v12  ;;  %89 = vpush %v48_v16 }
   0xe   :  { %32 = vadd.xlane.f32.xlu0 %v31_v17 }
  0x3b   :  { %s90_s0 = spop %89 }
  0x3c   :  { %v54_v31 = vstv %s90_s0 }
  0x97   :  { %v23_v18 = vpop.xlane.xlu0 %22 }
  0x98   :  { %v24_v19 = vmul.f32 0.001953125, %v23_v18 }
  0x9a   :  { %v35_v21 = vmul.f32 %v24_v19, %v24_v19  ;;  %v38_v26 = vsub.f32 %v15_v3, %v24_v19  ;;  %v39_v27 = vsub.f32 %v16_v4, %v24_v19  ;;  %v40_v28 = vsub.f32 %v17_v5, %v24_v19 }
  0x9b   :  { %v33_v20 = vpop.xlane.xlu0 %32  ;;  %v41_v29 = vsub.f32 %v18_v6, %v24_v19 }
  0x9c   :  { %v34_v22 = vmul.f32 0.001953125, %v33_v20 }
  0x9e   :  { %v36_v23 = vsub.f32 %v34_v22, %v35_v21 }
  0xa0   :  { %v37_v24 = vmax.f32 %v36_v23, 0.0 }
  0xa2   :  { %v42_v25 = vadd.f32 1e-05, %v37_v24 }
  0xa4   :  { %91 = vrsqrt.f32 %v42_v25 }
  0xae   :  { %v92_v30 = vpop.eup %91 }
  0xaf   :  { %v44_v32 = vmul.f32 %v92_v30, %v38_v26  ;;  %v45_v33 = vmul.f32 %v92_v30, %v39_v27  ;;  %v46_v34 = vmul.f32 %v92_v30, %v40_v28  ;;  %v47_v35 = vmul.f32 %v92_v30, %v41_v29 }
  0xb1   :  { %vm50_vm0 = vcmp.ge.f32.partialorder %v44_v32, 0.0  ;;  %vm51_vm1 = vcmp.ge.f32.partialorder %v45_v33, 0.0  ;;  %vm52_vm2 = vcmp.ge.f32.partialorder %v46_v34, 0.0  ;;  %vm53_vm3 = vcmp.ge.f32.partialorder %v47_v35, 0.0 }
  0xb2   :  { %v55_v36 = vmul.f32 %v54_v31, %v44_v32  ;;  %v56_v37 = vmul.f32 %v54_v31, %v45_v33  ;;  %v57_v38 = vmul.f32 %v54_v31, %v46_v34  ;;  %v58_v39 = vmul.f32 %v54_v31, %v47_v35 }
  0xb4   :  { %v59_v40 = vsel %vm50_vm0, %v44_v32, %v55_v36  ;;  %v60_v41 = vsel %vm51_vm1, %v45_v33, %v56_v37  ;;  %v61_v42 = vsel %vm52_vm2, %v46_v34, %v57_v38  ;;  %v62_v43 = vsel %vm53_vm3, %v47_v35, %v58_v39 }
  0xb5   :  { %v87_v44 = vpack.c.bf16 %v60_v41, %v59_v40  ;;  %v88_v45 = vpack.c.bf16 %v62_v43, %v61_v42 }
  0xb7   :  { %79 = vst [vmem:[%s125_s2] sm:$0xff] %v87_v44  ;;  %80 = vst [vmem:[%s125_s2 + $0x8] sm:$0xff] %v88_v45 }

// kernel: _lambda_.44
= control target key start
LH: loop header
LB: loop body
LE: loop exit
PB: predicated region body
PF: predicated region fallthrough
CT: control target
= control target key end

     0   :  { %s813_s12 = smov 0   ;;  %s815_s13 = smov 0   ;;  %s886_s0 = inlined_call_operand.vmem [shape: bf16[8,108], index: 0, kind: input, shape index: {}]   ;;  %s887_s1 = inlined_call_operand.vmem [shape: bf16[2,108,512], index: 1, kind: input, shape index: {}]   ;;  %s888_s2 = inlined_call_operand.vmem [shape: f32[8,1], index: 2, kind: input, shape index: {}]   ;;  %s889_s3 = inlined_call_operand.vmem [shape: bf16[2,8,512], index: 3, kind: output, shape index: {}]  }
   0x1   :  { %s817_s14 = smov 0  }
   0x2 LB: > { %s32_s15 = sadd.s32 1, %s786_s13  ;;  %p656_p0 = scmp.ge.s32.totalorder %s790_s14, 1  ;;  %s790_s14 = sphi %s817_s14, %s13_s14   ;;  %s786_s13 = sphi %s815_s13, %s891_s13   ;;  %s782_s12 = sphi %s813_s12, %s890_s12  }
   0x3   : > { %p34_p1 = scmp.ge.s32.totalorder %s32_s15, 2  ;;  %p173_p2 = scmp.lt.s32.totalorder %s790_s14, 3 }
   0x5   : > { %s893_s15 = smov (%p34_p1, %s32_s15), 0  ;;  %p174_p3 = pnand %p656_p0, %p173_p2 }
   0x6   : > { %p212_p4 = scmp.lt.s32.totalorder (!%p174_p3), %s782_s12, 1  ;;  %v792_v0 = vmov (!%p174_p3), 0   ;;  %v528_v1 = vld [vmem:[%s888_s2] sm:$0xff] (!%p174_p3)  ;;  %vm418_vm0 = vcmask (!%p174_p3), 1045504   ;;  %vm414_vm1 = vcmask (!%p174_p3), 883712  }
   0x7   : > { %177 = sbr.rel (%p174_p3) target bundleno = 265 (0x109), region = 32  ;;  %463 = vmatprep.mubr.bf16.mxu0 (!%p174_p3), %v792_v0  ;;  %504 = vmatprep.mubr.bf16.mxu1 (!%p174_p3), %v792_v0  ;;  %v245_v32 = vld [vmem:[%s886_s0] sm:$0xf] (!%p174_p3) }
   0x8   : > { %725 = vset.pattern.permute.xlu0 (!%p174_p3), %v792_v0 }
   0x9   : > { %531 = vperm.xlu0 (!%p174_p3), %725, %v528_v1  }
   0xe   : > { %s895_s12 = smov (!%p212_p4, %s782_s12), 1 }
   0xf   : > { %s699_s18 = smul.u32 224, %s895_s12  ;;  %s696_s24 = sshll.u32 %s895_s12, 4 }
  0x10   : > { %s234_s27 = scalar_lea.vmem %s889_s3, %s696_s24 }
  0x11   : > { %s840_s21 = scalar_lea.vmem %s887_s1, %s699_s18 }
  0x12   : > { %v726_v2 = vld [vmem:[%s840_s21 + $0x4] ss:$16 sps:$4 sm:$0xff]   ;;  %v728_v3 = vld [vmem:[%s840_s21 + $0xc] ss:$16 sps:$4 sm:$0xff]   ;;  %v730_v4 = vld [vmem:[%s840_s21] ss:$16 sps:$4 sm:$0xff]  }
  0x13   : > { %431 = vmatprep.subr.bf16.mxu0 %v726_v2  ;;  %v731_v5 = vld [vmem:[%s840_s21 + $0x8] ss:$16 sps:$4 sm:$0xff]   ;;  %472 = vmatprep.subr.bf16.mxu1 %v728_v3  ;;  %v732_v6 = vld [vmem:[%s840_s21 + $0x24] ss:$16 sps:$4 sm:$0xff]   ;;  %v734_v7 = vld [vmem:[%s840_s21 + $0x2c] ss:$16 sps:$4 sm:$0xff]  }
  0x14   : > { %432 = vmatpush1.bf16.msra.mxu0 %v730_v4  ;;  %473 = vmatpush1.bf16.msra.mxu1 %v731_v5  ;;  %v736_v8 = vld [vmem:[%s840_s21 + $0x20] ss:$16 sps:$4 sm:$0xff]   ;;  %v737_v9 = vld [vmem:[%s840_s21 + $0x28] ss:$16 sps:$4 sm:$0xff]   ;;  %v738_v10 = vld [vmem:[%s840_s21 + $0x44] ss:$16 sps:$4 sm:$0xff]  }
  0x15   : > { %433 = vmatprep.subr.bf16.mxu0 %v732_v6  ;;  %474 = vmatprep.subr.bf16.mxu1 %v734_v7  ;;  %v740_v11 = vld [vmem:[%s840_s21 + $0x4c] ss:$16 sps:$4 sm:$0xff]   ;;  %v742_v12 = vld [vmem:[%s840_s21 + $0x40] ss:$16 sps:$4 sm:$0xff]   ;;  %v743_v13 = vld [vmem:[%s840_s21 + $0x48] ss:$16 sps:$4 sm:$0xff]  }
  0x16   : > { %v744_v14 = vld [vmem:[%s840_s21 + $0x64] ss:$16 sps:$4 sm:$0xff]   ;;  %v746_v15 = vld [vmem:[%s840_s21 + $0x6c] ss:$16 sps:$4 sm:$0xff]   ;;  %v748_v16 = vld [vmem:[%s840_s21 + $0x60] ss:$16 sps:$4 sm:$0xff]  }
  0x17   : > { %v749_v17 = vld [vmem:[%s840_s21 + $0x68] ss:$16 sps:$4 sm:$0xff]   ;;  %v750_v18 = vld [vmem:[%s840_s21 + $0x84] ss:$16 sps:$4 sm:$0xff]   ;;  %v752_v19 = vld [vmem:[%s840_s21 + $0x8c] ss:$16 sps:$4 sm:$0xff]  }
  0x18   : > { %434 = vmatpush1.bf16.msra.mxu0 %v736_v8  ;;  %475 = vmatpush1.bf16.msra.mxu1 %v737_v9  ;;  %v754_v20 = vld [vmem:[%s840_s21 + $0x80] ss:$16 sps:$4 sm:$0xff]   ;;  %v755_v21 = vld [vmem:[%s840_s21 + $0x88] ss:$16 sps:$4 sm:$0xff]   ;;  %v756_v22 = vld [vmem:[%s840_s21 + $0xa4] ss:$16 sps:$4 sm:$0xff]  }
  0x19   : > { %435 = vmatprep.subr.bf16.mxu0 %v738_v10  ;;  %476 = vmatprep.subr.bf16.mxu1 %v740_v11  ;;  %v758_v23 = vld [vmem:[%s840_s21 + $0xac] ss:$16 sps:$4 sm:$0xff]   ;;  %v760_v24 = vld [vmem:[%s840_s21 + $0xa0] ss:$16 sps:$4 sm:$0xff]   ;;  %v761_v25 = vld [vmem:[%s840_s21 + $0xa8] ss:$16 sps:$4 sm:$0xff]  }
  0x1a   : > { %v762_v26 = vld [vmem:[%s840_s21 + $0xc4] ss:$16 sps:$4 sm:$0x3f]   ;;  %v764_v27 = vld [vmem:[%s840_s21 + $0xcc] ss:$16 sps:$4 sm:$0x3f]  }
  0x1b   : > { %v766_v28 = vld [vmem:[%s840_s21 + $0xc0] ss:$16 sps:$4 sm:$0x3f]   ;;  %v767_v29 = vld [vmem:[%s840_s21 + $0xc8] ss:$16 sps:$4 sm:$0x3f]  }
  0x1c   : > { %436 = vmatpush1.bf16.msra.mxu0 %v742_v12  ;;  %477 = vmatpush1.bf16.msra.mxu1 %v743_v13  ;;  %v420_v30 = vsel %vm418_vm0, %v766_v28, 0  ;;  %v426_v31 = vsel %vm418_vm0, %v767_v29, 0 }
  0x1d   : > { %437 = vmatprep.subr.bf16.mxu0 %v744_v14  ;;  %478 = vmatprep.subr.bf16.mxu1 %v746_v15 }
  0x20   : > { %438 = vmatpush1.bf16.msra.mxu0 %v748_v16  ;;  %479 = vmatpush1.bf16.msra.mxu1 %v749_v17 }
  0x21   : > { %439 = vmatprep.subr.bf16.mxu0 %v750_v18  ;;  %480 = vmatprep.subr.bf16.mxu1 %v752_v19 }
  0x24   : > { %440 = vmatpush1.bf16.msra.mxu0 %v754_v20  ;;  %481 = vmatpush1.bf16.msra.mxu1 %v755_v21 }
  0x25   : > { %441 = vmatprep.subr.bf16.mxu0 %v756_v22  ;;  %482 = vmatprep.subr.bf16.mxu1 %v758_v23 }
  0x28   : > { %442 = vmatpush1.bf16.msra.mxu0 %v760_v24  ;;  %483 = vmatpush1.bf16.msra.mxu1 %v761_v25 }
  0x29   : > { %688 = vmatprep.subr.msk.bf16.mxu0 %vm418_vm0, %v762_v26  ;;  %690 = vmatprep.subr.msk.bf16.mxu1 %vm418_vm0, %v764_v27 }
  0x2c   : > { %444 = vmatpush1.bf16.msra.mxu0 %v420_v30  ;;  %485 = vmatpush1.bf16.msra.mxu1 %v426_v31 }
  0x2f   : > { %689 = vmatmul.mubr.msk.bf16.vlgmr.msra.gmra.mrb[0].mxu0 %vm414_vm1, %v245_v32  ;;  %691 = vmatmul.mubr.msk.bf16.vlgmr.msra.gmra.mrb[0].mxu1 %vm414_vm1, %v245_v32 }
  0x88   : > { %v532_v33 = vpop.permute.xlu0 %531 }
 0x102   : > { %v465_v34 = vpop.f32.mrb[0].mxu0  ;;  %v506_v35 = vpop.f32.mrb[0].mxu1 }
 0x103   : > { %v534_v36 = vadd.f32 %v532_v33, %v465_v34  ;;  %v536_v37 = vadd.f32 %v532_v33, %v506_v35  ;;  %v467_v38 = vpop.f32.mrb[1].mxu0  ;;  %v508_v39 = vpop.f32.mrb[1].mxu1 }
 0x104   : > { %v535_v40 = vadd.f32 %v532_v33, %v467_v38  ;;  %v537_v41 = vadd.f32 %v532_v33, %v508_v39  ;;  %v469_v42 = vpop.f32.mrb[2].mxu0  ;;  %v510_v43 = vpop.f32.mrb[2].mxu1 }
 0x105   : > { %v470_v44 = vpop.f32.mrb[3].mxu0  ;;  %v511_v45 = vpop.f32.mrb[3].mxu1 }
 0x106   : > { %v697_v46 = vpack.c.bf16 %v535_v40, %v534_v36  ;;  %v698_v47 = vpack.c.bf16 %v537_v41, %v536_v37 }
 0x108   : > { %554 = vst [vmem:[%s234_s27] sm:$0xff] %v697_v46  ;;  %555 = vst [vmem:[%s234_s27 + $0x8] sm:$0xff] %v698_v47 }
 0x109 PF: > { %s13_s14 = sadd.s32 1, %s790_s14   ;;  %s890_s12 = smov %s786_s13 }
 0x10a   : > { %p10_p5 = scmp.ge.s32.totalorder %s13_s14, 4   ;;  %s891_s13 = smov %s893_s15 }
 0x10c   :  { %12 = sbr.rel (!%p10_p5) target bundleno = 2 (0x2), region = 70 }

// kernel: _lambda_.46
= control target key start
LH: loop header
LB: loop body
LE: loop exit
PB: predicated region body
PF: predicated region fallthrough
CT: control target
= control target key end

     0   :  { %s558_s12 = smov 0   ;;  %s560_s13 = smov 0   ;;  %s601_s0 = inlined_call_operand.vmem [shape: bf16[8,108], index: 0, kind: input, shape index: {}]   ;;  %s602_s1 = inlined_call_operand.vmem [shape: bf16[2,108,128], index: 1, kind: input, shape index: {}]   ;;  %s603_s2 = inlined_call_operand.vmem [shape: f32[8,1], index: 2, kind: input, shape index: {}]   ;;  %s604_s3 = inlined_call_operand.vmem [shape: bf16[2,8,128], index: 3, kind: output, shape index: {}]  }
   0x1   :  { %s562_s14 = smov 0  }
   0x2 LB: > { %s32_s15 = sadd.s32 1, %s529_s13  ;;  %p436_p0 = scmp.ge.s32.totalorder %s533_s14, 1  ;;  %s533_s14 = sphi %s562_s14, %s13_s14   ;;  %s529_s13 = sphi %s560_s13, %s606_s13   ;;  %s525_s12 = sphi %s558_s12, %s605_s12  }
   0x3   : > { %p34_p1 = scmp.ge.s32.totalorder %s32_s15, 2  ;;  %p170_p2 = scmp.lt.s32.totalorder %s533_s14, 3 }
   0x5   : > { %s608_s15 = smov (%p34_p1, %s32_s15), 0  ;;  %p171_p3 = pnand %p436_p0, %p170_p2 }
   0x6   : > { %p204_p4 = scmp.lt.s32.totalorder (!%p171_p3), %s525_s12, 1  ;;  %v535_v0 = vmov (!%p171_p3), 0.0   ;;  %vm536_vm0 = vmmov (!%p171_p3), 0   ;;  %v340_v1 = vld [vmem:[%s603_s2] sm:$0xff] (!%p171_p3)  ;;  %v537_v2 = vmov (!%p171_p3), 0   ;;  %vm290_vm1 = vcmask (!%p171_p3), 1045504  }
   0x7   : > { %174 = sbr.rel (%p171_p3) target bundleno = 263 (0x107), region = 32  ;;  %457 = vmatprep.subr.bf16.mxu0 (!%p171_p3), %v535_v0  ;;  %471 = vmatprep.mubr.msk.bf16.mxu0 (!%p171_p3), %vm536_vm0, %v535_v0  ;;  %v229_v11 = vld [vmem:[%s601_s0] sm:$0xf] (!%p171_p3)  ;;  %vm286_vm2 = vcmask (!%p171_p3), 883712  }
   0x8   : > { %503 = vset.pattern.permute.xlu0 (!%p171_p3), %v537_v2 }
   0x9   : > { %343 = vperm.xlu0 (!%p171_p3), %503, %v340_v1  }
   0xe   : > { %s610_s12 = smov (!%p204_p4, %s525_s12), 1 }
   0xf   : > { %s475_s18 = smul.u32 56, %s610_s12  ;;  %s438_s24 = sshll.u32 %s610_s12, 2 }
  0x10   : > { %s222_s27 = scalar_lea.vmem %s604_s3, %s438_s24 }
  0x11   : > { %s214_s21 = scalar_lea.vmem %s602_s1, %s475_s18 }
  0x12   : > { %v504_v3 = vld [vmem:[%s214_s21] sm:$0xff]   ;;  %v505_v4 = vld [vmem:[%s214_s21 + $0x8] sm:$0xff]   ;;  %v506_v5 = vld [vmem:[%s214_s21 + $0x10] sm:$0xff]  }
  0x13   : > { %458 = vmatpush3.bf16.msra.mxu0 %v504_v3  ;;  %v507_v6 = vld [vmem:[%s214_s21 + $0x18] sm:$0xff]   ;;  %v508_v7 = vld [vmem:[%s214_s21 + $0x20] sm:$0xff]   ;;  %v509_v8 = vld [vmem:[%s214_s21 + $0x28] sm:$0xff]  }
  0x14   : > { %459 = vmatprep.subr.bf16.mxu0 %v535_v0  ;;  %v510_v9 = vld [vmem:[%s214_s21 + $0x30] sm:$0x3f]  }
  0x15   : > { %v292_v10 = vsel %vm290_vm1, %v510_v9, 0 }
  0x17   : > { %460 = vmatpush3.bf16.msra.mxu0 %v505_v4 }
  0x18   : > { %461 = vmatprep.subr.bf16.mxu0 %v535_v0 }
  0x1b   : > { %462 = vmatpush3.bf16.msra.mxu0 %v506_v5 }
  0x1c   : > { %463 = vmatprep.subr.bf16.mxu0 %v535_v0 }
  0x1f   : > { %464 = vmatpush3.bf16.msra.mxu0 %v507_v6 }
  0x20   : > { %465 = vmatprep.subr.bf16.mxu0 %v535_v0 }
  0x23   : > { %466 = vmatpush3.bf16.msra.mxu0 %v508_v7 }
  0x24   : > { %467 = vmatprep.subr.bf16.mxu0 %v535_v0 }
  0x27   : > { %468 = vmatpush3.bf16.msra.mxu0 %v509_v8 }
  0x28   : > { %469 = vmatprep.subr.bf16.mxu0 %v535_v0 }
  0x2b   : > { %470 = vmatpush3.bf16.msra.mxu0 %v292_v10 }
  0x2e   : > { %472 = vmatmul.mubr.msk.bf16.vlgmr.msra.gmra.mrb[0].mxu0 %vm286_vm2, %v229_v11 }
  0x88   : > { %v344_v12 = vpop.permute.xlu0 %343 }
 0x101   : > { %v328_v13 = vpop.f32.mrb[0].mxu0 }
 0x102   : > { %v346_v14 = vadd.f32 %v344_v12, %v328_v13  ;;  %v473_v15 = vpop.f32.mrb[1].mxu0 }
 0x103   : > { %v331_v16 = vpop.f32.mrb[2].mxu0 }
 0x104   : > { %v347_v17 = vpack.c.bf16 %v346_v14, %v346_v14  ;;  %v474_v18 = vpop.f32.mrb[3].mxu0 }
 0x106   : > { %348 = vst [vmem:[%s222_s27] sm:$0xf] %v347_v17 }
 0x107 PF: > { %s13_s14 = sadd.s32 1, %s533_s14   ;;  %s605_s12 = smov %s529_s13 }
 0x108   : > { %p10_p5 = scmp.ge.s32.totalorder %s13_s14, 4   ;;  %s606_s13 = smov %s608_s15 }
 0x10a   :  { %12 = sbr.rel (!%p10_p5) target bundleno = 2 (0x2), region = 70 }

// kernel: _lambda_.48
= control target key start
LH: loop header
LB: loop body
LE: loop exit
PB: predicated region body
PF: predicated region fallthrough
CT: control target
= control target key end

     0   :  { %vm17_vm0 = vcmask 523264   ;;  %vm67_vm2 = vcmask 519168   ;;  %s115_s0 = inlined_call_operand.vmem [shape: bf16[16,64], index: 0, kind: input, shape index: {}]   ;;  %s116_s1 = inlined_call_operand.<no memory space> [shape: f32[1,1], index: 1, kind: input, shape index: {}]   ;;  %s117_s2 = inlined_call_operand.vmem [shape: bf16[16,64], index: 2, kind: output, shape index: {}]  }
   0x1   :  { %v79_v0 = vld [vmem:[%s115_s0] sm:$0xff]   ;;  %v7_v1 = vstv %s116_s1 }
   0x2   :  { %v80_v2 = vunpack.c.l.bf16 %v79_v0  ;;  %v81_v3 = vunpack.c.h.bf16 %v79_v0  ;;  %8 = vst [vmem:[#allocation2] sm:$0x1] %v7_v1 }
   0x4   :  { %v18_v4 = vsel %vm17_vm0, %v80_v2, 0.0  ;;  %v26_v5 = vmul.f32 %v80_v2, %v80_v2  ;;  %v27_v6 = vmul.f32 %v81_v3, %v81_v3  ;;  %v21_v8 = vsel %vm17_vm0, %v81_v3, 0.0 }
   0x5   :  { %19 = vadd.xlane.f32.xlu0 %v18_v4 }
   0x6   :  { %v28_v7 = vsel %vm17_vm0, %v26_v5, 0.0  ;;  %v31_v9 = vsel %vm17_vm0, %v27_v6, 0.0 }
   0x7   :  { %29 = vadd.xlane.f32.xlu1 %v28_v7 }
   0x9   :  { %22 = vadd.xlane.f32.xlu0 %v21_v8  ;;  %v50_v10 = vld [vmem:[#allocation2] sm:$0x1] }
   0xa   :  { %82 = vpush %v50_v10 }
   0xb   :  { %32 = vadd.xlane.f32.xlu1 %v31_v9 }
  0x3b   :  { %s83_s0 = spop %82 }
  0x3c   :  { %v54_v29 = vstv %s83_s0 }
  0x92   :  { %v20_v11 = vpop.xlane.xlu0 %19 }
  0x93   :  { %v24_v12 = vmul.f32 0.015625, %v20_v11 }
  0x94   :  { %v30_v13 = vpop.xlane.xlu1 %29 }
  0x95   :  { %v36_v14 = vmul.f32 %v24_v12, %v24_v12  ;;  %v34_v15 = vmul.f32 0.015625, %v30_v13  ;;  %v42_v27 = vsub.f32 %v80_v2, %v24_v12 }
  0x96   :  { %v23_v16 = vpop.xlane.xlu0 %22 }
  0x97   :  { %v38_v17 = vsub.f32 %v34_v15, %v36_v14  ;;  %v25_v18 = vmul.f32 0.015625, %v23_v16 }
  0x98   :  { %v33_v19 = vpop.xlane.xlu1 %32 }
  0x99   :  { %v40_v20 = vmax.f32 %v38_v17, 0.0  ;;  %v37_v21 = vmul.f32 %v25_v18, %v25_v18  ;;  %v35_v22 = vmul.f32 0.015625, %v33_v19  ;;  %v43_v31 = vsub.f32 %v81_v3, %v25_v18 }
  0x9b   :  { %v44_v23 = vadd.f32 1e-05, %v40_v20  ;;  %v39_v24 = vsub.f32 %v35_v22, %v37_v21 }
  0x9d   :  { %84 = vrsqrt.f32 %v44_v23  ;;  %v41_v25 = vmax.f32 %v39_v24, 0.0 }
  0x9f   :  { %v45_v26 = vadd.f32 1e-05, %v41_v25 }
  0xa1   :  { %86 = vrsqrt.f32 %v45_v26 }
  0xa7   :  { %v85_v28 = vpop.eup %84 }
  0xa8   :  { %v48_v30 = vmul.f32 %v85_v28, %v42_v27 }
  0xaa   :  { %vm52_vm1 = vcmp.ge.f32.partialorder %v48_v30, 0.0  ;;  %v55_v32 = vmul.f32 %v54_v29, %v48_v30 }
  0xab   :  { %v87_v33 = vpop.eup %86 }
  0xac   :  { %v49_v34 = vmul.f32 %v87_v33, %v43_v31  ;;  %v57_v35 = vsel %vm52_vm1, %v48_v30, %v55_v32 }
  0xad   :  { %v76_v36 = vpack.c.bf16 %v57_v35, %v57_v35 }
  0xae   :  { %vm53_vm3 = vcmp.ge.f32.partialorder %v49_v34, 0.0  ;;  %v56_v37 = vmul.f32 %v54_v29, %v49_v34 }
  0xaf   :  { %68 = vst.msk [vmem:[%s117_s2] sm:$0xf] %vm67_vm2, %v76_v36 }
  0xb0   :  { %v58_v38 = vsel %vm53_vm3, %v49_v34, %v56_v37 }
  0xb1   :  { %v77_v39 = vpack.c.bf16 %v58_v38, %v58_v38 }
  0xb3   :  { %69 = vst.msk [vmem:[%s117_s2 + $0x4] sm:$0xf] %vm67_vm2, %v77_v39 }

// kernel: _lambda_.49
= control target key start
LH: loop header
LB: loop body
LE: loop exit
PB: predicated region body
PF: predicated region fallthrough
CT: control target
= control target key end

     0   :  { %s605_s12 = smov 0   ;;  %s607_s13 = smov 0   ;;  %s664_s0 = inlined_call_operand.vmem [shape: bf16[8,216], index: 0, kind: input, shape index: {}]   ;;  %s665_s1 = inlined_call_operand.vmem [shape: bf16[2,216,128], index: 1, kind: input, shape index: {}]   ;;  %s666_s2 = inlined_call_operand.vmem [shape: f32[8,1], index: 2, kind: input, shape index: {}]   ;;  %s667_s3 = inlined_call_operand.vmem [shape: bf16[2,8,128], index: 3, kind: output, shape index: {}]  }
   0x1   :  { %s609_s14 = smov 0  }
   0x2 LB: > { %s32_s15 = sadd.s32 1, %s578_s13  ;;  %p495_p0 = scmp.ge.s32.totalorder %s582_s14, 1  ;;  %s582_s14 = sphi %s609_s14, %s13_s14   ;;  %s578_s13 = sphi %s607_s13, %s669_s13   ;;  %s574_s12 = sphi %s605_s12, %s668_s12  }
   0x3   : > { %p34_p1 = scmp.ge.s32.totalorder %s32_s15, 2  ;;  %p170_p2 = scmp.lt.s32.totalorder %s582_s14, 3 }
   0x5   : > { %s671_s15 = smov (%p34_p1, %s32_s15), 0  ;;  %p171_p3 = pnand %p495_p0, %p170_p2 }
   0x6   : > { %p204_p4 = scmp.lt.s32.totalorder (!%p171_p3), %s574_s12, 1  ;;  %v229_v0 = vld [vmem:[%s664_s0] sm:$0xff] (!%p171_p3)  ;;  %vm345_vm0 = vcmask (!%p171_p3), 719872   ;;  %v584_v2 = vmov (!%p171_p3), 0   ;;  %vm349_vm1 = vcmask (!%p171_p3), 1043456  }
   0x7   : > { %174 = sbr.rel (%p171_p3) target bundleno = 291 (0x123), region = 32  ;;  %v399_v1 = vld [vmem:[%s666_s2] sm:$0xff] (!%p171_p3)  ;;  %353 = vmatprep.subr.bf16.mxu0 (!%p171_p3), %v584_v2  ;;  %v499_v3 = vcombine.high (!%p171_p3), %v229_v0, %v229_v0  ;;  %543 = vset.pattern.permute.xlu0 (!%p171_p3), %v584_v2  ;;  %v498_v19 = vcombine.low (!%p171_p3), %v229_v0, %v229_v0 }
   0x8   : > { %402 = vperm.xlu0 (!%p171_p3), %543, %v399_v1  }
   0x9   : > { %514 = vmatprep.mubr.msk.bf16.mxu0 (!%p171_p3), %vm345_vm0, %v499_v3 }
   0xe   : > { %s673_s12 = smov (!%p204_p4, %s574_s12), 1 }
   0xf   : > { %s517_s20 = smul.u32 108, %s673_s12  ;;  %s497_s24 = sshll.u32 %s673_s12, 2 }
  0x10   : > { %s222_s27 = scalar_lea.vmem %s667_s3, %s497_s24 }
  0x11   : > { %s635_s23 = scalar_lea.vmem %s665_s1, %s517_s20 }
  0x12   : > { %v544_v4 = vld [vmem:[%s635_s23] sm:$0xff]   ;;  %v545_v5 = vld [vmem:[%s635_s23 + $0x8] sm:$0xff]   ;;  %v546_v6 = vld [vmem:[%s635_s23 + $0x10] sm:$0xff]  }
  0x13   : > { %354 = vmatpush1.bf16.msra.mxu0 %v544_v4  ;;  %v547_v7 = vld [vmem:[%s635_s23 + $0x18] sm:$0xff]   ;;  %v548_v8 = vld [vmem:[%s635_s23 + $0x20] sm:$0xff]   ;;  %v549_v9 = vld [vmem:[%s635_s23 + $0x28] sm:$0xff]  }
  0x14   : > { %355 = vmatprep.subr.bf16.mxu0 %v584_v2  ;;  %v550_v10 = vld [vmem:[%s635_s23 + $0x30] sm:$0xff]   ;;  %v551_v11 = vld [vmem:[%s635_s23 + $0x38] sm:$0xff]   ;;  %v552_v12 = vld [vmem:[%s635_s23 + $0x40] sm:$0xff]  }
  0x15   : > { %v553_v13 = vld [vmem:[%s635_s23 + $0x48] sm:$0xff]   ;;  %v554_v14 = vld [vmem:[%s635_s23 + $0x50] sm:$0xff]   ;;  %v555_v15 = vld [vmem:[%s635_s23 + $0x58] sm:$0xff]  }
  0x16   : > { %v556_v16 = vld [vmem:[%s635_s23 + $0x60] sm:$0xff]   ;;  %v557_v17 = vld [vmem:[%s635_s23 + $0x68] ss:$0 sps:$4 sm:$0xff]  }
  0x17   : > { %356 = vmatpush1.bf16.msra.mxu0 %v545_v5  ;;  %v351_v18 = vsel %vm349_vm1, %v557_v17, 0 }
  0x18   : > { %357 = vmatprep.subr.bf16.mxu0 %v584_v2 }
  0x1b   : > { %358 = vmatpush1.bf16.msra.mxu0 %v546_v6 }
  0x1c   : > { %359 = vmatprep.subr.bf16.mxu0 %v584_v2 }
  0x1f   : > { %360 = vmatpush1.bf16.msra.mxu0 %v547_v7 }
  0x20   : > { %361 = vmatprep.subr.bf16.mxu0 %v584_v2 }
  0x23   : > { %362 = vmatpush1.bf16.msra.mxu0 %v548_v8 }
  0x24   : > { %363 = vmatprep.subr.bf16.mxu0 %v584_v2 }
  0x27   : > { %364 = vmatpush1.bf16.msra.mxu0 %v549_v9 }
  0x28   : > { %365 = vmatprep.subr.bf16.mxu0 %v584_v2 }
  0x2b   : > { %366 = vmatpush1.bf16.msra.mxu0 %v550_v10 }
  0x2c   : > { %367 = vmatprep.subr.bf16.mxu0 %v584_v2 }
  0x2f   : > { %368 = vmatpush1.bf16.msra.mxu0 %v551_v11 }
  0x30   : > { %369 = vmatprep.subr.bf16.mxu0 %v584_v2 }
  0x33   : > { %370 = vmatpush1.bf16.msra.mxu0 %v552_v12 }
  0x34   : > { %371 = vmatprep.subr.bf16.mxu0 %v584_v2 }
  0x37   : > { %372 = vmatpush1.bf16.msra.mxu0 %v553_v13 }
  0x38   : > { %373 = vmatprep.subr.bf16.mxu0 %v584_v2 }
  0x3b   : > { %374 = vmatpush1.bf16.msra.mxu0 %v554_v14 }
  0x3c   : > { %375 = vmatprep.subr.bf16.mxu0 %v584_v2 }
  0x3f   : > { %376 = vmatpush1.bf16.msra.mxu0 %v555_v15 }
  0x40   : > { %377 = vmatprep.subr.bf16.mxu0 %v584_v2 }
  0x43   : > { %378 = vmatpush1.bf16.msra.mxu0 %v556_v16 }
  0x44   : > { %379 = vmatprep.subr.bf16.mxu0 %v584_v2 }
  0x47   : > { %380 = vmatpush1.bf16.msra.mxu0 %v351_v18 }
  0x4a   : > { %386 = vmatmul.mubr.bf16.vlgmr.msra.gmra.mrb[0].mxu0 %v498_v19 }
  0x87   : > { %v403_v20 = vpop.permute.xlu0 %402 }
 0x11d   : > { %v387_v21 = vpop.f32.mrb[0].mxu0 }
 0x11e   : > { %v405_v22 = vadd.f32 %v403_v20, %v387_v21  ;;  %v389_v23 = vpop.f32.mrb[1].mxu0 }
 0x11f   : > { %v390_v24 = vpop.f32.mrb[2].mxu0 }
 0x120   : > { %v406_v25 = vpack.c.bf16 %v405_v22, %v405_v22  ;;  %v391_v26 = vpop.f32.mrb[3].mxu0 }
 0x122   : > { %407 = vst [vmem:[%s222_s27] sm:$0xf] %v406_v25 }
 0x123 PF: > { %s13_s14 = sadd.s32 1, %s582_s14   ;;  %s668_s12 = smov %s578_s13 }
 0x124   : > { %p10_p5 = scmp.ge.s32.totalorder %s13_s14, 4   ;;  %s669_s13 = smov %s671_s15 }
 0x126   :  { %12 = sbr.rel (!%p10_p5) target bundleno = 2 (0x2), region = 70 }

// kernel: _lambda_.51
= control target key start
LH: loop header
LB: loop body
LE: loop exit
PB: predicated region body
PF: predicated region fallthrough
CT: control target
= control target key end

     0   :  { %s650_s12 = smov 0   ;;  %s652_s13 = smov 0   ;;  %s715_s0 = inlined_call_operand.vmem [shape: bf16[16,216], index: 0, kind: input, shape index: {}]   ;;  %s716_s1 = inlined_call_operand.vmem [shape: bf16[2,216,128], index: 1, kind: input, shape index: {}]   ;;  %s717_s2 = inlined_call_operand.vmem [shape: f32[16,1], index: 2, kind: input, shape index: {}]   ;;  %s718_s3 = inlined_call_operand.vmem [shape: bf16[2,16,128], index: 3, kind: output, shape index: {}]  }
   0x1   :  { %s654_s14 = smov 0  }
   0x2 LB: > { %s32_s15 = sadd.s32 1, %s623_s13  ;;  %p528_p0 = scmp.ge.s32.totalorder %s627_s14, 1  ;;  %s627_s14 = sphi %s654_s14, %s13_s14   ;;  %s623_s13 = sphi %s652_s13, %s720_s13   ;;  %s619_s12 = sphi %s650_s12, %s719_s12  }
   0x3   : > { %p34_p1 = scmp.ge.s32.totalorder %s32_s15, 2  ;;  %p170_p2 = scmp.lt.s32.totalorder %s627_s14, 3 }
   0x5   : > { %s722_s15 = smov (%p34_p1, %s32_s15), 0  ;;  %p171_p3 = pnand %p528_p0, %p170_p2 }
   0x6   : > { %p205_p4 = scmp.lt.s32.totalorder (!%p171_p3), %s619_s12, 1  ;;  %vm353_vm0 = vcmask (!%p171_p3), 719872   ;;  %v629_v0 = vmov (!%p171_p3), 0   ;;  %v604_v1 = vld [vmem:[%s715_s0 + $0x4] ss:$8 sps:$4 sm:$0xff] (!%p171_p3)   ;;  %vm357_vm1 = vcmask (!%p171_p3), 1043456  }
   0x7   : > { %174 = sbr.rel (%p171_p3) target bundleno = 293 (0x125), region = 32  ;;  %361 = vmatprep.subr.bf16.mxu0 (!%p171_p3), %v629_v0  ;;  %587 = vset.pattern.permute.xlu0 (!%p171_p3), %v629_v0  ;;  %v411_v2 = vld [vmem:[%s717_s2] sm:$0xff] (!%p171_p3)  ;;  %v412_v3 = vld [vmem:[%s717_s2 + $0x8] sm:$0xff] (!%p171_p3) }
   0x8   : > { %415 = vperm.xlu0 (!%p171_p3), %587, %v411_v2   ;;  %548 = vmatprep.mubr.msk.bf16.mxu0 (!%p171_p3), %vm353_vm0, %v604_v1  ;;  %v602_v19 = vld [vmem:[%s715_s0] ss:$8 sps:$4 sm:$0xff] (!%p171_p3)  }
   0xc   : > { %420 = vperm.xlu0 (!%p171_p3), %587, %v412_v3  }
   0xe   : > { %s724_s12 = smov (!%p205_p4, %s619_s12), 1 }
   0xf   : > { %s561_s22 = smul.u32 108, %s724_s12  ;;  %s553_s28 = sshll.u32 %s724_s12, 3 }
  0x10   : > { %s224_s4 = scalar_lea.vmem %s718_s3, %s553_s28 }
  0x11   : > { %s683_s25 = scalar_lea.vmem %s716_s1, %s561_s22 }
  0x12   : > { %v588_v4 = vld [vmem:[%s683_s25] sm:$0xff]   ;;  %v589_v5 = vld [vmem:[%s683_s25 + $0x8] sm:$0xff]   ;;  %v590_v6 = vld [vmem:[%s683_s25 + $0x10] sm:$0xff]  }
  0x13   : > { %362 = vmatpush1.bf16.msra.mxu0 %v588_v4  ;;  %v591_v7 = vld [vmem:[%s683_s25 + $0x18] sm:$0xff]   ;;  %v592_v8 = vld [vmem:[%s683_s25 + $0x20] sm:$0xff]   ;;  %v593_v9 = vld [vmem:[%s683_s25 + $0x28] sm:$0xff]  }
  0x14   : > { %363 = vmatprep.subr.bf16.mxu0 %v629_v0  ;;  %v594_v10 = vld [vmem:[%s683_s25 + $0x30] sm:$0xff]   ;;  %v595_v11 = vld [vmem:[%s683_s25 + $0x38] sm:$0xff]   ;;  %v596_v12 = vld [vmem:[%s683_s25 + $0x40] sm:$0xff]  }
  0x15   : > { %v597_v13 = vld [vmem:[%s683_s25 + $0x48] sm:$0xff]   ;;  %v598_v14 = vld [vmem:[%s683_s25 + $0x50] sm:$0xff]   ;;  %v599_v15 = vld [vmem:[%s683_s25 + $0x58] sm:$0xff]  }
  0x16   : > { %v600_v16 = vld [vmem:[%s683_s25 + $0x60] sm:$0xff]   ;;  %v601_v17 = vld [vmem:[%s683_s25 + $0x68] ss:$0 sps:$4 sm:$0xff]  }
  0x17   : > { %364 = vmatpush1.bf16.msra.mxu0 %v589_v5  ;;  %v359_v18 = vsel %vm357_vm1, %v601_v17, 0 }
  0x18   : > { %365 = vmatprep.subr.bf16.mxu0 %v629_v0 }
  0x1b   : > { %366 = vmatpush1.bf16.msra.mxu0 %v590_v6 }
  0x1c   : > { %367 = vmatprep.subr.bf16.mxu0 %v629_v0 }
  0x1f   : > { %368 = vmatpush1.bf16.msra.mxu0 %v591_v7 }
  0x20   : > { %369 = vmatprep.subr.bf16.mxu0 %v629_v0 }
  0x23   : > { %370 = vmatpush1.bf16.msra.mxu0 %v592_v8 }
  0x24   : > { %371 = vmatprep.subr.bf16.mxu0 %v629_v0 }
  0x27   : > { %372 = vmatpush1.bf16.msra.mxu0 %v593_v9 }
  0x28   : > { %373 = vmatprep.subr.bf16.mxu0 %v629_v0 }
  0x2b   : > { %374 = vmatpush1.bf16.msra.mxu0 %v594_v10 }
  0x2c   : > { %375 = vmatprep.subr.bf16.mxu0 %v629_v0 }
  0x2f   : > { %376 = vmatpush1.bf16.msra.mxu0 %v595_v11 }
  0x30   : > { %377 = vmatprep.subr.bf16.mxu0 %v629_v0 }
  0x33   : > { %378 = vmatpush1.bf16.msra.mxu0 %v596_v12 }
  0x34   : > { %379 = vmatprep.subr.bf16.mxu0 %v629_v0 }
  0x37   : > { %380 = vmatpush1.bf16.msra.mxu0 %v597_v13 }
  0x38   : > { %381 = vmatprep.subr.bf16.mxu0 %v629_v0 }
  0x3b   : > { %382 = vmatpush1.bf16.msra.mxu0 %v598_v14 }
  0x3c   : > { %383 = vmatprep.subr.bf16.mxu0 %v629_v0 }
  0x3f   : > { %384 = vmatpush1.bf16.msra.mxu0 %v599_v15 }
  0x40   : > { %385 = vmatprep.subr.bf16.mxu0 %v629_v0 }
  0x43   : > { %386 = vmatpush1.bf16.msra.mxu0 %v600_v16 }
  0x44   : > { %387 = vmatprep.subr.bf16.mxu0 %v629_v0 }
  0x47   : > { %388 = vmatpush1.bf16.msra.mxu0 %v359_v18 }
  0x4a   : > { %394 = vmatmul.mubr.bf16.vlgmr.msra.gmra.mrb[0].mxu0 %v602_v19 }
  0x87   : > { %v416_v20 = vpop.permute.xlu0 %415 }
  0x8b   : > { %v421_v23 = vpop.permute.xlu0 %420 }
 0x11d   : > { %v395_v21 = vpop.f32.mrb[0].mxu0 }
 0x11e   : > { %v397_v22 = vpop.f32.mrb[1].mxu0  ;;  %v423_v25 = vadd.f32 %v416_v20, %v395_v21 }
 0x11f   : > { %v398_v24 = vpop.f32.mrb[2].mxu0 }
 0x120   : > { %v424_v26 = vadd.f32 %v421_v23, %v398_v24  ;;  %v400_v27 = vpop.f32.mrb[3].mxu0 }
 0x122   : > { %v559_v28 = vpack.c.bf16 %v424_v26, %v423_v25 }
 0x124   : > { %560 = vst [vmem:[%s224_s4] sm:$0xff] %v559_v28  }
 0x125 PF: > { %s13_s14 = sadd.s32 1, %s627_s14   ;;  %s719_s12 = smov %s623_s13 }
 0x126   : > { %p10_p5 = scmp.ge.s32.totalorder %s13_s14, 4   ;;  %s720_s13 = smov %s722_s15 }
 0x128   :  { %12 = sbr.rel (!%p10_p5) target bundleno = 2 (0x2), region = 70 }

// kernel: _lambda_.53
= control target key start
LH: loop header
LB: loop body
LE: loop exit
PB: predicated region body
PF: predicated region fallthrough
CT: control target
= control target key end

     0   :  { %vm21_vm0 = vcmask 64512   ;;  %vm117_vm3 = vcmask 60416   ;;  %s225_s0 = inlined_call_operand.vmem [shape: bf16[32,8], index: 0, kind: input, shape index: {}]   ;;  %s226_s1 = inlined_call_operand.<no memory space> [shape: f32[1,1], index: 1, kind: input, shape index: {}]   ;;  %s227_s2 = inlined_call_operand.vmem [shape: bf16[32,8], index: 2, kind: output, shape index: {}]  }
   0x1   :  { %v142_v0 = vld [vmem:[%s225_s0 + $0x8] sm:$0xff]   ;;  %v135_v1 = vld [vmem:[%s225_s0] sm:$0xff]   ;;  %v7_v2 = vstv %s226_s1 }
   0x2   :  { %v177_v3 = vunpack.c.l.bf16 %v142_v0  ;;  %v179_v4 = vunpack.c.l.bf16 %v135_v1  ;;  %v181_v5 = vunpack.c.h.bf16 %v142_v0  ;;  %v183_v6 = vunpack.c.h.bf16 %v135_v1  ;;  %8 = vst [vmem:[#allocation2] sm:$0x1] %v7_v2 }
   0x4   :  { %v28_v7 = vsel %vm21_vm0, %v177_v3, 0.0  ;;  %v22_v8 = vsel %vm21_vm0, %v179_v4, 0.0  ;;  %v31_v9 = vsel %vm21_vm0, %v181_v5, 0.0  ;;  %v25_v10 = vsel %vm21_vm0, %v183_v6, 0.0 }
   0x5   :  { %29 = vadd.xlane.f32.xlu1 %v28_v7  ;;  %23 = vadd.xlane.f32.xlu0 %v22_v8  ;;  %v39_v11 = vmul.f32 %v183_v6, %v183_v6  ;;  %v38_v12 = vmul.f32 %v179_v4, %v179_v4  ;;  %v41_v16 = vmul.f32 %v181_v5, %v181_v5 }
   0x6   :  { %v40_v17 = vmul.f32 %v177_v3, %v177_v3 }
   0x7   :  { %v45_v14 = vsel %vm21_vm0, %v39_v11, 0.0  ;;  %v42_v15 = vsel %vm21_vm0, %v38_v12, 0.0  ;;  %v51_v18 = vsel %vm21_vm0, %v41_v16, 0.0 }
   0x8   :  { %v48_v19 = vsel %vm21_vm0, %v40_v17, 0.0 }
   0x9   :  { %32 = vadd.xlane.f32.xlu1 %v31_v9  ;;  %26 = vadd.xlane.f32.xlu0 %v25_v10  ;;  %v86_v13 = vld [vmem:[#allocation2] sm:$0x1] }
   0xa   :  { %143 = vpush %v86_v13 }
   0xd   :  { %46 = vadd.xlane.f32.xlu1 %v45_v14  ;;  %43 = vadd.xlane.f32.xlu0 %v42_v15 }
  0x11   :  { %52 = vadd.xlane.f32.xlu1 %v51_v18  ;;  %49 = vadd.xlane.f32.xlu0 %v48_v19 }
  0x3b   :  { %s144_s0 = spop %143 }
  0x3c   :  { %v92_v55 = vstv %s144_s0 }
  0x92   :  { %v30_v20 = vpop.xlane.xlu1 %29  ;;  %v24_v21 = vpop.xlane.xlu0 %23 }
  0x93   :  { %v34_v24 = vmul.f32 0.125, %v24_v21  ;;  %v36_v26 = vmul.f32 0.125, %v30_v20 }
  0x95   :  { %v58_v30 = vmul.f32 %v34_v24, %v34_v24  ;;  %v60_v36 = vmul.f32 %v36_v26, %v36_v26  ;;  %v70_v54 = vsub.f32 %v179_v4, %v34_v24  ;;  %v72_v62 = vsub.f32 %v177_v3, %v36_v26 }
  0x96   :  { %v33_v22 = vpop.xlane.xlu1 %32  ;;  %v27_v23 = vpop.xlane.xlu0 %26 }
  0x97   :  { %v35_v25 = vmul.f32 0.125, %v27_v23  ;;  %v37_v27 = vmul.f32 0.125, %v33_v22 }
  0x99   :  { %v59_v31 = vmul.f32 %v35_v25, %v35_v25  ;;  %v61_v37 = vmul.f32 %v37_v27, %v37_v27  ;;  %v71_v52 = vsub.f32 %v183_v6, %v35_v25  ;;  %v73_v59 = vsub.f32 %v181_v5, %v37_v27 }
  0x9a   :  { %v47_v28 = vpop.xlane.xlu1 %46  ;;  %v44_v29 = vpop.xlane.xlu0 %43 }
  0x9b   :  { %v55_v32 = vmul.f32 0.125, %v47_v28  ;;  %v54_v33 = vmul.f32 0.125, %v44_v29 }
  0x9d   :  { %v63_v34 = vsub.f32 %v55_v32, %v59_v31  ;;  %v62_v35 = vsub.f32 %v54_v33, %v58_v30 }
  0x9e   :  { %v53_v38 = vpop.xlane.xlu1 %52  ;;  %v50_v39 = vpop.xlane.xlu0 %49 }
  0x9f   :  { %v67_v40 = vmax.f32 %v63_v34, 0.0  ;;  %v66_v41 = vmax.f32 %v62_v35, 0.0  ;;  %v57_v42 = vmul.f32 0.125, %v53_v38  ;;  %v56_v43 = vmul.f32 0.125, %v50_v39 }
  0xa1   :  { %v75_v44 = vadd.f32 1e-05, %v67_v40  ;;  %v74_v45 = vadd.f32 1e-05, %v66_v41  ;;  %v65_v46 = vsub.f32 %v57_v42, %v61_v37  ;;  %v64_v47 = vsub.f32 %v56_v43, %v60_v36 }
  0xa3   :  { %145 = vrsqrt.f32 %v75_v44  ;;  %v69_v48 = vmax.f32 %v65_v46, 0.0  ;;  %v68_v49 = vmax.f32 %v64_v47, 0.0 }
  0xa4   :  { %147 = vrsqrt.f32 %v74_v45 }
  0xa5   :  { %v77_v50 = vadd.f32 1e-05, %v69_v48  ;;  %v76_v51 = vadd.f32 1e-05, %v68_v49 }
  0xa7   :  { %149 = vrsqrt.f32 %v77_v50 }
  0xa8   :  { %151 = vrsqrt.f32 %v76_v51 }
  0xad   :  { %v146_v53 = vpop.eup %145 }
  0xae   :  { %v148_v56 = vpop.eup %147  ;;  %v83_v57 = vmul.f32 %v146_v53, %v71_v52 }
  0xaf   :  { %v82_v58 = vmul.f32 %v148_v56, %v70_v54 }
  0xb0   :  { %vm89_vm1 = vcmp.ge.f32.partialorder %v83_v57, 0.0  ;;  %v94_v60 = vmul.f32 %v92_v55, %v83_v57 }
  0xb1   :  { %v150_v61 = vpop.eup %149  ;;  %vm88_vm2 = vcmp.ge.f32.partialorder %v82_v58, 0.0  ;;  %v93_v63 = vmul.f32 %v92_v55, %v82_v58 }
  0xb2   :  { %v152_v0 = vpop.eup %151  ;;  %v85_v1 = vmul.f32 %v150_v61, %v73_v59  ;;  %v98_v2 = vsel %vm89_vm1, %v83_v57, %v94_v60 }
  0xb3   :  { %v84_v6 = vmul.f32 %v152_v0, %v72_v62  ;;  %v97_v7 = vsel %vm88_vm2, %v82_v58, %v93_v63  ;;  %v131_v4 = vpack.c.bf16 %v98_v2, %v98_v2 }
  0xb4   :  { %vm91_vm4 = vcmp.ge.f32.partialorder %v85_v1, 0.0  ;;  %v96_v8 = vmul.f32 %v92_v55, %v85_v1  ;;  %v130_v9 = vpack.c.bf16 %v97_v7, %v97_v7 }
  0xb5   :  { %vm90_vm5 = vcmp.ge.f32.partialorder %v84_v6, 0.0  ;;  %v95_v10 = vmul.f32 %v92_v55, %v84_v6  ;;  %119 = vst.msk [vmem:[%s227_s2 + $0x4] sm:$0xf] %vm117_vm3, %v131_v4 }
  0xb6   :  { %v100_v3 = vsel %vm91_vm4, %v85_v1, %v96_v8  ;;  %118 = vst.msk [vmem:[%s227_s2] sm:$0xf] %vm117_vm3, %v130_v9 }
  0xb7   :  { %v99_v5 = vsel %vm90_vm5, %v84_v6, %v95_v10  ;;  %v133_v11 = vpack.c.bf16 %v100_v3, %v100_v3 }
  0xb8   :  { %v132_v12 = vpack.c.bf16 %v99_v5, %v99_v5 }
  0xb9   :  { %121 = vst.msk [vmem:[%s227_s2 + $0xc] sm:$0xf] %vm117_vm3, %v133_v11 }
  0xba   :  { %120 = vst.msk [vmem:[%s227_s2 + $0x8] sm:$0xf] %vm117_vm3, %v132_v12 }

// kernel: _lambda_.54
= control target key start
LH: loop header
LB: loop body
LE: loop exit
PB: predicated region body
PF: predicated region fallthrough
CT: control target
= control target key end

     0   :  { %s860_s12 = smov 0   ;;  %s862_s13 = smov 0   ;;  %s956_s0 = inlined_call_operand.vmem [shape: bf16[16,432], index: 0, kind: input, shape index: {}]   ;;  %s957_s1 = inlined_call_operand.vmem [shape: bf16[2,432,128], index: 1, kind: input, shape index: {}]   ;;  %s958_s2 = inlined_call_operand.vmem [shape: f32[16,1], index: 2, kind: input, shape index: {}]   ;;  %s959_s3 = inlined_call_operand.vmem [shape: bf16[2,16,128], index: 3, kind: output, shape index: {}]  }
   0x1   :  { %s864_s14 = smov 0  }
   0x2 LB: > { %s32_s15 = sadd.s32 1, %s833_s13  ;;  %p685_p0 = scmp.ge.s32.totalorder %s837_s14, 1  ;;  %s837_s14 = sphi %s864_s14, %s13_s14   ;;  %s833_s13 = sphi %s862_s13, %s961_s13   ;;  %s829_s12 = sphi %s860_s12, %s960_s12  }
   0x3   : > { %p34_p1 = scmp.ge.s32.totalorder %s32_s15, 2  ;;  %p170_p2 = scmp.lt.s32.totalorder %s837_s14, 3 }
   0x5   : > { %s963_s15 = smov (%p34_p1, %s32_s15), 0  ;;  %p171_p3 = pnand %p685_p0, %p170_p2 }
   0x6   : > { %p205_p4 = scmp.lt.s32.totalorder (!%p171_p3), %s829_s12, 1  ;;  %v839_v0 = vmov (!%p171_p3), 0   ;;  %v809_v1 = vld [vmem:[%s956_s0 + $0x4] ss:$16 sps:$4 sm:$0xff] (!%p171_p3)   ;;  %vm473_vm0 = vcmask (!%p171_p3), 392192   ;;  %v569_v4 = vld [vmem:[%s958_s2 + $0x8] sm:$0xff] (!%p171_p3) }
   0x7   : > { %174 = sbr.rel (%p171_p3) target bundleno = 283 (0x11b), region = 32  ;;  %518 = vmatprep.subr.bf16.mxu1 (!%p171_p3), %v839_v0  ;;  %781 = vset.pattern.permute.xlu0 (!%p171_p3), %v839_v0  ;;  %v814_v2 = vld [vmem:[%s956_s0 + $0xc] ss:$16 sps:$4 sm:$0xff] (!%p171_p3)   ;;  %v568_v3 = vld [vmem:[%s958_s2] sm:$0xff] (!%p171_p3)  ;;  %v812_v33 = vld [vmem:[%s956_s0 + $0x8] ss:$16 sps:$4 sm:$0xff] (!%p171_p3)  }
   0x8   : > { %509 = vmatprep.mubr.bf16.mxu0 (!%p171_p3), %v809_v1  ;;  %572 = vperm.xlu0 (!%p171_p3), %781, %v568_v3   ;;  %v807_v30 = vld [vmem:[%s956_s0] ss:$16 sps:$4 sm:$0xff] (!%p171_p3)  }
   0x9   : > { %720 = vmatprep.mubr.msk.bf16.mxu1 (!%p171_p3), %vm473_vm0, %v814_v2 }
   0xc   : > { %577 = vperm.xlu0 (!%p171_p3), %781, %v569_v4  }
   0xe   : > { %s965_s12 = smov (!%p205_p4, %s829_s12), 1 }
   0xf   : > { %s755_s22 = smul.u32 216, %s965_s12  ;;  %s725_s5 = sshll.u32 %s965_s12, 3 }
  0x10   : > { %s224_s8 = scalar_lea.vmem %s959_s3, %s725_s5 }
  0x11   : > { %s898_s27 = scalar_lea.vmem %s957_s1, %s755_s22 }
  0x12   : > { %v782_v5 = vld [vmem:[%s898_s27 + $0x80] sm:$0xff]   ;;  %v783_v6 = vld [vmem:[%s898_s27 + $0x88] sm:$0xff]   ;;  %v786_v9 = vld [vmem:[%s898_s27 + $0x90] sm:$0xff]  }
  0x13   : > { %519 = vmatpush1.bf16.msra.mxu1 %v782_v5  ;;  %v784_v7 = vld [vmem:[%s898_s27 + $0x40] sm:$0xff]   ;;  %v787_v10 = vld [vmem:[%s898_s27 + $0x48] sm:$0xff]   ;;  %v790_v12 = vld [vmem:[%s898_s27 + $0x50] sm:$0xff]  }
  0x14   : > { %520 = vmatprep.subr.bf16.mxu1 %v839_v0  ;;  %v785_v8 = vld [vmem:[%s898_s27] sm:$0xff]   ;;  %733 = vmatprep.subr.bf16.mxu0 %v784_v7  ;;  %v788_v11 = vld [vmem:[%s898_s27 + $0x8] sm:$0xff]   ;;  %v791_v13 = vld [vmem:[%s898_s27 + $0x10] sm:$0xff]  }
  0x15   : > { %734 = vmatpush3.bf16.msra.mxu0 %v785_v8  ;;  %v789_v14 = vld [vmem:[%s898_s27 + $0x98] sm:$0xff]   ;;  %v792_v16 = vld [vmem:[%s898_s27 + $0xa0] sm:$0xff]   ;;  %v795_v19 = vld [vmem:[%s898_s27 + $0xa8] sm:$0xff]  }
  0x16   : > { %735 = vmatprep.subr.bf16.mxu0 %v787_v10  ;;  %v793_v15 = vld [vmem:[%s898_s27 + $0x58] sm:$0xff]   ;;  %v796_v18 = vld [vmem:[%s898_s27 + $0x60] sm:$0xff]   ;;  %v799_v21 = vld [vmem:[%s898_s27 + $0x68] sm:$0xff]  }
  0x17   : > { %521 = vmatpush1.bf16.msra.mxu1 %v783_v6  ;;  %v794_v17 = vld [vmem:[%s898_s27 + $0x18] sm:$0xff]   ;;  %v797_v20 = vld [vmem:[%s898_s27 + $0x20] sm:$0xff]   ;;  %v798_v22 = vld [vmem:[%s898_s27 + $0xb0] sm:$0xff]  }
  0x18   : > { %522 = vmatprep.subr.bf16.mxu1 %v839_v0  ;;  %v800_v23 = vld [vmem:[%s898_s27 + $0x28] sm:$0xff]   ;;  %v802_v24 = vld [vmem:[%s898_s27 + $0x70] sm:$0xff]   ;;  %v801_v25 = vld [vmem:[%s898_s27 + $0xb8] sm:$0xff]  }
  0x19   : > { %736 = vmatpush3.bf16.msra.mxu0 %v788_v11  ;;  %v803_v26 = vld [vmem:[%s898_s27 + $0x30] sm:$0xff]   ;;  %v805_v27 = vld [vmem:[%s898_s27 + $0x78] sm:$0xff]   ;;  %v804_v29 = vld [vmem:[%s898_s27 + $0xc0] sm:$0xff]  }
  0x1a   : > { %737 = vmatprep.subr.bf16.mxu0 %v790_v12  ;;  %v806_v28 = vld [vmem:[%s898_s27 + $0x38] sm:$0xff]   ;;  %v810_v31 = vld [vmem:[%s898_s27 + $0xc8] sm:$0xff]   ;;  %v811_v32 = vld [vmem:[%s898_s27 + $0xd0] sm:$0xff]  }
  0x1b   : > { %523 = vmatpush1.bf16.msra.mxu1 %v786_v9 }
  0x1c   : > { %524 = vmatprep.subr.bf16.mxu1 %v839_v0 }
  0x1d   : > { %738 = vmatpush3.bf16.msra.mxu0 %v791_v13 }
  0x1e   : > { %739 = vmatprep.subr.bf16.mxu0 %v793_v15 }
  0x1f   : > { %525 = vmatpush1.bf16.msra.mxu1 %v789_v14 }
  0x20   : > { %526 = vmatprep.subr.bf16.mxu1 %v839_v0 }
  0x21   : > { %740 = vmatpush3.bf16.msra.mxu0 %v794_v17 }
  0x22   : > { %741 = vmatprep.subr.bf16.mxu0 %v796_v18 }
  0x23   : > { %527 = vmatpush1.bf16.msra.mxu1 %v792_v16 }
  0x24   : > { %528 = vmatprep.subr.bf16.mxu1 %v839_v0 }
  0x25   : > { %742 = vmatpush3.bf16.msra.mxu0 %v797_v20 }
  0x26   : > { %743 = vmatprep.subr.bf16.mxu0 %v799_v21 }
  0x27   : > { %529 = vmatpush1.bf16.msra.mxu1 %v795_v19 }
  0x28   : > { %530 = vmatprep.subr.bf16.mxu1 %v839_v0 }
  0x29   : > { %744 = vmatpush3.bf16.msra.mxu0 %v800_v23 }
  0x2a   : > { %745 = vmatprep.subr.bf16.mxu0 %v802_v24 }
  0x2b   : > { %531 = vmatpush1.bf16.msra.mxu1 %v798_v22 }
  0x2c   : > { %532 = vmatprep.subr.bf16.mxu1 %v839_v0 }
  0x2d   : > { %746 = vmatpush3.bf16.msra.mxu0 %v803_v26 }
  0x2e   : > { %747 = vmatprep.subr.bf16.mxu0 %v805_v27 }
  0x2f   : > { %533 = vmatpush1.bf16.msra.mxu1 %v801_v25 }
  0x30   : > { %534 = vmatprep.subr.bf16.mxu1 %v839_v0 }
  0x31   : > { %748 = vmatpush3.bf16.msra.mxu0 %v806_v28 }
  0x33   : > { %535 = vmatpush1.bf16.msra.mxu1 %v804_v29 }
  0x34   : > { %536 = vmatprep.subr.bf16.mxu1 %v839_v0  ;;  %510 = vmatmul.mubr.bf16.vlgmr.msra.gmra.mrb[0].mxu0 %v807_v30 }
  0x37   : > { %537 = vmatpush1.bf16.msra.mxu1 %v810_v31 }
  0x38   : > { %538 = vmatprep.subr.bf16.mxu1 %v839_v0 }
  0x3b   : > { %539 = vmatpush1.bf16.msra.mxu1 %v811_v32 }
  0x3e   : > { %551 = vmatmul.mubr.bf16.vlgmr.msra.gmra.mrb[0].mxu1 %v812_v33 }
  0x87   : > { %v573_v40 = vpop.permute.xlu0 %572 }
  0x8b   : > { %v578_v47 = vpop.permute.xlu0 %577 }
 0x107   : > { %v749_v34 = vpop.f32.mrb[0].mxu0 }
 0x108   : > { %v750_v35 = vpop.f32.mrb[1].mxu0 }
 0x109   : > { %v751_v36 = vadd.f32 %v750_v35, %v749_v34  ;;  %v752_v37 = vpop.f32.mrb[2].mxu0 }
 0x10a   : > { %v753_v38 = vpop.f32.mrb[3].mxu0 }
 0x10b   : > { %v754_v39 = vadd.f32 %v753_v38, %v752_v37 }
 0x111   : > { %v552_v41 = vpop.f32.mrb[0].mxu1 }
 0x112   : > { %v553_v42 = vadd.f32 %v751_v36, %v552_v41  ;;  %v554_v43 = vpop.f32.mrb[1].mxu1 }
 0x113   : > { %v555_v44 = vpop.f32.mrb[2].mxu1 }
 0x114   : > { %v556_v45 = vadd.f32 %v754_v39, %v555_v44  ;;  %v557_v46 = vpop.f32.mrb[3].mxu1  ;;  %v580_v48 = vadd.f32 %v573_v40, %v553_v42 }
 0x116   : > { %v581_v49 = vadd.f32 %v578_v47, %v556_v45 }
 0x118   : > { %v731_v50 = vpack.c.bf16 %v581_v49, %v580_v48 }
 0x11a   : > { %732 = vst [vmem:[%s224_s8] sm:$0xff] %v731_v50  }
 0x11b PF: > { %s13_s14 = sadd.s32 1, %s837_s14   ;;  %s960_s12 = smov %s833_s13 }
 0x11c   : > { %p10_p5 = scmp.ge.s32.totalorder %s13_s14, 4   ;;  %s961_s13 = smov %s963_s15 }
 0x11e   :  { %12 = sbr.rel (!%p10_p5) target bundleno = 2 (0x2), region = 70 }

// kernel: _lambda_.56
= control target key start
LH: loop header
LB: loop body
LE: loop exit
PB: predicated region body
PF: predicated region fallthrough
CT: control target
= control target key end

     0   :  { %s964_s12 = smov 0   ;;  %s966_s13 = smov 0   ;;  %s1081_s0 = inlined_call_operand.vmem [shape: bf16[32,432], index: 0, kind: input, shape index: {}]   ;;  %s1082_s1 = inlined_call_operand.vmem [shape: bf16[2,432,128], index: 1, kind: input, shape index: {}]   ;;  %s1083_s2 = inlined_call_operand.vmem [shape: f32[32,1], index: 2, kind: input, shape index: {}]   ;;  %s1084_s3 = inlined_call_operand.vmem [shape: bf16[2,32,128], index: 3, kind: output, shape index: {}]  }
   0x1   :  { %s968_s14 = smov 0  }
   0x2 LB: > { %s32_s15 = sadd.s32 1, %s937_s13  ;;  %p761_p0 = scmp.ge.s32.totalorder %s941_s14, 1  ;;  %s941_s14 = sphi %s968_s14, %s13_s14   ;;  %s937_s13 = sphi %s966_s13, %s1086_s13   ;;  %s933_s12 = sphi %s964_s12, %s1085_s12  }
   0x3   : > { %p34_p1 = scmp.ge.s32.totalorder %s32_s15, 2  ;;  %p170_p2 = scmp.lt.s32.totalorder %s941_s14, 3 }
   0x5   : > { %s1088_s15 = smov (%p34_p1, %s32_s15), 0  ;;  %p171_p3 = pnand %p761_p0, %p170_p2 }
   0x6   : > { %p205_p4 = scmp.lt.s32.totalorder (!%p171_p3), %s933_s12, 1  ;;  %v943_v0 = vmov (!%p171_p3), 0   ;;  %v907_v1 = vld [vmem:[%s1081_s0 + $0x4] ss:$16 sps:$4 sm:$0xff] (!%p171_p3)   ;;  %vm500_vm0 = vcmask (!%p171_p3), 392192   ;;  %v621_v5 = vld [vmem:[%s1083_s2 + $0x8] sm:$0xff] (!%p171_p3) }
   0x7   : > { %174 = sbr.rel (%p171_p3) target bundleno = 291 (0x123), region = 32  ;;  %556 = vmatprep.subr.bf16.mxu1 (!%p171_p3), %v943_v0  ;;  %878 = vset.pattern.permute.xlu0 (!%p171_p3), %v943_v0  ;;  %v912_v2 = vld [vmem:[%s1081_s0 + $0xc] ss:$16 sps:$4 sm:$0xff] (!%p171_p3)   ;;  %v620_v3 = vld [vmem:[%s1083_s2] sm:$0xff] (!%p171_p3)  ;;  %v622_v4 = vld [vmem:[%s1083_s2 + $0x10] sm:$0xff] (!%p171_p3) }
   0x8   : > { %879 = vset.pattern.permute.xlu1 (!%p171_p3), %v943_v0  ;;  %539 = vmatprep.mubr.bf16.mxu0 (!%p171_p3), %v907_v1  ;;  %v623_v6 = vld [vmem:[%s1083_s2 + $0x18] sm:$0xff] (!%p171_p3)  ;;  %v905_v32 = vld [vmem:[%s1081_s0] ss:$16 sps:$4 sm:$0xff] (!%p171_p3)   ;;  %v913_v33 = vld [vmem:[%s1081_s0 + $0x24] ss:$16 sps:$4 sm:$0xff] (!%p171_p3)  }
   0x9   : > { %800 = vmatprep.mubr.msk.bf16.mxu1 (!%p171_p3), %vm500_vm0, %v912_v2  ;;  %626 = vperm.xlu0 (!%p171_p3), %878, %v620_v3   ;;  %v915_v36 = vld [vmem:[%s1081_s0 + $0x20] ss:$16 sps:$4 sm:$0xff] (!%p171_p3)   ;;  %v910_v37 = vld [vmem:[%s1081_s0 + $0x8] ss:$16 sps:$4 sm:$0xff] (!%p171_p3)   ;;  %v916_v38 = vld [vmem:[%s1081_s0 + $0x2c] ss:$16 sps:$4 sm:$0xff] (!%p171_p3)  }
   0xa   : > { %636 = vperm.xlu1 (!%p171_p3), %879, %v622_v4   ;;  %v918_v39 = vld [vmem:[%s1081_s0 + $0x28] ss:$16 sps:$4 sm:$0xff] (!%p171_p3)  }
   0xd   : > { %631 = vperm.xlu0 (!%p171_p3), %878, %v621_v5  }
   0xe   : > { %s1090_s12 = smov (!%p205_p4, %s933_s12), 1  ;;  %641 = vperm.xlu1 %879, %v623_v6  }
   0xf   : > { %s852_s20 = smul.u32 216, %s1090_s12  ;;  %s808_s21 = sshll.u32 %s1090_s12, 4 }
  0x10   : > { %s224_s24 = scalar_lea.vmem %s1084_s3, %s808_s21 }
  0x11   : > { %s1004_s27 = scalar_lea.vmem %s1082_s1, %s852_s20 }
  0x12   : > { %v880_v7 = vld [vmem:[%s1004_s27 + $0x80] sm:$0xff]   ;;  %v881_v8 = vld [vmem:[%s1004_s27 + $0x88] sm:$0xff]   ;;  %v884_v11 = vld [vmem:[%s1004_s27 + $0x90] sm:$0xff]  }
  0x13   : > { %557 = vmatpush1.bf16.msra.mxu1 %v880_v7  ;;  %v882_v9 = vld [vmem:[%s1004_s27 + $0x40] sm:$0xff]   ;;  %v885_v12 = vld [vmem:[%s1004_s27 + $0x48] sm:$0xff]   ;;  %v888_v14 = vld [vmem:[%s1004_s27 + $0x50] sm:$0xff]  }
  0x14   : > { %558 = vmatprep.subr.bf16.mxu1 %v943_v0  ;;  %v883_v10 = vld [vmem:[%s1004_s27] sm:$0xff]   ;;  %824 = vmatprep.subr.bf16.mxu0 %v882_v9  ;;  %v886_v13 = vld [vmem:[%s1004_s27 + $0x8] sm:$0xff]   ;;  %v889_v15 = vld [vmem:[%s1004_s27 + $0x10] sm:$0xff]  }
  0x15   : > { %825 = vmatpush3.bf16.msra.mxu0 %v883_v10  ;;  %v887_v16 = vld [vmem:[%s1004_s27 + $0x98] sm:$0xff]   ;;  %v890_v18 = vld [vmem:[%s1004_s27 + $0xa0] sm:$0xff]   ;;  %v893_v21 = vld [vmem:[%s1004_s27 + $0xa8] sm:$0xff]  }
  0x16   : > { %826 = vmatprep.subr.bf16.mxu0 %v885_v12  ;;  %v891_v17 = vld [vmem:[%s1004_s27 + $0x58] sm:$0xff]   ;;  %v894_v20 = vld [vmem:[%s1004_s27 + $0x60] sm:$0xff]   ;;  %v897_v23 = vld [vmem:[%s1004_s27 + $0x68] sm:$0xff]  }
  0x17   : > { %559 = vmatpush1.bf16.msra.mxu1 %v881_v8  ;;  %v892_v19 = vld [vmem:[%s1004_s27 + $0x18] sm:$0xff]   ;;  %v895_v22 = vld [vmem:[%s1004_s27 + $0x20] sm:$0xff]   ;;  %v896_v24 = vld [vmem:[%s1004_s27 + $0xb0] sm:$0xff]  }
  0x18   : > { %560 = vmatprep.subr.bf16.mxu1 %v943_v0  ;;  %v898_v25 = vld [vmem:[%s1004_s27 + $0x28] sm:$0xff]   ;;  %v900_v26 = vld [vmem:[%s1004_s27 + $0x70] sm:$0xff]   ;;  %v899_v27 = vld [vmem:[%s1004_s27 + $0xb8] sm:$0xff]  }
  0x19   : > { %827 = vmatpush3.bf16.msra.mxu0 %v886_v13  ;;  %v901_v28 = vld [vmem:[%s1004_s27 + $0x30] sm:$0xff]   ;;  %v903_v29 = vld [vmem:[%s1004_s27 + $0x78] sm:$0xff]   ;;  %v902_v31 = vld [vmem:[%s1004_s27 + $0xc0] sm:$0xff]  }
  0x1a   : > { %828 = vmatprep.subr.bf16.mxu0 %v888_v14  ;;  %v904_v30 = vld [vmem:[%s1004_s27 + $0x38] sm:$0xff]   ;;  %v908_v34 = vld [vmem:[%s1004_s27 + $0xc8] sm:$0xff]   ;;  %v909_v35 = vld [vmem:[%s1004_s27 + $0xd0] sm:$0xff]  }
  0x1b   : > { %561 = vmatpush1.bf16.msra.mxu1 %v884_v11 }
  0x1c   : > { %562 = vmatprep.subr.bf16.mxu1 %v943_v0 }
  0x1d   : > { %829 = vmatpush3.bf16.msra.mxu0 %v889_v15 }
  0x1e   : > { %830 = vmatprep.subr.bf16.mxu0 %v891_v17 }
  0x1f   : > { %563 = vmatpush1.bf16.msra.mxu1 %v887_v16 }
  0x20   : > { %564 = vmatprep.subr.bf16.mxu1 %v943_v0 }
  0x21   : > { %831 = vmatpush3.bf16.msra.mxu0 %v892_v19 }
  0x22   : > { %832 = vmatprep.subr.bf16.mxu0 %v894_v20 }
  0x23   : > { %565 = vmatpush1.bf16.msra.mxu1 %v890_v18 }
  0x24   : > { %566 = vmatprep.subr.bf16.mxu1 %v943_v0 }
  0x25   : > { %833 = vmatpush3.bf16.msra.mxu0 %v895_v22 }
  0x26   : > { %834 = vmatprep.subr.bf16.mxu0 %v897_v23 }
  0x27   : > { %567 = vmatpush1.bf16.msra.mxu1 %v893_v21 }
  0x28   : > { %568 = vmatprep.subr.bf16.mxu1 %v943_v0 }
  0x29   : > { %835 = vmatpush3.bf16.msra.mxu0 %v898_v25 }
  0x2a   : > { %836 = vmatprep.subr.bf16.mxu0 %v900_v26 }
  0x2b   : > { %569 = vmatpush1.bf16.msra.mxu1 %v896_v24 }
  0x2c   : > { %570 = vmatprep.subr.bf16.mxu1 %v943_v0 }
  0x2d   : > { %837 = vmatpush3.bf16.msra.mxu0 %v901_v28 }
  0x2e   : > { %838 = vmatprep.subr.bf16.mxu0 %v903_v29 }
  0x2f   : > { %571 = vmatpush1.bf16.msra.mxu1 %v899_v27 }
  0x30   : > { %572 = vmatprep.subr.bf16.mxu1 %v943_v0 }
  0x31   : > { %839 = vmatpush3.bf16.msra.mxu0 %v904_v30 }
  0x33   : > { %573 = vmatpush1.bf16.msra.mxu1 %v902_v31 }
  0x34   : > { %574 = vmatprep.subr.bf16.mxu1 %v943_v0  ;;  %540 = vmatmul.mubr.bf16.vlgmr.msra.gmra.mrb[0].mxu0 %v905_v32 }
  0x35   : > { %547 = vmatprep.mubr.bf16.mxu0 %v913_v33 }
  0x37   : > { %575 = vmatpush1.bf16.msra.mxu1 %v908_v34 }
  0x38   : > { %576 = vmatprep.subr.bf16.mxu1 %v943_v0 }
  0x3b   : > { %577 = vmatpush1.bf16.msra.mxu1 %v909_v35 }
  0x3c   : > { %548 = vmatmul.mubr.bf16.gmra.mrb[4].mxu0 %v915_v36 }
  0x3e   : > { %589 = vmatmul.mubr.bf16.vlgmr.msra.gmra.mrb[0].mxu1 %v910_v37 }
  0x3f   : > { %801 = vmatprep.mubr.msk.bf16.mxu1 %vm500_vm0, %v916_v38 }
  0x46   : > { %597 = vmatmul.mubr.bf16.gmra.mrb[4].mxu1 %v918_v39 }
  0x88   : > { %v627_v44 = vpop.permute.xlu0 %626 }
  0x89   : > { %v637_v62 = vpop.permute.xlu1 %636 }
  0x8c   : > { %v632_v48 = vpop.permute.xlu0 %631 }
  0x8d   : > { %v642_v6 = vpop.permute.xlu1 %641 }
 0x107   : > { %v840_v40 = vpop.f32.mrb[0].mxu0 }
 0x108   : > { %v841_v41 = vpop.f32.mrb[1].mxu0 }
 0x109   : > { %v842_v42 = vadd.f32 %v841_v41, %v840_v40  ;;  %v843_v43 = vpop.f32.mrb[2].mxu0 }
 0x10a   : > { %v844_v45 = vpop.f32.mrb[3].mxu0 }
 0x10b   : > { %v845_v46 = vadd.f32 %v844_v45, %v843_v43 }
 0x10f   : > { %v846_v47 = vpop.f32.mrb[4].mxu0 }
 0x110   : > { %v847_v50 = vpop.f32.mrb[5].mxu0 }
 0x111   : > { %v590_v49 = vpop.f32.mrb[0].mxu1  ;;  %v848_v53 = vadd.f32 %v847_v50, %v846_v47  ;;  %v849_v54 = vpop.f32.mrb[6].mxu0 }
 0x112   : > { %v591_v51 = vadd.f32 %v842_v42, %v590_v49  ;;  %v592_v52 = vpop.f32.mrb[1].mxu1  ;;  %v850_v56 = vpop.f32.mrb[7].mxu0 }
 0x113   : > { %v593_v55 = vpop.f32.mrb[2].mxu1  ;;  %v851_v59 = vadd.f32 %v850_v56, %v849_v54 }
 0x114   : > { %v594_v57 = vadd.f32 %v845_v46, %v593_v55  ;;  %v595_v58 = vpop.f32.mrb[3].mxu1  ;;  %v644_v60 = vadd.f32 %v627_v44, %v591_v51 }
 0x116   : > { %v645_v61 = vadd.f32 %v632_v48, %v594_v57 }
 0x118   : > { %v816_v63 = vpack.c.bf16 %v645_v61, %v644_v60 }
 0x119   : > { %v598_v0 = vpop.f32.mrb[4].mxu1 }
 0x11a   : > { %817 = vst [vmem:[%s224_s24] sm:$0xff] %v816_v63   ;;  %v599_v1 = vadd.f32 %v848_v53, %v598_v0  ;;  %v600_v2 = vpop.f32.mrb[5].mxu1 }
 0x11b   : > { %v601_v3 = vpop.f32.mrb[6].mxu1 }
 0x11c   : > { %v602_v4 = vadd.f32 %v851_v59, %v601_v3  ;;  %v603_v5 = vpop.f32.mrb[7].mxu1  ;;  %v646_v7 = vadd.f32 %v637_v62, %v599_v1 }
 0x11e   : > { %v647_v8 = vadd.f32 %v642_v6, %v602_v4 }
 0x120   : > { %v821_v9 = vpack.c.bf16 %v647_v8, %v646_v7 }
 0x122   : > { %823 = vst [vmem:[%s224_s24 + $0x8] sm:$0xff] %v821_v9  }
 0x123 PF: > { %s13_s14 = sadd.s32 1, %s941_s14   ;;  %s1085_s12 = smov %s937_s13 }
 0x124   : > { %p10_p5 = scmp.ge.s32.totalorder %s13_s14, 4   ;;  %s1086_s13 = smov %s1088_s15 }
 0x126   :  { %12 = sbr.rel (!%p10_p5) target bundleno = 2 (0x2), region = 70 }

// kernel: _lambda_.58
= control target key start
LH: loop header
LB: loop body
LE: loop exit
PB: predicated region body
PF: predicated region fallthrough
CT: control target
= control target key end

     0   :  { %vm168_vm1 = vcmask 3072   ;;  %s346_s1 = inlined_call_operand.<no memory space> [shape: f32[1,1], index: 1, kind: input, shape index: {}]   ;;  %s347_s0 = inlined_call_operand.vmem [shape: bf16[64,1], index: 0, kind: input, shape index: {}]   ;;  %s348_s2 = inlined_call_operand.vmem [shape: bf16[64,1], index: 2, kind: output, shape index: {}]  }
   0x1   :  { %v7_v0 = vstv %s346_s1  ;;  %v198_v2 = vld [vmem:[%s347_s0] sm:$0xff]   ;;  %v213_v3 = vld [vmem:[%s347_s0 + $0x8] sm:$0xff]   ;;  %v214_v6 = vld [vmem:[%s347_s0 + $0x10] sm:$0xff]  }
   0x2   :  { %8 = vst [vmem:[#allocation2] sm:$0x1] %v7_v0  ;;  %v258_v4 = vunpack.c.l.bf16 %v198_v2  ;;  %v260_v5 = vunpack.c.h.bf16 %v198_v2  ;;  %v265_v7 = vunpack.c.l.bf16 %v213_v3  ;;  %v267_v8 = vunpack.c.h.bf16 %v213_v3  ;;  %v215_v9 = vld [vmem:[%s347_s0 + $0x18] sm:$0xff]  }
   0x3   :  { %v272_v10 = vunpack.c.l.bf16 %v214_v6  ;;  %v276_v12 = vunpack.c.h.bf16 %v214_v6  ;;  %v280_v14 = vunpack.c.l.bf16 %v215_v9  ;;  %v212_v16 = vunpack.c.h.bf16 %v215_v9 }
   0x4   :  { %v37_v11 = vmul.f32 %v258_v4, %v258_v4  ;;  %v38_v13 = vmul.f32 %v260_v5, %v260_v5  ;;  %v39_v15 = vmul.f32 %v265_v7, %v265_v7  ;;  %v40_v17 = vmul.f32 %v267_v8, %v267_v8 }
   0x5   :  { %v41_v18 = vmul.f32 %v272_v10, %v272_v10  ;;  %v42_v20 = vmul.f32 %v276_v12, %v276_v12  ;;  %v43_v22 = vmul.f32 %v280_v14, %v280_v14  ;;  %v44_v24 = vmul.f32 %v212_v16, %v212_v16 }
   0x6   :  { %v61_v19 = vsub.f32 %v37_v11, %v37_v11  ;;  %v62_v21 = vsub.f32 %v38_v13, %v38_v13  ;;  %v63_v23 = vsub.f32 %v39_v15, %v39_v15  ;;  %v64_v25 = vsub.f32 %v40_v17, %v40_v17 }
   0x7   :  { %v65_v26 = vsub.f32 %v41_v18, %v41_v18  ;;  %v66_v28 = vsub.f32 %v42_v20, %v42_v20  ;;  %v67_v30 = vsub.f32 %v43_v22, %v43_v22  ;;  %v68_v32 = vsub.f32 %v44_v24, %v44_v24 }
   0x8   :  { %v69_v27 = vmax.f32 %v61_v19, 0.0  ;;  %v70_v29 = vmax.f32 %v62_v21, 0.0  ;;  %v71_v31 = vmax.f32 %v63_v23, 0.0  ;;  %v72_v33 = vmax.f32 %v64_v25, 0.0 }
   0x9   :  { %v109_v1 = vld [vmem:[#allocation2] sm:$0x1]  ;;  %v73_v34 = vmax.f32 %v65_v26, 0.0  ;;  %v74_v36 = vmax.f32 %v66_v28, 0.0  ;;  %v75_v38 = vmax.f32 %v67_v30, 0.0  ;;  %v76_v40 = vmax.f32 %v68_v32, 0.0 }
   0xa   :  { %216 = vpush %v109_v1  ;;  %v85_v35 = vadd.f32 1e-05, %v69_v27  ;;  %v86_v37 = vadd.f32 1e-05, %v70_v29  ;;  %v87_v39 = vadd.f32 1e-05, %v71_v31  ;;  %v77_v51 = vsub.f32 %v258_v4, %v258_v4 }
   0xb   :  { %v88_v41 = vadd.f32 1e-05, %v72_v33  ;;  %v89_v42 = vadd.f32 1e-05, %v73_v34  ;;  %v90_v43 = vadd.f32 1e-05, %v74_v36  ;;  %v78_v53 = vsub.f32 %v260_v5, %v260_v5 }
   0xc   :  { %218 = vrsqrt.f32 %v85_v35  ;;  %v91_v44 = vadd.f32 1e-05, %v75_v38  ;;  %v92_v45 = vadd.f32 1e-05, %v76_v40  ;;  %v79_v54 = vsub.f32 %v265_v7, %v265_v7 }
   0xd   :  { %220 = vrsqrt.f32 %v86_v37  ;;  %v80_v55 = vsub.f32 %v267_v8, %v267_v8  ;;  %v81_v56 = vsub.f32 %v272_v10, %v272_v10  ;;  %v82_v58 = vsub.f32 %v276_v12, %v276_v12 }
   0xe   :  { %222 = vrsqrt.f32 %v87_v39  ;;  %v83_v59 = vsub.f32 %v280_v14, %v280_v14  ;;  %v84_v60 = vsub.f32 %v212_v16, %v212_v16 }
   0xf   :  { %224 = vrsqrt.f32 %v88_v41 }
  0x10   :  { %226 = vrsqrt.f32 %v89_v42 }
  0x11   :  { %228 = vrsqrt.f32 %v90_v43 }
  0x12   :  { %230 = vrsqrt.f32 %v91_v44 }
  0x13   :  { %232 = vrsqrt.f32 %v92_v45 }
  0x16   :  { %v219_v46 = vpop.eup %218 }
  0x17   :  { %v221_v47 = vpop.eup %220  ;;  %v101_v62 = vmul.f32 %v219_v46, %v77_v51 }
  0x18   :  { %v223_v48 = vpop.eup %222  ;;  %v102_v63 = vmul.f32 %v221_v47, %v78_v53 }
  0x19   :  { %v225_v49 = vpop.eup %224  ;;  %v103_v0 = vmul.f32 %v223_v48, %v79_v54  ;;  %vm111_vm0 = vcmp.ge.f32.partialorder %v101_v62, 0.0 }
  0x1a   :  { %v227_v50 = vpop.eup %226  ;;  %v104_v1 = vmul.f32 %v225_v49, %v80_v55  ;;  %vm112_vm2 = vcmp.ge.f32.partialorder %v102_v63, 0.0 }
  0x1b   :  { %v229_v52 = vpop.eup %228  ;;  %v105_v2 = vmul.f32 %v227_v50, %v81_v56  ;;  %vm113_vm3 = vcmp.ge.f32.partialorder %v103_v0, 0.0 }
  0x1c   :  { %v231_v57 = vpop.eup %230  ;;  %v106_v3 = vmul.f32 %v229_v52, %v82_v58  ;;  %vm114_vm4 = vcmp.ge.f32.partialorder %v104_v1, 0.0 }
  0x1d   :  { %v233_v61 = vpop.eup %232  ;;  %v107_v4 = vmul.f32 %v231_v57, %v83_v59  ;;  %vm115_vm5 = vcmp.ge.f32.partialorder %v105_v2, 0.0 }
  0x1e   :  { %v108_v5 = vmul.f32 %v233_v61, %v84_v60  ;;  %vm116_vm6 = vcmp.ge.f32.partialorder %v106_v3, 0.0 }
  0x1f   :  { %vm117_vm7 = vcmp.ge.f32.partialorder %v107_v4, 0.0 }
  0x20   :  { %vm118_vm8 = vcmp.ge.f32.partialorder %v108_v5, 0.0 }
  0x3b   :  { %s217_s0 = spop %216 }
  0x3c   :  { %v119_v6 = vstv %s217_s0 }
  0x3d   :  { %v120_v7 = vmul.f32 %v119_v6, %v101_v62  ;;  %v121_v8 = vmul.f32 %v119_v6, %v102_v63  ;;  %v122_v9 = vmul.f32 %v119_v6, %v103_v0  ;;  %v123_v10 = vmul.f32 %v119_v6, %v104_v1 }
  0x3e   :  { %v124_v11 = vmul.f32 %v119_v6, %v105_v2  ;;  %v125_v12 = vmul.f32 %v119_v6, %v106_v3  ;;  %v126_v13 = vmul.f32 %v119_v6, %v107_v4  ;;  %v127_v14 = vmul.f32 %v119_v6, %v108_v5 }
  0x3f   :  { %v128_v15 = vsel %vm111_vm0, %v101_v62, %v120_v7  ;;  %v129_v16 = vsel %vm112_vm2, %v102_v63, %v121_v8  ;;  %v130_v17 = vsel %vm113_vm3, %v103_v0, %v122_v9  ;;  %v131_v18 = vsel %vm114_vm4, %v104_v1, %v123_v10 }
  0x40   :  { %v132_v19 = vsel %vm115_vm5, %v105_v2, %v124_v11  ;;  %v133_v20 = vsel %vm116_vm6, %v106_v3, %v125_v12  ;;  %v134_v21 = vsel %vm117_vm7, %v107_v4, %v126_v13  ;;  %v135_v22 = vsel %vm118_vm8, %v108_v5, %v127_v14 }
  0x41   :  { %v189_v23 = vpack.c.bf16 %v128_v15, %v128_v15  ;;  %v190_v24 = vpack.c.bf16 %v129_v16, %v129_v16  ;;  %v191_v25 = vpack.c.bf16 %v130_v17, %v130_v17  ;;  %v192_v26 = vpack.c.bf16 %v131_v18, %v131_v18 }
  0x42   :  { %v193_v27 = vpack.c.bf16 %v132_v19, %v132_v19  ;;  %v194_v28 = vpack.c.bf16 %v133_v20, %v133_v20  ;;  %v195_v29 = vpack.c.bf16 %v134_v21, %v134_v21  ;;  %v196_v30 = vpack.c.bf16 %v135_v22, %v135_v22 }
  0x43   :  { %169 = vst.msk [vmem:[%s348_s2] sm:$0xf] %vm168_vm1, %v189_v23  ;;  %170 = vst.msk [vmem:[%s348_s2 + $0x4] sm:$0xf] %vm168_vm1, %v190_v24 }
  0x44   :  { %171 = vst.msk [vmem:[%s348_s2 + $0x8] sm:$0xf] %vm168_vm1, %v191_v25  ;;  %172 = vst.msk [vmem:[%s348_s2 + $0xc] sm:$0xf] %vm168_vm1, %v192_v26 }
  0x45   :  { %173 = vst.msk [vmem:[%s348_s2 + $0x10] sm:$0xf] %vm168_vm1, %v193_v27  ;;  %174 = vst.msk [vmem:[%s348_s2 + $0x14] sm:$0xf] %vm168_vm1, %v194_v28 }
  0x46   :  { %175 = vst.msk [vmem:[%s348_s2 + $0x18] sm:$0xf] %vm168_vm1, %v195_v29  ;;  %176 = vst.msk [vmem:[%s348_s2 + $0x1c] sm:$0xf] %vm168_vm1, %v196_v30 }

// kernel: _lambda_.59
= control target key start
LH: loop header
LB: loop body
LE: loop exit
PB: predicated region body
PF: predicated region fallthrough
CT: control target
= control target key end

     0   :  { %s1073_s12 = smov 0   ;;  %s1075_s13 = smov 0   ;;  %s1183_s0 = inlined_call_operand.vmem [shape: bf16[32,1024], index: 0, kind: input, shape index: {}]   ;;  %s1184_s1 = inlined_call_operand.vmem [shape: bf16[2,1024,128], index: 1, kind: input, shape index: {}]   ;;  %s1185_s2 = inlined_call_operand.vmem [shape: f32[32,1], index: 2, kind: input, shape index: {}]   ;;  %s1186_s3 = inlined_call_operand.vmem [shape: bf16[2,32,128], index: 3, kind: output, shape index: {}]  }
   0x1   :  { %s1077_s14 = smov 0   ;;  %s1079_s15 = smov 0  }
   0x2   :  { %s1081_s16 = smov 0  }
   0x3 LB: > { %s25_s17 = sadd.s32 1, %s1041_s14  ;;  %s32_s18 = sadd.s32 1, %s1045_s15  ;;  %s1049_s16 = sphi %s1081_s16, %s13_s16   ;;  %s1045_s15 = sphi %s1079_s15, %s1190_s15   ;;  %s1041_s14 = sphi %s1077_s14, %s1189_s14   ;;  %s1037_s13 = sphi %s1075_s13, %s1188_s13   ;;  %s1033_s12 = sphi %s1073_s12, %s1187_s12  }
   0x4   : > { %p26_p0 = scmp.ge.s32.totalorder %s25_s17, 2  ;;  %p807_p1 = scmp.ge.s32.totalorder %s1049_s16, 1 }
   0x5   : > { %p170_p2 = scmp.lt.s32.totalorder %s1049_s16, 5 }
   0x6   : > { %s1192_s17 = smov (%p26_p0, %s25_s17), 0  ;;  %s1194_s18 = smov (!%p26_p0, %s32_s18), %s1045_s15 }
   0x7   : > { %p171_p3 = pnand %p807_p1, %p170_p2  ;;  %p34_p4 = scmp.ge.s32.totalorder %s1194_s18, 2 }
   0x8   : > { %s808_s19 = sshll.u32 (!%p171_p3), %s1033_s12, 6  ;;  %p205_p5 = scmp.lt.s32.totalorder (!%p171_p3), %s1037_s13, 1 }
   0x9   : > { %s1196_s18 = smov (%p34_p4, %s1194_s18), 0  ;;  %174 = sbr.rel (%p171_p3) target bundleno = 303 (0x12f), region = 32 }
   0xa   : > { %p207_p6 = scmp.lt.s32.totalorder (!%p171_p3), %s808_s19, 127  ;;  %p813_p7 = scmp.ne.s32.totalorder (!%p171_p3), %s1033_s12, 0 }
  0x10   : > { %s1198_s13 = smov (!%p205_p5, %s1037_s13), 1  ;;  %s1200_s19 = smov (!%p207_p6, %s808_s19), 127 }
  0x11   : > { %s809_s20 = sshll.u32 %s1198_s13, 7  ;;  %s863_s21 = sshll.u32 %s1198_s13, 4  ;;  %v1051_v0 = vmov (!%p813_p7), 0.0  }
  0x12   : > { %s213_s22 = sadd.s32 %s809_s20, %s1200_s19  ;;  %s1109_s25 = scalar_lea.vmem %s1186_s3, %s863_s21  ;;  %230 = vst [vmem:[#allocation2] sm:$0xff] (!%p813_p7), %v1051_v0  ;;  %231 = vst [vmem:[#allocation2 + $0x8] sm:$0xff] (!%p813_p7), %v1051_v0 }
  0x13   : > { %s810_s26 = sshll.u32 %s213_s22, 2  ;;  %229 = sbr.rel (%p813_p7) target bundleno = 26 (0x1a), region = 36  ;;  %232 = vst [vmem:[#allocation2 + $0x10] sm:$0xff] (!%p813_p7), %v1051_v0  ;;  %233 = vst [vmem:[#allocation2 + $0x18] sm:$0xff] (!%p813_p7), %v1051_v0 }
  0x14   : > { %s1114_s29 = scalar_lea.vmem %s1184_s1, %s810_s26 }
  0x1a PF: > { %v977_v1 = vld [vmem:[%s1114_s29 + $0x40] sm:$0xff]   ;;  %v981_v5 = vld [vmem:[%s1114_s29 + $0x48] sm:$0xff]   ;;  %v985_v9 = vld [vmem:[%s1114_s29 + $0x50] sm:$0xff]   ;;  %s814_s30 = sshll.u32 %s1033_s12, 9  ;;  %p856_p8 = scmp.ne.s32.totalorder %s1033_s12, 1 }
  0x1b   : > { %v978_v2 = vld [vmem:[%s1114_s29 + $0xc0] sm:$0xff]   ;;  %879 = vmatprep.subr.bf16.mxu0 %v977_v1  ;;  %v982_v6 = vld [vmem:[%s1114_s29 + $0xc8] sm:$0xff]   ;;  %v986_v10 = vld [vmem:[%s1114_s29 + $0xd0] sm:$0xff]   ;;  %s235_s4 = sshra.s32 %s814_s30, 7 }
  0x1c   : > { %v979_v3 = vld [vmem:[%s1114_s29] sm:$0xff]   ;;  %907 = vmatprep.subr.bf16.mxu1 %v978_v2  ;;  %v983_v7 = vld [vmem:[%s1114_s29 + $0x8] sm:$0xff]   ;;  %v987_v11 = vld [vmem:[%s1114_s29 + $0x10] sm:$0xff]   ;;  %s815_s5 = sshll.u32 %s235_s4, 2 }
  0x1d   : > { %v980_v4 = vld [vmem:[%s1114_s29 + $0x80] sm:$0xff]   ;;  %880 = vmatpush3.bf16.msra.mxu0 %v979_v3  ;;  %v984_v8 = vld [vmem:[%s1114_s29 + $0x88] sm:$0xff]   ;;  %v988_v12 = vld [vmem:[%s1114_s29 + $0x90] sm:$0xff]   ;;  %s238_s8 = scalar_lea.vmem %s1183_s0, %s815_s5 }
  0x1e   : > { %908 = vmatpush3.bf16.msra.mxu1 %v980_v4  ;;  %881 = vmatprep.subr.bf16.mxu0 %v981_v5  ;;  %v989_v13 = vld [vmem:[%s1114_s29 + $0x58] sm:$0xff]   ;;  %v993_v17 = vld [vmem:[%s1114_s29 + $0x60] sm:$0xff]   ;;  %v997_v21 = vld [vmem:[%s1114_s29 + $0x68] sm:$0xff]  }
  0x1f   : > { %909 = vmatprep.subr.bf16.mxu1 %v982_v6  ;;  %v990_v14 = vld [vmem:[%s1114_s29 + $0xd8] sm:$0xff]   ;;  %v994_v18 = vld [vmem:[%s1114_s29 + $0xe0] sm:$0xff]   ;;  %v998_v22 = vld [vmem:[%s1114_s29 + $0xe8] sm:$0xff]  }
  0x20   : > { %v991_v15 = vld [vmem:[%s1114_s29 + $0x18] sm:$0xff]   ;;  %v995_v19 = vld [vmem:[%s1114_s29 + $0x20] sm:$0xff]   ;;  %v999_v23 = vld [vmem:[%s1114_s29 + $0x28] sm:$0xff]  }
  0x21   : > { %882 = vmatpush3.bf16.msra.mxu0 %v983_v7  ;;  %v992_v16 = vld [vmem:[%s1114_s29 + $0x98] sm:$0xff]   ;;  %v996_v20 = vld [vmem:[%s1114_s29 + $0xa0] sm:$0xff]   ;;  %v1000_v24 = vld [vmem:[%s1114_s29 + $0xa8] sm:$0xff]  }
  0x22   : > { %910 = vmatpush3.bf16.msra.mxu1 %v984_v8  ;;  %883 = vmatprep.subr.bf16.mxu0 %v985_v9  ;;  %v1001_v25 = vld [vmem:[%s1114_s29 + $0x70] sm:$0xff]   ;;  %v1005_v29 = vld [vmem:[%s1114_s29 + $0x78] sm:$0xff]   ;;  %v239_v33 = vld [vmem:[%s238_s8] sm:$0xff] }
  0x23   : > { %911 = vmatprep.subr.bf16.mxu1 %v986_v10  ;;  %v1002_v26 = vld [vmem:[%s1114_s29 + $0xf0] sm:$0xff]   ;;  %v1006_v30 = vld [vmem:[%s1114_s29 + $0xf8] sm:$0xff]   ;;  %v241_v34 = vld [vmem:[%s238_s8 + $0x20] sm:$0xff] }
  0x24   : > { %v1003_v27 = vld [vmem:[%s1114_s29 + $0x30] sm:$0xff]   ;;  %v1007_v31 = vld [vmem:[%s1114_s29 + $0x38] sm:$0xff]   ;;  %v240_v35 = vld [vmem:[%s238_s8 + $0x8] sm:$0xff]  ;;  %v816_v36 = vcombine.low %v239_v33, %v241_v34  ;;  %v817_v37 = vcombine.high %v239_v33, %v241_v34 }
  0x25   : > { %884 = vmatpush3.bf16.msra.mxu0 %v987_v11  ;;  %v1004_v28 = vld [vmem:[%s1114_s29 + $0xb0] sm:$0xff]   ;;  %v1008_v32 = vld [vmem:[%s1114_s29 + $0xb8] sm:$0xff]   ;;  %v242_v38 = vld [vmem:[%s238_s8 + $0x28] sm:$0xff] }
  0x26   : > { %912 = vmatpush3.bf16.msra.mxu1 %v988_v12  ;;  %885 = vmatprep.subr.bf16.mxu0 %v989_v13  ;;  %v243_v39 = vld [vmem:[%s238_s8 + $0x40] sm:$0xff]  ;;  %v818_v41 = vcombine.low %v240_v35, %v242_v38  ;;  %v819_v42 = vcombine.high %v240_v35, %v242_v38  ;;  %v244_v44 = vld [vmem:[%s238_s8 + $0x48] sm:$0xff]  ;;  %v249_v12 = vld [vmem:[#allocation2 + $0x10] sm:$0xff] }
  0x27   : > { %913 = vmatprep.subr.bf16.mxu1 %v990_v14  ;;  %v245_v40 = vld [vmem:[%s238_s8 + $0x60] sm:$0xff]  ;;  %v246_v45 = vld [vmem:[%s238_s8 + $0x68] sm:$0xff]  ;;  %579 = vmatprep.mubr.bf16.mxu0 %v817_v37 }
  0x28   : > { %v821_v43 = vcombine.high %v243_v39, %v245_v40  ;;  %v823_v46 = vcombine.high %v244_v44, %v246_v45  ;;  %628 = vmatprep.mubr.bf16.mxu1 %v819_v42  ;;  %v820_v47 = vcombine.low %v243_v39, %v245_v40  ;;  %v822_v48 = vcombine.low %v244_v44, %v246_v45  ;;  %v247_v58 = vld [vmem:[#allocation2] sm:$0xff]  ;;  %v248_v63 = vld [vmem:[#allocation2 + $0x8] sm:$0xff] }
  0x29   : > { %886 = vmatpush3.bf16.msra.mxu0 %v991_v15 }
  0x2a   : > { %914 = vmatpush3.bf16.msra.mxu1 %v992_v16  ;;  %887 = vmatprep.subr.bf16.mxu0 %v993_v17  ;;  %v250_v17 = vld [vmem:[#allocation2 + $0x18] sm:$0xff] }
  0x2b   : > { %915 = vmatprep.subr.bf16.mxu1 %v994_v18 }
  0x2d   : > { %888 = vmatpush3.bf16.msra.mxu0 %v995_v19 }
  0x2e   : > { %916 = vmatpush3.bf16.msra.mxu1 %v996_v20  ;;  %889 = vmatprep.subr.bf16.mxu0 %v997_v21  ;;  %v663_v21 = vld [vmem:[%s1185_s2 + $0x10] sm:$0xff] (!%p856_p8) }
  0x2f   : > { %917 = vmatprep.subr.bf16.mxu1 %v998_v22  ;;  %v661_v22 = vld [vmem:[%s1185_s2] sm:$0xff] (!%p856_p8) }
  0x31   : > { %890 = vmatpush3.bf16.msra.mxu0 %v999_v23  ;;  %v1052_v23 = vmov (!%p856_p8), 0  }
  0x32   : > { %918 = vmatpush3.bf16.msra.mxu1 %v1000_v24  ;;  %891 = vmatprep.subr.bf16.mxu0 %v1001_v25  ;;  %v664_v24 = vld [vmem:[%s1185_s2 + $0x18] sm:$0xff] (!%p856_p8)  ;;  %v662_v25 = vld [vmem:[%s1185_s2 + $0x8] sm:$0xff] (!%p856_p8) }
  0x33   : > { %919 = vmatprep.subr.bf16.mxu1 %v1002_v26  ;;  %1010 = vset.pattern.permute.xlu1 (!%p856_p8), %v1052_v23 }
  0x34   : > { %1009 = vset.pattern.permute.xlu0 (!%p856_p8), %v1052_v23  ;;  %677 = vperm.xlu1 (!%p856_p8), %1010, %v663_v21  }
  0x35   : > { %892 = vmatpush3.bf16.msra.mxu0 %v1003_v27  ;;  %667 = vperm.xlu0 (!%p856_p8), %1009, %v661_v22  }
  0x36   : > { %920 = vmatpush3.bf16.msra.mxu1 %v1004_v28  ;;  %893 = vmatprep.subr.bf16.mxu0 %v1005_v29 }
  0x37   : > { %921 = vmatprep.subr.bf16.mxu1 %v1006_v30 }
  0x38   : > { %682 = vperm.xlu1 (!%p856_p8), %1010, %v664_v24  }
  0x39   : > { %894 = vmatpush3.bf16.msra.mxu0 %v1007_v31  ;;  %672 = vperm.xlu0 (!%p856_p8), %1009, %v662_v25  }
  0x3a   : > { %922 = vmatpush3.bf16.msra.mxu1 %v1008_v32 }
  0x3c   : > { %580 = vmatmul.mubr.bf16.vlgmr.msra.gmra.mrb[0].mxu0 %v816_v36 }
  0x3d   : > { %629 = vmatmul.mubr.bf16.vlgmr.msra.gmra.mrb[0].mxu1 %v818_v41  ;;  %587 = vmatprep.mubr.bf16.mxu0 %v821_v43 }
  0x3e   : > { %636 = vmatprep.mubr.bf16.mxu1 %v823_v46 }
  0x44   : > { %588 = vmatmul.mubr.bf16.gmra.mrb[4].mxu0 %v820_v47 }
  0x45   : > { %637 = vmatmul.mubr.bf16.gmra.mrb[4].mxu1 %v822_v48 }
  0xb3   : > { %v678_v26 = vpop.permute.xlu1 (!%p856_p8), %677 }
  0xb4   : > { %v668_v27 = vpop.permute.xlu0 (!%p856_p8), %667 }
  0xb7   : > { %v683_v32 = vpop.permute.xlu1 (!%p856_p8), %682 }
  0xb8   : > { %v673_v33 = vpop.permute.xlu0 (!%p856_p8), %672 }
 0x10f   : > { %v895_v49 = vpop.f32.mrb[0].mxu0 }
 0x110   : > { %v923_v50 = vpop.f32.mrb[0].mxu1  ;;  %v896_v51 = vpop.f32.mrb[1].mxu0 }
 0x111   : > { %v897_v52 = vadd.f32 %v896_v51, %v895_v49  ;;  %v924_v53 = vpop.f32.mrb[1].mxu1  ;;  %v898_v54 = vpop.f32.mrb[2].mxu0 }
 0x112   : > { %v925_v55 = vadd.f32 %v924_v53, %v923_v50  ;;  %v926_v56 = vpop.f32.mrb[2].mxu1  ;;  %v899_v57 = vpop.f32.mrb[3].mxu0 }
 0x113   : > { %v900_v59 = vadd.f32 %v899_v57, %v898_v54  ;;  %v927_v60 = vpop.f32.mrb[3].mxu1 }
 0x114   : > { %v631_v61 = vadd.f32 %v925_v55, %v897_v52  ;;  %v928_v62 = vadd.f32 %v927_v60, %v926_v56 }
 0x116   : > { %v645_v0 = vadd.f32 %v631_v61, %v247_v58  ;;  %v634_v1 = vadd.f32 %v928_v62, %v900_v59 }
 0x117   : > { %v901_v2 = vpop.f32.mrb[4].mxu0 }
 0x118   : > { %649 = vst [vmem:[#allocation2] sm:$0xff] %v645_v0  ;;  %v646_v3 = vadd.f32 %v634_v1, %v248_v63  ;;  %v929_v4 = vpop.f32.mrb[4].mxu1  ;;  %v902_v5 = vpop.f32.mrb[5].mxu0 }
 0x119   : > { %v903_v6 = vadd.f32 %v902_v5, %v901_v2  ;;  %v930_v7 = vpop.f32.mrb[5].mxu1  ;;  %v904_v8 = vpop.f32.mrb[6].mxu0 }
 0x11a   : > { %650 = vst [vmem:[#allocation2 + $0x8] sm:$0xff] %v646_v3  ;;  %v931_v9 = vadd.f32 %v930_v7, %v929_v4  ;;  %v932_v10 = vpop.f32.mrb[6].mxu1  ;;  %v905_v11 = vpop.f32.mrb[7].mxu0 }
 0x11b   : > { %v906_v13 = vadd.f32 %v905_v11, %v904_v8  ;;  %v933_v14 = vpop.f32.mrb[7].mxu1 }
 0x11c   : > { %v639_v15 = vadd.f32 %v931_v9, %v903_v6  ;;  %v934_v16 = vadd.f32 %v933_v14, %v932_v10  ;;  %656 = sbr.rel (%p856_p8) target bundleno = 303 (0x12f), region = 40 }
 0x11e   : > { %v647_v18 = vadd.f32 %v639_v15, %v249_v12  ;;  %v642_v19 = vadd.f32 %v934_v16, %v906_v13 }
 0x11f   : > { %v657_v29 = vld [vmem:[#allocation2] sm:$0xff] (!%p856_p8) }
 0x120   : > { %651 = vst [vmem:[#allocation2 + $0x10] sm:$0xff] %v647_v18  ;;  %v648_v20 = vadd.f32 %v642_v19, %v250_v17  ;;  %v685_v35 = vadd.f32 (!%p856_p8), %v668_v27, %v657_v29 }
 0x121   : > { %v658_v31 = vld [vmem:[#allocation2 + $0x8] sm:$0xff] (!%p856_p8) }
 0x122   : > { %652 = vst [vmem:[#allocation2 + $0x18] sm:$0xff] %v648_v20  ;;  %v686_v37 = vadd.f32 (!%p856_p8), %v673_v33, %v658_v31 }
 0x124   : > { %v871_v39 = vpack.c.bf16 %v686_v37, %v685_v35 }
 0x126   : > { %872 = vst [vmem:[%s1109_s25] sm:$0xff] %v871_v39  }
 0x127   : > { %v659_v28 = vld [vmem:[#allocation2 + $0x10] sm:$0xff] }
 0x128   : > { %v687_v34 = vadd.f32 %v678_v26, %v659_v28 }
 0x129   : > { %v660_v30 = vld [vmem:[#allocation2 + $0x18] sm:$0xff] }
 0x12a   : > { %v688_v36 = vadd.f32 %v683_v32, %v660_v30 }
 0x12c   : > { %v876_v38 = vpack.c.bf16 %v688_v36, %v687_v34 }
 0x12e   : > { %878 = vst [vmem:[%s1109_s25 + $0x8] sm:$0xff] %v876_v38  }
 0x12f PF: > { %s13_s16 = sadd.s32 1, %s1049_s16   ;;  %s1187_s12 = smov %s1041_s14 }
 0x130   : > { %p10_p9 = scmp.ge.s32.totalorder %s13_s16, 6   ;;  %s1188_s13 = smov %s1045_s15 }
 0x131   : > { %s1189_s14 = smov %s1192_s17  ;;  %s1190_s15 = smov %s1196_s18 }
 0x132   :  { %12 = sbr.rel (!%p10_p9) target bundleno = 3 (0x3), region = 71 }

// kernel: _lambda_.61
= control target key start
LH: loop header
LB: loop body
LE: loop exit
PB: predicated region body
PF: predicated region fallthrough
CT: control target
= control target key end

     0   :  { %s742_s12 = smov 0   ;;  %s744_s13 = smov 0   ;;  %s819_s0 = inlined_call_operand.vmem [shape: bf16[64,32], index: 0, kind: input, shape index: {}]   ;;  %s820_s1 = inlined_call_operand.vmem [shape: bf16[2,32,128], index: 1, kind: input, shape index: {}]   ;;  %s821_s2 = inlined_call_operand.vmem [shape: f32[64,1], index: 2, kind: input, shape index: {}]   ;;  %s822_s3 = inlined_call_operand.vmem [shape: bf16[2,64,128], index: 3, kind: output, shape index: {}]  }
   0x1   :  { %s746_s14 = smov 0  }
   0x2 LB: > { %s32_s15 = sadd.s32 1, %s715_s13  ;;  %p584_p0 = scmp.ge.s32.totalorder %s719_s14, 1  ;;  %s719_s14 = sphi %s746_s14, %s13_s14   ;;  %s715_s13 = sphi %s744_s13, %s824_s13   ;;  %s711_s12 = sphi %s742_s12, %s823_s12  }
   0x3   : > { %p34_p1 = scmp.ge.s32.totalorder %s32_s15, 2  ;;  %p170_p2 = scmp.lt.s32.totalorder %s719_s14, 3 }
   0x5   : > { %s826_s15 = smov (%p34_p1, %s32_s15), 0  ;;  %p171_p3 = pnand %p584_p0, %p170_p2 }
   0x6   : > { %p205_p4 = scmp.lt.s32.totalorder (!%p171_p3), %s711_s12, 1  ;;  %v693_v0 = vld [vmem:[%s819_s0] sm:$0xff] (!%p171_p3)   ;;  %vm290_vm0 = vcmask (!%p171_p3), 261120   ;;  %v694_v1 = vld [vmem:[%s819_s0 + $0x10] sm:$0xff] (!%p171_p3)   ;;  %v721_v2 = vmov (!%p171_p3), 0   ;;  %v398_v7 = vld [vmem:[%s821_s2 + $0x18] sm:$0xff] (!%p171_p3) }
   0x7   : > { %174 = sbr.rel (%p171_p3) target bundleno = 246 (0xf6), region = 32  ;;  %652 = vmatprep.mubr.msk.bf16.mxu0 (!%p171_p3), %vm290_vm0, %v693_v0  ;;  %656 = vmatprep.mubr.msk.bf16.mxu1 (!%p171_p3), %vm290_vm0, %v694_v1  ;;  %v397_v3 = vld [vmem:[%s821_s2 + $0x10] sm:$0xff] (!%p171_p3)  ;;  %v395_v4 = vld [vmem:[%s821_s2] sm:$0xff] (!%p171_p3)  ;;  %v396_v8 = vld [vmem:[%s821_s2 + $0x8] sm:$0xff] (!%p171_p3) }
   0x8   : > { %690 = vset.pattern.permute.xlu1 (!%p171_p3), %v721_v2  ;;  %689 = vset.pattern.permute.xlu0 (!%p171_p3), %v721_v2  ;;  %v695_v9 = vld [vmem:[%s819_s0 + $0x8] sm:$0xff] (!%p171_p3)   ;;  %v696_v10 = vld [vmem:[%s819_s0 + $0x18] sm:$0xff] (!%p171_p3)   ;;  %v399_v12 = vld [vmem:[%s821_s2 + $0x20] sm:$0xff] (!%p171_p3) }
   0x9   : > { %415 = vperm.xlu1 (!%p171_p3), %690, %v397_v3   ;;  %405 = vperm.xlu0 (!%p171_p3), %689, %v395_v4   ;;  %v400_v11 = vld [vmem:[%s821_s2 + $0x28] sm:$0xff] (!%p171_p3)  ;;  %v402_v13 = vld [vmem:[%s821_s2 + $0x38] sm:$0xff] (!%p171_p3)  ;;  %v401_v14 = vld [vmem:[%s821_s2 + $0x30] sm:$0xff] (!%p171_p3) }
   0xd   : > { %420 = vperm.xlu1 (!%p171_p3), %690, %v398_v7   ;;  %410 = vperm.xlu0 (!%p171_p3), %689, %v396_v8  }
   0xe   : > { %s828_s12 = smov (!%p205_p4, %s711_s12), 1 }
   0xf   : > { %s609_s20 = sshll.u32 %s828_s12, 4  ;;  %s610_s21 = sshll.u32 %s828_s12, 5 }
  0x10   : > { %s215_s27 = scalar_lea.vmem %s820_s1, %s609_s20  ;;  %s224_s24 = scalar_lea.vmem %s822_s3, %s610_s21 }
  0x11   : > { %v691_v5 = vld [vmem:[%s215_s27] sm:$0xff]   ;;  %v692_v6 = vld [vmem:[%s215_s27 + $0x8] sm:$0xff]   ;;  %430 = vperm.xlu1 %690, %v400_v11   ;;  %425 = vperm.xlu0 %689, %v399_v12  }
  0x12   : > { %648 = vmatprep.subr.bf16.mxu0 %v691_v5  ;;  %660 = vmatprep.subr.bf16.mxu1 %v691_v5 }
  0x13   : > { %649 = vmatpush3.bf16.msra.mxu0 %v691_v5  ;;  %662 = vmatpush3.bf16.msra.mxu1 %v691_v5 }
  0x14   : > { %650 = vmatprep.subr.bf16.mxu0 %v692_v6  ;;  %661 = vmatprep.subr.bf16.mxu1 %v692_v6 }
  0x15   : > { %440 = vperm.xlu1 %690, %v402_v13   ;;  %435 = vperm.xlu0 %689, %v401_v14  }
  0x17   : > { %651 = vmatpush3.bf16.msra.mxu0 %v692_v6  ;;  %663 = vmatpush3.bf16.msra.mxu1 %v692_v6 }
  0x1a   : > { %653 = vmatmul.mubr.msk.bf16.vlgmr.msra.gmra.mrb[0].mxu0 %vm290_vm0, %v695_v9  ;;  %657 = vmatmul.mubr.msk.bf16.vlgmr.msra.gmra.mrb[0].mxu1 %vm290_vm0, %v696_v10 }
  0x88   : > { %v416_v15 = vpop.permute.xlu1 %415  ;;  %v406_v16 = vpop.permute.xlu0 %405 }
  0x8c   : > { %v421_v17 = vpop.permute.xlu1 %420  ;;  %v411_v18 = vpop.permute.xlu0 %410 }
  0x90   : > { %v431_v19 = vpop.permute.xlu1 %430  ;;  %v426_v20 = vpop.permute.xlu0 %425 }
  0x94   : > { %v441_v21 = vpop.permute.xlu1 %440  ;;  %v436_v22 = vpop.permute.xlu0 %435 }
  0xed   : > { %v654_v23 = vpop.f32.mrb[0].mxu0  ;;  %v658_v24 = vpop.f32.mrb[0].mxu1 }
  0xee   : > { %v337_v25 = vpop.f32.mrb[1].mxu0  ;;  %v353_v26 = vpop.f32.mrb[1].mxu1  ;;  %v445_v29 = vadd.f32 %v654_v23, %v416_v15  ;;  %v449_v30 = vadd.f32 %v658_v24, %v436_v22 }
  0xef   : > { %v655_v27 = vpop.f32.mrb[2].mxu0  ;;  %v659_v28 = vpop.f32.mrb[2].mxu1  ;;  %v443_v35 = vadd.f32 %v406_v16, %v337_v25  ;;  %v447_v36 = vadd.f32 %v426_v20, %v353_v26 }
  0xf0   : > { %v446_v31 = vadd.f32 %v655_v27, %v421_v17  ;;  %v450_v32 = vadd.f32 %v659_v28, %v441_v21  ;;  %v340_v33 = vpop.f32.mrb[3].mxu0  ;;  %v356_v34 = vpop.f32.mrb[3].mxu1 }
  0xf1   : > { %v444_v37 = vadd.f32 %v411_v18, %v340_v33  ;;  %v448_v38 = vadd.f32 %v431_v19, %v356_v34 }
  0xf2   : > { %v627_v39 = vpack.c.bf16 %v446_v31, %v445_v29  ;;  %v637_v40 = vpack.c.bf16 %v450_v32, %v449_v30 }
  0xf3   : > { %v622_v41 = vpack.c.bf16 %v444_v37, %v443_v35  ;;  %v632_v42 = vpack.c.bf16 %v448_v38, %v447_v36 }
  0xf4   : > { %639 = vst [vmem:[%s224_s24 + $0x8] sm:$0xff] %v627_v39   ;;  %641 = vst [vmem:[%s224_s24 + $0x18] sm:$0xff] %v637_v40  }
  0xf5   : > { %623 = vst [vmem:[%s224_s24] sm:$0xff] %v622_v41   ;;  %640 = vst [vmem:[%s224_s24 + $0x10] sm:$0xff] %v632_v42  }
  0xf6 PF: > { %s13_s14 = sadd.s32 1, %s719_s14   ;;  %s823_s12 = smov %s715_s13 }
  0xf7   : > { %p10_p5 = scmp.ge.s32.totalorder %s13_s14, 4   ;;  %s824_s13 = smov %s826_s15 }
  0xf9   :  { %12 = sbr.rel (!%p10_p5) target bundleno = 2 (0x2), region = 70 }

// kernel: _lambda_.63
= control target key start
LH: loop header
LB: loop body
LE: loop exit
PB: predicated region body
PF: predicated region fallthrough
CT: control target
= control target key end

     0   :  { %s467_s11 = smov 0   ;;  %s549_s0 = inlined_call_operand.vmem [shape: bf16[128,1], index: 0, kind: input, shape index: {}]   ;;  %s550_s1 = inlined_call_operand.<no memory space> [shape: f32[1,1], index: 1, kind: input, shape index: {}]   ;;  %s551_s2 = inlined_call_operand.vmem [shape: bf16[128,1], index: 2, kind: output, shape index: {}]  }
   0x1   :  { %v7_v0 = vstv %s550_s1 }
   0x2   :  { %8 = vst [vmem:[#allocation2] sm:$0x1] %v7_v0 }
   0x3 LB: > { %s369_s12 = sadd.s32 4294967295, %s447_s11   ;;  %p373_p0 = scmp.ge.s32.totalorder %s447_s11, 1  ;;  %s447_s11 = sphi %s467_s11, %s14_s11  }
   0x4   : > { %p115_p1 = scmp.lt.s32.totalorder %s447_s11, 3 }
   0x6   : > { %p116_p2 = pnand %p373_p0, %p115_p1 }
   0x7   : > { %s374_s13 = sshll.u32 (!%p116_p2), %s369_s12, 3  ;;  %vm304_vm1 = vcmask (!%p116_p2), 3072  }
   0x8   : > { %119 = sbr.rel (%p116_p2) target bundleno = 71 (0x47), region = 28  ;;  %p138_p3 = scmp.lt.s32.totalorder (!%p116_p2), %s374_s13, 15 }
   0x9   : > { %v245_v1 = vld [vmem:[#allocation2] sm:$0x1] (!%p116_p2) }
   0xa   : > { %415 = vpush (!%p116_p2), %v245_v1 }
   0xf   : > { %s553_s13 = smov (!%p138_p3, %s374_s13), 15 }
  0x10   : > { %s375_s1 = sshll.u32 %s553_s13, 2 }
  0x11   : > { %s141_s16 = scalar_lea.vmem %s549_s0, %s375_s1  ;;  %s147_s20 = scalar_lea.vmem %s551_s2, %s375_s1 }
  0x12   : > { %v397_v2 = vld [vmem:[%s141_s16] sm:$0xff]   ;;  %v412_v3 = vld [vmem:[%s141_s16 + $0x8] sm:$0xff]   ;;  %v413_v6 = vld [vmem:[%s141_s16 + $0x10] sm:$0xff]  }
  0x13   : > { %v483_v4 = vunpack.c.l.bf16 %v397_v2  ;;  %v485_v5 = vunpack.c.h.bf16 %v397_v2  ;;  %v487_v7 = vunpack.c.l.bf16 %v412_v3  ;;  %v489_v8 = vunpack.c.h.bf16 %v412_v3  ;;  %v414_v9 = vld [vmem:[%s141_s16 + $0x18] sm:$0xff]  }
  0x14   : > { %v491_v10 = vunpack.c.l.bf16 %v413_v6  ;;  %v495_v12 = vunpack.c.h.bf16 %v413_v6  ;;  %v499_v14 = vunpack.c.l.bf16 %v414_v9  ;;  %v411_v16 = vunpack.c.h.bf16 %v414_v9 }
  0x15   : > { %v173_v11 = vmul.f32 %v483_v4, %v483_v4  ;;  %v174_v13 = vmul.f32 %v485_v5, %v485_v5  ;;  %v175_v15 = vmul.f32 %v487_v7, %v487_v7  ;;  %v176_v17 = vmul.f32 %v489_v8, %v489_v8 }
  0x16   : > { %v177_v18 = vmul.f32 %v491_v10, %v491_v10  ;;  %v178_v20 = vmul.f32 %v495_v12, %v495_v12  ;;  %v179_v22 = vmul.f32 %v499_v14, %v499_v14  ;;  %v180_v24 = vmul.f32 %v411_v16, %v411_v16 }
  0x17   : > { %v197_v19 = vsub.f32 %v173_v11, %v173_v11  ;;  %v198_v21 = vsub.f32 %v174_v13, %v174_v13  ;;  %v199_v23 = vsub.f32 %v175_v15, %v175_v15  ;;  %v200_v25 = vsub.f32 %v176_v17, %v176_v17 }
  0x18   : > { %v201_v26 = vsub.f32 %v177_v18, %v177_v18  ;;  %v202_v28 = vsub.f32 %v178_v20, %v178_v20  ;;  %v203_v30 = vsub.f32 %v179_v22, %v179_v22  ;;  %v204_v32 = vsub.f32 %v180_v24, %v180_v24 }
  0x19   : > { %v205_v27 = vmax.f32 %v197_v19, 0.0  ;;  %v206_v29 = vmax.f32 %v198_v21, 0.0  ;;  %v207_v31 = vmax.f32 %v199_v23, 0.0  ;;  %v208_v33 = vmax.f32 %v200_v25, 0.0 }
  0x1a   : > { %v209_v34 = vmax.f32 %v201_v26, 0.0  ;;  %v210_v36 = vmax.f32 %v202_v28, 0.0  ;;  %v211_v38 = vmax.f32 %v203_v30, 0.0  ;;  %v212_v40 = vmax.f32 %v204_v32, 0.0 }
  0x1b   : > { %v221_v35 = vadd.f32 1e-05, %v205_v27  ;;  %v222_v37 = vadd.f32 1e-05, %v206_v29  ;;  %v223_v39 = vadd.f32 1e-05, %v207_v31  ;;  %v213_v51 = vsub.f32 %v483_v4, %v483_v4 }
  0x1c   : > { %v224_v41 = vadd.f32 1e-05, %v208_v33  ;;  %v225_v42 = vadd.f32 1e-05, %v209_v34  ;;  %v226_v43 = vadd.f32 1e-05, %v210_v36  ;;  %v214_v53 = vsub.f32 %v485_v5, %v485_v5 }
  0x1d   : > { %425 = vrsqrt.f32 %v221_v35  ;;  %v227_v44 = vadd.f32 1e-05, %v211_v38  ;;  %v228_v45 = vadd.f32 1e-05, %v212_v40  ;;  %v215_v54 = vsub.f32 %v487_v7, %v487_v7 }
  0x1e   : > { %427 = vrsqrt.f32 %v222_v37  ;;  %v216_v55 = vsub.f32 %v489_v8, %v489_v8  ;;  %v217_v56 = vsub.f32 %v491_v10, %v491_v10  ;;  %v218_v58 = vsub.f32 %v495_v12, %v495_v12 }
  0x1f   : > { %429 = vrsqrt.f32 %v223_v39  ;;  %v219_v59 = vsub.f32 %v499_v14, %v499_v14  ;;  %v220_v60 = vsub.f32 %v411_v16, %v411_v16 }
  0x20   : > { %431 = vrsqrt.f32 %v224_v41 }
  0x21   : > { %433 = vrsqrt.f32 %v225_v42 }
  0x22   : > { %435 = vrsqrt.f32 %v226_v43 }
  0x23   : > { %437 = vrsqrt.f32 %v227_v44 }
  0x24   : > { %439 = vrsqrt.f32 %v228_v45 }
  0x27   : > { %v426_v46 = vpop.eup %425 }
  0x28   : > { %v428_v47 = vpop.eup %427  ;;  %v237_v62 = vmul.f32 %v426_v46, %v213_v51 }
  0x29   : > { %v430_v48 = vpop.eup %429  ;;  %v238_v63 = vmul.f32 %v428_v47, %v214_v53 }
  0x2a   : > { %v432_v49 = vpop.eup %431  ;;  %v239_v0 = vmul.f32 %v430_v48, %v215_v54  ;;  %vm247_vm0 = vcmp.ge.f32.partialorder %v237_v62, 0.0 }
  0x2b   : > { %v434_v50 = vpop.eup %433  ;;  %v240_v1 = vmul.f32 %v432_v49, %v216_v55  ;;  %vm248_vm2 = vcmp.ge.f32.partialorder %v238_v63, 0.0 }
  0x2c   : > { %v436_v52 = vpop.eup %435  ;;  %v241_v2 = vmul.f32 %v434_v50, %v217_v56  ;;  %vm249_vm3 = vcmp.ge.f32.partialorder %v239_v0, 0.0 }
  0x2d   : > { %v438_v57 = vpop.eup %437  ;;  %v242_v3 = vmul.f32 %v436_v52, %v218_v58  ;;  %vm250_vm4 = vcmp.ge.f32.partialorder %v240_v1, 0.0 }
  0x2e   : > { %v440_v61 = vpop.eup %439  ;;  %v243_v4 = vmul.f32 %v438_v57, %v219_v59  ;;  %vm251_vm5 = vcmp.ge.f32.partialorder %v241_v2, 0.0 }
  0x2f   : > { %v244_v5 = vmul.f32 %v440_v61, %v220_v60  ;;  %vm252_vm6 = vcmp.ge.f32.partialorder %v242_v3, 0.0 }
  0x30   : > { %vm253_vm7 = vcmp.ge.f32.partialorder %v243_v4, 0.0 }
  0x31   : > { %vm254_vm8 = vcmp.ge.f32.partialorder %v244_v5, 0.0 }
  0x3b   : > { %s416_s17 = spop %415 }
  0x3c   : > { %v255_v6 = vstv %s416_s17 }
  0x3d   : > { %v256_v7 = vmul.f32 %v255_v6, %v237_v62  ;;  %v257_v8 = vmul.f32 %v255_v6, %v238_v63  ;;  %v258_v9 = vmul.f32 %v255_v6, %v239_v0  ;;  %v259_v10 = vmul.f32 %v255_v6, %v240_v1 }
  0x3e   : > { %v260_v11 = vmul.f32 %v255_v6, %v241_v2  ;;  %v261_v12 = vmul.f32 %v255_v6, %v242_v3  ;;  %v262_v13 = vmul.f32 %v255_v6, %v243_v4  ;;  %v263_v14 = vmul.f32 %v255_v6, %v244_v5 }
  0x3f   : > { %v264_v15 = vsel %vm247_vm0, %v237_v62, %v256_v7  ;;  %v265_v16 = vsel %vm248_vm2, %v238_v63, %v257_v8  ;;  %v266_v17 = vsel %vm249_vm3, %v239_v0, %v258_v9  ;;  %v267_v18 = vsel %vm250_vm4, %v240_v1, %v259_v10 }
  0x40   : > { %v268_v19 = vsel %vm251_vm5, %v241_v2, %v260_v11  ;;  %v269_v20 = vsel %vm252_vm6, %v242_v3, %v261_v12  ;;  %v270_v21 = vsel %vm253_vm7, %v243_v4, %v262_v13  ;;  %v271_v22 = vsel %vm254_vm8, %v244_v5, %v263_v14 }
  0x41   : > { %v388_v23 = vpack.c.bf16 %v264_v15, %v264_v15  ;;  %v389_v24 = vpack.c.bf16 %v265_v16, %v265_v16  ;;  %v390_v25 = vpack.c.bf16 %v266_v17, %v266_v17  ;;  %v391_v26 = vpack.c.bf16 %v267_v18, %v267_v18 }
  0x42   : > { %v392_v27 = vpack.c.bf16 %v268_v19, %v268_v19  ;;  %v393_v28 = vpack.c.bf16 %v269_v20, %v269_v20  ;;  %v394_v29 = vpack.c.bf16 %v270_v21, %v270_v21  ;;  %v395_v30 = vpack.c.bf16 %v271_v22, %v271_v22 }
  0x43   : > { %305 = vst.msk [vmem:[%s147_s20] sm:$0xf] %vm304_vm1, %v388_v23  ;;  %306 = vst.msk [vmem:[%s147_s20 + $0x4] sm:$0xf] %vm304_vm1, %v389_v24 }
  0x44   : > { %307 = vst.msk [vmem:[%s147_s20 + $0x8] sm:$0xf] %vm304_vm1, %v390_v25  ;;  %308 = vst.msk [vmem:[%s147_s20 + $0xc] sm:$0xf] %vm304_vm1, %v391_v26 }
  0x45   : > { %309 = vst.msk [vmem:[%s147_s20 + $0x10] sm:$0xf] %vm304_vm1, %v392_v27  ;;  %310 = vst.msk [vmem:[%s147_s20 + $0x14] sm:$0xf] %vm304_vm1, %v393_v28 }
  0x46   : > { %311 = vst.msk [vmem:[%s147_s20 + $0x18] sm:$0xf] %vm304_vm1, %v394_v29  ;;  %312 = vst.msk [vmem:[%s147_s20 + $0x1c] sm:$0xf] %vm304_vm1, %v395_v30 }
  0x47 PF: > { %s14_s11 = sadd.s32 1, %s447_s11  }
  0x48   : > { %p11_p4 = scmp.ge.s32.totalorder %s14_s11, 4  }
  0x4a   :  { %13 = sbr.rel (!%p11_p4) target bundleno = 3 (0x3), region = 58 }

// kernel: _lambda_.62
= control target key start
LH: loop header
LB: loop body
LE: loop exit
PB: predicated region body
PF: predicated region fallthrough
CT: control target
= control target key end

     0   :  { %s1273_s12 = smov 0   ;;  %s1275_s13 = smov 0   ;;  %s1415_s0 = inlined_call_operand.vmem [shape: bf16[64,1024], index: 0, kind: input, shape index: {}]   ;;  %s1416_s1 = inlined_call_operand.vmem [shape: bf16[2,1024,128], index: 1, kind: input, shape index: {}]   ;;  %s1417_s2 = inlined_call_operand.vmem [shape: f32[64,1], index: 2, kind: input, shape index: {}]   ;;  %s1418_s3 = inlined_call_operand.vmem [shape: bf16[2,64,128], index: 3, kind: output, shape index: {}]  }
   0x1   :  { %s1277_s14 = smov 0   ;;  %s1279_s15 = smov 0  }
   0x2   :  { %s1281_s16 = smov 0  }
   0x3 LB: > { %s25_s17 = sadd.s32 1, %s1241_s14  ;;  %s32_s18 = sadd.s32 1, %s1245_s15  ;;  %s1249_s16 = sphi %s1281_s16, %s13_s16   ;;  %s1245_s15 = sphi %s1279_s15, %s1422_s15   ;;  %s1241_s14 = sphi %s1277_s14, %s1421_s14   ;;  %s1237_s13 = sphi %s1275_s13, %s1420_s13   ;;  %s1233_s12 = sphi %s1273_s12, %s1419_s12  }
   0x4   : > { %p26_p0 = scmp.ge.s32.totalorder %s25_s17, 2  ;;  %p955_p1 = scmp.ge.s32.totalorder %s1249_s16, 1 }
   0x5   : > { %p170_p2 = scmp.lt.s32.totalorder %s1249_s16, 5 }
   0x6   : > { %s1424_s17 = smov (%p26_p0, %s25_s17), 0  ;;  %s1426_s18 = smov (!%p26_p0, %s32_s18), %s1245_s15 }
   0x7   : > { %p171_p3 = pnand %p955_p1, %p170_p2  ;;  %p34_p4 = scmp.ge.s32.totalorder %s1426_s18, 2 }
   0x8   : > { %s956_s19 = sshll.u32 (!%p171_p3), %s1233_s12, 6  ;;  %p205_p5 = scmp.lt.s32.totalorder (!%p171_p3), %s1237_s13, 1 }
   0x9   : > { %s1428_s18 = smov (%p34_p4, %s1426_s18), 0  ;;  %174 = sbr.rel (%p171_p3) target bundleno = 425 (0x1a9), region = 32 }
   0xa   : > { %p207_p6 = scmp.lt.s32.totalorder (!%p171_p3), %s956_s19, 127  ;;  %p961_p7 = scmp.ne.s32.totalorder (!%p171_p3), %s1233_s12, 0 }
  0x10   : > { %s1430_s13 = smov (!%p205_p5, %s1237_s13), 1  ;;  %s1432_s19 = smov (!%p207_p6, %s956_s19), 127 }
  0x11   : > { %s957_s20 = sshll.u32 %s1430_s13, 7  ;;  %s1023_s21 = sshll.u32 %s1430_s13, 5  ;;  %v1251_v0 = vmov (!%p961_p7), 0.0  }
  0x12   : > { %s213_s22 = sadd.s32 %s957_s20, %s1432_s19  ;;  %s1309_s25 = scalar_lea.vmem %s1418_s3, %s1023_s21  ;;  %230 = vst [vmem:[#allocation2] sm:$0xff] (!%p961_p7), %v1251_v0  ;;  %231 = vst [vmem:[#allocation2 + $0x8] sm:$0xff] (!%p961_p7), %v1251_v0 }
  0x13   : > { %s958_s26 = sshll.u32 %s213_s22, 2  ;;  %229 = sbr.rel (%p961_p7) target bundleno = 26 (0x1a), region = 36  ;;  %232 = vst [vmem:[#allocation2 + $0x10] sm:$0xff] (!%p961_p7), %v1251_v0  ;;  %233 = vst [vmem:[#allocation2 + $0x18] sm:$0xff] (!%p961_p7), %v1251_v0 }
  0x14   : > { %s1314_s29 = scalar_lea.vmem %s1416_s1, %s958_s26  ;;  %234 = vst [vmem:[#allocation2 + $0x20] sm:$0xff] (!%p961_p7), %v1251_v0  ;;  %235 = vst [vmem:[#allocation2 + $0x28] sm:$0xff] (!%p961_p7), %v1251_v0 }
  0x15   : > { %236 = vst [vmem:[#allocation2 + $0x30] sm:$0xff] (!%p961_p7), %v1251_v0  ;;  %237 = vst [vmem:[#allocation2 + $0x38] sm:$0xff] (!%p961_p7), %v1251_v0 }
  0x1a PF: > { %v1177_v1 = vld [vmem:[%s1314_s29 + $0x40] sm:$0xff]   ;;  %v1181_v5 = vld [vmem:[%s1314_s29 + $0x48] sm:$0xff]   ;;  %v1185_v9 = vld [vmem:[%s1314_s29 + $0x50] sm:$0xff]   ;;  %s962_s30 = sshll.u32 %s1233_s12, 9  ;;  %p1012_p8 = scmp.ne.s32.totalorder %s1233_s12, 1 }
  0x1b   : > { %v1178_v2 = vld [vmem:[%s1314_s29 + $0xc0] sm:$0xff]   ;;  %1055 = vmatprep.subr.bf16.mxu0 %v1177_v1  ;;  %v1182_v6 = vld [vmem:[%s1314_s29 + $0xc8] sm:$0xff]   ;;  %v1186_v10 = vld [vmem:[%s1314_s29 + $0xd0] sm:$0xff]   ;;  %s239_s4 = sshra.s32 %s962_s30, 7 }
  0x1c   : > { %v1179_v3 = vld [vmem:[%s1314_s29] sm:$0xff]   ;;  %1095 = vmatprep.subr.bf16.mxu1 %v1178_v2  ;;  %v1183_v7 = vld [vmem:[%s1314_s29 + $0x8] sm:$0xff]   ;;  %v1187_v11 = vld [vmem:[%s1314_s29 + $0x10] sm:$0xff]   ;;  %s963_s5 = sshll.u32 %s239_s4, 2 }
  0x1d   : > { %v1180_v4 = vld [vmem:[%s1314_s29 + $0x80] sm:$0xff]   ;;  %1056 = vmatpush3.bf16.msra.mxu0 %v1179_v3  ;;  %v1184_v8 = vld [vmem:[%s1314_s29 + $0x88] sm:$0xff]   ;;  %v1188_v12 = vld [vmem:[%s1314_s29 + $0x90] sm:$0xff]   ;;  %s1351_s8 = scalar_lea.vmem %s1415_s0, %s963_s5 }
  0x1e   : > { %1096 = vmatpush3.bf16.msra.mxu1 %v1180_v4  ;;  %1057 = vmatprep.subr.bf16.mxu0 %v1181_v5  ;;  %v1189_v13 = vld [vmem:[%s1314_s29 + $0x58] sm:$0xff]   ;;  %v1193_v17 = vld [vmem:[%s1314_s29 + $0x60] sm:$0xff]   ;;  %v1197_v21 = vld [vmem:[%s1314_s29 + $0x68] sm:$0xff]  }
  0x1f   : > { %1097 = vmatprep.subr.bf16.mxu1 %v1182_v6  ;;  %v1190_v14 = vld [vmem:[%s1314_s29 + $0xd8] sm:$0xff]   ;;  %v1194_v18 = vld [vmem:[%s1314_s29 + $0xe0] sm:$0xff]   ;;  %v1198_v22 = vld [vmem:[%s1314_s29 + $0xe8] sm:$0xff]  }
  0x20   : > { %v1191_v15 = vld [vmem:[%s1314_s29 + $0x18] sm:$0xff]   ;;  %v1195_v19 = vld [vmem:[%s1314_s29 + $0x20] sm:$0xff]   ;;  %v1199_v23 = vld [vmem:[%s1314_s29 + $0x28] sm:$0xff]  }
  0x21   : > { %1058 = vmatpush3.bf16.msra.mxu0 %v1183_v7  ;;  %v1192_v16 = vld [vmem:[%s1314_s29 + $0x98] sm:$0xff]   ;;  %v1196_v20 = vld [vmem:[%s1314_s29 + $0xa0] sm:$0xff]   ;;  %v1200_v24 = vld [vmem:[%s1314_s29 + $0xa8] sm:$0xff]  }
  0x22   : > { %1098 = vmatpush3.bf16.msra.mxu1 %v1184_v8  ;;  %1059 = vmatprep.subr.bf16.mxu0 %v1185_v9  ;;  %v1201_v25 = vld [vmem:[%s1314_s29 + $0x70] sm:$0xff]   ;;  %v1205_v29 = vld [vmem:[%s1314_s29 + $0x78] sm:$0xff]   ;;  %v243_v33 = vld [vmem:[%s1351_s8] sm:$0xff] }
  0x23   : > { %1099 = vmatprep.subr.bf16.mxu1 %v1186_v10  ;;  %v1202_v26 = vld [vmem:[%s1314_s29 + $0xf0] sm:$0xff]   ;;  %v1206_v30 = vld [vmem:[%s1314_s29 + $0xf8] sm:$0xff]   ;;  %v245_v34 = vld [vmem:[%s1351_s8 + $0x20] sm:$0xff] }
  0x24   : > { %v1203_v27 = vld [vmem:[%s1314_s29 + $0x30] sm:$0xff]   ;;  %v1207_v31 = vld [vmem:[%s1314_s29 + $0x38] sm:$0xff]   ;;  %v244_v35 = vld [vmem:[%s1351_s8 + $0x8] sm:$0xff]  ;;  %v964_v36 = vcombine.low %v243_v33, %v245_v34  ;;  %v965_v37 = vcombine.high %v243_v33, %v245_v34 }
  0x25   : > { %1060 = vmatpush3.bf16.msra.mxu0 %v1187_v11  ;;  %v1204_v28 = vld [vmem:[%s1314_s29 + $0xb0] sm:$0xff]   ;;  %v1208_v32 = vld [vmem:[%s1314_s29 + $0xb8] sm:$0xff]   ;;  %v246_v38 = vld [vmem:[%s1351_s8 + $0x28] sm:$0xff] }
  0x26   : > { %1100 = vmatpush3.bf16.msra.mxu1 %v1188_v12  ;;  %1061 = vmatprep.subr.bf16.mxu0 %v1189_v13  ;;  %v247_v39 = vld [vmem:[%s1351_s8 + $0x40] sm:$0xff]  ;;  %v966_v41 = vcombine.low %v244_v35, %v246_v38  ;;  %v967_v42 = vcombine.high %v244_v35, %v246_v38  ;;  %v248_v44 = vld [vmem:[%s1351_s8 + $0x48] sm:$0xff]  ;;  %v262_v33 = vld [vmem:[#allocation2 + $0x18] sm:$0xff] }
  0x27   : > { %1101 = vmatprep.subr.bf16.mxu1 %v1190_v14  ;;  %v249_v40 = vld [vmem:[%s1351_s8 + $0x60] sm:$0xff]  ;;  %v250_v45 = vld [vmem:[%s1351_s8 + $0x68] sm:$0xff]  ;;  %635 = vmatprep.mubr.bf16.mxu0 %v965_v37 }
  0x28   : > { %v969_v43 = vcombine.high %v247_v39, %v249_v40  ;;  %v971_v46 = vcombine.high %v248_v44, %v250_v45  ;;  %700 = vmatprep.mubr.bf16.mxu1 %v967_v42  ;;  %v251_v47 = vld [vmem:[%s1351_s8 + $0x80] sm:$0xff]  ;;  %v252_v49 = vld [vmem:[%s1351_s8 + $0x88] sm:$0xff]  ;;  %v968_v51 = vcombine.low %v247_v39, %v249_v40  ;;  %v970_v52 = vcombine.low %v248_v44, %v250_v45 }
  0x29   : > { %1062 = vmatpush3.bf16.msra.mxu0 %v1191_v15  ;;  %v253_v48 = vld [vmem:[%s1351_s8 + $0xa0] sm:$0xff]  ;;  %v254_v50 = vld [vmem:[%s1351_s8 + $0xa8] sm:$0xff] }
  0x2a   : > { %1102 = vmatpush3.bf16.msra.mxu1 %v1192_v16  ;;  %1063 = vmatprep.subr.bf16.mxu0 %v1193_v17  ;;  %v973_v53 = vcombine.high %v251_v47, %v253_v48  ;;  %v975_v54 = vcombine.high %v252_v49, %v254_v50  ;;  %v255_v55 = vld [vmem:[%s1351_s8 + $0xc0] sm:$0xff]  ;;  %v256_v57 = vld [vmem:[%s1351_s8 + $0xc8] sm:$0xff]  ;;  %v972_v59 = vcombine.low %v251_v47, %v253_v48 }
  0x2b   : > { %1103 = vmatprep.subr.bf16.mxu1 %v1194_v18  ;;  %v257_v56 = vld [vmem:[%s1351_s8 + $0xe0] sm:$0xff]  ;;  %v258_v58 = vld [vmem:[%s1351_s8 + $0xe8] sm:$0xff]  ;;  %v974_v60 = vcombine.low %v252_v49, %v254_v50 }
  0x2c   : > { %v977_v61 = vcombine.high %v255_v55, %v257_v56  ;;  %v979_v62 = vcombine.high %v256_v57, %v258_v58  ;;  %v976_v63 = vcombine.low %v255_v55, %v257_v56  ;;  %v978_v0 = vcombine.low %v256_v57, %v258_v58  ;;  %v259_v10 = vld [vmem:[#allocation2] sm:$0xff]  ;;  %v260_v15 = vld [vmem:[#allocation2 + $0x8] sm:$0xff] }
  0x2d   : > { %1064 = vmatpush3.bf16.msra.mxu0 %v1195_v19 }
  0x2e   : > { %1104 = vmatpush3.bf16.msra.mxu1 %v1196_v20  ;;  %1065 = vmatprep.subr.bf16.mxu0 %v1197_v21 }
  0x2f   : > { %1105 = vmatprep.subr.bf16.mxu1 %v1198_v22 }
  0x31   : > { %1066 = vmatpush3.bf16.msra.mxu0 %v1199_v23 }
  0x32   : > { %1106 = vmatpush3.bf16.msra.mxu1 %v1200_v24  ;;  %1067 = vmatprep.subr.bf16.mxu0 %v1201_v25 }
  0x33   : > { %1107 = vmatprep.subr.bf16.mxu1 %v1202_v26 }
  0x35   : > { %1068 = vmatpush3.bf16.msra.mxu0 %v1203_v27 }
  0x36   : > { %1108 = vmatpush3.bf16.msra.mxu1 %v1204_v28  ;;  %1069 = vmatprep.subr.bf16.mxu0 %v1205_v29  ;;  %v261_v28 = vld [vmem:[#allocation2 + $0x10] sm:$0xff] }
  0x37   : > { %1109 = vmatprep.subr.bf16.mxu1 %v1206_v30 }
  0x39   : > { %1070 = vmatpush3.bf16.msra.mxu0 %v1207_v31 }
  0x3a   : > { %1110 = vmatpush3.bf16.msra.mxu1 %v1208_v32 }
  0x3c   : > { %636 = vmatmul.mubr.bf16.vlgmr.msra.gmra.mrb[0].mxu0 %v964_v36 }
  0x3d   : > { %701 = vmatmul.mubr.bf16.vlgmr.msra.gmra.mrb[0].mxu1 %v966_v41  ;;  %643 = vmatprep.mubr.bf16.mxu0 %v969_v43 }
  0x3e   : > { %708 = vmatprep.mubr.bf16.mxu1 %v971_v46  ;;  %v263_v46 = vld [vmem:[#allocation2 + $0x20] sm:$0xff] }
  0x44   : > { %644 = vmatmul.mubr.bf16.gmra.mrb[4].mxu0 %v968_v51  ;;  %v264_v51 = vld [vmem:[#allocation2 + $0x28] sm:$0xff] }
  0x45   : > { %709 = vmatmul.mubr.bf16.gmra.mrb[4].mxu1 %v970_v52  ;;  %651 = vmatprep.mubr.bf16.mxu0 %v973_v53 }
  0x46   : > { %716 = vmatprep.mubr.bf16.mxu1 %v975_v54 }
  0x4c   : > { %652 = vmatmul.mubr.bf16.gmra.mrb[8].mxu0 %v972_v59 }
  0x4d   : > { %717 = vmatmul.mubr.bf16.gmra.mrb[8].mxu1 %v974_v60  ;;  %659 = vmatprep.mubr.bf16.mxu0 %v977_v61 }
  0x4e   : > { %724 = vmatprep.mubr.bf16.mxu1 %v979_v62 }
  0x54   : > { %660 = vmatmul.mubr.bf16.gmra.mrb[12].mxu0 %v976_v63 }
  0x55   : > { %725 = vmatmul.mubr.bf16.gmra.mrb[12].mxu1 %v978_v0  ;;  %v265_v0 = vld [vmem:[#allocation2 + $0x30] sm:$0xff] }
 0x10f   : > { %v1071_v1 = vpop.f32.mrb[0].mxu0 }
 0x110   : > { %v1111_v2 = vpop.f32.mrb[0].mxu1  ;;  %v1072_v3 = vpop.f32.mrb[1].mxu0 }
 0x111   : > { %v1073_v4 = vadd.f32 %v1072_v3, %v1071_v1  ;;  %v1112_v5 = vpop.f32.mrb[1].mxu1  ;;  %v1074_v6 = vpop.f32.mrb[2].mxu0 }
 0x112   : > { %v1113_v7 = vadd.f32 %v1112_v5, %v1111_v2  ;;  %v1114_v8 = vpop.f32.mrb[2].mxu1  ;;  %v1075_v9 = vpop.f32.mrb[3].mxu0  ;;  %v266_v5 = vld [vmem:[#allocation2 + $0x38] sm:$0xff] }
 0x113   : > { %v1076_v11 = vadd.f32 %v1075_v9, %v1074_v6  ;;  %v1115_v12 = vpop.f32.mrb[3].mxu1  ;;  %v763_v9 = vld [vmem:[%s1417_s2 + $0x10] sm:$0xff] (!%p1012_p8) }
 0x114   : > { %v703_v13 = vadd.f32 %v1113_v7, %v1073_v4  ;;  %v1116_v14 = vadd.f32 %v1115_v12, %v1114_v8  ;;  %v764_v12 = vld [vmem:[%s1417_s2 + $0x18] sm:$0xff] (!%p1012_p8) }
 0x116   : > { %v733_v16 = vadd.f32 %v703_v13, %v259_v10  ;;  %v706_v17 = vadd.f32 %v1116_v14, %v1076_v11  ;;  %v761_v10 = vld [vmem:[%s1417_s2] sm:$0xff] (!%p1012_p8)  ;;  %v1252_v11 = vmov (!%p1012_p8), 0   ;;  %v762_v13 = vld [vmem:[%s1417_s2 + $0x8] sm:$0xff] (!%p1012_p8) }
 0x117   : > { %v1077_v18 = vpop.f32.mrb[4].mxu0  ;;  %1210 = vset.pattern.permute.xlu1 (!%p1012_p8), %v1252_v11  ;;  %1209 = vset.pattern.permute.xlu0 (!%p1012_p8), %v1252_v11  ;;  %v766_v14 = vld [vmem:[%s1417_s2 + $0x28] sm:$0xff] (!%p1012_p8) }
 0x118   : > { %741 = vst [vmem:[#allocation2] sm:$0xff] %v733_v16  ;;  %v734_v19 = vadd.f32 %v706_v17, %v260_v15  ;;  %v1117_v20 = vpop.f32.mrb[4].mxu1  ;;  %v1078_v21 = vpop.f32.mrb[5].mxu0  ;;  %781 = vperm.xlu1 (!%p1012_p8), %1210, %v763_v9   ;;  %771 = vperm.xlu0 (!%p1012_p8), %1209, %v761_v10   ;;  %v765_v15 = vld [vmem:[%s1417_s2 + $0x20] sm:$0xff] (!%p1012_p8)  ;;  %v768_v16 = vld [vmem:[%s1417_s2 + $0x38] sm:$0xff] (!%p1012_p8)  ;;  %v767_v17 = vld [vmem:[%s1417_s2 + $0x30] sm:$0xff] (!%p1012_p8) }
 0x119   : > { %v1079_v22 = vadd.f32 %v1078_v21, %v1077_v18  ;;  %v1118_v23 = vpop.f32.mrb[5].mxu1  ;;  %v1080_v24 = vpop.f32.mrb[6].mxu0 }
 0x11a   : > { %742 = vst [vmem:[#allocation2 + $0x8] sm:$0xff] %v734_v19  ;;  %v1119_v25 = vadd.f32 %v1118_v23, %v1117_v20  ;;  %v1120_v26 = vpop.f32.mrb[6].mxu1  ;;  %v1081_v27 = vpop.f32.mrb[7].mxu0 }
 0x11b   : > { %v1082_v29 = vadd.f32 %v1081_v27, %v1080_v24  ;;  %v1121_v30 = vpop.f32.mrb[7].mxu1 }
 0x11c   : > { %v711_v31 = vadd.f32 %v1119_v25, %v1079_v22  ;;  %v1122_v32 = vadd.f32 %v1121_v30, %v1120_v26  ;;  %786 = vperm.xlu1 (!%p1012_p8), %1210, %v764_v12   ;;  %776 = vperm.xlu0 (!%p1012_p8), %1209, %v762_v13  }
 0x11e   : > { %v735_v34 = vadd.f32 %v711_v31, %v261_v28  ;;  %v714_v35 = vadd.f32 %v1122_v32, %v1082_v29 }
 0x11f   : > { %v1083_v36 = vpop.f32.mrb[8].mxu0  ;;  %v753_v21 = vld [vmem:[#allocation2] sm:$0xff] (!%p1012_p8) }
 0x120   : > { %743 = vst [vmem:[#allocation2 + $0x10] sm:$0xff] %v735_v34  ;;  %v736_v37 = vadd.f32 %v714_v35, %v262_v33  ;;  %v1123_v38 = vpop.f32.mrb[8].mxu1  ;;  %v1084_v39 = vpop.f32.mrb[9].mxu0  ;;  %796 = vperm.xlu1 (!%p1012_p8), %1210, %v766_v14   ;;  %791 = vperm.xlu0 (!%p1012_p8), %1209, %v765_v15  }
 0x121   : > { %v1085_v40 = vadd.f32 %v1084_v39, %v1083_v36  ;;  %v1124_v41 = vpop.f32.mrb[9].mxu1  ;;  %v1086_v42 = vpop.f32.mrb[10].mxu0  ;;  %v754_v23 = vld [vmem:[#allocation2 + $0x8] sm:$0xff] (!%p1012_p8) }
 0x122   : > { %744 = vst [vmem:[#allocation2 + $0x18] sm:$0xff] %v736_v37  ;;  %v1125_v43 = vadd.f32 %v1124_v41, %v1123_v38  ;;  %v1126_v44 = vpop.f32.mrb[10].mxu1  ;;  %v1087_v45 = vpop.f32.mrb[11].mxu0 }
 0x123   : > { %v1088_v47 = vadd.f32 %v1087_v45, %v1086_v42  ;;  %v1127_v48 = vpop.f32.mrb[11].mxu1 }
 0x124   : > { %v719_v49 = vadd.f32 %v1125_v43, %v1085_v40  ;;  %v1128_v50 = vadd.f32 %v1127_v48, %v1126_v44  ;;  %806 = vperm.xlu1 (!%p1012_p8), %1210, %v768_v16   ;;  %801 = vperm.xlu0 (!%p1012_p8), %1209, %v767_v17  }
 0x126   : > { %v737_v52 = vadd.f32 %v719_v49, %v263_v46  ;;  %v722_v53 = vadd.f32 %v1128_v50, %v1088_v47 }
 0x127   : > { %v1089_v54 = vpop.f32.mrb[12].mxu0  ;;  %v755_v20 = vld [vmem:[#allocation2 + $0x10] sm:$0xff] (!%p1012_p8) }
 0x128   : > { %745 = vst [vmem:[#allocation2 + $0x20] sm:$0xff] %v737_v52  ;;  %v738_v55 = vadd.f32 %v722_v53, %v264_v51  ;;  %v1129_v56 = vpop.f32.mrb[12].mxu1  ;;  %v1090_v57 = vpop.f32.mrb[13].mxu0 }
 0x129   : > { %v1091_v58 = vadd.f32 %v1090_v57, %v1089_v54  ;;  %v1130_v59 = vpop.f32.mrb[13].mxu1  ;;  %v1092_v60 = vpop.f32.mrb[14].mxu0  ;;  %v756_v22 = vld [vmem:[#allocation2 + $0x18] sm:$0xff] (!%p1012_p8) }
 0x12a   : > { %746 = vst [vmem:[#allocation2 + $0x28] sm:$0xff] %v738_v55  ;;  %v1131_v61 = vadd.f32 %v1130_v59, %v1129_v56  ;;  %v1132_v62 = vpop.f32.mrb[14].mxu1  ;;  %v1093_v63 = vpop.f32.mrb[15].mxu0 }
 0x12b   : > { %v1094_v1 = vadd.f32 %v1093_v63, %v1092_v60  ;;  %v1133_v2 = vpop.f32.mrb[15].mxu1 }
 0x12c   : > { %v727_v3 = vadd.f32 %v1131_v61, %v1091_v58  ;;  %v1134_v4 = vadd.f32 %v1133_v2, %v1132_v62  ;;  %752 = sbr.rel (%p1012_p8) target bundleno = 425 (0x1a9), region = 40 }
 0x12e   : > { %v739_v6 = vadd.f32 %v727_v3, %v265_v0  ;;  %v730_v7 = vadd.f32 %v1134_v4, %v1094_v1 }
 0x12f   : > { %v757_v31 = vld [vmem:[#allocation2 + $0x20] sm:$0xff] (!%p1012_p8) }
 0x130   : > { %747 = vst [vmem:[#allocation2 + $0x30] sm:$0xff] %v739_v6  ;;  %v740_v8 = vadd.f32 %v730_v7, %v266_v5 }
 0x131   : > { %v758_v30 = vld [vmem:[#allocation2 + $0x28] sm:$0xff] (!%p1012_p8) }
 0x132   : > { %748 = vst [vmem:[#allocation2 + $0x38] sm:$0xff] %v740_v8 }
 0x137   : > { %v759_v39 = vld [vmem:[#allocation2 + $0x30] sm:$0xff] }
 0x139   : > { %v760_v38 = vld [vmem:[#allocation2 + $0x38] sm:$0xff] }
 0x197   : > { %v782_v18 = vpop.permute.xlu1 %781  ;;  %v772_v19 = vpop.permute.xlu0 %771 }
 0x198   : > { %v811_v26 = vadd.f32 %v782_v18, %v755_v20  ;;  %v809_v27 = vadd.f32 %v772_v19, %v753_v21 }
 0x19b   : > { %v787_v24 = vpop.permute.xlu1 %786  ;;  %v777_v25 = vpop.permute.xlu0 %776 }
 0x19c   : > { %v812_v28 = vadd.f32 %v787_v24, %v756_v22  ;;  %v810_v29 = vadd.f32 %v777_v25, %v754_v23 }
 0x19e   : > { %v1040_v32 = vpack.c.bf16 %v812_v28, %v811_v26  ;;  %v1035_v33 = vpack.c.bf16 %v810_v29, %v809_v27 }
 0x19f   : > { %v797_v34 = vpop.permute.xlu1 %796  ;;  %v792_v35 = vpop.permute.xlu0 %791 }
 0x1a0   : > { %1052 = vst [vmem:[%s1309_s25 + $0x8] sm:$0xff] %v1040_v32   ;;  %1036 = vst [vmem:[%s1309_s25] sm:$0xff] %v1035_v33   ;;  %v814_v36 = vadd.f32 %v797_v34, %v758_v30  ;;  %v813_v37 = vadd.f32 %v792_v35, %v757_v31 }
 0x1a2   : > { %v1045_v40 = vpack.c.bf16 %v814_v36, %v813_v37 }
 0x1a3   : > { %v807_v41 = vpop.permute.xlu1 %806  ;;  %v802_v42 = vpop.permute.xlu0 %801 }
 0x1a4   : > { %1053 = vst [vmem:[%s1309_s25 + $0x10] sm:$0xff] %v1045_v40   ;;  %v816_v43 = vadd.f32 %v807_v41, %v760_v38  ;;  %v815_v44 = vadd.f32 %v802_v42, %v759_v39 }
 0x1a6   : > { %v1050_v45 = vpack.c.bf16 %v816_v43, %v815_v44 }
 0x1a8   : > { %1054 = vst [vmem:[%s1309_s25 + $0x18] sm:$0xff] %v1050_v45  }
 0x1a9 PF: > { %s13_s16 = sadd.s32 1, %s1249_s16   ;;  %s1419_s12 = smov %s1241_s14 }
 0x1aa   : > { %p10_p9 = scmp.ge.s32.totalorder %s13_s16, 6   ;;  %s1420_s13 = smov %s1245_s15 }
 0x1ab   : > { %s1421_s14 = smov %s1424_s17  ;;  %s1422_s15 = smov %s1428_s18 }
 0x1ac   :  { %12 = sbr.rel (!%p10_p9) target bundleno = 3 (0x3), region = 71 }

// kernel: _lambda_.64
= control target key start
LH: loop header
LB: loop body
LE: loop exit
PB: predicated region body
PF: predicated region fallthrough
CT: control target
= control target key end

     0   :  { %s1273_s12 = smov 0   ;;  %s1275_s13 = smov 0   ;;  %s1415_s0 = inlined_call_operand.vmem [shape: bf16[64,2048], index: 0, kind: input, shape index: {}]   ;;  %s1416_s1 = inlined_call_operand.vmem [shape: bf16[2,2048,128], index: 1, kind: input, shape index: {}]   ;;  %s1417_s2 = inlined_call_operand.vmem [shape: f32[64,1], index: 2, kind: input, shape index: {}]   ;;  %s1418_s3 = inlined_call_operand.vmem [shape: bf16[2,64,128], index: 3, kind: output, shape index: {}]  }
   0x1   :  { %s1277_s14 = smov 0   ;;  %s1279_s15 = smov 0  }
   0x2   :  { %s1281_s16 = smov 0  }
   0x3 LB: > { %s25_s17 = sadd.s32 1, %s1241_s14  ;;  %s32_s18 = sadd.s32 1, %s1245_s15  ;;  %s1249_s16 = sphi %s1281_s16, %s13_s16   ;;  %s1245_s15 = sphi %s1279_s15, %s1422_s15   ;;  %s1241_s14 = sphi %s1277_s14, %s1421_s14   ;;  %s1237_s13 = sphi %s1275_s13, %s1420_s13   ;;  %s1233_s12 = sphi %s1273_s12, %s1419_s12  }
   0x4   : > { %p26_p0 = scmp.ge.s32.totalorder %s25_s17, 4  ;;  %p955_p1 = scmp.ge.s32.totalorder %s1249_s16, 1 }
   0x5   : > { %p170_p2 = scmp.lt.s32.totalorder %s1249_s16, 9 }
   0x6   : > { %s1424_s17 = smov (%p26_p0, %s25_s17), 0  ;;  %s1426_s18 = smov (!%p26_p0, %s32_s18), %s1245_s15 }
   0x7   : > { %p171_p3 = pnand %p955_p1, %p170_p2  ;;  %p34_p4 = scmp.ge.s32.totalorder %s1426_s18, 2 }
   0x8   : > { %s956_s19 = sshll.u32 (!%p171_p3), %s1233_s12, 6  ;;  %p205_p5 = scmp.lt.s32.totalorder (!%p171_p3), %s1237_s13, 1 }
   0x9   : > { %s1428_s18 = smov (%p34_p4, %s1426_s18), 0  ;;  %174 = sbr.rel (%p171_p3) target bundleno = 425 (0x1a9), region = 32 }
   0xa   : > { %p207_p6 = scmp.lt.s32.totalorder (!%p171_p3), %s956_s19, 255  ;;  %p961_p7 = scmp.ne.s32.totalorder (!%p171_p3), %s1233_s12, 0 }
  0x10   : > { %s1430_s13 = smov (!%p205_p5, %s1237_s13), 1  ;;  %s1432_s19 = smov (!%p207_p6, %s956_s19), 255 }
  0x11   : > { %s957_s20 = sshll.u32 %s1430_s13, 8  ;;  %s1023_s21 = sshll.u32 %s1430_s13, 5  ;;  %v1251_v0 = vmov (!%p961_p7), 0.0  }
  0x12   : > { %s213_s22 = sadd.s32 %s957_s20, %s1432_s19  ;;  %s1309_s25 = scalar_lea.vmem %s1418_s3, %s1023_s21  ;;  %230 = vst [vmem:[#allocation2] sm:$0xff] (!%p961_p7), %v1251_v0  ;;  %231 = vst [vmem:[#allocation2 + $0x8] sm:$0xff] (!%p961_p7), %v1251_v0 }
  0x13   : > { %s958_s26 = sshll.u32 %s213_s22, 2  ;;  %229 = sbr.rel (%p961_p7) target bundleno = 26 (0x1a), region = 36  ;;  %232 = vst [vmem:[#allocation2 + $0x10] sm:$0xff] (!%p961_p7), %v1251_v0  ;;  %233 = vst [vmem:[#allocation2 + $0x18] sm:$0xff] (!%p961_p7), %v1251_v0 }
  0x14   : > { %s1314_s29 = scalar_lea.vmem %s1416_s1, %s958_s26  ;;  %234 = vst [vmem:[#allocation2 + $0x20] sm:$0xff] (!%p961_p7), %v1251_v0  ;;  %235 = vst [vmem:[#allocation2 + $0x28] sm:$0xff] (!%p961_p7), %v1251_v0 }
  0x15   : > { %236 = vst [vmem:[#allocation2 + $0x30] sm:$0xff] (!%p961_p7), %v1251_v0  ;;  %237 = vst [vmem:[#allocation2 + $0x38] sm:$0xff] (!%p961_p7), %v1251_v0 }
  0x1a PF: > { %v1177_v1 = vld [vmem:[%s1314_s29 + $0x40] sm:$0xff]   ;;  %v1181_v5 = vld [vmem:[%s1314_s29 + $0x48] sm:$0xff]   ;;  %v1185_v9 = vld [vmem:[%s1314_s29 + $0x50] sm:$0xff]   ;;  %s962_s30 = sshll.u32 %s1233_s12, 9  ;;  %p1012_p8 = scmp.ne.s32.totalorder %s1233_s12, 3 }
  0x1b   : > { %v1178_v2 = vld [vmem:[%s1314_s29 + $0xc0] sm:$0xff]   ;;  %1055 = vmatprep.subr.bf16.mxu0 %v1177_v1  ;;  %v1182_v6 = vld [vmem:[%s1314_s29 + $0xc8] sm:$0xff]   ;;  %v1186_v10 = vld [vmem:[%s1314_s29 + $0xd0] sm:$0xff]   ;;  %s239_s4 = sshra.s32 %s962_s30, 7 }
  0x1c   : > { %v1179_v3 = vld [vmem:[%s1314_s29] sm:$0xff]   ;;  %1095 = vmatprep.subr.bf16.mxu1 %v1178_v2  ;;  %v1183_v7 = vld [vmem:[%s1314_s29 + $0x8] sm:$0xff]   ;;  %v1187_v11 = vld [vmem:[%s1314_s29 + $0x10] sm:$0xff]   ;;  %s963_s5 = sshll.u32 %s239_s4, 2 }
  0x1d   : > { %v1180_v4 = vld [vmem:[%s1314_s29 + $0x80] sm:$0xff]   ;;  %1056 = vmatpush3.bf16.msra.mxu0 %v1179_v3  ;;  %v1184_v8 = vld [vmem:[%s1314_s29 + $0x88] sm:$0xff]   ;;  %v1188_v12 = vld [vmem:[%s1314_s29 + $0x90] sm:$0xff]   ;;  %s1351_s8 = scalar_lea.vmem %s1415_s0, %s963_s5 }
  0x1e   : > { %1096 = vmatpush3.bf16.msra.mxu1 %v1180_v4  ;;  %1057 = vmatprep.subr.bf16.mxu0 %v1181_v5  ;;  %v1189_v13 = vld [vmem:[%s1314_s29 + $0x58] sm:$0xff]   ;;  %v1193_v17 = vld [vmem:[%s1314_s29 + $0x60] sm:$0xff]   ;;  %v1197_v21 = vld [vmem:[%s1314_s29 + $0x68] sm:$0xff]  }
  0x1f   : > { %1097 = vmatprep.subr.bf16.mxu1 %v1182_v6  ;;  %v1190_v14 = vld [vmem:[%s1314_s29 + $0xd8] sm:$0xff]   ;;  %v1194_v18 = vld [vmem:[%s1314_s29 + $0xe0] sm:$0xff]   ;;  %v1198_v22 = vld [vmem:[%s1314_s29 + $0xe8] sm:$0xff]  }
  0x20   : > { %v1191_v15 = vld [vmem:[%s1314_s29 + $0x18] sm:$0xff]   ;;  %v1195_v19 = vld [vmem:[%s1314_s29 + $0x20] sm:$0xff]   ;;  %v1199_v23 = vld [vmem:[%s1314_s29 + $0x28] sm:$0xff]  }
  0x21   : > { %1058 = vmatpush3.bf16.msra.mxu0 %v1183_v7  ;;  %v1192_v16 = vld [vmem:[%s1314_s29 + $0x98] sm:$0xff]   ;;  %v1196_v20 = vld [vmem:[%s1314_s29 + $0xa0] sm:$0xff]   ;;  %v1200_v24 = vld [vmem:[%s1314_s29 + $0xa8] sm:$0xff]  }
  0x22   : > { %1098 = vmatpush3.bf16.msra.mxu1 %v1184_v8  ;;  %1059 = vmatprep.subr.bf16.mxu0 %v1185_v9  ;;  %v1201_v25 = vld [vmem:[%s1314_s29 + $0x70] sm:$0xff]   ;;  %v1205_v29 = vld [vmem:[%s1314_s29 + $0x78] sm:$0xff]   ;;  %v243_v33 = vld [vmem:[%s1351_s8] sm:$0xff] }
  0x23   : > { %1099 = vmatprep.subr.bf16.mxu1 %v1186_v10  ;;  %v1202_v26 = vld [vmem:[%s1314_s29 + $0xf0] sm:$0xff]   ;;  %v1206_v30 = vld [vmem:[%s1314_s29 + $0xf8] sm:$0xff]   ;;  %v245_v34 = vld [vmem:[%s1351_s8 + $0x40] sm:$0xff] }
  0x24   : > { %v1203_v27 = vld [vmem:[%s1314_s29 + $0x30] sm:$0xff]   ;;  %v1207_v31 = vld [vmem:[%s1314_s29 + $0x38] sm:$0xff]   ;;  %v244_v35 = vld [vmem:[%s1351_s8 + $0x8] sm:$0xff]  ;;  %v964_v36 = vcombine.low %v243_v33, %v245_v34  ;;  %v965_v37 = vcombine.high %v243_v33, %v245_v34 }
  0x25   : > { %1060 = vmatpush3.bf16.msra.mxu0 %v1187_v11  ;;  %v1204_v28 = vld [vmem:[%s1314_s29 + $0xb0] sm:$0xff]   ;;  %v1208_v32 = vld [vmem:[%s1314_s29 + $0xb8] sm:$0xff]   ;;  %v246_v38 = vld [vmem:[%s1351_s8 + $0x48] sm:$0xff] }
  0x26   : > { %1100 = vmatpush3.bf16.msra.mxu1 %v1188_v12  ;;  %1061 = vmatprep.subr.bf16.mxu0 %v1189_v13  ;;  %v247_v39 = vld [vmem:[%s1351_s8 + $0x80] sm:$0xff]  ;;  %v966_v41 = vcombine.low %v244_v35, %v246_v38  ;;  %v967_v42 = vcombine.high %v244_v35, %v246_v38  ;;  %v248_v44 = vld [vmem:[%s1351_s8 + $0x88] sm:$0xff]  ;;  %v262_v33 = vld [vmem:[#allocation2 + $0x18] sm:$0xff] }
  0x27   : > { %1101 = vmatprep.subr.bf16.mxu1 %v1190_v14  ;;  %v249_v40 = vld [vmem:[%s1351_s8 + $0xc0] sm:$0xff]  ;;  %v250_v45 = vld [vmem:[%s1351_s8 + $0xc8] sm:$0xff]  ;;  %635 = vmatprep.mubr.bf16.mxu0 %v965_v37 }
  0x28   : > { %v969_v43 = vcombine.high %v247_v39, %v249_v40  ;;  %v971_v46 = vcombine.high %v248_v44, %v250_v45  ;;  %700 = vmatprep.mubr.bf16.mxu1 %v967_v42  ;;  %v251_v47 = vld [vmem:[%s1351_s8 + $0x100] sm:$0xff]  ;;  %v252_v49 = vld [vmem:[%s1351_s8 + $0x108] sm:$0xff]  ;;  %v968_v51 = vcombine.low %v247_v39, %v249_v40  ;;  %v970_v52 = vcombine.low %v248_v44, %v250_v45 }
  0x29   : > { %1062 = vmatpush3.bf16.msra.mxu0 %v1191_v15  ;;  %v253_v48 = vld [vmem:[%s1351_s8 + $0x140] sm:$0xff]  ;;  %v254_v50 = vld [vmem:[%s1351_s8 + $0x148] sm:$0xff] }
  0x2a   : > { %1102 = vmatpush3.bf16.msra.mxu1 %v1192_v16  ;;  %1063 = vmatprep.subr.bf16.mxu0 %v1193_v17  ;;  %v973_v53 = vcombine.high %v251_v47, %v253_v48  ;;  %v975_v54 = vcombine.high %v252_v49, %v254_v50  ;;  %v255_v55 = vld [vmem:[%s1351_s8 + $0x180] sm:$0xff]  ;;  %v256_v57 = vld [vmem:[%s1351_s8 + $0x188] sm:$0xff]  ;;  %v972_v59 = vcombine.low %v251_v47, %v253_v48 }
  0x2b   : > { %1103 = vmatprep.subr.bf16.mxu1 %v1194_v18  ;;  %v257_v56 = vld [vmem:[%s1351_s8 + $0x1c0] sm:$0xff]  ;;  %v258_v58 = vld [vmem:[%s1351_s8 + $0x1c8] sm:$0xff]  ;;  %v974_v60 = vcombine.low %v252_v49, %v254_v50 }
  0x2c   : > { %v977_v61 = vcombine.high %v255_v55, %v257_v56  ;;  %v979_v62 = vcombine.high %v256_v57, %v258_v58  ;;  %v976_v63 = vcombine.low %v255_v55, %v257_v56  ;;  %v978_v0 = vcombine.low %v256_v57, %v258_v58  ;;  %v259_v10 = vld [vmem:[#allocation2] sm:$0xff]  ;;  %v260_v15 = vld [vmem:[#allocation2 + $0x8] sm:$0xff] }
  0x2d   : > { %1064 = vmatpush3.bf16.msra.mxu0 %v1195_v19 }
  0x2e   : > { %1104 = vmatpush3.bf16.msra.mxu1 %v1196_v20  ;;  %1065 = vmatprep.subr.bf16.mxu0 %v1197_v21 }
  0x2f   : > { %1105 = vmatprep.subr.bf16.mxu1 %v1198_v22 }
  0x31   : > { %1066 = vmatpush3.bf16.msra.mxu0 %v1199_v23 }
  0x32   : > { %1106 = vmatpush3.bf16.msra.mxu1 %v1200_v24  ;;  %1067 = vmatprep.subr.bf16.mxu0 %v1201_v25 }
  0x33   : > { %1107 = vmatprep.subr.bf16.mxu1 %v1202_v26 }
  0x35   : > { %1068 = vmatpush3.bf16.msra.mxu0 %v1203_v27 }
  0x36   : > { %1108 = vmatpush3.bf16.msra.mxu1 %v1204_v28  ;;  %1069 = vmatprep.subr.bf16.mxu0 %v1205_v29  ;;  %v261_v28 = vld [vmem:[#allocation2 + $0x10] sm:$0xff] }
  0x37   : > { %1109 = vmatprep.subr.bf16.mxu1 %v1206_v30 }
  0x39   : > { %1070 = vmatpush3.bf16.msra.mxu0 %v1207_v31 }
  0x3a   : > { %1110 = vmatpush3.bf16.msra.mxu1 %v1208_v32 }
  0x3c   : > { %636 = vmatmul.mubr.bf16.vlgmr.msra.gmra.mrb[0].mxu0 %v964_v36 }
  0x3d   : > { %701 = vmatmul.mubr.bf16.vlgmr.msra.gmra.mrb[0].mxu1 %v966_v41  ;;  %643 = vmatprep.mubr.bf16.mxu0 %v969_v43 }
  0x3e   : > { %708 = vmatprep.mubr.bf16.mxu1 %v971_v46  ;;  %v263_v46 = vld [vmem:[#allocation2 + $0x20] sm:$0xff] }
  0x44   : > { %644 = vmatmul.mubr.bf16.gmra.mrb[4].mxu0 %v968_v51  ;;  %v264_v51 = vld [vmem:[#allocation2 + $0x28] sm:$0xff] }
  0x45   : > { %709 = vmatmul.mubr.bf16.gmra.mrb[4].mxu1 %v970_v52  ;;  %651 = vmatprep.mubr.bf16.mxu0 %v973_v53 }
  0x46   : > { %716 = vmatprep.mubr.bf16.mxu1 %v975_v54 }
  0x4c   : > { %652 = vmatmul.mubr.bf16.gmra.mrb[8].mxu0 %v972_v59 }
  0x4d   : > { %717 = vmatmul.mubr.bf16.gmra.mrb[8].mxu1 %v974_v60  ;;  %659 = vmatprep.mubr.bf16.mxu0 %v977_v61 }
  0x4e   : > { %724 = vmatprep.mubr.bf16.mxu1 %v979_v62 }
  0x54   : > { %660 = vmatmul.mubr.bf16.gmra.mrb[12].mxu0 %v976_v63 }
  0x55   : > { %725 = vmatmul.mubr.bf16.gmra.mrb[12].mxu1 %v978_v0  ;;  %v265_v0 = vld [vmem:[#allocation2 + $0x30] sm:$0xff] }
 0x10f   : > { %v1071_v1 = vpop.f32.mrb[0].mxu0 }
 0x110   : > { %v1111_v2 = vpop.f32.mrb[0].mxu1  ;;  %v1072_v3 = vpop.f32.mrb[1].mxu0 }
 0x111   : > { %v1073_v4 = vadd.f32 %v1072_v3, %v1071_v1  ;;  %v1112_v5 = vpop.f32.mrb[1].mxu1  ;;  %v1074_v6 = vpop.f32.mrb[2].mxu0 }
 0x112   : > { %v1113_v7 = vadd.f32 %v1112_v5, %v1111_v2  ;;  %v1114_v8 = vpop.f32.mrb[2].mxu1  ;;  %v1075_v9 = vpop.f32.mrb[3].mxu0  ;;  %v266_v5 = vld [vmem:[#allocation2 + $0x38] sm:$0xff] }
 0x113   : > { %v1076_v11 = vadd.f32 %v1075_v9, %v1074_v6  ;;  %v1115_v12 = vpop.f32.mrb[3].mxu1  ;;  %v763_v9 = vld [vmem:[%s1417_s2 + $0x10] sm:$0xff] (!%p1012_p8) }
 0x114   : > { %v703_v13 = vadd.f32 %v1113_v7, %v1073_v4  ;;  %v1116_v14 = vadd.f32 %v1115_v12, %v1114_v8  ;;  %v764_v12 = vld [vmem:[%s1417_s2 + $0x18] sm:$0xff] (!%p1012_p8) }
 0x116   : > { %v733_v16 = vadd.f32 %v703_v13, %v259_v10  ;;  %v706_v17 = vadd.f32 %v1116_v14, %v1076_v11  ;;  %v761_v10 = vld [vmem:[%s1417_s2] sm:$0xff] (!%p1012_p8)  ;;  %v1252_v11 = vmov (!%p1012_p8), 0   ;;  %v762_v13 = vld [vmem:[%s1417_s2 + $0x8] sm:$0xff] (!%p1012_p8) }
 0x117   : > { %v1077_v18 = vpop.f32.mrb[4].mxu0  ;;  %1210 = vset.pattern.permute.xlu1 (!%p1012_p8), %v1252_v11  ;;  %1209 = vset.pattern.permute.xlu0 (!%p1012_p8), %v1252_v11  ;;  %v766_v14 = vld [vmem:[%s1417_s2 + $0x28] sm:$0xff] (!%p1012_p8) }
 0x118   : > { %741 = vst [vmem:[#allocation2] sm:$0xff] %v733_v16  ;;  %v734_v19 = vadd.f32 %v706_v17, %v260_v15  ;;  %v1117_v20 = vpop.f32.mrb[4].mxu1  ;;  %v1078_v21 = vpop.f32.mrb[5].mxu0  ;;  %781 = vperm.xlu1 (!%p1012_p8), %1210, %v763_v9   ;;  %771 = vperm.xlu0 (!%p1012_p8), %1209, %v761_v10   ;;  %v765_v15 = vld [vmem:[%s1417_s2 + $0x20] sm:$0xff] (!%p1012_p8)  ;;  %v768_v16 = vld [vmem:[%s1417_s2 + $0x38] sm:$0xff] (!%p1012_p8)  ;;  %v767_v17 = vld [vmem:[%s1417_s2 + $0x30] sm:$0xff] (!%p1012_p8) }
 0x119   : > { %v1079_v22 = vadd.f32 %v1078_v21, %v1077_v18  ;;  %v1118_v23 = vpop.f32.mrb[5].mxu1  ;;  %v1080_v24 = vpop.f32.mrb[6].mxu0 }
 0x11a   : > { %742 = vst [vmem:[#allocation2 + $0x8] sm:$0xff] %v734_v19  ;;  %v1119_v25 = vadd.f32 %v1118_v23, %v1117_v20  ;;  %v1120_v26 = vpop.f32.mrb[6].mxu1  ;;  %v1081_v27 = vpop.f32.mrb[7].mxu0 }
 0x11b   : > { %v1082_v29 = vadd.f32 %v1081_v27, %v1080_v24  ;;  %v1121_v30 = vpop.f32.mrb[7].mxu1 }
 0x11c   : > { %v711_v31 = vadd.f32 %v1119_v25, %v1079_v22  ;;  %v1122_v32 = vadd.f32 %v1121_v30, %v1120_v26  ;;  %786 = vperm.xlu1 (!%p1012_p8), %1210, %v764_v12   ;;  %776 = vperm.xlu0 (!%p1012_p8), %1209, %v762_v13  }
 0x11e   : > { %v735_v34 = vadd.f32 %v711_v31, %v261_v28  ;;  %v714_v35 = vadd.f32 %v1122_v32, %v1082_v29 }
 0x11f   : > { %v1083_v36 = vpop.f32.mrb[8].mxu0  ;;  %v753_v21 = vld [vmem:[#allocation2] sm:$0xff] (!%p1012_p8) }
 0x120   : > { %743 = vst [vmem:[#allocation2 + $0x10] sm:$0xff] %v735_v34  ;;  %v736_v37 = vadd.f32 %v714_v35, %v262_v33  ;;  %v1123_v38 = vpop.f32.mrb[8].mxu1  ;;  %v1084_v39 = vpop.f32.mrb[9].mxu0  ;;  %796 = vperm.xlu1 (!%p1012_p8), %1210, %v766_v14   ;;  %791 = vperm.xlu0 (!%p1012_p8), %1209, %v765_v15  }
 0x121   : > { %v1085_v40 = vadd.f32 %v1084_v39, %v1083_v36  ;;  %v1124_v41 = vpop.f32.mrb[9].mxu1  ;;  %v1086_v42 = vpop.f32.mrb[10].mxu0  ;;  %v754_v23 = vld [vmem:[#allocation2 + $0x8] sm:$0xff] (!%p1012_p8) }
 0x122   : > { %744 = vst [vmem:[#allocation2 + $0x18] sm:$0xff] %v736_v37  ;;  %v1125_v43 = vadd.f32 %v1124_v41, %v1123_v38  ;;  %v1126_v44 = vpop.f32.mrb[10].mxu1  ;;  %v1087_v45 = vpop.f32.mrb[11].mxu0 }
 0x123   : > { %v1088_v47 = vadd.f32 %v1087_v45, %v1086_v42  ;;  %v1127_v48 = vpop.f32.mrb[11].mxu1 }
 0x124   : > { %v719_v49 = vadd.f32 %v1125_v43, %v1085_v40  ;;  %v1128_v50 = vadd.f32 %v1127_v48, %v1126_v44  ;;  %806 = vperm.xlu1 (!%p1012_p8), %1210, %v768_v16   ;;  %801 = vperm.xlu0 (!%p1012_p8), %1209, %v767_v17  }
 0x126   : > { %v737_v52 = vadd.f32 %v719_v49, %v263_v46  ;;  %v722_v53 = vadd.f32 %v1128_v50, %v1088_v47 }
 0x127   : > { %v1089_v54 = vpop.f32.mrb[12].mxu0  ;;  %v755_v20 = vld [vmem:[#allocation2 + $0x10] sm:$0xff] (!%p1012_p8) }
 0x128   : > { %745 = vst [vmem:[#allocation2 + $0x20] sm:$0xff] %v737_v52  ;;  %v738_v55 = vadd.f32 %v722_v53, %v264_v51  ;;  %v1129_v56 = vpop.f32.mrb[12].mxu1  ;;  %v1090_v57 = vpop.f32.mrb[13].mxu0 }
 0x129   : > { %v1091_v58 = vadd.f32 %v1090_v57, %v1089_v54  ;;  %v1130_v59 = vpop.f32.mrb[13].mxu1  ;;  %v1092_v60 = vpop.f32.mrb[14].mxu0  ;;  %v756_v22 = vld [vmem:[#allocation2 + $0x18] sm:$0xff] (!%p1012_p8) }
 0x12a   : > { %746 = vst [vmem:[#allocation2 + $0x28] sm:$0xff] %v738_v55  ;;  %v1131_v61 = vadd.f32 %v1130_v59, %v1129_v56  ;;  %v1132_v62 = vpop.f32.mrb[14].mxu1  ;;  %v1093_v63 = vpop.f32.mrb[15].mxu0 }
 0x12b   : > { %v1094_v1 = vadd.f32 %v1093_v63, %v1092_v60  ;;  %v1133_v2 = vpop.f32.mrb[15].mxu1 }
 0x12c   : > { %v727_v3 = vadd.f32 %v1131_v61, %v1091_v58  ;;  %v1134_v4 = vadd.f32 %v1133_v2, %v1132_v62  ;;  %752 = sbr.rel (%p1012_p8) target bundleno = 425 (0x1a9), region = 40 }
 0x12e   : > { %v739_v6 = vadd.f32 %v727_v3, %v265_v0  ;;  %v730_v7 = vadd.f32 %v1134_v4, %v1094_v1 }
 0x12f   : > { %v757_v31 = vld [vmem:[#allocation2 + $0x20] sm:$0xff] (!%p1012_p8) }
 0x130   : > { %747 = vst [vmem:[#allocation2 + $0x30] sm:$0xff] %v739_v6  ;;  %v740_v8 = vadd.f32 %v730_v7, %v266_v5 }
 0x131   : > { %v758_v30 = vld [vmem:[#allocation2 + $0x28] sm:$0xff] (!%p1012_p8) }
 0x132   : > { %748 = vst [vmem:[#allocation2 + $0x38] sm:$0xff] %v740_v8 }
 0x137   : > { %v759_v39 = vld [vmem:[#allocation2 + $0x30] sm:$0xff] }
 0x139   : > { %v760_v38 = vld [vmem:[#allocation2 + $0x38] sm:$0xff] }
 0x197   : > { %v782_v18 = vpop.permute.xlu1 %781  ;;  %v772_v19 = vpop.permute.xlu0 %771 }
 0x198   : > { %v811_v26 = vadd.f32 %v782_v18, %v755_v20  ;;  %v809_v27 = vadd.f32 %v772_v19, %v753_v21 }
 0x19b   : > { %v787_v24 = vpop.permute.xlu1 %786  ;;  %v777_v25 = vpop.permute.xlu0 %776 }
 0x19c   : > { %v812_v28 = vadd.f32 %v787_v24, %v756_v22  ;;  %v810_v29 = vadd.f32 %v777_v25, %v754_v23 }
 0x19e   : > { %v1040_v32 = vpack.c.bf16 %v812_v28, %v811_v26  ;;  %v1035_v33 = vpack.c.bf16 %v810_v29, %v809_v27 }
 0x19f   : > { %v797_v34 = vpop.permute.xlu1 %796  ;;  %v792_v35 = vpop.permute.xlu0 %791 }
 0x1a0   : > { %1052 = vst [vmem:[%s1309_s25 + $0x8] sm:$0xff] %v1040_v32   ;;  %1036 = vst [vmem:[%s1309_s25] sm:$0xff] %v1035_v33   ;;  %v814_v36 = vadd.f32 %v797_v34, %v758_v30  ;;  %v813_v37 = vadd.f32 %v792_v35, %v757_v31 }
 0x1a2   : > { %v1045_v40 = vpack.c.bf16 %v814_v36, %v813_v37 }
 0x1a3   : > { %v807_v41 = vpop.permute.xlu1 %806  ;;  %v802_v42 = vpop.permute.xlu0 %801 }
 0x1a4   : > { %1053 = vst [vmem:[%s1309_s25 + $0x10] sm:$0xff] %v1045_v40   ;;  %v816_v43 = vadd.f32 %v807_v41, %v760_v38  ;;  %v815_v44 = vadd.f32 %v802_v42, %v759_v39 }
 0x1a6   : > { %v1050_v45 = vpack.c.bf16 %v816_v43, %v815_v44 }
 0x1a8   : > { %1054 = vst [vmem:[%s1309_s25 + $0x18] sm:$0xff] %v1050_v45  }
 0x1a9 PF: > { %s13_s16 = sadd.s32 1, %s1249_s16   ;;  %s1419_s12 = smov %s1241_s14 }
 0x1aa   : > { %p10_p9 = scmp.ge.s32.totalorder %s13_s16, 10   ;;  %s1420_s13 = smov %s1245_s15 }
 0x1ab   : > { %s1421_s14 = smov %s1424_s17  ;;  %s1422_s15 = smov %s1428_s18 }
 0x1ac   :  { %12 = sbr.rel (!%p10_p9) target bundleno = 3 (0x3), region = 71 }

// kernel: _lambda_.66
= control target key start
LH: loop header
LB: loop body
LE: loop exit
PB: predicated region body
PF: predicated region fallthrough
CT: control target
= control target key end

     0   :  { %s1673_s12 = smov 0   ;;  %s1675_s13 = smov 0   ;;  %s1859_s0 = inlined_call_operand.vmem [shape: bf16[128,1024], index: 0, kind: input, shape index: {}]   ;;  %s1860_s1 = inlined_call_operand.vmem [shape: bf16[2,1024,128], index: 1, kind: input, shape index: {}]   ;;  %s1861_s2 = inlined_call_operand.vmem [shape: f32[128,1], index: 2, kind: input, shape index: {}]   ;;  %s1862_s3 = inlined_call_operand.vmem [shape: bf16[2,128,128], index: 3, kind: output, shape index: {}]  }
   0x1   :  { %s1677_s14 = smov 0   ;;  %s1679_s15 = smov 0  }
   0x2   :  { %s1681_s16 = smov 0  }
   0x3 LB: > { %s25_s17 = sadd.s32 1, %s1641_s14  ;;  %s32_s18 = sadd.s32 1, %s1645_s15  ;;  %s1649_s16 = sphi %s1681_s16, %s13_s16   ;;  %s1645_s15 = sphi %s1679_s15, %s1866_s15   ;;  %s1641_s14 = sphi %s1677_s14, %s1865_s14   ;;  %s1637_s13 = sphi %s1675_s13, %s1864_s13   ;;  %s1633_s12 = sphi %s1673_s12, %s1863_s12  }
   0x4   : > { %p26_p0 = scmp.ge.s32.totalorder %s25_s17, 2  ;;  %p1251_p1 = scmp.ge.s32.totalorder %s1649_s16, 1 }
   0x5   : > { %p170_p2 = scmp.lt.s32.totalorder %s1649_s16, 5 }
   0x6   : > { %s1868_s17 = smov (%p26_p0, %s25_s17), 0  ;;  %s1870_s18 = smov (!%p26_p0, %s32_s18), %s1645_s15 }
   0x7   : > { %p171_p3 = pnand %p1251_p1, %p170_p2  ;;  %p34_p4 = scmp.ge.s32.totalorder %s1870_s18, 2 }
   0x8   : > { %s1252_s19 = sshll.u32 (!%p171_p3), %s1633_s12, 6  ;;  %p205_p5 = scmp.lt.s32.totalorder (!%p171_p3), %s1637_s13, 1 }
   0x9   : > { %s1872_s18 = smov (%p34_p4, %s1870_s18), 0  ;;  %174 = sbr.rel (%p171_p3) target bundleno = 473 (0x1d9), region = 32 }
   0xa   : > { %p207_p6 = scmp.lt.s32.totalorder (!%p171_p3), %s1252_s19, 127  ;;  %p1257_p7 = scmp.ne.s32.totalorder (!%p171_p3), %s1633_s12, 0 }
  0x10   : > { %s1874_s13 = smov (!%p205_p5, %s1637_s13), 1  ;;  %s1876_s19 = smov (!%p207_p6, %s1252_s19), 127 }
  0x11   : > { %s1253_s20 = sshll.u32 %s1874_s13, 7  ;;  %s1343_s21 = sshll.u32 %s1874_s13, 6  ;;  %v1651_v0 = vmov (!%p1257_p7), 0.0  }
  0x12   : > { %s213_s22 = sadd.s32 %s1253_s20, %s1876_s19  ;;  %s1709_s25 = scalar_lea.vmem %s1862_s3, %s1343_s21  ;;  %230 = vst [vmem:[#allocation2] sm:$0xff] (!%p1257_p7), %v1651_v0  ;;  %231 = vst [vmem:[#allocation2 + $0x8] sm:$0xff] (!%p1257_p7), %v1651_v0 }
  0x13   : > { %s1254_s26 = sshll.u32 %s213_s22, 2  ;;  %229 = sbr.rel (%p1257_p7) target bundleno = 26 (0x1a), region = 36  ;;  %232 = vst [vmem:[#allocation2 + $0x10] sm:$0xff] (!%p1257_p7), %v1651_v0  ;;  %233 = vst [vmem:[#allocation2 + $0x18] sm:$0xff] (!%p1257_p7), %v1651_v0 }
  0x14   : > { %s1714_s29 = scalar_lea.vmem %s1860_s1, %s1254_s26  ;;  %234 = vst [vmem:[#allocation2 + $0x20] sm:$0xff] (!%p1257_p7), %v1651_v0  ;;  %235 = vst [vmem:[#allocation2 + $0x28] sm:$0xff] (!%p1257_p7), %v1651_v0 }
  0x15   : > { %236 = vst [vmem:[#allocation2 + $0x30] sm:$0xff] (!%p1257_p7), %v1651_v0  ;;  %237 = vst [vmem:[#allocation2 + $0x38] sm:$0xff] (!%p1257_p7), %v1651_v0 }
  0x16   : > { %238 = vst [vmem:[#allocation2 + $0x40] sm:$0xff] (!%p1257_p7), %v1651_v0  ;;  %239 = vst [vmem:[#allocation2 + $0x48] sm:$0xff] (!%p1257_p7), %v1651_v0 }
  0x17   : > { %240 = vst [vmem:[#allocation2 + $0x50] sm:$0xff] (!%p1257_p7), %v1651_v0  ;;  %241 = vst [vmem:[#allocation2 + $0x58] sm:$0xff] (!%p1257_p7), %v1651_v0 }
  0x18   : > { %242 = vst [vmem:[#allocation2 + $0x60] sm:$0xff] (!%p1257_p7), %v1651_v0  ;;  %243 = vst [vmem:[#allocation2 + $0x68] sm:$0xff] (!%p1257_p7), %v1651_v0 }
  0x19   : > { %244 = vst [vmem:[#allocation2 + $0x70] sm:$0xff] (!%p1257_p7), %v1651_v0  ;;  %245 = vst [vmem:[#allocation2 + $0x78] sm:$0xff] (!%p1257_p7), %v1651_v0 }
  0x1a PF: > { %v1577_v1 = vld [vmem:[%s1714_s29 + $0x40] sm:$0xff]   ;;  %v1581_v5 = vld [vmem:[%s1714_s29 + $0x48] sm:$0xff]   ;;  %v1585_v9 = vld [vmem:[%s1714_s29 + $0x50] sm:$0xff]   ;;  %s1258_s30 = sshll.u32 %s1633_s12, 9  ;;  %p1324_p8 = scmp.ne.s32.totalorder %s1633_s12, 1 }
  0x1b   : > { %v1578_v2 = vld [vmem:[%s1714_s29 + $0xc0] sm:$0xff]   ;;  %1407 = vmatprep.subr.bf16.mxu0 %v1577_v1  ;;  %v1582_v6 = vld [vmem:[%s1714_s29 + $0xc8] sm:$0xff]   ;;  %v1586_v10 = vld [vmem:[%s1714_s29 + $0xd0] sm:$0xff]   ;;  %s247_s4 = sshra.s32 %s1258_s30, 7 }
  0x1c   : > { %v1579_v3 = vld [vmem:[%s1714_s29] sm:$0xff]   ;;  %1471 = vmatprep.subr.bf16.mxu1 %v1578_v2  ;;  %v1583_v7 = vld [vmem:[%s1714_s29 + $0x8] sm:$0xff]   ;;  %v1587_v11 = vld [vmem:[%s1714_s29 + $0x10] sm:$0xff]   ;;  %s1259_s5 = sshll.u32 %s247_s4, 2 }
  0x1d   : > { %v1580_v4 = vld [vmem:[%s1714_s29 + $0x80] sm:$0xff]   ;;  %1408 = vmatpush3.bf16.msra.mxu0 %v1579_v3  ;;  %v1584_v8 = vld [vmem:[%s1714_s29 + $0x88] sm:$0xff]   ;;  %v1588_v12 = vld [vmem:[%s1714_s29 + $0x90] sm:$0xff]   ;;  %s1751_s8 = scalar_lea.vmem %s1859_s0, %s1259_s5 }
  0x1e   : > { %1472 = vmatpush3.bf16.msra.mxu1 %v1580_v4  ;;  %1409 = vmatprep.subr.bf16.mxu0 %v1581_v5  ;;  %v1589_v13 = vld [vmem:[%s1714_s29 + $0x58] sm:$0xff]   ;;  %v1593_v17 = vld [vmem:[%s1714_s29 + $0x60] sm:$0xff]   ;;  %v1597_v21 = vld [vmem:[%s1714_s29 + $0x68] sm:$0xff]  }
  0x1f   : > { %1473 = vmatprep.subr.bf16.mxu1 %v1582_v6  ;;  %v1590_v14 = vld [vmem:[%s1714_s29 + $0xd8] sm:$0xff]   ;;  %v1594_v18 = vld [vmem:[%s1714_s29 + $0xe0] sm:$0xff]   ;;  %v1598_v22 = vld [vmem:[%s1714_s29 + $0xe8] sm:$0xff]  }
  0x20   : > { %v1591_v15 = vld [vmem:[%s1714_s29 + $0x18] sm:$0xff]   ;;  %v1595_v19 = vld [vmem:[%s1714_s29 + $0x20] sm:$0xff]   ;;  %v1599_v23 = vld [vmem:[%s1714_s29 + $0x28] sm:$0xff]  }
  0x21   : > { %1410 = vmatpush3.bf16.msra.mxu0 %v1583_v7  ;;  %v1592_v16 = vld [vmem:[%s1714_s29 + $0x98] sm:$0xff]   ;;  %v1596_v20 = vld [vmem:[%s1714_s29 + $0xa0] sm:$0xff]   ;;  %v1600_v24 = vld [vmem:[%s1714_s29 + $0xa8] sm:$0xff]  }
  0x22   : > { %1474 = vmatpush3.bf16.msra.mxu1 %v1584_v8  ;;  %1411 = vmatprep.subr.bf16.mxu0 %v1585_v9  ;;  %v1601_v25 = vld [vmem:[%s1714_s29 + $0x70] sm:$0xff]   ;;  %v1605_v29 = vld [vmem:[%s1714_s29 + $0x78] sm:$0xff]   ;;  %v251_v33 = vld [vmem:[%s1751_s8] sm:$0xff] }
  0x23   : > { %1475 = vmatprep.subr.bf16.mxu1 %v1586_v10  ;;  %v1602_v26 = vld [vmem:[%s1714_s29 + $0xf0] sm:$0xff]   ;;  %v1606_v30 = vld [vmem:[%s1714_s29 + $0xf8] sm:$0xff]   ;;  %v253_v34 = vld [vmem:[%s1751_s8 + $0x20] sm:$0xff] }
  0x24   : > { %v1603_v27 = vld [vmem:[%s1714_s29 + $0x30] sm:$0xff]   ;;  %v1607_v31 = vld [vmem:[%s1714_s29 + $0x38] sm:$0xff]   ;;  %v252_v35 = vld [vmem:[%s1751_s8 + $0x8] sm:$0xff]  ;;  %v1260_v36 = vcombine.low %v251_v33, %v253_v34  ;;  %v1261_v37 = vcombine.high %v251_v33, %v253_v34 }
  0x25   : > { %1412 = vmatpush3.bf16.msra.mxu0 %v1587_v11  ;;  %v1604_v28 = vld [vmem:[%s1714_s29 + $0xb0] sm:$0xff]   ;;  %v1608_v32 = vld [vmem:[%s1714_s29 + $0xb8] sm:$0xff]   ;;  %v254_v38 = vld [vmem:[%s1751_s8 + $0x28] sm:$0xff] }
  0x26   : > { %1476 = vmatpush3.bf16.msra.mxu1 %v1588_v12  ;;  %1413 = vmatprep.subr.bf16.mxu0 %v1589_v13  ;;  %v255_v39 = vld [vmem:[%s1751_s8 + $0x40] sm:$0xff]  ;;  %v1262_v41 = vcombine.low %v252_v35, %v254_v38  ;;  %v1263_v42 = vcombine.high %v252_v35, %v254_v38  ;;  %v256_v44 = vld [vmem:[%s1751_s8 + $0x48] sm:$0xff] }
  0x27   : > { %1477 = vmatprep.subr.bf16.mxu1 %v1590_v14  ;;  %v257_v40 = vld [vmem:[%s1751_s8 + $0x60] sm:$0xff]  ;;  %v258_v45 = vld [vmem:[%s1751_s8 + $0x68] sm:$0xff]  ;;  %747 = vmatprep.mubr.bf16.mxu0 %v1261_v37 }
  0x28   : > { %v1265_v43 = vcombine.high %v255_v39, %v257_v40  ;;  %v1267_v46 = vcombine.high %v256_v44, %v258_v45  ;;  %844 = vmatprep.mubr.bf16.mxu1 %v1263_v42  ;;  %v259_v47 = vld [vmem:[%s1751_s8 + $0x80] sm:$0xff]  ;;  %v260_v49 = vld [vmem:[%s1751_s8 + $0x88] sm:$0xff]  ;;  %v1264_v51 = vcombine.low %v255_v39, %v257_v40  ;;  %v1266_v52 = vcombine.low %v256_v44, %v258_v45 }
  0x29   : > { %1414 = vmatpush3.bf16.msra.mxu0 %v1591_v15  ;;  %v261_v48 = vld [vmem:[%s1751_s8 + $0xa0] sm:$0xff]  ;;  %v262_v50 = vld [vmem:[%s1751_s8 + $0xa8] sm:$0xff] }
  0x2a   : > { %1478 = vmatpush3.bf16.msra.mxu1 %v1592_v16  ;;  %1415 = vmatprep.subr.bf16.mxu0 %v1593_v17  ;;  %v1269_v53 = vcombine.high %v259_v47, %v261_v48  ;;  %v1271_v54 = vcombine.high %v260_v49, %v262_v50  ;;  %v263_v55 = vld [vmem:[%s1751_s8 + $0xc0] sm:$0xff]  ;;  %v264_v57 = vld [vmem:[%s1751_s8 + $0xc8] sm:$0xff]  ;;  %v1268_v59 = vcombine.low %v259_v47, %v261_v48 }
  0x2b   : > { %1479 = vmatprep.subr.bf16.mxu1 %v1594_v18  ;;  %v265_v56 = vld [vmem:[%s1751_s8 + $0xe0] sm:$0xff]  ;;  %v266_v58 = vld [vmem:[%s1751_s8 + $0xe8] sm:$0xff]  ;;  %v1270_v60 = vcombine.low %v260_v49, %v262_v50 }
  0x2c   : > { %v1273_v61 = vcombine.high %v263_v55, %v265_v56  ;;  %v1275_v62 = vcombine.high %v264_v57, %v266_v58  ;;  %v267_v63 = vld [vmem:[%s1751_s8 + $0x100] sm:$0xff]  ;;  %v268_v1 = vld [vmem:[%s1751_s8 + $0x108] sm:$0xff]  ;;  %v1272_v3 = vcombine.low %v263_v55, %v265_v56  ;;  %v1274_v4 = vcombine.low %v264_v57, %v266_v58 }
  0x2d   : > { %1416 = vmatpush3.bf16.msra.mxu0 %v1595_v19  ;;  %v269_v0 = vld [vmem:[%s1751_s8 + $0x120] sm:$0xff]  ;;  %v270_v2 = vld [vmem:[%s1751_s8 + $0x128] sm:$0xff] }
  0x2e   : > { %1480 = vmatpush3.bf16.msra.mxu1 %v1596_v20  ;;  %1417 = vmatprep.subr.bf16.mxu0 %v1597_v21  ;;  %v1277_v5 = vcombine.high %v267_v63, %v269_v0  ;;  %v1279_v6 = vcombine.high %v268_v1, %v270_v2  ;;  %v271_v7 = vld [vmem:[%s1751_s8 + $0x140] sm:$0xff]  ;;  %v272_v9 = vld [vmem:[%s1751_s8 + $0x148] sm:$0xff]  ;;  %v1276_v11 = vcombine.low %v267_v63, %v269_v0 }
  0x2f   : > { %1481 = vmatprep.subr.bf16.mxu1 %v1598_v22  ;;  %v273_v8 = vld [vmem:[%s1751_s8 + $0x160] sm:$0xff]  ;;  %v274_v10 = vld [vmem:[%s1751_s8 + $0x168] sm:$0xff]  ;;  %v1278_v12 = vcombine.low %v268_v1, %v270_v2  ;;  %v286_v1 = vld [vmem:[#allocation2 + $0x18] sm:$0xff] }
  0x30   : > { %v1281_v13 = vcombine.high %v271_v7, %v273_v8  ;;  %v1283_v14 = vcombine.high %v272_v9, %v274_v10  ;;  %v275_v15 = vld [vmem:[%s1751_s8 + $0x180] sm:$0xff]  ;;  %v276_v17 = vld [vmem:[%s1751_s8 + $0x188] sm:$0xff]  ;;  %v1280_v19 = vcombine.low %v271_v7, %v273_v8  ;;  %v1282_v20 = vcombine.low %v272_v9, %v274_v10 }
  0x31   : > { %1418 = vmatpush3.bf16.msra.mxu0 %v1599_v23  ;;  %v277_v16 = vld [vmem:[%s1751_s8 + $0x1a0] sm:$0xff]  ;;  %v278_v18 = vld [vmem:[%s1751_s8 + $0x1a8] sm:$0xff] }
  0x32   : > { %1482 = vmatpush3.bf16.msra.mxu1 %v1600_v24  ;;  %1419 = vmatprep.subr.bf16.mxu0 %v1601_v25  ;;  %v1285_v21 = vcombine.high %v275_v15, %v277_v16  ;;  %v1287_v22 = vcombine.high %v276_v17, %v278_v18  ;;  %v279_v23 = vld [vmem:[%s1751_s8 + $0x1c0] sm:$0xff]  ;;  %v280_v25 = vld [vmem:[%s1751_s8 + $0x1c8] sm:$0xff] }
  0x33   : > { %1483 = vmatprep.subr.bf16.mxu1 %v1602_v26  ;;  %v281_v24 = vld [vmem:[%s1751_s8 + $0x1e0] sm:$0xff]  ;;  %v282_v26 = vld [vmem:[%s1751_s8 + $0x1e8] sm:$0xff] }
  0x34   : > { %v283_v42 = vld [vmem:[#allocation2] sm:$0xff]  ;;  %v284_v47 = vld [vmem:[#allocation2 + $0x8] sm:$0xff] }
  0x35   : > { %1420 = vmatpush3.bf16.msra.mxu0 %v1603_v27  ;;  %v1284_v27 = vcombine.low %v275_v15, %v277_v16 }
  0x36   : > { %1484 = vmatpush3.bf16.msra.mxu1 %v1604_v28  ;;  %1421 = vmatprep.subr.bf16.mxu0 %v1605_v29  ;;  %v1286_v28 = vcombine.low %v276_v17, %v278_v18  ;;  %v1289_v29 = vcombine.high %v279_v23, %v281_v24 }
  0x37   : > { %1485 = vmatprep.subr.bf16.mxu1 %v1606_v30  ;;  %v1291_v30 = vcombine.high %v280_v25, %v282_v26 }
  0x39   : > { %1422 = vmatpush3.bf16.msra.mxu0 %v1607_v31  ;;  %v1288_v31 = vcombine.low %v279_v23, %v281_v24 }
  0x3a   : > { %1486 = vmatpush3.bf16.msra.mxu1 %v1608_v32  ;;  %v1290_v32 = vcombine.low %v280_v25, %v282_v26 }
  0x3c   : > { %748 = vmatmul.mubr.bf16.vlgmr.msra.gmra.mrb[0].mxu0 %v1260_v36 }
  0x3d   : > { %845 = vmatmul.mubr.bf16.vlgmr.msra.gmra.mrb[0].mxu1 %v1262_v41  ;;  %755 = vmatprep.mubr.bf16.mxu0 %v1265_v43 }
  0x3e   : > { %852 = vmatprep.mubr.bf16.mxu1 %v1267_v46 }
  0x44   : > { %756 = vmatmul.mubr.bf16.gmra.mrb[4].mxu0 %v1264_v51 }
  0x45   : > { %853 = vmatmul.mubr.bf16.gmra.mrb[4].mxu1 %v1266_v52  ;;  %763 = vmatprep.mubr.bf16.mxu0 %v1269_v53 }
  0x46   : > { %860 = vmatprep.mubr.bf16.mxu1 %v1271_v54 }
  0x4c   : > { %764 = vmatmul.mubr.bf16.gmra.mrb[8].mxu0 %v1268_v59 }
  0x4d   : > { %861 = vmatmul.mubr.bf16.gmra.mrb[8].mxu1 %v1270_v60  ;;  %771 = vmatprep.mubr.bf16.mxu0 %v1273_v61  ;;  %v285_v60 = vld [vmem:[#allocation2 + $0x10] sm:$0xff] }
  0x4e   : > { %868 = vmatprep.mubr.bf16.mxu1 %v1275_v62 }
  0x54   : > { %772 = vmatmul.mubr.bf16.gmra.mrb[12].mxu0 %v1272_v3 }
  0x55   : > { %869 = vmatmul.mubr.bf16.gmra.mrb[12].mxu1 %v1274_v4  ;;  %779 = vmatprep.mubr.bf16.mxu0 %v1277_v5 }
  0x56   : > { %876 = vmatprep.mubr.bf16.mxu1 %v1279_v6 }
  0x5c   : > { %780 = vmatmul.mubr.bf16.gmra.mrb[16].mxu0 %v1276_v11 }
  0x5d   : > { %877 = vmatmul.mubr.bf16.gmra.mrb[16].mxu1 %v1278_v12  ;;  %787 = vmatprep.mubr.bf16.mxu0 %v1281_v13 }
  0x5e   : > { %884 = vmatprep.mubr.bf16.mxu1 %v1283_v14  ;;  %v287_v14 = vld [vmem:[#allocation2 + $0x20] sm:$0xff] }
  0x64   : > { %788 = vmatmul.mubr.bf16.gmra.mrb[20].mxu0 %v1280_v19  ;;  %v288_v19 = vld [vmem:[#allocation2 + $0x28] sm:$0xff] }
  0x65   : > { %885 = vmatmul.mubr.bf16.gmra.mrb[20].mxu1 %v1282_v20  ;;  %795 = vmatprep.mubr.bf16.mxu0 %v1285_v21 }
  0x66   : > { %892 = vmatprep.mubr.bf16.mxu1 %v1287_v22 }
  0x6c   : > { %796 = vmatmul.mubr.bf16.gmra.mrb[24].mxu0 %v1284_v27 }
  0x6d   : > { %893 = vmatmul.mubr.bf16.gmra.mrb[24].mxu1 %v1286_v28  ;;  %803 = vmatprep.mubr.bf16.mxu0 %v1289_v29 }
  0x6e   : > { %900 = vmatprep.mubr.bf16.mxu1 %v1291_v30 }
  0x74   : > { %804 = vmatmul.mubr.bf16.gmra.mrb[28].mxu0 %v1288_v31 }
  0x75   : > { %901 = vmatmul.mubr.bf16.gmra.mrb[28].mxu1 %v1290_v32  ;;  %v289_v32 = vld [vmem:[#allocation2 + $0x30] sm:$0xff] }
 0x10f   : > { %v1423_v33 = vpop.f32.mrb[0].mxu0 }
 0x110   : > { %v1487_v34 = vpop.f32.mrb[0].mxu1  ;;  %v1424_v35 = vpop.f32.mrb[1].mxu0 }
 0x111   : > { %v1425_v36 = vadd.f32 %v1424_v35, %v1423_v33  ;;  %v1488_v37 = vpop.f32.mrb[1].mxu1  ;;  %v1426_v38 = vpop.f32.mrb[2].mxu0 }
 0x112   : > { %v1489_v39 = vadd.f32 %v1488_v37, %v1487_v34  ;;  %v1490_v40 = vpop.f32.mrb[2].mxu1  ;;  %v1427_v41 = vpop.f32.mrb[3].mxu0  ;;  %v290_v37 = vld [vmem:[#allocation2 + $0x38] sm:$0xff] }
 0x113   : > { %v1428_v43 = vadd.f32 %v1427_v41, %v1426_v38  ;;  %v1491_v44 = vpop.f32.mrb[3].mxu1 }
 0x114   : > { %v847_v45 = vadd.f32 %v1489_v39, %v1425_v36  ;;  %v1492_v46 = vadd.f32 %v1491_v44, %v1490_v40 }
 0x116   : > { %v909_v48 = vadd.f32 %v847_v45, %v283_v42  ;;  %v850_v49 = vadd.f32 %v1492_v46, %v1428_v43 }
 0x117   : > { %v1429_v50 = vpop.f32.mrb[4].mxu0 }
 0x118   : > { %925 = vst [vmem:[#allocation2] sm:$0xff] %v909_v48  ;;  %v910_v51 = vadd.f32 %v850_v49, %v284_v47  ;;  %v1493_v52 = vpop.f32.mrb[4].mxu1  ;;  %v1430_v53 = vpop.f32.mrb[5].mxu0 }
 0x119   : > { %v1431_v54 = vadd.f32 %v1430_v53, %v1429_v50  ;;  %v1494_v55 = vpop.f32.mrb[5].mxu1  ;;  %v1432_v56 = vpop.f32.mrb[6].mxu0  ;;  %v291_v50 = vld [vmem:[#allocation2 + $0x40] sm:$0xff] }
 0x11a   : > { %926 = vst [vmem:[#allocation2 + $0x8] sm:$0xff] %v910_v51  ;;  %v1495_v57 = vadd.f32 %v1494_v55, %v1493_v52  ;;  %v1496_v58 = vpop.f32.mrb[6].mxu1  ;;  %v1433_v59 = vpop.f32.mrb[7].mxu0  ;;  %v292_v55 = vld [vmem:[#allocation2 + $0x48] sm:$0xff] }
 0x11b   : > { %v1434_v61 = vadd.f32 %v1433_v59, %v1432_v56  ;;  %v1497_v62 = vpop.f32.mrb[7].mxu1 }
 0x11c   : > { %v855_v63 = vadd.f32 %v1495_v57, %v1431_v54  ;;  %v1498_v0 = vadd.f32 %v1497_v62, %v1496_v58 }
 0x11e   : > { %v911_v2 = vadd.f32 %v855_v63, %v285_v60  ;;  %v858_v3 = vadd.f32 %v1498_v0, %v1434_v61 }
 0x11f   : > { %v1435_v4 = vpop.f32.mrb[8].mxu0 }
 0x120   : > { %927 = vst [vmem:[#allocation2 + $0x10] sm:$0xff] %v911_v2  ;;  %v912_v5 = vadd.f32 %v858_v3, %v286_v1  ;;  %v1499_v6 = vpop.f32.mrb[8].mxu1  ;;  %v1436_v7 = vpop.f32.mrb[9].mxu0 }
 0x121   : > { %v1437_v8 = vadd.f32 %v1436_v7, %v1435_v4  ;;  %v1500_v9 = vpop.f32.mrb[9].mxu1  ;;  %v1438_v10 = vpop.f32.mrb[10].mxu0  ;;  %v293_v4 = vld [vmem:[#allocation2 + $0x50] sm:$0xff] }
 0x122   : > { %928 = vst [vmem:[#allocation2 + $0x18] sm:$0xff] %v912_v5  ;;  %v1501_v11 = vadd.f32 %v1500_v9, %v1499_v6  ;;  %v1502_v12 = vpop.f32.mrb[10].mxu1  ;;  %v1439_v13 = vpop.f32.mrb[11].mxu0  ;;  %v294_v9 = vld [vmem:[#allocation2 + $0x58] sm:$0xff] }
 0x123   : > { %v1440_v15 = vadd.f32 %v1439_v13, %v1438_v10  ;;  %v1503_v16 = vpop.f32.mrb[11].mxu1 }
 0x124   : > { %v863_v17 = vadd.f32 %v1501_v11, %v1437_v8  ;;  %v1504_v18 = vadd.f32 %v1503_v16, %v1502_v12 }
 0x126   : > { %v913_v20 = vadd.f32 %v863_v17, %v287_v14  ;;  %v866_v21 = vadd.f32 %v1504_v18, %v1440_v15 }
 0x127   : > { %v1441_v22 = vpop.f32.mrb[12].mxu0 }
 0x128   : > { %929 = vst [vmem:[#allocation2 + $0x20] sm:$0xff] %v913_v20  ;;  %v914_v23 = vadd.f32 %v866_v21, %v288_v19  ;;  %v1505_v24 = vpop.f32.mrb[12].mxu1  ;;  %v1442_v25 = vpop.f32.mrb[13].mxu0 }
 0x129   : > { %v1443_v26 = vadd.f32 %v1442_v25, %v1441_v22  ;;  %v1506_v27 = vpop.f32.mrb[13].mxu1  ;;  %v1444_v28 = vpop.f32.mrb[14].mxu0  ;;  %v295_v22 = vld [vmem:[#allocation2 + $0x60] sm:$0xff] }
 0x12a   : > { %930 = vst [vmem:[#allocation2 + $0x28] sm:$0xff] %v914_v23  ;;  %v1507_v29 = vadd.f32 %v1506_v27, %v1505_v24  ;;  %v1508_v30 = vpop.f32.mrb[14].mxu1  ;;  %v1445_v31 = vpop.f32.mrb[15].mxu0  ;;  %v296_v27 = vld [vmem:[#allocation2 + $0x68] sm:$0xff] }
 0x12b   : > { %v1446_v33 = vadd.f32 %v1445_v31, %v1444_v28  ;;  %v1509_v34 = vpop.f32.mrb[15].mxu1 }
 0x12c   : > { %v871_v35 = vadd.f32 %v1507_v29, %v1443_v26  ;;  %v1510_v36 = vadd.f32 %v1509_v34, %v1508_v30 }
 0x12e   : > { %v915_v38 = vadd.f32 %v871_v35, %v289_v32  ;;  %v874_v39 = vadd.f32 %v1510_v36, %v1446_v33 }
 0x12f   : > { %v1447_v40 = vpop.f32.mrb[16].mxu0 }
 0x130   : > { %931 = vst [vmem:[#allocation2 + $0x30] sm:$0xff] %v915_v38  ;;  %v916_v41 = vadd.f32 %v874_v39, %v290_v37  ;;  %v1511_v42 = vpop.f32.mrb[16].mxu1  ;;  %v1448_v43 = vpop.f32.mrb[17].mxu0 }
 0x131   : > { %v1449_v44 = vadd.f32 %v1448_v43, %v1447_v40  ;;  %v1512_v45 = vpop.f32.mrb[17].mxu1  ;;  %v1450_v46 = vpop.f32.mrb[18].mxu0  ;;  %v297_v40 = vld [vmem:[#allocation2 + $0x70] sm:$0xff] }
 0x132   : > { %932 = vst [vmem:[#allocation2 + $0x38] sm:$0xff] %v916_v41  ;;  %v1513_v47 = vadd.f32 %v1512_v45, %v1511_v42  ;;  %v1514_v48 = vpop.f32.mrb[18].mxu1  ;;  %v1451_v49 = vpop.f32.mrb[19].mxu0  ;;  %v298_v45 = vld [vmem:[#allocation2 + $0x78] sm:$0xff] }
 0x133   : > { %v1452_v51 = vadd.f32 %v1451_v49, %v1450_v46  ;;  %v1515_v52 = vpop.f32.mrb[19].mxu1  ;;  %v963_v49 = vld [vmem:[%s1861_s2 + $0x10] sm:$0xff] (!%p1324_p8) }
 0x134   : > { %v879_v53 = vadd.f32 %v1513_v47, %v1449_v44  ;;  %v1516_v54 = vadd.f32 %v1515_v52, %v1514_v48  ;;  %v964_v52 = vld [vmem:[%s1861_s2 + $0x18] sm:$0xff] (!%p1324_p8) }
 0x136   : > { %v917_v56 = vadd.f32 %v879_v53, %v291_v50  ;;  %v882_v57 = vadd.f32 %v1516_v54, %v1452_v51  ;;  %v961_v50 = vld [vmem:[%s1861_s2] sm:$0xff] (!%p1324_p8)  ;;  %v1652_v51 = vmov (!%p1324_p8), 0   ;;  %v962_v53 = vld [vmem:[%s1861_s2 + $0x8] sm:$0xff] (!%p1324_p8) }
 0x137   : > { %v1453_v58 = vpop.f32.mrb[20].mxu0  ;;  %1610 = vset.pattern.permute.xlu1 (!%p1324_p8), %v1652_v51  ;;  %1609 = vset.pattern.permute.xlu0 (!%p1324_p8), %v1652_v51  ;;  %v966_v54 = vld [vmem:[%s1861_s2 + $0x28] sm:$0xff] (!%p1324_p8) }
 0x138   : > { %933 = vst [vmem:[#allocation2 + $0x40] sm:$0xff] %v917_v56  ;;  %v918_v59 = vadd.f32 %v882_v57, %v292_v55  ;;  %v1517_v60 = vpop.f32.mrb[20].mxu1  ;;  %v1454_v61 = vpop.f32.mrb[21].mxu0  ;;  %989 = vperm.xlu1 (!%p1324_p8), %1610, %v963_v49   ;;  %979 = vperm.xlu0 (!%p1324_p8), %1609, %v961_v50   ;;  %v965_v55 = vld [vmem:[%s1861_s2 + $0x20] sm:$0xff] (!%p1324_p8)  ;;  %v968_v56 = vld [vmem:[%s1861_s2 + $0x38] sm:$0xff] (!%p1324_p8)  ;;  %v967_v57 = vld [vmem:[%s1861_s2 + $0x30] sm:$0xff] (!%p1324_p8) }
 0x139   : > { %v1455_v62 = vadd.f32 %v1454_v61, %v1453_v58  ;;  %v1518_v63 = vpop.f32.mrb[21].mxu1  ;;  %v1456_v0 = vpop.f32.mrb[22].mxu0  ;;  %v970_v58 = vld [vmem:[%s1861_s2 + $0x48] sm:$0xff] (!%p1324_p8)  ;;  %v971_v61 = vld [vmem:[%s1861_s2 + $0x50] sm:$0xff] (!%p1324_p8) }
 0x13a   : > { %934 = vst [vmem:[#allocation2 + $0x48] sm:$0xff] %v918_v59  ;;  %v1519_v1 = vadd.f32 %v1518_v63, %v1517_v60  ;;  %v1520_v2 = vpop.f32.mrb[22].mxu1  ;;  %v1457_v3 = vpop.f32.mrb[23].mxu0  ;;  %v969_v59 = vld [vmem:[%s1861_s2 + $0x40] sm:$0xff] (!%p1324_p8)  ;;  %v972_v60 = vld [vmem:[%s1861_s2 + $0x58] sm:$0xff] (!%p1324_p8) }
 0x13b   : > { %v1458_v5 = vadd.f32 %v1457_v3, %v1456_v0  ;;  %v1521_v6 = vpop.f32.mrb[23].mxu1  ;;  %v973_v63 = vld [vmem:[%s1861_s2 + $0x60] sm:$0xff] (!%p1324_p8)  ;;  %v976_v0 = vld [vmem:[%s1861_s2 + $0x78] sm:$0xff] (!%p1324_p8) }
 0x13c   : > { %v887_v7 = vadd.f32 %v1519_v1, %v1455_v62  ;;  %v1522_v8 = vadd.f32 %v1521_v6, %v1520_v2  ;;  %994 = vperm.xlu1 (!%p1324_p8), %1610, %v964_v52   ;;  %984 = vperm.xlu0 (!%p1324_p8), %1609, %v962_v53   ;;  %v974_v62 = vld [vmem:[%s1861_s2 + $0x68] sm:$0xff] (!%p1324_p8)  ;;  %v975_v1 = vld [vmem:[%s1861_s2 + $0x70] sm:$0xff] (!%p1324_p8)  ;;  %v948_v6 = vld [vmem:[#allocation2 + $0x18] sm:$0xff] (!%p1324_p8) }
 0x13e   : > { %v919_v10 = vadd.f32 %v887_v7, %v293_v4  ;;  %v890_v11 = vadd.f32 %v1522_v8, %v1458_v5  ;;  %v947_v4 = vld [vmem:[#allocation2 + $0x10] sm:$0xff] (!%p1324_p8)  ;;  %v945_v5 = vld [vmem:[#allocation2] sm:$0xff] (!%p1324_p8)  ;;  %v946_v7 = vld [vmem:[#allocation2 + $0x8] sm:$0xff] (!%p1324_p8) }
 0x13f   : > { %v1459_v12 = vpop.f32.mrb[24].mxu0 }
 0x140   : > { %935 = vst [vmem:[#allocation2 + $0x50] sm:$0xff] %v919_v10  ;;  %v920_v13 = vadd.f32 %v890_v11, %v294_v9  ;;  %v1523_v14 = vpop.f32.mrb[24].mxu1  ;;  %v1460_v15 = vpop.f32.mrb[25].mxu0  ;;  %1004 = vperm.xlu1 (!%p1324_p8), %1610, %v966_v54   ;;  %999 = vperm.xlu0 (!%p1324_p8), %1609, %v965_v55  }
 0x141   : > { %v1461_v16 = vadd.f32 %v1460_v15, %v1459_v12  ;;  %v1524_v17 = vpop.f32.mrb[25].mxu1  ;;  %v1462_v18 = vpop.f32.mrb[26].mxu0  ;;  %v949_v15 = vld [vmem:[#allocation2 + $0x20] sm:$0xff] (!%p1324_p8) }
 0x142   : > { %936 = vst [vmem:[#allocation2 + $0x58] sm:$0xff] %v920_v13  ;;  %v1525_v19 = vadd.f32 %v1524_v17, %v1523_v14  ;;  %v1526_v20 = vpop.f32.mrb[26].mxu1  ;;  %v1463_v21 = vpop.f32.mrb[27].mxu0  ;;  %v950_v14 = vld [vmem:[#allocation2 + $0x28] sm:$0xff] (!%p1324_p8) }
 0x143   : > { %v1464_v23 = vadd.f32 %v1463_v21, %v1462_v18  ;;  %v1527_v24 = vpop.f32.mrb[27].mxu1 }
 0x144   : > { %v895_v25 = vadd.f32 %v1525_v19, %v1461_v16  ;;  %v1528_v26 = vadd.f32 %v1527_v24, %v1526_v20  ;;  %1014 = vperm.xlu1 (!%p1324_p8), %1610, %v968_v56   ;;  %1009 = vperm.xlu0 (!%p1324_p8), %1609, %v967_v57  }
 0x146   : > { %v921_v28 = vadd.f32 %v895_v25, %v295_v22  ;;  %v898_v29 = vadd.f32 %v1528_v26, %v1464_v23  ;;  %v952_v22 = vld [vmem:[#allocation2 + $0x38] sm:$0xff] (!%p1324_p8)  ;;  %v951_v23 = vld [vmem:[#allocation2 + $0x30] sm:$0xff] (!%p1324_p8) }
 0x147   : > { %v1465_v30 = vpop.f32.mrb[28].mxu0 }
 0x148   : > { %937 = vst [vmem:[#allocation2 + $0x60] sm:$0xff] %v921_v28  ;;  %v922_v31 = vadd.f32 %v898_v29, %v296_v27  ;;  %v1529_v32 = vpop.f32.mrb[28].mxu1  ;;  %v1466_v33 = vpop.f32.mrb[29].mxu0  ;;  %1024 = vperm.xlu1 (!%p1324_p8), %1610, %v970_v58   ;;  %1019 = vperm.xlu0 (!%p1324_p8), %1609, %v969_v59   ;;  %v954_v29 = vld [vmem:[#allocation2 + $0x48] sm:$0xff] (!%p1324_p8) }
 0x149   : > { %v1467_v34 = vadd.f32 %v1466_v33, %v1465_v30  ;;  %v1530_v35 = vpop.f32.mrb[29].mxu1  ;;  %v1468_v36 = vpop.f32.mrb[30].mxu0  ;;  %v953_v30 = vld [vmem:[#allocation2 + $0x40] sm:$0xff] (!%p1324_p8) }
 0x14a   : > { %938 = vst [vmem:[#allocation2 + $0x68] sm:$0xff] %v922_v31  ;;  %v1531_v37 = vadd.f32 %v1530_v35, %v1529_v32  ;;  %v1532_v38 = vpop.f32.mrb[30].mxu1  ;;  %v1469_v39 = vpop.f32.mrb[31].mxu0 }
 0x14b   : > { %v1470_v41 = vadd.f32 %v1469_v39, %v1468_v36  ;;  %v1533_v42 = vpop.f32.mrb[31].mxu1  ;;  %v956_v36 = vld [vmem:[#allocation2 + $0x58] sm:$0xff] (!%p1324_p8) }
 0x14c   : > { %v903_v43 = vadd.f32 %v1531_v37, %v1467_v34  ;;  %v1534_v44 = vadd.f32 %v1533_v42, %v1532_v38  ;;  %944 = sbr.rel (%p1324_p8) target bundleno = 473 (0x1d9), region = 40  ;;  %1034 = vperm.xlu1 (!%p1324_p8), %1610, %v972_v60   ;;  %1029 = vperm.xlu0 (!%p1324_p8), %1609, %v971_v61   ;;  %v955_v37 = vld [vmem:[#allocation2 + $0x50] sm:$0xff] (!%p1324_p8) }
 0x14e   : > { %v923_v46 = vadd.f32 %v903_v43, %v297_v40  ;;  %v906_v47 = vadd.f32 %v1534_v44, %v1470_v41 }
 0x14f   : > { %v957_v44 = vld [vmem:[#allocation2 + $0x60] sm:$0xff] (!%p1324_p8) }
 0x150   : > { %939 = vst [vmem:[#allocation2 + $0x70] sm:$0xff] %v923_v46  ;;  %v924_v48 = vadd.f32 %v906_v47, %v298_v45  ;;  %1044 = vperm.xlu1 (!%p1324_p8), %1610, %v974_v62   ;;  %1039 = vperm.xlu0 (!%p1324_p8), %1609, %v973_v63  }
 0x151   : > { %v958_v43 = vld [vmem:[#allocation2 + $0x68] sm:$0xff] (!%p1324_p8) }
 0x152   : > { %940 = vst [vmem:[#allocation2 + $0x78] sm:$0xff] %v924_v48 }
 0x154   : > { %1054 = vperm.xlu1 %1610, %v976_v0   ;;  %1049 = vperm.xlu0 %1609, %v975_v1  }
 0x157   : > { %v959_v51 = vld [vmem:[#allocation2 + $0x70] sm:$0xff] }
 0x159   : > { %v960_v50 = vld [vmem:[#allocation2 + $0x78] sm:$0xff] }
 0x1b7   : > { %v990_v2 = vpop.permute.xlu1 %989  ;;  %v980_v3 = vpop.permute.xlu0 %979 }
 0x1b8   : > { %v1059_v10 = vadd.f32 %v990_v2, %v947_v4  ;;  %v1057_v11 = vadd.f32 %v980_v3, %v945_v5 }
 0x1bb   : > { %v995_v8 = vpop.permute.xlu1 %994  ;;  %v985_v9 = vpop.permute.xlu0 %984 }
 0x1bc   : > { %v1060_v12 = vadd.f32 %v995_v8, %v948_v6  ;;  %v1058_v13 = vadd.f32 %v985_v9, %v946_v7 }
 0x1be   : > { %v1368_v16 = vpack.c.bf16 %v1060_v12, %v1059_v10  ;;  %v1363_v17 = vpack.c.bf16 %v1058_v13, %v1057_v11 }
 0x1bf   : > { %v1005_v18 = vpop.permute.xlu1 %1004  ;;  %v1000_v19 = vpop.permute.xlu0 %999 }
 0x1c0   : > { %1400 = vst [vmem:[%s1709_s25 + $0x8] sm:$0xff] %v1368_v16   ;;  %1364 = vst [vmem:[%s1709_s25] sm:$0xff] %v1363_v17   ;;  %v1062_v20 = vadd.f32 %v1005_v18, %v950_v14  ;;  %v1061_v21 = vadd.f32 %v1000_v19, %v949_v15 }
 0x1c2   : > { %v1373_v24 = vpack.c.bf16 %v1062_v20, %v1061_v21 }
 0x1c3   : > { %v1015_v25 = vpop.permute.xlu1 %1014  ;;  %v1010_v26 = vpop.permute.xlu0 %1009 }
 0x1c4   : > { %1401 = vst [vmem:[%s1709_s25 + $0x10] sm:$0xff] %v1373_v24   ;;  %v1064_v27 = vadd.f32 %v1015_v25, %v952_v22  ;;  %v1063_v28 = vadd.f32 %v1010_v26, %v951_v23 }
 0x1c6   : > { %v1378_v31 = vpack.c.bf16 %v1064_v27, %v1063_v28 }
 0x1c7   : > { %v1025_v32 = vpop.permute.xlu1 %1024  ;;  %v1020_v33 = vpop.permute.xlu0 %1019 }
 0x1c8   : > { %1402 = vst [vmem:[%s1709_s25 + $0x18] sm:$0xff] %v1378_v31   ;;  %v1066_v34 = vadd.f32 %v1025_v32, %v954_v29  ;;  %v1065_v35 = vadd.f32 %v1020_v33, %v953_v30 }
 0x1ca   : > { %v1383_v38 = vpack.c.bf16 %v1066_v34, %v1065_v35 }
 0x1cb   : > { %v1035_v39 = vpop.permute.xlu1 %1034  ;;  %v1030_v40 = vpop.permute.xlu0 %1029 }
 0x1cc   : > { %1403 = vst [vmem:[%s1709_s25 + $0x20] sm:$0xff] %v1383_v38   ;;  %v1068_v41 = vadd.f32 %v1035_v39, %v956_v36  ;;  %v1067_v42 = vadd.f32 %v1030_v40, %v955_v37 }
 0x1ce   : > { %v1388_v45 = vpack.c.bf16 %v1068_v41, %v1067_v42 }
 0x1cf   : > { %v1045_v46 = vpop.permute.xlu1 %1044  ;;  %v1040_v47 = vpop.permute.xlu0 %1039 }
 0x1d0   : > { %1404 = vst [vmem:[%s1709_s25 + $0x28] sm:$0xff] %v1388_v45   ;;  %v1070_v48 = vadd.f32 %v1045_v46, %v958_v43  ;;  %v1069_v49 = vadd.f32 %v1040_v47, %v957_v44 }
 0x1d2   : > { %v1393_v52 = vpack.c.bf16 %v1070_v48, %v1069_v49 }
 0x1d3   : > { %v1055_v53 = vpop.permute.xlu1 %1054  ;;  %v1050_v54 = vpop.permute.xlu0 %1049 }
 0x1d4   : > { %1405 = vst [vmem:[%s1709_s25 + $0x30] sm:$0xff] %v1393_v52   ;;  %v1072_v55 = vadd.f32 %v1055_v53, %v960_v50  ;;  %v1071_v56 = vadd.f32 %v1050_v54, %v959_v51 }
 0x1d6   : > { %v1398_v57 = vpack.c.bf16 %v1072_v55, %v1071_v56 }
 0x1d8   : > { %1406 = vst [vmem:[%s1709_s25 + $0x38] sm:$0xff] %v1398_v57  }
 0x1d9 PF: > { %s13_s16 = sadd.s32 1, %s1649_s16   ;;  %s1863_s12 = smov %s1641_s14 }
 0x1da   : > { %p10_p9 = scmp.ge.s32.totalorder %s13_s16, 6   ;;  %s1864_s13 = smov %s1645_s15 }
 0x1db   : > { %s1865_s14 = smov %s1868_s17  ;;  %s1866_s15 = smov %s1872_s18 }
 0x1dc   :  { %12 = sbr.rel (!%p10_p9) target bundleno = 3 (0x3), region = 71 }

// kernel: _lambda_.70
= control target key start
LH: loop header
LB: loop body
LE: loop exit
PB: predicated region body
PF: predicated region fallthrough
CT: control target
= control target key end

     0   :  { %s931_s12 = smov 0   ;;  %s933_s13 = smov 0   ;;  %s1034_s0 = inlined_call_operand.vmem [shape: bf16[64,256], index: 0, kind: input, shape index: {}]   ;;  %s1035_s1 = inlined_call_operand.vmem [shape: bf16[2,256,128], index: 1, kind: input, shape index: {}]   ;;  %s1036_s2 = inlined_call_operand.vmem [shape: f32[64,1], index: 2, kind: input, shape index: {}]   ;;  %s1037_s3 = inlined_call_operand.vmem [shape: bf16[2,64,128], index: 3, kind: output, shape index: {}]  }
   0x1   :  { %s935_s14 = smov 0  }
   0x2 LB: > { %s32_s15 = sadd.s32 1, %s904_s13  ;;  %p703_p0 = scmp.ge.s32.totalorder %s908_s14, 1  ;;  %s908_s14 = sphi %s935_s14, %s13_s14   ;;  %s904_s13 = sphi %s933_s13, %s1039_s13   ;;  %s900_s12 = sphi %s931_s12, %s1038_s12  }
   0x3   : > { %p34_p1 = scmp.ge.s32.totalorder %s32_s15, 2  ;;  %p170_p2 = scmp.lt.s32.totalorder %s908_s14, 3 }
   0x5   : > { %s1041_s15 = smov (%p34_p1, %s32_s15), 0  ;;  %p171_p3 = pnand %p703_p0, %p170_p2 }
   0x6   : > { %p205_p4 = scmp.lt.s32.totalorder (!%p171_p3), %s900_s12, 1  ;;  %v876_v0 = vld [vmem:[%s1034_s0 + $0x4] ss:$8 sps:$4 sm:$0xff] (!%p171_p3)   ;;  %v910_v1 = vmov (!%p171_p3), 0   ;;  %v516_v3 = vld [vmem:[%s1036_s2 + $0x10] sm:$0xff] (!%p171_p3)  ;;  %v517_v16 = vld [vmem:[%s1036_s2 + $0x18] sm:$0xff] (!%p171_p3) }
   0x7   : > { %174 = sbr.rel (%p171_p3) target bundleno = 280 (0x118), region = 32  ;;  %857 = vset.pattern.permute.xlu1 (!%p171_p3), %v910_v1  ;;  %856 = vset.pattern.permute.xlu0 (!%p171_p3), %v910_v1  ;;  %v879_v2 = vld [vmem:[%s1034_s0 + $0x24] ss:$8 sps:$4 sm:$0xff] (!%p171_p3)   ;;  %v521_v22 = vld [vmem:[%s1036_s2 + $0x38] sm:$0xff] (!%p171_p3)  ;;  %v520_v23 = vld [vmem:[%s1036_s2 + $0x30] sm:$0xff] (!%p171_p3) }
   0x8   : > { %454 = vmatprep.mubr.bf16.mxu0 (!%p171_p3), %v876_v0  ;;  %470 = vmatprep.mubr.bf16.mxu1 (!%p171_p3), %v879_v2  ;;  %v514_v4 = vld [vmem:[%s1036_s2] sm:$0xff] (!%p171_p3)  ;;  %v515_v17 = vld [vmem:[%s1036_s2 + $0x8] sm:$0xff] (!%p171_p3)  ;;  %v880_v29 = vld [vmem:[%s1034_s0 + $0x14] ss:$8 sps:$4 sm:$0xff] (!%p171_p3)  }
   0x9   : > { %534 = vperm.xlu1 (!%p171_p3), %857, %v516_v3   ;;  %524 = vperm.xlu0 (!%p171_p3), %856, %v514_v4   ;;  %v519_v18 = vld [vmem:[%s1036_s2 + $0x28] sm:$0xff] (!%p171_p3)  ;;  %v518_v19 = vld [vmem:[%s1036_s2 + $0x20] sm:$0xff] (!%p171_p3)  ;;  %v882_v30 = vld [vmem:[%s1034_s0 + $0x34] ss:$8 sps:$4 sm:$0xff] (!%p171_p3)  }
   0xa   : > { %v874_v27 = vld [vmem:[%s1034_s0] ss:$8 sps:$4 sm:$0xff] (!%p171_p3)   ;;  %v884_v31 = vld [vmem:[%s1034_s0 + $0x10] ss:$8 sps:$4 sm:$0xff] (!%p171_p3)  }
   0xb   : > { %v877_v28 = vld [vmem:[%s1034_s0 + $0x20] ss:$8 sps:$4 sm:$0xff] (!%p171_p3)   ;;  %v885_v32 = vld [vmem:[%s1034_s0 + $0x30] ss:$8 sps:$4 sm:$0xff] (!%p171_p3)  }
   0xd   : > { %539 = vperm.xlu1 (!%p171_p3), %857, %v517_v16   ;;  %529 = vperm.xlu0 (!%p171_p3), %856, %v515_v17  }
   0xe   : > { %s1043_s12 = smov (!%p205_p4, %s900_s12), 1 }
   0xf   : > { %s742_s20 = sshll.u32 %s1043_s12, 7  ;;  %s743_s29 = sshll.u32 %s1043_s12, 5 }
  0x10   : > { %s961_s23 = scalar_lea.vmem %s1035_s1, %s742_s20  ;;  %s224_s5 = scalar_lea.vmem %s1037_s3, %s743_s29 }
  0x11   : > { %v858_v5 = vld [vmem:[%s961_s23 + $0x40] sm:$0xff]   ;;  %v860_v7 = vld [vmem:[%s961_s23 + $0x48] sm:$0xff]   ;;  %v862_v9 = vld [vmem:[%s961_s23 + $0x50] sm:$0xff]   ;;  %549 = vperm.xlu1 %857, %v519_v18   ;;  %544 = vperm.xlu0 %856, %v518_v19  }
  0x12   : > { %v859_v6 = vld [vmem:[%s961_s23] sm:$0xff]   ;;  %775 = vmatprep.subr.bf16.mxu0 %v858_v5  ;;  %815 = vmatprep.subr.bf16.mxu1 %v858_v5  ;;  %v861_v8 = vld [vmem:[%s961_s23 + $0x8] sm:$0xff]   ;;  %v863_v10 = vld [vmem:[%s961_s23 + $0x10] sm:$0xff]  }
  0x13   : > { %776 = vmatpush3.bf16.msra.mxu0 %v859_v6  ;;  %823 = vmatpush3.bf16.msra.mxu1 %v859_v6  ;;  %v864_v11 = vld [vmem:[%s961_s23 + $0x58] sm:$0xff]   ;;  %v866_v13 = vld [vmem:[%s961_s23 + $0x60] sm:$0xff]   ;;  %v868_v15 = vld [vmem:[%s961_s23 + $0x68] sm:$0xff]  }
  0x14   : > { %777 = vmatprep.subr.bf16.mxu0 %v860_v7  ;;  %816 = vmatprep.subr.bf16.mxu1 %v860_v7  ;;  %v865_v12 = vld [vmem:[%s961_s23 + $0x18] sm:$0xff]   ;;  %v867_v14 = vld [vmem:[%s961_s23 + $0x20] sm:$0xff]   ;;  %v869_v20 = vld [vmem:[%s961_s23 + $0x28] sm:$0xff]  }
  0x15   : > { %v870_v21 = vld [vmem:[%s961_s23 + $0x70] sm:$0xff]   ;;  %v872_v25 = vld [vmem:[%s961_s23 + $0x78] sm:$0xff]   ;;  %559 = vperm.xlu1 %857, %v521_v22   ;;  %554 = vperm.xlu0 %856, %v520_v23  }
  0x16   : > { %v871_v24 = vld [vmem:[%s961_s23 + $0x30] sm:$0xff]   ;;  %v873_v26 = vld [vmem:[%s961_s23 + $0x38] sm:$0xff]  }
  0x17   : > { %778 = vmatpush3.bf16.msra.mxu0 %v861_v8  ;;  %824 = vmatpush3.bf16.msra.mxu1 %v861_v8 }
  0x18   : > { %779 = vmatprep.subr.bf16.mxu0 %v862_v9  ;;  %817 = vmatprep.subr.bf16.mxu1 %v862_v9 }
  0x1b   : > { %780 = vmatpush3.bf16.msra.mxu0 %v863_v10  ;;  %825 = vmatpush3.bf16.msra.mxu1 %v863_v10 }
  0x1c   : > { %781 = vmatprep.subr.bf16.mxu0 %v864_v11  ;;  %818 = vmatprep.subr.bf16.mxu1 %v864_v11 }
  0x1f   : > { %782 = vmatpush3.bf16.msra.mxu0 %v865_v12  ;;  %826 = vmatpush3.bf16.msra.mxu1 %v865_v12 }
  0x20   : > { %783 = vmatprep.subr.bf16.mxu0 %v866_v13  ;;  %819 = vmatprep.subr.bf16.mxu1 %v866_v13 }
  0x23   : > { %784 = vmatpush3.bf16.msra.mxu0 %v867_v14  ;;  %827 = vmatpush3.bf16.msra.mxu1 %v867_v14 }
  0x24   : > { %785 = vmatprep.subr.bf16.mxu0 %v868_v15  ;;  %820 = vmatprep.subr.bf16.mxu1 %v868_v15 }
  0x27   : > { %786 = vmatpush3.bf16.msra.mxu0 %v869_v20  ;;  %828 = vmatpush3.bf16.msra.mxu1 %v869_v20 }
  0x28   : > { %787 = vmatprep.subr.bf16.mxu0 %v870_v21  ;;  %821 = vmatprep.subr.bf16.mxu1 %v870_v21 }
  0x2b   : > { %788 = vmatpush3.bf16.msra.mxu0 %v871_v24  ;;  %829 = vmatpush3.bf16.msra.mxu1 %v871_v24 }
  0x2c   : > { %789 = vmatprep.subr.bf16.mxu0 %v872_v25  ;;  %822 = vmatprep.subr.bf16.mxu1 %v872_v25 }
  0x2f   : > { %790 = vmatpush3.bf16.msra.mxu0 %v873_v26  ;;  %830 = vmatpush3.bf16.msra.mxu1 %v873_v26 }
  0x32   : > { %455 = vmatmul.mubr.bf16.vlgmr.msra.gmra.mrb[0].mxu0 %v874_v27  ;;  %471 = vmatmul.mubr.bf16.vlgmr.msra.gmra.mrb[0].mxu1 %v877_v28 }
  0x33   : > { %462 = vmatprep.mubr.bf16.mxu0 %v880_v29  ;;  %478 = vmatprep.mubr.bf16.mxu1 %v882_v30 }
  0x3a   : > { %463 = vmatmul.mubr.bf16.gmra.mrb[4].mxu0 %v884_v31  ;;  %479 = vmatmul.mubr.bf16.gmra.mrb[4].mxu1 %v885_v32 }
  0x88   : > { %v535_v33 = vpop.permute.xlu1 %534  ;;  %v525_v34 = vpop.permute.xlu0 %524 }
  0x8c   : > { %v540_v35 = vpop.permute.xlu1 %539  ;;  %v530_v36 = vpop.permute.xlu0 %529 }
  0x90   : > { %v550_v49 = vpop.permute.xlu1 %549  ;;  %v545_v50 = vpop.permute.xlu0 %544 }
  0x94   : > { %v560_v5 = vpop.permute.xlu1 %559  ;;  %v555_v6 = vpop.permute.xlu0 %554 }
 0x105   : > { %v791_v37 = vpop.f32.mrb[0].mxu0  ;;  %v803_v38 = vpop.f32.mrb[0].mxu1 }
 0x106   : > { %v792_v39 = vpop.f32.mrb[1].mxu0  ;;  %v804_v40 = vpop.f32.mrb[1].mxu1 }
 0x107   : > { %v793_v41 = vadd.f32 %v792_v39, %v791_v37  ;;  %v805_v42 = vadd.f32 %v804_v40, %v803_v38  ;;  %v794_v43 = vpop.f32.mrb[2].mxu0  ;;  %v806_v44 = vpop.f32.mrb[2].mxu1 }
 0x108   : > { %v795_v45 = vpop.f32.mrb[3].mxu0  ;;  %v807_v46 = vpop.f32.mrb[3].mxu1 }
 0x109   : > { %v796_v47 = vadd.f32 %v795_v45, %v794_v43  ;;  %v808_v48 = vadd.f32 %v807_v46, %v806_v44  ;;  %v562_v51 = vadd.f32 %v793_v41, %v525_v34  ;;  %v566_v52 = vadd.f32 %v805_v42, %v545_v50 }
 0x10b   : > { %v563_v53 = vadd.f32 %v796_v47, %v530_v36  ;;  %v567_v54 = vadd.f32 %v808_v48, %v550_v49 }
 0x10d   : > { %v755_v55 = vpack.c.bf16 %v563_v53, %v562_v51  ;;  %v765_v56 = vpack.c.bf16 %v567_v54, %v566_v52  ;;  %v797_v57 = vpop.f32.mrb[4].mxu0  ;;  %v809_v58 = vpop.f32.mrb[4].mxu1 }
 0x10e   : > { %v798_v59 = vpop.f32.mrb[5].mxu0  ;;  %v810_v60 = vpop.f32.mrb[5].mxu1 }
 0x10f   : > { %756 = vst [vmem:[%s224_s5] sm:$0xff] %v755_v55   ;;  %773 = vst [vmem:[%s224_s5 + $0x10] sm:$0xff] %v765_v56   ;;  %v799_v61 = vadd.f32 %v798_v59, %v797_v57  ;;  %v811_v62 = vadd.f32 %v810_v60, %v809_v58  ;;  %v800_v63 = vpop.f32.mrb[6].mxu0  ;;  %v812_v0 = vpop.f32.mrb[6].mxu1 }
 0x110   : > { %v801_v1 = vpop.f32.mrb[7].mxu0  ;;  %v813_v2 = vpop.f32.mrb[7].mxu1 }
 0x111   : > { %v802_v3 = vadd.f32 %v801_v1, %v800_v63  ;;  %v814_v4 = vadd.f32 %v813_v2, %v812_v0  ;;  %v564_v7 = vadd.f32 %v799_v61, %v535_v33  ;;  %v568_v8 = vadd.f32 %v811_v62, %v555_v6 }
 0x113   : > { %v565_v9 = vadd.f32 %v802_v3, %v540_v35  ;;  %v569_v10 = vadd.f32 %v814_v4, %v560_v5 }
 0x115   : > { %v760_v11 = vpack.c.bf16 %v565_v9, %v564_v7  ;;  %v770_v12 = vpack.c.bf16 %v569_v10, %v568_v8 }
 0x117   : > { %772 = vst [vmem:[%s224_s5 + $0x8] sm:$0xff] %v760_v11   ;;  %774 = vst [vmem:[%s224_s5 + $0x18] sm:$0xff] %v770_v12  }
 0x118 PF: > { %s13_s14 = sadd.s32 1, %s908_s14   ;;  %s1038_s12 = smov %s904_s13 }
 0x119   : > { %p10_p5 = scmp.ge.s32.totalorder %s13_s14, 4   ;;  %s1039_s13 = smov %s1041_s15 }
 0x11b   :  { %12 = sbr.rel (!%p10_p5) target bundleno = 2 (0x2), region = 70 }

// kernel: _lambda_.74
= control target key start
LH: loop header
LB: loop body
LE: loop exit
PB: predicated region body
PF: predicated region fallthrough
CT: control target
= control target key end

     0   :  { %s673_s12 = smov 0   ;;  %s675_s13 = smov 0   ;;  %s728_s0 = inlined_call_operand.vmem [shape: bf16[32,128], index: 0, kind: input, shape index: {}]   ;;  %s729_s1 = inlined_call_operand.vmem [shape: bf16[2,128,128], index: 1, kind: input, shape index: {}]   ;;  %s730_s2 = inlined_call_operand.vmem [shape: f32[32,1], index: 2, kind: input, shape index: {}]   ;;  %s731_s3 = inlined_call_operand.vmem [shape: bf16[2,32,128], index: 3, kind: output, shape index: {}]  }
   0x1   :  { %s677_s14 = smov 0  }
   0x2 LB: > { %s32_s15 = sadd.s32 1, %s646_s13  ;;  %p523_p0 = scmp.ge.s32.totalorder %s650_s14, 1  ;;  %s650_s14 = sphi %s677_s14, %s13_s14   ;;  %s646_s13 = sphi %s675_s13, %s733_s13   ;;  %s642_s12 = sphi %s673_s12, %s732_s12  }
   0x3   : > { %p34_p1 = scmp.ge.s32.totalorder %s32_s15, 2  ;;  %p170_p2 = scmp.lt.s32.totalorder %s650_s14, 3 }
   0x5   : > { %s735_s15 = smov (%p34_p1, %s32_s15), 0  ;;  %p171_p3 = pnand %p523_p0, %p170_p2 }
   0x6   : > { %p205_p4 = scmp.lt.s32.totalorder (!%p171_p3), %s642_s12, 1  ;;  %v626_v0 = vld [vmem:[%s728_s0] sm:$0xff] (!%p171_p3)   ;;  %v652_v1 = vmov (!%p171_p3), 0   ;;  %v384_v2 = vld [vmem:[%s730_s2 + $0x10] sm:$0xff] (!%p171_p3)  ;;  %v385_v4 = vld [vmem:[%s730_s2 + $0x18] sm:$0xff] (!%p171_p3) }
   0x7   : > { %174 = sbr.rel (%p171_p3) target bundleno = 270 (0x10e), region = 32  ;;  %587 = vmatprep.mubr.bf16.mxu0 (!%p171_p3), %v626_v0  ;;  %617 = vset.pattern.permute.xlu1 (!%p171_p3), %v652_v1  ;;  %v382_v3 = vld [vmem:[%s730_s2] sm:$0xff] (!%p171_p3)  ;;  %v383_v5 = vld [vmem:[%s730_s2 + $0x8] sm:$0xff] (!%p171_p3) }
   0x8   : > { %616 = vset.pattern.permute.xlu0 (!%p171_p3), %v652_v1  ;;  %398 = vperm.xlu1 (!%p171_p3), %617, %v384_v2   ;;  %v627_v14 = vld [vmem:[%s728_s0 + $0x8] sm:$0xff] (!%p171_p3)  }
   0x9   : > { %388 = vperm.xlu0 (!%p171_p3), %616, %v382_v3  }
   0xc   : > { %403 = vperm.xlu1 (!%p171_p3), %617, %v385_v4  }
   0xd   : > { %393 = vperm.xlu0 (!%p171_p3), %616, %v383_v5  }
   0xe   : > { %s737_s12 = smov (!%p205_p4, %s642_s12), 1 }
   0xf   : > { %s544_s22 = sshll.u32 %s737_s12, 6  ;;  %s545_s5 = sshll.u32 %s737_s12, 4 }
  0x10   : > { %s215_s27 = scalar_lea.vmem %s729_s1, %s544_s22  ;;  %s224_s8 = scalar_lea.vmem %s731_s3, %s545_s5 }
  0x11   : > { %v618_v6 = vld [vmem:[%s215_s27] sm:$0xff]   ;;  %v619_v7 = vld [vmem:[%s215_s27 + $0x8] sm:$0xff]   ;;  %v620_v8 = vld [vmem:[%s215_s27 + $0x10] sm:$0xff]  }
  0x12   : > { %571 = vmatprep.subr.bf16.mxu0 %v618_v6  ;;  %v621_v9 = vld [vmem:[%s215_s27 + $0x18] sm:$0xff]   ;;  %v622_v10 = vld [vmem:[%s215_s27 + $0x20] sm:$0xff]   ;;  %v623_v11 = vld [vmem:[%s215_s27 + $0x28] sm:$0xff]  }
  0x13   : > { %572 = vmatpush3.bf16.msra.mxu0 %v618_v6  ;;  %v624_v12 = vld [vmem:[%s215_s27 + $0x30] sm:$0xff]   ;;  %v625_v13 = vld [vmem:[%s215_s27 + $0x38] sm:$0xff]  }
  0x14   : > { %573 = vmatprep.subr.bf16.mxu0 %v619_v7 }
  0x17   : > { %574 = vmatpush3.bf16.msra.mxu0 %v619_v7 }
  0x18   : > { %575 = vmatprep.subr.bf16.mxu0 %v620_v8 }
  0x1b   : > { %576 = vmatpush3.bf16.msra.mxu0 %v620_v8 }
  0x1c   : > { %577 = vmatprep.subr.bf16.mxu0 %v621_v9 }
  0x1f   : > { %578 = vmatpush3.bf16.msra.mxu0 %v621_v9 }
  0x20   : > { %579 = vmatprep.subr.bf16.mxu0 %v622_v10 }
  0x23   : > { %580 = vmatpush3.bf16.msra.mxu0 %v622_v10 }
  0x24   : > { %581 = vmatprep.subr.bf16.mxu0 %v623_v11 }
  0x27   : > { %582 = vmatpush3.bf16.msra.mxu0 %v623_v11 }
  0x28   : > { %583 = vmatprep.subr.bf16.mxu0 %v624_v12 }
  0x2b   : > { %584 = vmatpush3.bf16.msra.mxu0 %v624_v12 }
  0x2c   : > { %585 = vmatprep.subr.bf16.mxu0 %v625_v13 }
  0x2f   : > { %586 = vmatpush3.bf16.msra.mxu0 %v625_v13 }
  0x32   : > { %588 = vmatmul.mubr.bf16.vlgmr.msra.gmra.mrb[0].mxu0 %v627_v14 }
  0x87   : > { %v399_v15 = vpop.permute.xlu1 %398 }
  0x88   : > { %v389_v16 = vpop.permute.xlu0 %388 }
  0x8b   : > { %v404_v19 = vpop.permute.xlu1 %403 }
  0x8c   : > { %v394_v21 = vpop.permute.xlu0 %393 }
 0x105   : > { %v589_v17 = vpop.f32.mrb[0].mxu0 }
 0x106   : > { %v352_v18 = vpop.f32.mrb[1].mxu0  ;;  %v408_v22 = vadd.f32 %v589_v17, %v399_v15 }
 0x107   : > { %v590_v20 = vpop.f32.mrb[2].mxu0  ;;  %v406_v25 = vadd.f32 %v389_v16, %v352_v18 }
 0x108   : > { %v409_v23 = vadd.f32 %v590_v20, %v404_v19  ;;  %v355_v24 = vpop.f32.mrb[3].mxu0 }
 0x109   : > { %v407_v26 = vadd.f32 %v394_v21, %v355_v24 }
 0x10a   : > { %v558_v27 = vpack.c.bf16 %v409_v23, %v408_v22 }
 0x10b   : > { %v553_v28 = vpack.c.bf16 %v407_v26, %v406_v25 }
 0x10c   : > { %560 = vst [vmem:[%s224_s8 + $0x8] sm:$0xff] %v558_v27  }
 0x10d   : > { %554 = vst [vmem:[%s224_s8] sm:$0xff] %v553_v28  }
 0x10e PF: > { %s13_s14 = sadd.s32 1, %s650_s14   ;;  %s732_s12 = smov %s646_s13 }
 0x10f   : > { %p10_p5 = scmp.ge.s32.totalorder %s13_s14, 4   ;;  %s733_s13 = smov %s735_s15 }
 0x111   :  { %12 = sbr.rel (!%p10_p5) target bundleno = 2 (0x2), region = 70 }

// kernel: _lambda_.78
= control target key start
LH: loop header
LB: loop body
LE: loop exit
PB: predicated region body
PF: predicated region fallthrough
CT: control target
= control target key end

     0   :  { %s757_s12 = smov 0   ;;  %s759_s13 = smov 0   ;;  %s803_s0 = inlined_call_operand.vmem [shape: bf16[16,64], index: 0, kind: input, shape index: {}]   ;;  %s804_s1 = inlined_call_operand.vmem [shape: bf16[2,64,512], index: 1, kind: input, shape index: {}]   ;;  %s805_s2 = inlined_call_operand.vmem [shape: f32[16,1], index: 2, kind: input, shape index: {}]   ;;  %s806_s3 = inlined_call_operand.vmem [shape: bf16[2,16,512], index: 3, kind: output, shape index: {}]  }
   0x1   :  { %s761_s14 = smov 0  }
   0x2 LB: > { %s32_s15 = sadd.s32 1, %s730_s13  ;;  %p625_p0 = scmp.ge.s32.totalorder %s734_s14, 1  ;;  %s734_s14 = sphi %s761_s14, %s13_s14   ;;  %s730_s13 = sphi %s759_s13, %s808_s13   ;;  %s726_s12 = sphi %s757_s12, %s807_s12  }
   0x3   : > { %p34_p1 = scmp.ge.s32.totalorder %s32_s15, 2  ;;  %p173_p2 = scmp.lt.s32.totalorder %s734_s14, 3 }
   0x5   : > { %s810_s15 = smov (%p34_p1, %s32_s15), 0  ;;  %p174_p3 = pnand %p625_p0, %p173_p2 }
   0x6   : > { %p212_p4 = scmp.lt.s32.totalorder (!%p174_p3), %s726_s12, 1  ;;  %v736_v0 = vmov (!%p174_p3), 0   ;;  %v477_v1 = vld [vmem:[%s805_s2] sm:$0xff] (!%p174_p3)  ;;  %v478_v2 = vld [vmem:[%s805_s2 + $0x8] sm:$0xff] (!%p174_p3)  ;;  %vm360_vm0 = vcmask (!%p174_p3), 523264  }
   0x7   : > { %177 = sbr.rel (%p174_p3) target bundleno = 254 (0xfe), region = 32  ;;  %396 = vmatprep.mubr.bf16.mxu0 (!%p174_p3), %v736_v0  ;;  %439 = vmatprep.mubr.bf16.mxu1 (!%p174_p3), %v736_v0  ;;  %v711_v19 = vld [vmem:[%s803_s0] sm:$0xff] (!%p174_p3)  }
   0x8   : > { %686 = vset.pattern.permute.xlu0 (!%p174_p3), %v736_v0 }
   0x9   : > { %481 = vperm.xlu0 (!%p174_p3), %686, %v477_v1  }
   0xd   : > { %486 = vperm.xlu0 (!%p174_p3), %686, %v478_v2  }
   0xe   : > { %s812_s12 = smov (!%p212_p4, %s726_s12), 1 }
   0xf   : > { %s655_s18 = sshll.u32 %s812_s12, 7  ;;  %s656_s26 = sshll.u32 %s812_s12, 5 }
  0x10   : > { %s223_s23 = scalar_lea.vmem %s804_s1, %s655_s18  ;;  %s234_s29 = scalar_lea.vmem %s806_s3, %s656_s26 }
  0x11   : > { %v687_v3 = vld [vmem:[%s223_s23 + $0x4] ss:$16 sps:$4 sm:$0xff]   ;;  %v689_v4 = vld [vmem:[%s223_s23 + $0xc] ss:$16 sps:$4 sm:$0xff]   ;;  %v691_v5 = vld [vmem:[%s223_s23] ss:$16 sps:$4 sm:$0xff]  }
  0x12   : > { %364 = vmatprep.subr.bf16.mxu0 %v687_v3  ;;  %v692_v6 = vld [vmem:[%s223_s23 + $0x8] ss:$16 sps:$4 sm:$0xff]   ;;  %407 = vmatprep.subr.bf16.mxu1 %v689_v4  ;;  %v693_v7 = vld [vmem:[%s223_s23 + $0x24] ss:$16 sps:$4 sm:$0xff]   ;;  %v695_v8 = vld [vmem:[%s223_s23 + $0x2c] ss:$16 sps:$4 sm:$0xff]  }
  0x13   : > { %365 = vmatpush1.bf16.msra.mxu0 %v691_v5  ;;  %408 = vmatpush1.bf16.msra.mxu1 %v692_v6  ;;  %v697_v9 = vld [vmem:[%s223_s23 + $0x20] ss:$16 sps:$4 sm:$0xff]   ;;  %v698_v10 = vld [vmem:[%s223_s23 + $0x28] ss:$16 sps:$4 sm:$0xff]   ;;  %v699_v11 = vld [vmem:[%s223_s23 + $0x44] ss:$16 sps:$4 sm:$0xff]  }
  0x14   : > { %366 = vmatprep.subr.bf16.mxu0 %v693_v7  ;;  %409 = vmatprep.subr.bf16.mxu1 %v695_v8  ;;  %v701_v12 = vld [vmem:[%s223_s23 + $0x4c] ss:$16 sps:$4 sm:$0xff]   ;;  %v703_v13 = vld [vmem:[%s223_s23 + $0x40] ss:$16 sps:$4 sm:$0xff]   ;;  %v704_v14 = vld [vmem:[%s223_s23 + $0x48] ss:$16 sps:$4 sm:$0xff]  }
  0x15   : > { %v705_v15 = vld [vmem:[%s223_s23 + $0x64] ss:$16 sps:$4 sm:$0xff]   ;;  %v707_v16 = vld [vmem:[%s223_s23 + $0x6c] ss:$16 sps:$4 sm:$0xff]   ;;  %v709_v17 = vld [vmem:[%s223_s23 + $0x60] ss:$16 sps:$4 sm:$0xff]  }
  0x16   : > { %v710_v18 = vld [vmem:[%s223_s23 + $0x68] ss:$16 sps:$4 sm:$0xff]  }
  0x17   : > { %367 = vmatpush1.bf16.msra.mxu0 %v697_v9  ;;  %410 = vmatpush1.bf16.msra.mxu1 %v698_v10 }
  0x18   : > { %368 = vmatprep.subr.bf16.mxu0 %v699_v11  ;;  %411 = vmatprep.subr.bf16.mxu1 %v701_v12 }
  0x1b   : > { %369 = vmatpush1.bf16.msra.mxu0 %v703_v13  ;;  %412 = vmatpush1.bf16.msra.mxu1 %v704_v14 }
  0x1c   : > { %370 = vmatprep.subr.bf16.mxu0 %v705_v15  ;;  %413 = vmatprep.subr.bf16.mxu1 %v707_v16 }
  0x1f   : > { %371 = vmatpush1.bf16.msra.mxu0 %v709_v17  ;;  %414 = vmatpush1.bf16.msra.mxu1 %v710_v18 }
  0x22   : > { %647 = vmatmul.mubr.msk.bf16.vlgmr.msra.gmra.mrb[0].mxu0 %vm360_vm0, %v711_v19  ;;  %648 = vmatmul.mubr.msk.bf16.vlgmr.msra.gmra.mrb[0].mxu1 %vm360_vm0, %v711_v19 }
  0x88   : > { %v482_v20 = vpop.permute.xlu0 %481 }
  0x8c   : > { %v487_v21 = vpop.permute.xlu0 %486 }
  0xf5   : > { %v398_v22 = vpop.f32.mrb[0].mxu0  ;;  %v441_v23 = vpop.f32.mrb[0].mxu1 }
  0xf6   : > { %v489_v24 = vadd.f32 %v482_v20, %v398_v22  ;;  %v491_v25 = vadd.f32 %v482_v20, %v441_v23  ;;  %v400_v26 = vpop.f32.mrb[1].mxu0  ;;  %v443_v27 = vpop.f32.mrb[1].mxu1 }
  0xf7   : > { %v490_v28 = vadd.f32 %v482_v20, %v400_v26  ;;  %v492_v29 = vadd.f32 %v482_v20, %v443_v27  ;;  %v402_v30 = vpop.f32.mrb[2].mxu0  ;;  %v445_v31 = vpop.f32.mrb[2].mxu1 }
  0xf8   : > { %v493_v32 = vadd.f32 %v487_v21, %v402_v30  ;;  %v495_v33 = vadd.f32 %v487_v21, %v445_v31  ;;  %v404_v34 = vpop.f32.mrb[3].mxu0  ;;  %v447_v35 = vpop.f32.mrb[3].mxu1 }
  0xf9   : > { %v657_v36 = vpack.c.bf16 %v490_v28, %v489_v24  ;;  %v658_v37 = vpack.c.bf16 %v492_v29, %v491_v25  ;;  %v494_v38 = vadd.f32 %v487_v21, %v404_v34  ;;  %v496_v39 = vadd.f32 %v487_v21, %v447_v35 }
  0xfb   : > { %521 = vst [vmem:[%s234_s29] sm:$0xff] %v657_v36  ;;  %522 = vst [vmem:[%s234_s29 + $0x8] sm:$0xff] %v658_v37  ;;  %v659_v40 = vpack.c.bf16 %v494_v38, %v493_v32  ;;  %v660_v41 = vpack.c.bf16 %v496_v39, %v495_v33 }
  0xfd   : > { %523 = vst [vmem:[%s234_s29 + $0x10] sm:$0xff] %v659_v40  ;;  %524 = vst [vmem:[%s234_s29 + $0x18] sm:$0xff] %v660_v41 }
  0xfe PF: > { %s13_s14 = sadd.s32 1, %s734_s14   ;;  %s807_s12 = smov %s730_s13 }
  0xff   : > { %p10_p5 = scmp.ge.s32.totalorder %s13_s14, 4   ;;  %s808_s13 = smov %s810_s15 }
 0x101   :  { %12 = sbr.rel (!%p10_p5) target bundleno = 2 (0x2), region = 70 }

// kernel: _lambda_.79
= control target key start
LH: loop header
LB: loop body
LE: loop exit
PB: predicated region body
PF: predicated region fallthrough
CT: control target
= control target key end

     0   :  { %s517_s9 = smov 0   ;;  %s519_s10 = smov 0   ;;  %s600_s0 = inlined_call_operand.vmem [shape: bf16[4,4096], index: 0, kind: input, shape index: {}]   ;;  %s601_s1 = inlined_call_operand.vmem [shape: f32[4,1], index: 1, kind: output, shape index: {0}]   ;;  %s602_s2 = inlined_call_operand.vmem [shape: f32[4,1], index: 2, kind: output, shape index: {1}]  }
   0x1   :  { %s521_s11 = smov 0  }
   0x2 LB: > { %s22_s12 = sadd.s32 1, %s495_s10  ;;  %p441_p0 = scmp.ge.s32.totalorder %s499_s11, 1  ;;  %s499_s11 = sphi %s521_s11, %s13_s11   ;;  %s495_s10 = sphi %s519_s10, %s604_s10   ;;  %s491_s9 = sphi %s517_s9, %s603_s9  }
   0x3   : > { %p23_p1 = scmp.ge.s32.totalorder %s22_s12, 2  ;;  %p134_p2 = scmp.lt.s32.totalorder %s499_s11, 3 }
   0x5   : > { %s606_s12 = smov (%p23_p1, %s22_s12), 0  ;;  %p135_p3 = pnand %p441_p0, %p134_p2 }
   0x6   : > { %s442_s13 = sshll.u32 (!%p135_p3), %s491_s9, 4  ;;  %p444_p5 = scmp.ne.s32.totalorder (!%p135_p3), %s491_s9, 0 }
   0x7   : > { %138 = sbr.rel (%p135_p3) target bundleno = 233 (0xe9), region = 24  ;;  %p166_p4 = scmp.lt.s32.totalorder (!%p135_p3), %s442_s13, 31 }
   0xe   : > { %s608_s13 = smov (!%p166_p4, %s442_s13), 31  ;;  %184 = sbr.rel (%p444_p5) target bundleno = 21 (0x15), region = 28 }
   0xf   : > { %s443_s14 = sshll.u32 %s608_s13, 1  ;;  %vm185_vm0 = vcmask (!%p444_p5), 3072   ;;  %v501_v0 = vmov (!%p444_p5), 0.0  }
  0x10   : > { %s541_s17 = scalar_lea.vmem %s600_s0, %s443_s14  ;;  %186 = vst.msk [vmem:[#allocation2] sm:$0xf] (!%p444_p5), %vm185_vm0, %v501_v0  ;;  %187 = vst.msk [vmem:[#allocation3] sm:$0xf] (!%p444_p5), %vm185_vm0, %v501_v0 }
  0x15 PF: > { %v188_v1 = vld [vmem:[%s541_s17] sm:$0xff]  ;;  %v189_v2 = vld [vmem:[%s541_s17 + $0x8] sm:$0xff]  ;;  %vm225_vm1 = vcmask 1043456   ;;  %v190_v15 = vld [vmem:[%s541_s17 + $0x10] sm:$0xff]  ;;  %vm260_vm2 = vcmask 3072   ;;  %p445_p6 = scmp.ne.s32.totalorder %s491_s9, 1 }
  0x16   : > { %v192_v3 = vunpack.c.l.bf16 %v188_v1  ;;  %v193_v4 = vunpack.c.h.bf16 %v188_v1  ;;  %v194_v5 = vunpack.c.l.bf16 %v189_v2  ;;  %v195_v12 = vunpack.c.h.bf16 %v189_v2  ;;  %v191_v37 = vld [vmem:[%s541_s17 + $0x18] sm:$0xff] }
  0x17   : > { %v196_v21 = vunpack.c.l.bf16 %v190_v15  ;;  %v197_v33 = vunpack.c.h.bf16 %v190_v15  ;;  %v198_v46 = vunpack.c.l.bf16 %v191_v37  ;;  %v199_v58 = vunpack.c.h.bf16 %v191_v37 }
  0x18   : > { %v209_v6 = vcombine.high %v192_v3, %v192_v3  ;;  %v210_v7 = vcombine.high %v193_v4, %v193_v4  ;;  %v226_v8 = vsel %vm225_vm1, %v192_v3, 0.0  ;;  %v229_v10 = vsel %vm225_vm1, %v193_v4, 0.0 }
  0x19   : > { %v211_v13 = vcombine.high %v194_v5, %v194_v5  ;;  %v233_v17 = vsel %vm225_vm1, %v194_v5, 0.0  ;;  %v263_v18 = vmul.f32 %v192_v3, %v192_v3  ;;  %v264_v19 = vmul.f32 %v193_v4, %v193_v4 }
  0x1a   : > { %v227_v9 = vsel %vm225_vm1, %v209_v6, 0.0  ;;  %v231_v14 = vsel %vm225_vm1, %v210_v7, 0.0  ;;  %v212_v22 = vcombine.high %v195_v12, %v195_v12  ;;  %v265_v26 = vmul.f32 %v194_v5, %v194_v5 }
  0x1b   : > { %v228_v11 = vadd.f32 %v227_v9, %v226_v8  ;;  %v235_v23 = vsel %vm225_vm1, %v211_v13, 0.0  ;;  %v279_v24 = vcombine.high %v263_v18, %v263_v18  ;;  %v280_v27 = vcombine.high %v264_v19, %v264_v19 }
  0x1c   : > { %v237_v28 = vsel %vm225_vm1, %v195_v12, 0.0  ;;  %v295_v30 = vsel %vm225_vm1, %v263_v18, 0.0  ;;  %v298_v32 = vsel %vm225_vm1, %v264_v19, 0.0  ;;  %v213_v34 = vcombine.high %v196_v21, %v196_v21 }
  0x1d   : > { %v230_v16 = vadd.f32 %v229_v10, %v228_v11  ;;  %v296_v31 = vsel %vm225_vm1, %v279_v24, 0.0  ;;  %v239_v35 = vsel %vm225_vm1, %v212_v22, 0.0  ;;  %v266_v39 = vmul.f32 %v195_v12, %v195_v12 }
  0x1e   : > { %v297_v36 = vadd.f32 %v296_v31, %v295_v30  ;;  %v281_v40 = vcombine.high %v265_v26, %v265_v26  ;;  %v300_v41 = vsel %vm225_vm1, %v280_v27, 0.0  ;;  %v241_v42 = vsel %vm225_vm1, %v196_v21, 0.0 }
  0x1f   : > { %v232_v20 = vadd.f32 %v231_v14, %v230_v16  ;;  %v302_v45 = vsel %vm225_vm1, %v265_v26, 0.0  ;;  %v214_v47 = vcombine.high %v197_v33, %v197_v33  ;;  %v243_v48 = vsel %vm225_vm1, %v213_v34, 0.0 }
  0x20   : > { %v299_v43 = vadd.f32 %v298_v32, %v297_v36  ;;  %v267_v51 = vmul.f32 %v196_v21, %v196_v21  ;;  %v282_v52 = vcombine.high %v266_v39, %v266_v39  ;;  %v304_v53 = vsel %vm225_vm1, %v281_v40, 0.0 }
  0x21   : > { %v234_v25 = vadd.f32 %v233_v17, %v232_v20  ;;  %v245_v54 = vsel %vm225_vm1, %v197_v33, 0.0  ;;  %v306_v57 = vsel %vm225_vm1, %v266_v39, 0.0  ;;  %v215_v59 = vcombine.high %v198_v46, %v198_v46 }
  0x22   : > { %v301_v49 = vadd.f32 %v300_v41, %v299_v43  ;;  %v247_v60 = vsel %vm225_vm1, %v214_v47, 0.0  ;;  %v268_v63 = vmul.f32 %v197_v33, %v197_v33  ;;  %v283_v0 = vcombine.high %v267_v51, %v267_v51 }
  0x23   : > { %v236_v29 = vadd.f32 %v235_v23, %v234_v25  ;;  %v308_v1 = vsel %vm225_vm1, %v282_v52, 0.0  ;;  %v249_v2 = vsel %vm225_vm1, %v198_v46, 0.0  ;;  %v310_v5 = vsel %vm225_vm1, %v267_v51, 0.0 }
  0x24   : > { %v303_v55 = vadd.f32 %v302_v45, %v301_v49  ;;  %v216_v6 = vcombine.high %v199_v58, %v199_v58  ;;  %v251_v7 = vsel %vm225_vm1, %v215_v59, 0.0  ;;  %v269_v10 = vmul.f32 %v198_v46, %v198_v46 }
  0x25   : > { %v238_v38 = vadd.f32 %v237_v28, %v236_v29  ;;  %v284_v11 = vcombine.high %v268_v63, %v268_v63  ;;  %v312_v12 = vsel %vm225_vm1, %v283_v0, 0.0  ;;  %v253_v13 = vsel %vm225_vm1, %v199_v58, 0.0 }
  0x26   : > { %v305_v61 = vadd.f32 %v304_v53, %v303_v55  ;;  %v314_v16 = vsel %vm225_vm1, %v268_v63, 0.0  ;;  %v255_v17 = vsel %vm225_vm1, %v216_v6, 0.0  ;;  %v270_v20 = vmul.f32 %v199_v58, %v199_v58 }
  0x27   : > { %v240_v44 = vadd.f32 %v239_v35, %v238_v38  ;;  %v285_v21 = vcombine.high %v269_v10, %v269_v10  ;;  %v316_v22 = vsel %vm225_vm1, %v284_v11, 0.0  ;;  %v318_v25 = vsel %vm225_vm1, %v269_v10, 0.0  ;;  %v200_v35 = vld [vmem:[#allocation2] sm:$0xf]  ;;  %v262_v38 = vld [vmem:[#allocation3] sm:$0xf] }
  0x28   : > { %v307_v3 = vadd.f32 %v306_v57, %v305_v61  ;;  %v286_v27 = vcombine.high %v270_v20, %v270_v20  ;;  %v322_v30 = vsel %vm225_vm1, %v270_v20, 0.0 }
  0x29   : > { %v242_v50 = vadd.f32 %v241_v42, %v240_v44  ;;  %v320_v28 = vsel %vm225_vm1, %v285_v21, 0.0 }
  0x2a   : > { %v309_v8 = vadd.f32 %v308_v1, %v307_v3  ;;  %v324_v32 = vsel %vm225_vm1, %v286_v27, 0.0 }
  0x2b   : > { %v244_v56 = vadd.f32 %v243_v48, %v242_v50 }
  0x2c   : > { %v311_v14 = vadd.f32 %v310_v5, %v309_v8 }
  0x2d   : > { %v246_v62 = vadd.f32 %v245_v54, %v244_v56 }
  0x2e   : > { %v313_v18 = vadd.f32 %v312_v12, %v311_v14 }
  0x2f   : > { %v248_v4 = vadd.f32 %v247_v60, %v246_v62 }
  0x30   : > { %v315_v23 = vadd.f32 %v314_v16, %v313_v18 }
  0x31   : > { %v250_v9 = vadd.f32 %v249_v2, %v248_v4 }
  0x32   : > { %v317_v26 = vadd.f32 %v316_v22, %v315_v23 }
  0x33   : > { %v252_v15 = vadd.f32 %v251_v7, %v250_v9 }
  0x34   : > { %v319_v29 = vadd.f32 %v318_v25, %v317_v26 }
  0x35   : > { %v254_v19 = vadd.f32 %v253_v13, %v252_v15 }
  0x36   : > { %v321_v31 = vadd.f32 %v320_v28, %v319_v29 }
  0x37   : > { %v256_v24 = vadd.f32 %v255_v17, %v254_v19 }
  0x38   : > { %v323_v33 = vadd.f32 %v322_v30, %v321_v31 }
  0x39   : > { %257 = vadd.xlane.f32.xlu0 %v256_v24 }
  0x3a   : > { %v325_v34 = vadd.f32 %v324_v32, %v323_v33 }
  0x3d   : > { %326 = vadd.xlane.f32.xlu0 %v325_v34 }
  0xc6   : > { %v258_v36 = vpop.xlane.xlu0 %257 }
  0xc7   : > { %v259_v37 = vadd.f32 %v258_v36, %v200_v35  ;;  %333 = sbr.rel (%p445_p6) target bundleno = 233 (0xe9), region = 32 }
  0xc9   : > { %261 = vst.msk [vmem:[#allocation2] sm:$0xf] %vm260_vm2, %v259_v37 }
  0xca   : > { %v327_v39 = vpop.xlane.xlu0 %326 }
  0xcb   : > { %v328_v40 = vadd.f32 %v327_v39, %v262_v38 }
  0xcd   : > { %329 = vst.msk [vmem:[#allocation3] sm:$0xf] %vm260_vm2, %v328_v40 }
  0xd0   : > { %v334_v41 = vld [vmem:[#allocation2] sm:$0xf] }
  0xd1   : > { %v335_v43 = vmul.f32 0.00024414063, %v334_v41 }
  0xd3   : > { %v338_v45 = vmul.f32 %v335_v43, %v335_v43  ;;  %341 = vst.msk [vmem:[%s601_s1] sm:$0xf] %vm260_vm2, %v335_v43 }
  0xd4   : > { %v336_v42 = vld [vmem:[#allocation3] sm:$0xf] }
  0xd5   : > { %v337_v44 = vmul.f32 0.00024414063, %v336_v42 }
  0xd7   : > { %v339_v46 = vsub.f32 %v337_v44, %v338_v45 }
  0xd9   : > { %v340_v47 = vmax.f32 %v339_v46, 0.0 }
  0xdb   : > { %v342_v48 = vadd.f32 1e-05, %v340_v47 }
  0xdd   : > { %475 = vrsqrt.f32 %v342_v48 }
  0xe7   : > { %v476_v49 = vpop.eup %475 }
  0xe8   : > { %344 = vst.msk [vmem:[%s602_s2] sm:$0xf] %vm260_vm2, %v476_v49 }
  0xe9 PF: > { %s13_s11 = sadd.s32 1, %s499_s11   ;;  %s603_s9 = smov %s495_s10 }
  0xea   : > { %p10_p7 = scmp.ge.s32.totalorder %s13_s11, 4   ;;  %s604_s10 = smov %s606_s12 }
  0xec   :  { %12 = sbr.rel (!%p10_p7) target bundleno = 2 (0x2), region = 74 }

// kernel: _lambda_.80
= control target key start
LH: loop header
LB: loop body
LE: loop exit
PB: predicated region body
PF: predicated region fallthrough
CT: control target
= control target key end

     0   :  { %s709_s17 = smov 0   ;;  %s711_s18 = smov 0   ;;  %s773_s0 = inlined_call_operand.vmem [shape: bf16[4,4096], index: 0, kind: input, shape index: {}]   ;;  %s774_s1 = inlined_call_operand.vmem [shape: f32[4,1], index: 1, kind: input, shape index: {}]   ;;  %s775_s2 = inlined_call_operand.vmem [shape: f32[4,1], index: 2, kind: input, shape index: {}]   ;;  %s776_s3 = inlined_call_operand.<no memory space> [shape: f32[1,1], index: 3, kind: input, shape index: {}]   ;;  %s777_s4 = inlined_call_operand.vmem [shape: bf16[4,4096], index: 4, kind: output, shape index: {}]  }
   0x1   :  { %v9_v0 = vstv %s776_s3  ;;  %s713_s19 = smov 0  }
   0x2   :  { %10 = vst [vmem:[#allocation2] sm:$0x1] %v9_v0 }
   0x3 LB: > { %s25_s3 = sadd.s32 1, %s672_s18  ;;  %p609_p0 = scmp.ge.s32.totalorder %s676_s19, 1  ;;  %s676_s19 = sphi %s713_s19, %s16_s19   ;;  %s672_s18 = sphi %s711_s18, %s779_s18   ;;  %s668_s17 = sphi %s709_s17, %s778_s17  }
   0x4   : > { %p26_p1 = scmp.ge.s32.totalorder %s25_s3, 2  ;;  %p203_p2 = scmp.lt.s32.totalorder %s676_s19, 3 }
   0x6   : > { %s781_s3 = smov (%p26_p1, %s25_s3), 0  ;;  %p204_p3 = pnand %p609_p0, %p203_p2 }
   0x7   : > { %v285_v1 = vld [vmem:[%s774_s1] sm:$0xf] (!%p204_p3)  ;;  %v678_v2 = vmov (!%p204_p3), 0   ;;  %s610_s24 = sshll.u32 (!%p204_p3), %s668_s17, 4  ;;  %v679_v5 = vmov (!%p204_p3), 839922192   ;;  %v293_v7 = vlaneseq (!%p204_p3) }
   0x8   : > { %207 = sbr.rel (%p204_p3) target bundleno = 161 (0xa1), region = 36  ;;  %653 = vset.pattern.permute.xlu0 (!%p204_p3), %v678_v2  ;;  %v306_v4 = vld [vmem:[%s775_s2] sm:$0xf] (!%p204_p3)  ;;  %p248_p4 = scmp.lt.s32.totalorder (!%p204_p3), %s610_s24, 31  ;;  %v291_v6 = vunpack.c.l.s4 (!%p204_p3), %v679_v5  ;;  %v680_v10 = vmov (!%p204_p3), 1983009808  }
   0x9   : > { %v327_v3 = vld [vmem:[#allocation2] sm:$0x1] (!%p204_p3)  ;;  %288 = vperm.xlu0 (!%p204_p3), %653, %v285_v1   ;;  %v294_v9 = vshrl.u32 (!%p204_p3), %v293_v7, 7  ;;  %v413_v11 = vunpack.c.l.s4 (!%p204_p3), %v680_v10 }
   0xa   : > { %624 = vpush (!%p204_p3), %v327_v3  ;;  %v292_v8 = vunpack.c.0.s8 (!%p204_p3), %v291_v6 }
   0xb   : > { %v414_v17 = vunpack.c.0.s8 (!%p204_p3), %v413_v11 }
   0xc   : > { %v295_v12 = vsub.s32 (!%p204_p3), %v292_v8, %v294_v9 }
   0xd   : > { %309 = vperm.xlu0 (!%p204_p3), %653, %v306_v4   ;;  %v741_v28 = vsub.s32 (!%p204_p3), %v414_v17, %v294_v9 }
   0xf   : > { %s783_s24 = smov (!%p248_p4, %s610_s24), 31 }
  0x10   : > { %s611_s25 = sshll.u32 %s783_s24, 1 }
  0x11   : > { %s253_s28 = scalar_lea.vmem %s773_s0, %s611_s25  ;;  %s271_s6 = scalar_lea.vmem %s777_s4, %s611_s25 }
  0x12   : > { %v273_v13 = vld [vmem:[%s253_s28] sm:$0xff]  ;;  %v274_v14 = vld [vmem:[%s253_s28 + $0x8] sm:$0xff]  ;;  %v275_v15 = vld [vmem:[%s253_s28 + $0x10] sm:$0xff] }
  0x13   : > { %v276_v16 = vld [vmem:[%s253_s28 + $0x18] sm:$0xff]  ;;  %v277_v19 = vunpack.c.l.bf16 %v273_v13  ;;  %v278_v21 = vunpack.c.h.bf16 %v273_v13  ;;  %v279_v22 = vunpack.c.l.bf16 %v274_v14  ;;  %v280_v23 = vunpack.c.h.bf16 %v274_v14 }
  0x14   : > { %v281_v24 = vunpack.c.l.bf16 %v275_v15  ;;  %v282_v25 = vunpack.c.h.bf16 %v275_v15  ;;  %v283_v26 = vunpack.c.l.bf16 %v276_v16  ;;  %v284_v27 = vunpack.c.h.bf16 %v276_v16 }
  0x3b   : > { %s625_s29 = spop %624 }
  0x3c   : > { %v337_v31 = vstv %s625_s29 }
  0x88   : > { %v289_v18 = vpop.permute.xlu0 %288 }
  0x89   : > { %v296_v20 = vrot.slane %v289_v18, %v295_v12 }
  0x8b   : > { %v298_v30 = vsub.f32 %v277_v19, %v296_v20  ;;  %v299_v33 = vsub.f32 %v278_v21, %v296_v20  ;;  %v300_v34 = vsub.f32 %v279_v22, %v296_v20  ;;  %v301_v35 = vsub.f32 %v280_v23, %v296_v20 }
  0x8c   : > { %v310_v29 = vpop.permute.xlu0 %309  ;;  %v302_v36 = vsub.f32 %v281_v24, %v296_v20  ;;  %v303_v37 = vsub.f32 %v282_v25, %v296_v20  ;;  %v304_v38 = vsub.f32 %v283_v26, %v296_v20  ;;  %v305_v39 = vsub.f32 %v284_v27, %v296_v20 }
  0x8d   : > { %v317_v32 = vrot.slane %v310_v29, %v295_v12 }
  0x8f   : > { %v319_v40 = vmul.f32 %v317_v32, %v298_v30  ;;  %v320_v41 = vmul.f32 %v317_v32, %v299_v33  ;;  %v321_v42 = vmul.f32 %v317_v32, %v300_v34  ;;  %v322_v43 = vmul.f32 %v317_v32, %v301_v35 }
  0x90   : > { %v323_v44 = vmul.f32 %v317_v32, %v302_v36  ;;  %v324_v45 = vmul.f32 %v317_v32, %v303_v37  ;;  %v325_v46 = vmul.f32 %v317_v32, %v304_v38  ;;  %v326_v47 = vmul.f32 %v317_v32, %v305_v39 }
  0x91   : > { %vm329_vm0 = vcmp.ge.f32.partialorder %v319_v40, 0.0  ;;  %vm330_vm1 = vcmp.ge.f32.partialorder %v320_v41, 0.0  ;;  %vm331_vm2 = vcmp.ge.f32.partialorder %v321_v42, 0.0  ;;  %vm332_vm3 = vcmp.ge.f32.partialorder %v322_v43, 0.0 }
  0x92   : > { %vm333_vm4 = vcmp.ge.f32.partialorder %v323_v44, 0.0  ;;  %vm334_vm5 = vcmp.ge.f32.partialorder %v324_v45, 0.0  ;;  %vm335_vm6 = vcmp.ge.f32.partialorder %v325_v46, 0.0  ;;  %vm336_vm7 = vcmp.ge.f32.partialorder %v326_v47, 0.0 }
  0x93   : > { %v338_v48 = vmul.f32 %v337_v31, %v319_v40  ;;  %v339_v49 = vmul.f32 %v337_v31, %v320_v41  ;;  %v340_v50 = vmul.f32 %v337_v31, %v321_v42  ;;  %v341_v51 = vmul.f32 %v337_v31, %v322_v43 }
  0x94   : > { %v342_v52 = vmul.f32 %v337_v31, %v323_v44  ;;  %v343_v53 = vmul.f32 %v337_v31, %v324_v45  ;;  %v344_v54 = vmul.f32 %v337_v31, %v325_v46  ;;  %v345_v55 = vmul.f32 %v337_v31, %v326_v47 }
  0x95   : > { %v346_v56 = vsel %vm329_vm0, %v319_v40, %v338_v48  ;;  %v347_v57 = vsel %vm330_vm1, %v320_v41, %v339_v49  ;;  %v348_v58 = vsel %vm331_vm2, %v321_v42, %v340_v50  ;;  %v349_v59 = vsel %vm332_vm3, %v322_v43, %v341_v51 }
  0x96   : > { %v350_v60 = vsel %vm333_vm4, %v323_v44, %v342_v52  ;;  %v351_v61 = vsel %vm334_vm5, %v324_v45, %v343_v53  ;;  %v352_v62 = vsel %vm335_vm6, %v325_v46, %v344_v54  ;;  %v353_v63 = vsel %vm336_vm7, %v326_v47, %v345_v55 }
  0x97   : > { %v362_v0 = vcombine.high %v346_v56, %v346_v56  ;;  %v363_v1 = vcombine.high %v347_v57, %v347_v57  ;;  %v364_v2 = vcombine.high %v348_v58, %v348_v58  ;;  %v365_v3 = vcombine.high %v349_v59, %v349_v59 }
  0x98   : > { %v366_v4 = vcombine.high %v350_v60, %v350_v60  ;;  %v367_v5 = vcombine.high %v351_v61, %v351_v61  ;;  %v368_v6 = vcombine.high %v352_v62, %v352_v62  ;;  %v369_v7 = vcombine.high %v353_v63, %v353_v63 }
  0x99   : > { %v614_v8 = vpack.c.bf16 %v362_v0, %v346_v56  ;;  %v615_v9 = vpack.c.bf16 %v363_v1, %v347_v57  ;;  %v616_v10 = vpack.c.bf16 %v364_v2, %v348_v58  ;;  %v617_v11 = vpack.c.bf16 %v365_v3, %v349_v59 }
  0x9a   : > { %v618_v12 = vpack.c.bf16 %v366_v4, %v350_v60  ;;  %v619_v13 = vpack.c.bf16 %v367_v5, %v351_v61  ;;  %v620_v14 = vpack.c.bf16 %v368_v6, %v352_v62  ;;  %v621_v15 = vpack.c.bf16 %v369_v7, %v353_v63 }
  0x9b   : > { %v418_v16 = vrot.slane %v614_v8, %v741_v28  ;;  %v425_v17 = vrot.slane %v615_v9, %v741_v28  ;;  %v435_v18 = vrot.slane %v616_v10, %v741_v28  ;;  %v442_v19 = vrot.slane %v617_v11, %v741_v28 }
  0x9c   : > { %v452_v20 = vrot.slane %v618_v12, %v741_v28  ;;  %v459_v21 = vrot.slane %v619_v13, %v741_v28  ;;  %v469_v22 = vrot.slane %v620_v14, %v741_v28  ;;  %v476_v23 = vrot.slane %v621_v15, %v741_v28 }
  0x9d   : > { %v426_v24 = vcombine.low %v418_v16, %v425_v17  ;;  %v443_v25 = vcombine.low %v435_v18, %v442_v19 }
  0x9e   : > { %v460_v26 = vcombine.low %v452_v20, %v459_v21  ;;  %v477_v27 = vcombine.low %v469_v22, %v476_v23 }
  0x9f   : > { %482 = vst [vmem:[%s271_s6] sm:$0xff] %v426_v24  ;;  %483 = vst [vmem:[%s271_s6 + $0x8] sm:$0xff] %v443_v25 }
  0xa0   : > { %484 = vst [vmem:[%s271_s6 + $0x10] sm:$0xff] %v460_v26  ;;  %485 = vst [vmem:[%s271_s6 + $0x18] sm:$0xff] %v477_v27 }
  0xa1 PF: > { %s16_s19 = sadd.s32 1, %s676_s19   ;;  %s778_s17 = smov %s672_s18 }
  0xa2   : > { %p13_p5 = scmp.ge.s32.totalorder %s16_s19, 4   ;;  %s779_s18 = smov %s781_s3 }
  0xa4   :  { %15 = sbr.rel (!%p13_p5) target bundleno = 3 (0x3), region = 72 }

// kernel: _lambda_.81
= control target key start
LH: loop header
LB: loop body
LE: loop exit
PB: predicated region body
PF: predicated region fallthrough
CT: control target
= control target key end

     0   :  { %s1602_s12 = smov 0   ;;  %s1604_s13 = smov 0   ;;  %s1925_s0 = inlined_call_operand.vmem [shape: bf16[8,54], index: 0, kind: input, shape index: {}]   ;;  %s1926_s1 = inlined_call_operand.vmem [shape: bf16[2,54,4096], index: 1, kind: input, shape index: {}]   ;;  %s1927_s2 = inlined_call_operand.vmem [shape: f32[8,1], index: 2, kind: input, shape index: {}]   ;;  %s1928_s3 = inlined_call_operand.vmem [shape: bf16[2,8,4096], index: 3, kind: output, shape index: {}]  }
   0x1   :  { %s1606_s14 = smov 0   ;;  %s1608_s15 = smov 0  }
   0x2   :  { %s1610_s16 = smov 0   ;;  %s1612_s17 = smov 0  }
   0x3   :  { %s1614_s18 = smov 0  }
   0x4 LB: > { %s28_s19 = sadd.s32 1, %s1571_s16  ;;  %s32_s20 = sadd.s32 1, %s1575_s17  ;;  %s1579_s18 = sphi %s1614_s18, %s13_s18   ;;  %s1575_s17 = sphi %s1612_s17, %s1934_s17   ;;  %s1571_s16 = sphi %s1610_s16, %s1933_s16   ;;  %s1567_s15 = sphi %s1608_s15, %s1932_s15   ;;  %s1563_s14 = sphi %s1606_s14, %s1931_s14   ;;  %s1559_s13 = sphi %s1604_s13, %s1930_s13   ;;  %s1555_s12 = sphi %s1602_s12, %s1929_s12  }
   0x5   : > { %p30_p0 = scmp.ge.s32.totalorder %s28_s19, 2  ;;  %p71_p1 = scmp.ne.s32.totalorder %s1559_s13, %s1555_s12 }
   0x6   : > { %p72_p2 = scmp.eq.s32.totalorder %s1579_s18, 0  ;;  %s64_s24 = sadd.s32 1, %s1559_s13 }
   0x7   : > { %s1936_s19 = smov (%p30_p0, %s28_s19), 0  ;;  %s1938_s20 = smov (!%p30_p0, %s32_s20), %s1575_s17 }
   0x8   : > { %p73_p3 = por %p72_p2, %p71_p1  ;;  %p34_p4 = scmp.ge.s32.totalorder %s1938_s20, 2 }
   0x9   : > { %s60_s21 = ssub.s32 %s1571_s16, %s1936_s19  ;;  %p1343_p6 = scmp.ge.s32.totalorder %s1579_s18, 4 }
   0xa   : > { %s1940_s20 = smov (%p34_p4, %s1938_s20), 0 }
   0xb   : > { %s57_s22 = ssub.s32 %s1575_s17, %s1940_s20  ;;  %152 = sbr.rel (%p1343_p6) target bundleno = 54 (0x36), region = 24 }
   0xc   : > { %s61_s23 = sor.u32 %s60_s21, %s57_s22 }
   0xd   : > { %p62_p5 = scmp.eq.s32.totalorder %s61_s23, 0 }
   0xf   : > { %s1653_s25 = scalar_select %p62_p5, %s1559_s13, %s64_s24  }
  0x12   : > { %155 = sbr.rel (!%p73_p3) target bundleno = 54 (0x36), region = 28  ;;  %s157_s26 = sand.u32 (%p73_p3), 1, %s1559_s13  }
  0x13   : > { %s1448_s27 = smul.u32 (%p73_p3), 448, %s157_s26  ;;  %s1344_s28 = sshll.u32 (%p73_p3), %s1571_s16, 4 }
  0x14   : > { %s1449_s29 = smul.u32 (%p73_p3), 224, %s1575_s17 }
  0x15   : > { %s1667_s8 = scalar_lea.vmem (%p73_p3), [#allocation3], %s1448_s27 }
  0x16   : > { %s165_s30 = sadd.s32 (%p73_p3), %s1449_s29, %s1344_s28 }
  0x17   : > { %s1345_s4 = sshll.u32 (%p73_p3), %s165_s30, 2 }
  0x18   : > { %s1662_s7 = scalar_lea.vmem (%p73_p3), %s1926_s1, %s1345_s4 }
  0x19   : > { %v180_v0 = vld [vmem:[%s1662_s7] sm:$0xff]  ;;  %v182_v1 = vld [vmem:[%s1662_s7 + $0x8] sm:$0xff]  ;;  %v184_v2 = vld [vmem:[%s1662_s7 + $0x10] sm:$0xff] }
  0x1a   : > { %181 = vst [vmem:[%s1667_s8] sm:$0xff] %v180_v0  ;;  %183 = vst [vmem:[%s1667_s8 + $0x8] sm:$0xff] %v182_v1  ;;  %v186_v3 = vld [vmem:[%s1662_s7 + $0x18] sm:$0xff]  ;;  %v188_v4 = vld [vmem:[%s1662_s7 + $0x20] sm:$0xff] }
  0x1b   : > { %185 = vst [vmem:[%s1667_s8 + $0x10] sm:$0xff] %v184_v2  ;;  %v190_v5 = vld [vmem:[%s1662_s7 + $0x28] sm:$0xff]  ;;  %187 = vst [vmem:[%s1667_s8 + $0x18] sm:$0xff] %v186_v3  ;;  %v192_v6 = vld [vmem:[%s1662_s7 + $0x30] sm:$0xff] }
  0x1c   : > { %189 = vst [vmem:[%s1667_s8 + $0x20] sm:$0xff] %v188_v4  ;;  %191 = vst [vmem:[%s1667_s8 + $0x28] sm:$0xff] %v190_v5  ;;  %v194_v7 = vld [vmem:[%s1662_s7 + $0x38] sm:$0xff]  ;;  %v196_v8 = vld [vmem:[%s1662_s7 + $0x80] sm:$0xff] }
  0x1d   : > { %193 = vst [vmem:[%s1667_s8 + $0x30] sm:$0xff] %v192_v6  ;;  %195 = vst [vmem:[%s1667_s8 + $0x38] sm:$0xff] %v194_v7  ;;  %v198_v9 = vld [vmem:[%s1662_s7 + $0x88] sm:$0xff]  ;;  %v200_v10 = vld [vmem:[%s1662_s7 + $0x90] sm:$0xff] }
  0x1e   : > { %197 = vst [vmem:[%s1667_s8 + $0x40] sm:$0xff] %v196_v8  ;;  %v202_v11 = vld [vmem:[%s1662_s7 + $0x98] sm:$0xff]  ;;  %199 = vst [vmem:[%s1667_s8 + $0x48] sm:$0xff] %v198_v9  ;;  %v204_v12 = vld [vmem:[%s1662_s7 + $0xa0] sm:$0xff] }
  0x1f   : > { %201 = vst [vmem:[%s1667_s8 + $0x50] sm:$0xff] %v200_v10  ;;  %203 = vst [vmem:[%s1667_s8 + $0x58] sm:$0xff] %v202_v11  ;;  %v206_v13 = vld [vmem:[%s1662_s7 + $0xa8] sm:$0xff]  ;;  %v208_v14 = vld [vmem:[%s1662_s7 + $0xb0] sm:$0xff] }
  0x20   : > { %205 = vst [vmem:[%s1667_s8 + $0x60] sm:$0xff] %v204_v12  ;;  %207 = vst [vmem:[%s1667_s8 + $0x68] sm:$0xff] %v206_v13  ;;  %v210_v15 = vld [vmem:[%s1662_s7 + $0xb8] sm:$0xff]  ;;  %v212_v16 = vld [vmem:[%s1662_s7 + $0x100] sm:$0xff] }
  0x21   : > { %209 = vst [vmem:[%s1667_s8 + $0x70] sm:$0xff] %v208_v14  ;;  %v214_v17 = vld [vmem:[%s1662_s7 + $0x108] sm:$0xff]  ;;  %211 = vst [vmem:[%s1667_s8 + $0x78] sm:$0xff] %v210_v15  ;;  %v216_v18 = vld [vmem:[%s1662_s7 + $0x110] sm:$0xff] }
  0x22   : > { %213 = vst [vmem:[%s1667_s8 + $0x80] sm:$0xff] %v212_v16  ;;  %215 = vst [vmem:[%s1667_s8 + $0x88] sm:$0xff] %v214_v17  ;;  %v218_v19 = vld [vmem:[%s1662_s7 + $0x118] sm:$0xff]  ;;  %v220_v20 = vld [vmem:[%s1662_s7 + $0x120] sm:$0xff] }
  0x23   : > { %217 = vst [vmem:[%s1667_s8 + $0x90] sm:$0xff] %v216_v18  ;;  %219 = vst [vmem:[%s1667_s8 + $0x98] sm:$0xff] %v218_v19  ;;  %v222_v21 = vld [vmem:[%s1662_s7 + $0x128] sm:$0xff]  ;;  %v224_v22 = vld [vmem:[%s1662_s7 + $0x130] sm:$0xff] }
  0x24   : > { %221 = vst [vmem:[%s1667_s8 + $0xa0] sm:$0xff] %v220_v20  ;;  %v226_v23 = vld [vmem:[%s1662_s7 + $0x138] sm:$0xff]  ;;  %223 = vst [vmem:[%s1667_s8 + $0xa8] sm:$0xff] %v222_v21  ;;  %v228_v24 = vld [vmem:[%s1662_s7 + $0x180] sm:$0xff] }
  0x25   : > { %225 = vst [vmem:[%s1667_s8 + $0xb0] sm:$0xff] %v224_v22  ;;  %227 = vst [vmem:[%s1667_s8 + $0xb8] sm:$0xff] %v226_v23  ;;  %v230_v25 = vld [vmem:[%s1662_s7 + $0x188] sm:$0xff]  ;;  %v232_v26 = vld [vmem:[%s1662_s7 + $0x190] sm:$0xff] }
  0x26   : > { %229 = vst [vmem:[%s1667_s8 + $0xc0] sm:$0xff] %v228_v24  ;;  %231 = vst [vmem:[%s1667_s8 + $0xc8] sm:$0xff] %v230_v25  ;;  %v234_v27 = vld [vmem:[%s1662_s7 + $0x198] sm:$0xff]  ;;  %v236_v28 = vld [vmem:[%s1662_s7 + $0x1a0] sm:$0xff] }
  0x27   : > { %233 = vst [vmem:[%s1667_s8 + $0xd0] sm:$0xff] %v232_v26  ;;  %v238_v29 = vld [vmem:[%s1662_s7 + $0x1a8] sm:$0xff]  ;;  %235 = vst [vmem:[%s1667_s8 + $0xd8] sm:$0xff] %v234_v27  ;;  %v240_v30 = vld [vmem:[%s1662_s7 + $0x1b0] sm:$0xff] }
  0x28   : > { %237 = vst [vmem:[%s1667_s8 + $0xe0] sm:$0xff] %v236_v28  ;;  %239 = vst [vmem:[%s1667_s8 + $0xe8] sm:$0xff] %v238_v29  ;;  %v242_v31 = vld [vmem:[%s1662_s7 + $0x1b8] sm:$0xff]  ;;  %v244_v32 = vld [vmem:[%s1662_s7 + $0x200] sm:$0xff] }
  0x29   : > { %241 = vst [vmem:[%s1667_s8 + $0xf0] sm:$0xff] %v240_v30  ;;  %243 = vst [vmem:[%s1667_s8 + $0xf8] sm:$0xff] %v242_v31  ;;  %v246_v33 = vld [vmem:[%s1662_s7 + $0x208] sm:$0xff]  ;;  %v248_v34 = vld [vmem:[%s1662_s7 + $0x210] sm:$0xff] }
  0x2a   : > { %245 = vst [vmem:[%s1667_s8 + $0x100] sm:$0xff] %v244_v32  ;;  %v250_v35 = vld [vmem:[%s1662_s7 + $0x218] sm:$0xff]  ;;  %247 = vst [vmem:[%s1667_s8 + $0x108] sm:$0xff] %v246_v33  ;;  %v252_v36 = vld [vmem:[%s1662_s7 + $0x220] sm:$0xff] }
  0x2b   : > { %249 = vst [vmem:[%s1667_s8 + $0x110] sm:$0xff] %v248_v34  ;;  %251 = vst [vmem:[%s1667_s8 + $0x118] sm:$0xff] %v250_v35  ;;  %v254_v37 = vld [vmem:[%s1662_s7 + $0x228] sm:$0xff]  ;;  %v256_v38 = vld [vmem:[%s1662_s7 + $0x230] sm:$0xff] }
  0x2c   : > { %253 = vst [vmem:[%s1667_s8 + $0x120] sm:$0xff] %v252_v36  ;;  %255 = vst [vmem:[%s1667_s8 + $0x128] sm:$0xff] %v254_v37  ;;  %v258_v39 = vld [vmem:[%s1662_s7 + $0x238] sm:$0xff]  ;;  %v260_v40 = vld [vmem:[%s1662_s7 + $0x280] sm:$0xff] }
  0x2d   : > { %257 = vst [vmem:[%s1667_s8 + $0x130] sm:$0xff] %v256_v38  ;;  %v262_v41 = vld [vmem:[%s1662_s7 + $0x288] sm:$0xff]  ;;  %259 = vst [vmem:[%s1667_s8 + $0x138] sm:$0xff] %v258_v39  ;;  %v264_v42 = vld [vmem:[%s1662_s7 + $0x290] sm:$0xff] }
  0x2e   : > { %261 = vst [vmem:[%s1667_s8 + $0x140] sm:$0xff] %v260_v40  ;;  %263 = vst [vmem:[%s1667_s8 + $0x148] sm:$0xff] %v262_v41  ;;  %v266_v43 = vld [vmem:[%s1662_s7 + $0x298] sm:$0xff]  ;;  %v268_v44 = vld [vmem:[%s1662_s7 + $0x2a0] sm:$0xff] }
  0x2f   : > { %265 = vst [vmem:[%s1667_s8 + $0x150] sm:$0xff] %v264_v42  ;;  %267 = vst [vmem:[%s1667_s8 + $0x158] sm:$0xff] %v266_v43  ;;  %v270_v45 = vld [vmem:[%s1662_s7 + $0x2a8] sm:$0xff]  ;;  %v272_v46 = vld [vmem:[%s1662_s7 + $0x2b0] sm:$0xff] }
  0x30   : > { %269 = vst [vmem:[%s1667_s8 + $0x160] sm:$0xff] %v268_v44  ;;  %v274_v47 = vld [vmem:[%s1662_s7 + $0x2b8] sm:$0xff]  ;;  %271 = vst [vmem:[%s1667_s8 + $0x168] sm:$0xff] %v270_v45  ;;  %v276_v48 = vld [vmem:[%s1662_s7 + $0x300] sm:$0xff] }
  0x31   : > { %273 = vst [vmem:[%s1667_s8 + $0x170] sm:$0xff] %v272_v46  ;;  %275 = vst [vmem:[%s1667_s8 + $0x178] sm:$0xff] %v274_v47  ;;  %v278_v49 = vld [vmem:[%s1662_s7 + $0x308] sm:$0xff]  ;;  %v280_v50 = vld [vmem:[%s1662_s7 + $0x310] sm:$0xff] }
  0x32   : > { %277 = vst [vmem:[%s1667_s8 + $0x180] sm:$0xff] %v276_v48  ;;  %279 = vst [vmem:[%s1667_s8 + $0x188] sm:$0xff] %v278_v49  ;;  %v282_v51 = vld [vmem:[%s1662_s7 + $0x318] sm:$0xff]  ;;  %v284_v52 = vld [vmem:[%s1662_s7 + $0x320] sm:$0xff] }
  0x33   : > { %281 = vst [vmem:[%s1667_s8 + $0x190] sm:$0xff] %v280_v50  ;;  %v286_v53 = vld [vmem:[%s1662_s7 + $0x328] sm:$0xff]  ;;  %283 = vst [vmem:[%s1667_s8 + $0x198] sm:$0xff] %v282_v51  ;;  %v288_v54 = vld [vmem:[%s1662_s7 + $0x330] sm:$0xff] }
  0x34   : > { %285 = vst [vmem:[%s1667_s8 + $0x1a0] sm:$0xff] %v284_v52  ;;  %287 = vst [vmem:[%s1667_s8 + $0x1a8] sm:$0xff] %v286_v53  ;;  %v290_v55 = vld [vmem:[%s1662_s7 + $0x338] sm:$0xff] }
  0x35   : > { %289 = vst [vmem:[%s1667_s8 + $0x1b0] sm:$0xff] %v288_v54  ;;  %291 = vst [vmem:[%s1667_s8 + $0x1b8] sm:$0xff] %v290_v55 }
  0x36 PF: > { %p1346_p7 = scmp.ge.s32.totalorder %s1579_s18, 1  ;;  %p296_p8 = scmp.lt.s32.totalorder %s1579_s18, 5 }
  0x38   : > { %p297_p9 = pnand %p1346_p7, %p296_p8 }
  0x39   : > { %s303_s9 = sand.u32 (!%p297_p9), 1, %s1555_s12   ;;  %v1581_v56 = vmov (!%p297_p9), 0   ;;  %v1148_v57 = vld [vmem:[%s1927_s2] sm:$0xff] (!%p297_p9)  ;;  %vm720_vm0 = vcmask (!%p297_p9), 1042432   ;;  %vm716_vm1 = vcmask (!%p297_p9), 441344   ;;  %s1347_s24 = sshll.u32 (!%p297_p9), %s1563_s14, 4 }
  0x3a   : > { %300 = sbr.rel (%p297_p9) target bundleno = 348 (0x15c), region = 51  ;;  %801 = vmatprep.mubr.bf16.mxu0 (!%p297_p9), %v1581_v56  ;;  %842 = vmatprep.mubr.bf16.mxu1 (!%p297_p9), %v1581_v56  ;;  %v1818_v36 = vld [vmem:[%s1925_s0] sm:$0xf] (!%p297_p9)  ;;  %p333_p10 = scmp.lt.s32.totalorder (!%p297_p9), %s1567_s15, 1 }
  0x3b   : > { %s1450_s10 = smul.u32 (!%p297_p9), 448, %s303_s9  ;;  %1508 = vset.pattern.permute.xlu0 (!%p297_p9), %v1581_v56  ;;  %p335_p11 = scmp.lt.s32.totalorder (!%p297_p9), %s1347_s24, 31 }
  0x3c   : > { %1151 = vperm.xlu0 (!%p297_p9), %1508, %v1148_v57  }
  0x3d   : > { %s1787_s22 = scalar_lea.vmem (!%p297_p9), [#allocation3], %s1450_s10 }
  0x3e   : > { %v380_v58 = vld [vmem:[%s1787_s22] sm:$0xff] (!%p297_p9)  ;;  %v381_v60 = vld [vmem:[%s1787_s22 + $0x8] sm:$0xff] (!%p297_p9)  ;;  %v382_v24 = vld [vmem:[%s1787_s22 + $0x10] sm:$0xff] (!%p297_p9) }
  0x3f   : > { %v388_v59 = vld [vmem:[%s1787_s22 + $0x40] sm:$0xff] (!%p297_p9)  ;;  %v389_v62 = vld [vmem:[%s1787_s22 + $0x48] sm:$0xff] (!%p297_p9)  ;;  %v390_v25 = vld [vmem:[%s1787_s22 + $0x50] sm:$0xff] (!%p297_p9) }
  0x40   : > { %v1351_v61 = vcombine.high (!%p297_p9), %v380_v58, %v388_v59  ;;  %v1350_v63 = vcombine.low (!%p297_p9), %v380_v58, %v388_v59  ;;  %v396_v0 = vld [vmem:[%s1787_s22 + $0x80] sm:$0xff] (!%p297_p9)  ;;  %v1353_v2 = vcombine.high (!%p297_p9), %v381_v60, %v389_v62  ;;  %v1352_v3 = vcombine.low (!%p297_p9), %v381_v60, %v389_v62  ;;  %v397_v5 = vld [vmem:[%s1787_s22 + $0x88] sm:$0xff] (!%p297_p9)  ;;  %v383_v26 = vld [vmem:[%s1787_s22 + $0x18] sm:$0xff] (!%p297_p9) }
  0x41   : > { %v404_v1 = vld [vmem:[%s1787_s22 + $0xc0] sm:$0xff]  ;;  %v405_v6 = vld [vmem:[%s1787_s22 + $0xc8] sm:$0xff]  ;;  %v391_v27 = vld [vmem:[%s1787_s22 + $0x58] sm:$0xff]  ;;  %v1355_v29 = vcombine.high %v382_v24, %v390_v25  ;;  %v1354_v37 = vcombine.low %v382_v24, %v390_v25  ;;  %s1942_s15 = smov (!%p333_p10, %s1567_s15), 1  ;;  %s1944_s24 = smov (!%p335_p11, %s1347_s24), 31 }
  0x42   : > { %v1367_v4 = vcombine.high %v396_v0, %v404_v1  ;;  %v412_v7 = vld [vmem:[%s1787_s22 + $0x100] sm:$0xff]  ;;  %769 = vmatprep.subr.bf16.mxu0 %v1351_v61  ;;  %v1369_v8 = vcombine.high %v397_v5, %v405_v6  ;;  %v413_v10 = vld [vmem:[%s1787_s22 + $0x108] sm:$0xff]  ;;  %810 = vmatprep.subr.bf16.mxu1 %v1353_v2  ;;  %v1366_v12 = vcombine.low %v396_v0, %v404_v1  ;;  %v398_v32 = vld [vmem:[%s1787_s22 + $0x90] sm:$0xff]  ;;  %s1348_s26 = sshll.u32 %s1942_s15, 5 }
  0x43   : > { %v420_v9 = vld [vmem:[%s1787_s22 + $0x140] sm:$0xff]  ;;  %v421_v11 = vld [vmem:[%s1787_s22 + $0x148] sm:$0xff]  ;;  %770 = vmatpush1.bf16.msra.mxu0 %v1350_v63  ;;  %811 = vmatpush1.bf16.msra.mxu1 %v1352_v3  ;;  %v1368_v13 = vcombine.low %v397_v5, %v405_v6  ;;  %v1357_v31 = vcombine.high %v383_v26, %v391_v27  ;;  %v406_v33 = vld [vmem:[%s1787_s22 + $0xd0] sm:$0xff]  ;;  %v1356_v38 = vcombine.low %v383_v26, %v391_v27  ;;  %s338_s27 = sadd.s32 %s1348_s26, %s1944_s24 }
  0x44   : > { %771 = vmatprep.subr.bf16.mxu0 %v1367_v4  ;;  %v1383_v14 = vcombine.high %v412_v7, %v420_v9  ;;  %812 = vmatprep.subr.bf16.mxu1 %v1369_v8  ;;  %v1385_v15 = vcombine.high %v413_v10, %v421_v11  ;;  %v428_v16 = vld [vmem:[%s1787_s22 + $0x180] sm:$0x77]  ;;  %v429_v17 = vld [vmem:[%s1787_s22 + $0x188] sm:$0x77]  ;;  %v1382_v18 = vcombine.low %v412_v7, %v420_v9  ;;  %v399_v34 = vld [vmem:[%s1787_s22 + $0x98] sm:$0xff]  ;;  %s1349_s28 = sshll.u32 %s338_s27, 2 }
  0x45   : > { %v1384_v19 = vcombine.low %v413_v10, %v421_v11  ;;  %v1399_v20 = vcombine.high %v428_v16, %v428_v16  ;;  %v1398_v21 = vcombine.low %v428_v16, %v428_v16  ;;  %v1401_v22 = vcombine.high %v429_v17, %v429_v17  ;;  %v407_v35 = vld [vmem:[%s1787_s22 + $0xd8] sm:$0xff]  ;;  %v414_v41 = vld [vmem:[%s1787_s22 + $0x110] sm:$0xff]  ;;  %v384_v58 = vld [vmem:[%s1787_s22 + $0x20] sm:$0xff]  ;;  %s1894_s14 = scalar_lea.vmem %s1928_s3, %s1349_s28 }
  0x46   : > { %v1400_v23 = vcombine.low %v429_v17, %v429_v17  ;;  %v1371_v39 = vcombine.high %v398_v32, %v406_v33  ;;  %v1373_v40 = vcombine.high %v399_v34, %v407_v35  ;;  %v422_v42 = vld [vmem:[%s1787_s22 + $0x150] sm:$0xff]  ;;  %v415_v43 = vld [vmem:[%s1787_s22 + $0x118] sm:$0xff]  ;;  %v1370_v45 = vcombine.low %v398_v32, %v406_v33  ;;  %v392_v59 = vld [vmem:[%s1787_s22 + $0x60] sm:$0xff] }
  0x47   : > { %772 = vmatpush1.bf16.msra.mxu0 %v1366_v12  ;;  %813 = vmatpush1.bf16.msra.mxu1 %v1368_v13  ;;  %v722_v28 = vsel %vm720_vm0, %v1398_v21, 0  ;;  %v423_v44 = vld [vmem:[%s1787_s22 + $0x158] sm:$0xff]  ;;  %v1372_v46 = vcombine.low %v399_v34, %v407_v35  ;;  %v1387_v47 = vcombine.high %v414_v41, %v422_v42  ;;  %v430_v49 = vld [vmem:[%s1787_s22 + $0x190] sm:$0x77]  ;;  %v1386_v51 = vcombine.low %v414_v41, %v422_v42  ;;  %v385_v60 = vld [vmem:[%s1787_s22 + $0x28] sm:$0xff] }
  0x48   : > { %773 = vmatprep.subr.bf16.mxu0 %v1383_v14  ;;  %814 = vmatprep.subr.bf16.mxu1 %v1385_v15  ;;  %v728_v30 = vsel %vm720_vm0, %v1400_v23, 0  ;;  %v1389_v48 = vcombine.high %v415_v43, %v423_v44  ;;  %v431_v50 = vld [vmem:[%s1787_s22 + $0x198] sm:$0x77]  ;;  %v1388_v52 = vcombine.low %v415_v43, %v423_v44  ;;  %v1403_v53 = vcombine.high %v430_v49, %v430_v49  ;;  %v393_v61 = vld [vmem:[%s1787_s22 + $0x68] sm:$0xff]  ;;  %v400_v2 = vld [vmem:[%s1787_s22 + $0xa0] sm:$0xff] }
  0x49   : > { %v1402_v54 = vcombine.low %v430_v49, %v430_v49  ;;  %v1405_v55 = vcombine.high %v431_v50, %v431_v50  ;;  %v1404_v57 = vcombine.low %v431_v50, %v431_v50  ;;  %v1359_v63 = vcombine.high %v384_v58, %v392_v59  ;;  %v408_v3 = vld [vmem:[%s1787_s22 + $0xe0] sm:$0xff]  ;;  %v401_v4 = vld [vmem:[%s1787_s22 + $0xa8] sm:$0xff]  ;;  %v386_v26 = vld [vmem:[%s1787_s22 + $0x30] sm:$0xff] }
  0x4a   : > { %v1361_v1 = vcombine.high %v385_v60, %v393_v61  ;;  %v409_v5 = vld [vmem:[%s1787_s22 + $0xe8] sm:$0xff]  ;;  %v1358_v6 = vcombine.low %v384_v58, %v392_v59  ;;  %v1360_v7 = vcombine.low %v385_v60, %v393_v61  ;;  %v1375_v8 = vcombine.high %v400_v2, %v408_v3  ;;  %v416_v10 = vld [vmem:[%s1787_s22 + $0x120] sm:$0xff]  ;;  %v394_v27 = vld [vmem:[%s1787_s22 + $0x70] sm:$0xff] }
  0x4b   : > { %774 = vmatpush1.bf16.msra.mxu0 %v1382_v18  ;;  %815 = vmatpush1.bf16.msra.mxu1 %v1384_v19  ;;  %v734_v62 = vsel %vm720_vm0, %v1402_v54, 0  ;;  %v740_v0 = vsel %vm720_vm0, %v1404_v57, 0  ;;  %v1377_v9 = vcombine.high %v401_v4, %v409_v5  ;;  %v424_v11 = vld [vmem:[%s1787_s22 + $0x160] sm:$0xff]  ;;  %v417_v12 = vld [vmem:[%s1787_s22 + $0x128] sm:$0xff]  ;;  %v1374_v14 = vcombine.low %v400_v2, %v408_v3  ;;  %v402_v34 = vld [vmem:[%s1787_s22 + $0xb0] sm:$0xff] }
  0x4c   : > { %1414 = vmatprep.subr.msk.bf16.mxu0 %vm720_vm0, %v1399_v20  ;;  %1416 = vmatprep.subr.msk.bf16.mxu1 %vm720_vm0, %v1401_v22  ;;  %v425_v13 = vld [vmem:[%s1787_s22 + $0x168] sm:$0xff]  ;;  %v1376_v15 = vcombine.low %v401_v4, %v409_v5  ;;  %v1391_v16 = vcombine.high %v416_v10, %v424_v11  ;;  %v432_v18 = vld [vmem:[%s1787_s22 + $0x1a0] sm:$0x77]  ;;  %v1390_v20 = vcombine.low %v416_v10, %v424_v11  ;;  %v410_v35 = vld [vmem:[%s1787_s22 + $0xf0] sm:$0xff] }
  0x4d   : > { %v1393_v17 = vcombine.high %v417_v12, %v425_v13  ;;  %v433_v19 = vld [vmem:[%s1787_s22 + $0x1a8] sm:$0x77]  ;;  %v1392_v21 = vcombine.low %v417_v12, %v425_v13  ;;  %v1407_v22 = vcombine.high %v432_v18, %v432_v18  ;;  %v1406_v23 = vcombine.low %v432_v18, %v432_v18  ;;  %v418_v43 = vld [vmem:[%s1787_s22 + $0x130] sm:$0xff] }
  0x4e   : > { %v1409_v24 = vcombine.high %v433_v19, %v433_v19  ;;  %v1408_v25 = vcombine.low %v433_v19, %v433_v19  ;;  %v1379_v41 = vcombine.high %v402_v34, %v410_v35  ;;  %v426_v44 = vld [vmem:[%s1787_s22 + $0x170] sm:$0xff] }
  0x4f   : > { %776 = vmatpush1.bf16.msra.mxu0 %v722_v28  ;;  %817 = vmatpush1.bf16.msra.mxu1 %v728_v30  ;;  %v387_v28 = vld [vmem:[%s1787_s22 + $0x38] sm:$0xff]  ;;  %v746_v30 = vsel %vm720_vm0, %v1406_v23, 0  ;;  %v1395_v49 = vcombine.high %v418_v43, %v426_v44 }
  0x50   : > { %851 = vmatprep.subr.bf16.mxu0 %v1355_v29  ;;  %892 = vmatprep.subr.bf16.mxu1 %v1357_v31  ;;  %v395_v29 = vld [vmem:[%s1787_s22 + $0x78] sm:$0xff]  ;;  %v1363_v31 = vcombine.high %v386_v26, %v394_v27  ;;  %v752_v32 = vsel %vm720_vm0, %v1408_v25, 0 }
  0x51   : > { %v1365_v33 = vcombine.high %v387_v28, %v395_v29 }
  0x52   : > { %1415 = vmatmul.mubr.msk.bf16.vlgmr.msra.gmra.mrb[0].mxu0 %vm716_vm1, %v1818_v36  ;;  %1417 = vmatmul.mubr.msk.bf16.vlgmr.msra.gmra.mrb[0].mxu1 %vm716_vm1, %v1818_v36 }
  0x53   : > { %852 = vmatpush1.bf16.msra.mxu0 %v1354_v37  ;;  %893 = vmatpush1.bf16.msra.mxu1 %v1356_v38  ;;  %v403_v37 = vld [vmem:[%s1787_s22 + $0xb8] sm:$0xff] }
  0x54   : > { %853 = vmatprep.subr.bf16.mxu0 %v1371_v39  ;;  %894 = vmatprep.subr.bf16.mxu1 %v1373_v40  ;;  %v411_v38 = vld [vmem:[%s1787_s22 + $0xf8] sm:$0xff]  ;;  %v1362_v39 = vcombine.low %v386_v26, %v394_v27  ;;  %v1364_v40 = vcombine.low %v387_v28, %v395_v29 }
  0x55   : > { %883 = vmatprep.mubr.bf16.mxu0 %v1581_v56  ;;  %924 = vmatprep.mubr.bf16.mxu1 %v1581_v56  ;;  %v1381_v42 = vcombine.high %v403_v37, %v411_v38 }
  0x57   : > { %854 = vmatpush1.bf16.msra.mxu0 %v1370_v45  ;;  %895 = vmatpush1.bf16.msra.mxu1 %v1372_v46  ;;  %v419_v45 = vld [vmem:[%s1787_s22 + $0x138] sm:$0xff] }
  0x58   : > { %855 = vmatprep.subr.bf16.mxu0 %v1387_v47  ;;  %896 = vmatprep.subr.bf16.mxu1 %v1389_v48  ;;  %v427_v46 = vld [vmem:[%s1787_s22 + $0x178] sm:$0xff]  ;;  %v1378_v47 = vcombine.low %v402_v34, %v410_v35  ;;  %v1380_v48 = vcombine.low %v403_v37, %v411_v38 }
  0x59   : > { %v1397_v50 = vcombine.high %v419_v45, %v427_v46  ;;  %v1396_v54 = vcombine.low %v419_v45, %v427_v46 }
  0x5b   : > { %856 = vmatpush1.bf16.msra.mxu0 %v1386_v51  ;;  %897 = vmatpush1.bf16.msra.mxu1 %v1388_v52  ;;  %v434_v51 = vld [vmem:[%s1787_s22 + $0x1b0] sm:$0x77]  ;;  %v435_v52 = vld [vmem:[%s1787_s22 + $0x1b8] sm:$0x77] }
  0x5c   : > { %1418 = vmatprep.subr.msk.bf16.mxu0 %vm720_vm0, %v1403_v53  ;;  %1420 = vmatprep.subr.msk.bf16.mxu1 %vm720_vm0, %v1405_v55  ;;  %v1394_v53 = vcombine.low %v418_v43, %v426_v44  ;;  %v1411_v55 = vcombine.high %v434_v51, %v434_v51  ;;  %v1410_v57 = vcombine.low %v434_v51, %v434_v51 }
  0x5d   : > { %v1413_v58 = vcombine.high %v435_v52, %v435_v52  ;;  %v1412_v59 = vcombine.low %v435_v52, %v435_v52 }
  0x5e   : > { %v758_v60 = vsel %vm720_vm0, %v1410_v57, 0 }
  0x5f   : > { %858 = vmatpush1.bf16.msra.mxu0 %v734_v62  ;;  %899 = vmatpush1.bf16.msra.mxu1 %v740_v0 }
  0x60   : > { %933 = vmatprep.subr.bf16.mxu0 %v1359_v63  ;;  %974 = vmatprep.subr.bf16.mxu1 %v1361_v1 }
  0x62   : > { %1419 = vmatmul.mubr.msk.bf16.vlgmr.msra.gmra.mrb[4].mxu0 %vm716_vm1, %v1818_v36  ;;  %1421 = vmatmul.mubr.msk.bf16.vlgmr.msra.gmra.mrb[4].mxu1 %vm716_vm1, %v1818_v36 }
  0x63   : > { %934 = vmatpush1.bf16.msra.mxu0 %v1358_v6  ;;  %975 = vmatpush1.bf16.msra.mxu1 %v1360_v7 }
  0x64   : > { %935 = vmatprep.subr.bf16.mxu0 %v1375_v8  ;;  %976 = vmatprep.subr.bf16.mxu1 %v1377_v9 }
  0x65   : > { %965 = vmatprep.mubr.bf16.mxu0 %v1581_v56  ;;  %1006 = vmatprep.mubr.bf16.mxu1 %v1581_v56 }
  0x67   : > { %936 = vmatpush1.bf16.msra.mxu0 %v1374_v14  ;;  %977 = vmatpush1.bf16.msra.mxu1 %v1376_v15 }
  0x68   : > { %937 = vmatprep.subr.bf16.mxu0 %v1391_v16  ;;  %978 = vmatprep.subr.bf16.mxu1 %v1393_v17 }
  0x6b   : > { %938 = vmatpush1.bf16.msra.mxu0 %v1390_v20  ;;  %979 = vmatpush1.bf16.msra.mxu1 %v1392_v21 }
  0x6c   : > { %1422 = vmatprep.subr.msk.bf16.mxu0 %vm720_vm0, %v1407_v22  ;;  %1424 = vmatprep.subr.msk.bf16.mxu1 %vm720_vm0, %v1409_v24 }
  0x6f   : > { %940 = vmatpush1.bf16.msra.mxu0 %v746_v30  ;;  %981 = vmatpush1.bf16.msra.mxu1 %v752_v32 }
  0x70   : > { %1015 = vmatprep.subr.bf16.mxu0 %v1363_v31  ;;  %1056 = vmatprep.subr.bf16.mxu1 %v1365_v33 }
  0x72   : > { %1423 = vmatmul.mubr.msk.bf16.vlgmr.msra.gmra.mrb[8].mxu0 %vm716_vm1, %v1818_v36  ;;  %1425 = vmatmul.mubr.msk.bf16.vlgmr.msra.gmra.mrb[8].mxu1 %vm716_vm1, %v1818_v36 }
  0x73   : > { %1016 = vmatpush1.bf16.msra.mxu0 %v1362_v39  ;;  %1057 = vmatpush1.bf16.msra.mxu1 %v1364_v40 }
  0x74   : > { %1017 = vmatprep.subr.bf16.mxu0 %v1379_v41  ;;  %1058 = vmatprep.subr.bf16.mxu1 %v1381_v42 }
  0x75   : > { %1047 = vmatprep.mubr.bf16.mxu0 %v1581_v56  ;;  %1088 = vmatprep.mubr.bf16.mxu1 %v1581_v56  ;;  %v764_v56 = vsel %vm720_vm0, %v1412_v59, 0 }
  0x77   : > { %1018 = vmatpush1.bf16.msra.mxu0 %v1378_v47  ;;  %1059 = vmatpush1.bf16.msra.mxu1 %v1380_v48 }
  0x78   : > { %1019 = vmatprep.subr.bf16.mxu0 %v1395_v49  ;;  %1060 = vmatprep.subr.bf16.mxu1 %v1397_v50 }
  0x7b   : > { %1020 = vmatpush1.bf16.msra.mxu0 %v1394_v53  ;;  %1061 = vmatpush1.bf16.msra.mxu1 %v1396_v54 }
  0x7c   : > { %1426 = vmatprep.subr.msk.bf16.mxu0 %vm720_vm0, %v1411_v55  ;;  %1428 = vmatprep.subr.msk.bf16.mxu1 %vm720_vm0, %v1413_v58 }
  0x7f   : > { %1022 = vmatpush1.bf16.msra.mxu0 %v758_v60  ;;  %1063 = vmatpush1.bf16.msra.mxu1 %v764_v56 }
  0x82   : > { %1427 = vmatmul.mubr.msk.bf16.vlgmr.msra.gmra.mrb[12].mxu0 %vm716_vm1, %v1818_v36  ;;  %1429 = vmatmul.mubr.msk.bf16.vlgmr.msra.gmra.mrb[12].mxu1 %vm716_vm1, %v1818_v36 }
  0xbb   : > { %v1152_v61 = vpop.permute.xlu0 %1151 }
 0x125   : > { %v803_v62 = vpop.f32.mrb[0].mxu0  ;;  %v844_v63 = vpop.f32.mrb[0].mxu1 }
 0x126   : > { %v805_v0 = vpop.f32.mrb[1].mxu0  ;;  %v1154_v1 = vadd.f32 %v1152_v61, %v803_v62  ;;  %v846_v3 = vpop.f32.mrb[1].mxu1  ;;  %v1156_v4 = vadd.f32 %v1152_v61, %v844_v63 }
 0x127   : > { %v1155_v2 = vadd.f32 %v1152_v61, %v805_v0  ;;  %v807_v5 = vpop.f32.mrb[2].mxu0  ;;  %v1157_v36 = vadd.f32 %v1152_v61, %v846_v3  ;;  %v848_v6 = vpop.f32.mrb[2].mxu1 }
 0x128   : > { %v808_v7 = vpop.f32.mrb[3].mxu0  ;;  %v849_v9 = vpop.f32.mrb[3].mxu1 }
 0x129   : > { %v1440_v8 = vpack.c.bf16 %v1155_v2, %v1154_v1  ;;  %v1441_v10 = vpack.c.bf16 %v1157_v36, %v1156_v4 }
 0x12b   : > { %1234 = vst [vmem:[%s1894_s14] sm:$0xff] %v1440_v8  ;;  %1235 = vst [vmem:[%s1894_s14 + $0x8] sm:$0xff] %v1441_v10 }
 0x135   : > { %v885_v11 = vpop.f32.mrb[4].mxu0  ;;  %v926_v13 = vpop.f32.mrb[4].mxu1 }
 0x136   : > { %v1158_v12 = vadd.f32 %v1152_v61, %v885_v11  ;;  %v887_v14 = vpop.f32.mrb[5].mxu0  ;;  %v1160_v15 = vadd.f32 %v1152_v61, %v926_v13  ;;  %v928_v17 = vpop.f32.mrb[5].mxu1 }
 0x137   : > { %v1159_v16 = vadd.f32 %v1152_v61, %v887_v14  ;;  %v889_v18 = vpop.f32.mrb[6].mxu0  ;;  %v1161_v19 = vadd.f32 %v1152_v61, %v928_v17  ;;  %v930_v20 = vpop.f32.mrb[6].mxu1 }
 0x138   : > { %v890_v21 = vpop.f32.mrb[7].mxu0  ;;  %v931_v23 = vpop.f32.mrb[7].mxu1 }
 0x139   : > { %v1442_v22 = vpack.c.bf16 %v1159_v16, %v1158_v12  ;;  %v1443_v24 = vpack.c.bf16 %v1161_v19, %v1160_v15 }
 0x13b   : > { %1236 = vst [vmem:[%s1894_s14 + $0x10] sm:$0xff] %v1442_v22  ;;  %1237 = vst [vmem:[%s1894_s14 + $0x18] sm:$0xff] %v1443_v24 }
 0x145   : > { %v967_v25 = vpop.f32.mrb[8].mxu0  ;;  %v1008_v27 = vpop.f32.mrb[8].mxu1 }
 0x146   : > { %v1162_v26 = vadd.f32 %v1152_v61, %v967_v25  ;;  %v969_v28 = vpop.f32.mrb[9].mxu0  ;;  %v1164_v29 = vadd.f32 %v1152_v61, %v1008_v27  ;;  %v1010_v31 = vpop.f32.mrb[9].mxu1 }
 0x147   : > { %v1163_v30 = vadd.f32 %v1152_v61, %v969_v28  ;;  %v971_v32 = vpop.f32.mrb[10].mxu0  ;;  %v1165_v33 = vadd.f32 %v1152_v61, %v1010_v31  ;;  %v1012_v34 = vpop.f32.mrb[10].mxu1 }
 0x148   : > { %v972_v35 = vpop.f32.mrb[11].mxu0  ;;  %v1013_v38 = vpop.f32.mrb[11].mxu1 }
 0x149   : > { %v1444_v37 = vpack.c.bf16 %v1163_v30, %v1162_v26  ;;  %v1445_v39 = vpack.c.bf16 %v1165_v33, %v1164_v29 }
 0x14b   : > { %1238 = vst [vmem:[%s1894_s14 + $0x20] sm:$0xff] %v1444_v37  ;;  %1239 = vst [vmem:[%s1894_s14 + $0x28] sm:$0xff] %v1445_v39 }
 0x155   : > { %v1049_v40 = vpop.f32.mrb[12].mxu0  ;;  %v1090_v42 = vpop.f32.mrb[12].mxu1 }
 0x156   : > { %v1166_v41 = vadd.f32 %v1152_v61, %v1049_v40  ;;  %v1051_v43 = vpop.f32.mrb[13].mxu0  ;;  %v1168_v44 = vadd.f32 %v1152_v61, %v1090_v42  ;;  %v1092_v46 = vpop.f32.mrb[13].mxu1 }
 0x157   : > { %v1167_v45 = vadd.f32 %v1152_v61, %v1051_v43  ;;  %v1053_v47 = vpop.f32.mrb[14].mxu0  ;;  %v1169_v48 = vadd.f32 %v1152_v61, %v1092_v46  ;;  %v1094_v49 = vpop.f32.mrb[14].mxu1 }
 0x158   : > { %v1054_v50 = vpop.f32.mrb[15].mxu0  ;;  %v1095_v52 = vpop.f32.mrb[15].mxu1 }
 0x159   : > { %v1446_v51 = vpack.c.bf16 %v1167_v45, %v1166_v41  ;;  %v1447_v53 = vpack.c.bf16 %v1169_v48, %v1168_v44 }
 0x15b   : > { %1240 = vst [vmem:[%s1894_s14 + $0x30] sm:$0xff] %v1446_v51  ;;  %1241 = vst [vmem:[%s1894_s14 + $0x38] sm:$0xff] %v1447_v53 }
 0x15c PF: > { %s13_s18 = sadd.s32 1, %s1579_s18   ;;  %s1929_s12 = smov %s1559_s13 }
 0x15d   : > { %p10_p12 = scmp.ge.s32.totalorder %s13_s18, 6   ;;  %s1930_s13 = smov %s1653_s25 }
 0x15e   : > { %s1931_s14 = smov %s1571_s16  ;;  %s1932_s15 = smov %s1575_s17 }
 0x15f   : > { %s1933_s16 = smov %s1936_s19  ;;  %s1934_s17 = smov %s1940_s20 }
 0x160   :  { %12 = sbr.rel (!%p10_p12) target bundleno = 4 (0x4), region = 98 }

</bundles_post_ra>
